<compile_context>
chip_gen: v6e
topology: v6e:2x2x1
jax: 0.10.0
libtpu: 0.0.40
codegen_flags: <defaults>
</compile_context>

<pallas_src>
import functools

import jax
import jax.numpy as jnp
from jax import lax
from jax.experimental import pallas as pl
from jax.experimental.pallas import tpu as pltpu

_GOLDEN = 0x9E3779B9  # 2**32 / golden ratio


def _mix32(x):
    """lowbias32 integer finalizer: uint32 -> well-mixed uint32 (pure VPU ops)."""
    x = x ^ (x >> 16)
    x = x * jnp.uint32(0x7FEB352D)
    x = x ^ (x >> 15)
    x = x * jnp.uint32(0x846CA68B)
    x = x ^ (x >> 16)
    return x


def _shift_zero_fill(m, axis, off):
    """result[i] = m[i - off] along `axis`; vacated positions are filled with 0."""
    size = m.shape[axis]
    if off == 0:
        return m
    if abs(off) >= size:
        return jnp.zeros_like(m)
    zshape = list(m.shape)
    zshape[axis] = abs(off)
    zeros = jnp.zeros(zshape, m.dtype)
    if off > 0:
        return jnp.concatenate(
            [zeros, lax.slice_in_dim(m, 0, size - off, axis=axis)], axis=axis)
    return jnp.concatenate(
        [lax.slice_in_dim(m, -off, size, axis=axis), zeros], axis=axis)


def _maxpool1d_same(m, axis, block_size):
    """1D max pool (kernel=block_size odd, stride=1, padding=block_size//2).

    Zero padding == PyTorch's -inf padded max pool because all pooled values are >= 0.
    """
    pad = block_size // 2
    out = m
    for off in range(1, pad + 1):
        out = jnp.maximum(out, _shift_zero_fill(m, axis, off))
        out = jnp.maximum(out, _shift_zero_fill(m, axis, -off))
    return out


def _keep_mask(seed_u32, group_idx, *, nc, D, H, W, gamma, block_size):
    """Regenerate the DropBlock keep mask (1=keep) for one (nc, D, H, W) channel group."""
    shape = (nc, D, H, W)
    c = (lax.broadcasted_iota(jnp.int32, shape, 0) + group_idx * nc).astype(jnp.uint32)
    d = lax.broadcasted_iota(jnp.int32, shape, 1).astype(jnp.uint32)
    h = lax.broadcasted_iota(jnp.int32, shape, 2).astype(jnp.uint32)
    w = lax.broadcasted_iota(jnp.int32, shape, 3).astype(jnp.uint32)
    # Global element index in (N*C, D, H, W) order -> tiling-invariant RNG.
    lin = ((c * jnp.uint32(D) + d) * jnp.uint32(H) + h) * jnp.uint32(W) + w
    bits = _mix32(_mix32(lin ^ (seed_u32 * jnp.uint32(_GOLDEN))))
    # Top 24 bits -> uniform [0,1); Bernoulli(gamma) like torch.rand_like(x) < gamma.
    u01 = (bits >> 8).astype(jnp.int32).astype(jnp.float32) * jnp.float32(2.0 ** -24)
    drop = jnp.where(u01 < jnp.float32(gamma), 1.0, 0.0)

    # W pool (lane axis) via a banded matmul on the otherwise-idle MXU: counts of
    # seeds in each W-window.  Exact in f32 (counts <= block_size).
    pad = block_size // 2
    wi = lax.broadcasted_iota(jnp.int32, (W, W), 0)
    wj = lax.broadcasted_iota(jnp.int32, (W, W), 1)
    band = jnp.where(jnp.abs(wi - wj) <= pad, 1.0, 0.0)
    counts = jnp.dot(drop.reshape(nc * D * H, W), band,
                     preferred_element_type=jnp.float32)
    m3 = counts.reshape(nc, D, H, W)
    # H (sublane) and D (major) pools via zero-filled shift + max (values >= 0).
    m3 = _maxpool1d_same(m3, 2, block_size)
    m3 = _maxpool1d_same(m3, 1, block_size)
    # Any seed in the 3D window  <=>  max of W-window counts > 0.
    return jnp.where(m3 > 0.5, 0.0, 1.0)


def _dropblock_sum_kernel(seed_ref, psum_ref, *, nc, D, H, W, gamma, block_size):
    # Pass 1: the mask depends only on the RNG -> no x read, just the per-group sum.
    g = pl.program_id(0)
    keep = _keep_mask(seed_ref[0].astype(jnp.uint32), g, nc=nc, D=D, H=H, W=W,
                      gamma=gamma, block_size=block_size)
    psum_ref[...] = jnp.broadcast_to(jnp.sum(keep), psum_ref.shape)


def _dropblock_apply_kernel(seed_ref, scale_ref, x_ref, o_ref, *, nc, D, H, W,
                            gamma, block_size):
    # Pass 2: regenerate the identical mask and apply the global scale.
    g = pl.program_id(0)
    keep = _keep_mask(seed_ref[0].astype(jnp.uint32), g, nc=nc, D=D, H=H, W=W,
                      gamma=gamma, block_size=block_size)
    o_ref[...] = (x_ref[...] * keep * scale_ref[0]).astype(o_ref.dtype)


def _compute_gamma(D, H, W, block_size, keep_prob):
    return (1.0 - keep_prob) / block_size ** 3 * (
        D * H * W / ((D - block_size + 1) * (H - block_size + 1) * (W - block_size + 1)))


def _pick_nc_per_tile(nc_total, dhw_bytes, target_bytes):
    best = 1
    for cand in range(1, nc_total + 1):
        if nc_total % cand == 0 and cand * dhw_bytes <= target_bytes:
            best = cand
    return best


def dropblock3d(x, seed, *, block_size, keep_prob, training=True,
                tile_target_bytes=2 << 20, nc_per_tile=None):
    """DropBlock3D forward. x: (N, C, D, H, W) float32; seed: int."""
    if (not training) or keep_prob == 1:
        return x

    N, C, D, H, W = x.shape
    NC = N * C
    assert block_size % 2 == 1, (
        "only odd block_size keeps the pooled mask the same shape as x "
        "(implicitly required by the PyTorch module)")
    gamma = _compute_gamma(D, H, W, block_size, keep_prob)

    if nc_per_tile is None:
        nc_per_tile = _pick_nc_per_tile(NC, D * H * W * x.dtype.itemsize,
                                        tile_target_bytes)
    assert NC % nc_per_tile == 0
    G = NC // nc_per_tile
    # TODO(synk): volumes where even a single channel slab (D*H*W*4B) overflows VMEM
    # would need halo-aware spatial tiling of the max pool; U-Net level sizes fit.

    xr = x.reshape(NC, D, H, W)                  # contiguous view, no transpose
    seed_arr = jnp.asarray([seed], dtype=jnp.int32)
    elems = NC * D * H * W
    tile_bytes = nc_per_tile * D * H * W * x.dtype.itemsize
    compiler_params = pltpu.CompilerParams(
        dimension_semantics=("parallel",),       # channel groups are independent
        vmem_limit_bytes=int(min(56 << 20, max(32 << 20, 12 * tile_bytes))))

    kw = dict(nc=nc_per_tile, D=D, H=H, W=W, gamma=gamma, block_size=block_size)
    per_elem_flops = 14 + 2 * W + 4 * (block_size // 2)   # hash + band matmul + pools

    # ---- Pass 1: per-group sum(keep); no x traffic at all. -----------------------
    partial = pl.pallas_call(
        functools.partial(_dropblock_sum_kernel, **kw),
        out_shape=jax.ShapeDtypeStruct((G, 1, 128), jnp.float32),
        grid_spec=pltpu.PrefetchScalarGridSpec(
            num_scalar_prefetch=1,               # seed -> SMEM
            grid=(G,),
            in_specs=[],
            out_specs=pl.BlockSpec((1, 1, 128), lambda g, seed: (g, 0, 0))),
        compiler_params=compiler_params,
        cost_estimate=pl.CostEstimate(flops=int((per_elem_flops + 1) * elems),
                                      transcendentals=0,
                                      bytes_accessed=int(G * 128 * 4)),
    )(seed_arr)

    total = jnp.sum(partial[:, 0, 0])
    scale = (float(elems) / jnp.maximum(total, 1.0)).astype(jnp.float32).reshape(1)

    # ---- Pass 2: regenerate the same mask, write x * keep * scale. ---------------
    out_r = pl.pallas_call(
        functools.partial(_dropblock_apply_kernel, **kw),
        out_shape=jax.ShapeDtypeStruct(xr.shape, x.dtype),
        grid_spec=pltpu.PrefetchScalarGridSpec(
            num_scalar_prefetch=2,               # seed, global scale -> SMEM
            grid=(G,),
            in_specs=[pl.BlockSpec((nc_per_tile, D, H, W),
                                   lambda g, seed, scale: (g, 0, 0, 0))],
            out_specs=pl.BlockSpec((nc_per_tile, D, H, W),
                                   lambda g, seed, scale: (g, 0, 0, 0))),
        compiler_params=compiler_params,
        cost_estimate=pl.CostEstimate(flops=int((per_elem_flops + 3) * elems),
                                      transcendentals=0,
                                      bytes_accessed=int(2 * elems * x.dtype.itemsize)),
    )(seed_arr, scale, xr)

    return out_r.reshape(N, C, D, H, W)


def dropblock3d_reference(x, seed, *, block_size, keep_prob):
    """Pure-jnp reference mirroring the kernel's hash RNG exactly (for testing)."""
    N, C, D, H, W = x.shape
    NC = N * C
    gamma = _compute_gamma(D, H, W, block_size, keep_prob)
    lin = jnp.arange(NC * D * H * W, dtype=jnp.uint32).reshape(NC, D, H, W)
    bits = _mix32(_mix32(lin ^ (jnp.uint32(seed) * jnp.uint32(_GOLDEN))))
    u01 = (bits >> 8).astype(jnp.int32).astype(jnp.float32) * jnp.float32(2.0 ** -24)
    drop = (u01 < jnp.float32(gamma)).astype(jnp.float32)
    pooled = _maxpool1d_same(drop, 1, block_size)
    pooled = _maxpool1d_same(pooled, 2, block_size)
    pooled = _maxpool1d_same(pooled, 3, block_size)
    keep = 1.0 - pooled
    scale = keep.size / jnp.maximum(jnp.sum(keep), 1.0)
    return (x.reshape(NC, D, H, W) * keep * scale).reshape(x.shape).astype(x.dtype)


if __name__ == "__main__":
    key = jax.random.PRNGKey(0)
    N, C, D, H, W = 2, 4, 8, 16, 16
    x = jax.random.normal(key, (N, C, D, H, W), dtype=jnp.float32)

    # Training mode, block_size 3.
    y = dropblock3d(x, seed=0, block_size=3, keep_prob=0.9, training=True)
    y = jax.block_until_ready(y)
    assert y.shape == x.shape and y.dtype == x.dtype
    assert bool(jnp.all(jnp.isfinite(y)))

    # Matches the pure-jnp reference (same hash RNG -> same mask and global scale).
    y_ref = dropblock3d_reference(x, seed=0, block_size=3, keep_prob=0.9)
    assert bool(jnp.allclose(y, y_ref, rtol=1e-5, atol=1e-5))

    # Tiling invariance: forcing a 4-step grid over channel groups gives the same
    # result because the RNG hashes the global element index and the normalization
    # still uses the global sum.
    y_tiled = dropblock3d(x, seed=0, block_size=3, keep_prob=0.9, training=True,
                          nc_per_tile=2)
    y_tiled = jax.block_until_ready(y_tiled)
    assert bool(jnp.allclose(y, y_tiled, rtol=1e-5, atol=1e-5))

    # Eval-mode / keep_prob == 1 passthrough.
    y_eval = dropblock3d(x, seed=0, block_size=3, keep_prob=0.9, training=False)
    assert bool(jnp.all(y_eval == x))

    print("KERNEL_OK")
</pallas_src>

<mosaic_0001>
module attributes {stable_mosaic.version = 11 : i64} {
  func.func @_dropblock_sum_kernel(%arg0: i32, %arg1: memref<1xi32, #tpu.memory_space<smem>>, %arg2: memref<1x1x128xf32, #tpu.memory_space<vmem>>) attributes {dimension_semantics = [#tpu.dimension_semantics<parallel>], iteration_bounds = array<i64: 1>, scalar_prefetch = 1 : i64, scratch_operands = 0 : i64, tpu.core_type = #tpu.core_type<tc>, window_params = [{transform_indices = @transform_0, window_bounds = array<i64: 1, 1, 128>}]} {
    %c0 = arith.constant 0 : index
    %0 = memref.load %arg1[%c0] : memref<1xi32, #tpu.memory_space<smem>>
    %1 = tpu.iota {dimensions = array<i32: 0>} : vector<8x8x16x16xi32>
    %c8_i32 = arith.constant 8 : i32
    %2 = arith.muli %arg0, %c8_i32 : i32
    %3 = vector.broadcast %2 : i32 to vector<8x8x16x16xi32>
    %4 = arith.addi %1, %3 : vector<8x8x16x16xi32>
    %5 = tpu.iota {dimensions = array<i32: 1>} : vector<8x8x16x16xi32>
    %6 = tpu.iota {dimensions = array<i32: 2>} : vector<8x8x16x16xi32>
    %7 = tpu.iota {dimensions = array<i32: 3>} : vector<8x8x16x16xi32>
    %c8_i32_0 = arith.constant 8 : i32
    %8 = vector.broadcast %c8_i32_0 : i32 to vector<8x8x16x16xi32>
    %9 = arith.muli %4, %8 : vector<8x8x16x16xi32>
    %10 = arith.addi %9, %5 : vector<8x8x16x16xi32>
    %c16_i32 = arith.constant 16 : i32
    %11 = vector.broadcast %c16_i32 : i32 to vector<8x8x16x16xi32>
    %12 = arith.muli %10, %11 : vector<8x8x16x16xi32>
    %13 = arith.addi %12, %6 : vector<8x8x16x16xi32>
    %c16_i32_1 = arith.constant 16 : i32
    %14 = vector.broadcast %c16_i32_1 : i32 to vector<8x8x16x16xi32>
    %15 = arith.muli %13, %14 : vector<8x8x16x16xi32>
    %16 = arith.addi %15, %7 : vector<8x8x16x16xi32>
    %c-1640531527_i32 = arith.constant -1640531527 : i32
    %17 = arith.muli %0, %c-1640531527_i32 : i32
    %18 = vector.broadcast %17 : i32 to vector<8x8x16x16xi32>
    %19 = arith.xori %16, %18 : vector<8x8x16x16xi32>
    %c16_i32_2 = arith.constant 16 : i32
    %20 = vector.broadcast %c16_i32_2 : i32 to vector<8x8x16x16xi32>
    %21 = arith.shrui %19, %20 : vector<8x8x16x16xi32>
    %22 = arith.xori %19, %21 : vector<8x8x16x16xi32>
    %c2146121005_i32 = arith.constant 2146121005 : i32
    %23 = vector.broadcast %c2146121005_i32 : i32 to vector<8x8x16x16xi32>
    %24 = arith.muli %22, %23 : vector<8x8x16x16xi32>
    %c15_i32 = arith.constant 15 : i32
    %25 = vector.broadcast %c15_i32 : i32 to vector<8x8x16x16xi32>
    %26 = arith.shrui %24, %25 : vector<8x8x16x16xi32>
    %27 = arith.xori %24, %26 : vector<8x8x16x16xi32>
    %c-2073254261_i32 = arith.constant -2073254261 : i32
    %28 = vector.broadcast %c-2073254261_i32 : i32 to vector<8x8x16x16xi32>
    %29 = arith.muli %27, %28 : vector<8x8x16x16xi32>
    %c16_i32_3 = arith.constant 16 : i32
    %30 = vector.broadcast %c16_i32_3 : i32 to vector<8x8x16x16xi32>
    %31 = arith.shrui %29, %30 : vector<8x8x16x16xi32>
    %32 = arith.xori %29, %31 : vector<8x8x16x16xi32>
    %c16_i32_4 = arith.constant 16 : i32
    %33 = vector.broadcast %c16_i32_4 : i32 to vector<8x8x16x16xi32>
    %34 = arith.shrui %32, %33 : vector<8x8x16x16xi32>
    %35 = arith.xori %32, %34 : vector<8x8x16x16xi32>
    %c2146121005_i32_5 = arith.constant 2146121005 : i32
    %36 = vector.broadcast %c2146121005_i32_5 : i32 to vector<8x8x16x16xi32>
    %37 = arith.muli %35, %36 : vector<8x8x16x16xi32>
    %c15_i32_6 = arith.constant 15 : i32
    %38 = vector.broadcast %c15_i32_6 : i32 to vector<8x8x16x16xi32>
    %39 = arith.shrui %37, %38 : vector<8x8x16x16xi32>
    %40 = arith.xori %37, %39 : vector<8x8x16x16xi32>
    %c-2073254261_i32_7 = arith.constant -2073254261 : i32
    %41 = vector.broadcast %c-2073254261_i32_7 : i32 to vector<8x8x16x16xi32>
    %42 = arith.muli %40, %41 : vector<8x8x16x16xi32>
    %c16_i32_8 = arith.constant 16 : i32
    %43 = vector.broadcast %c16_i32_8 : i32 to vector<8x8x16x16xi32>
    %44 = arith.shrui %42, %43 : vector<8x8x16x16xi32>
    %45 = arith.xori %42, %44 : vector<8x8x16x16xi32>
    %c8_i32_9 = arith.constant 8 : i32
    %46 = vector.broadcast %c8_i32_9 : i32 to vector<8x8x16x16xi32>
    %47 = arith.shrui %45, %46 : vector<8x8x16x16xi32>
    %48 = arith.sitofp %47 : vector<8x8x16x16xi32> to vector<8x8x16x16xf32>
    %cst = arith.constant 5.96046448E-8 : f32
    %49 = vector.broadcast %cst : f32 to vector<8x8x16x16xf32>
    %50 = arith.mulf %48, %49 : vector<8x8x16x16xf32>
    %cst_10 = arith.constant 0.00644998718 : f32
    %51 = vector.broadcast %cst_10 : f32 to vector<8x8x16x16xf32>
    %52 = arith.cmpf olt, %50, %51 : vector<8x8x16x16xf32>
    %cst_11 = arith.constant 1.000000e+00 : f32
    %cst_12 = arith.constant 0.000000e+00 : f32
    %53 = vector.broadcast %cst_11 : f32 to vector<8x8x16x16xf32>
    %54 = vector.broadcast %cst_12 : f32 to vector<8x8x16x16xf32>
    %55 = arith.select %52, %53, %54 : vector<8x8x16x16xi1>, vector<8x8x16x16xf32>
    %56 = tpu.iota {dimensions = array<i32: 0>} : vector<16x16xi32>
    %57 = tpu.iota {dimensions = array<i32: 1>} : vector<16x16xi32>
    %58 = arith.subi %56, %57 : vector<16x16xi32>
    %59 = math.absi %58 : vector<16x16xi32>
    %c1_i32 = arith.constant 1 : i32
    %60 = vector.broadcast %c1_i32 : i32 to vector<16x16xi32>
    %61 = arith.cmpi sle, %59, %60 : vector<16x16xi32>
    %cst_13 = arith.constant 1.000000e+00 : f32
    %cst_14 = arith.constant 0.000000e+00 : f32
    %62 = vector.broadcast %cst_13 : f32 to vector<16x16xf32>
    %63 = vector.broadcast %cst_14 : f32 to vector<16x16xf32>
    %64 = arith.select %61, %62, %63 : vector<16x16xi1>, vector<16x16xf32>
    %65 = vector.shape_cast %55 : vector<8x8x16x16xf32> to vector<1024x16xf32>
    %cst_15 = arith.constant dense<0.000000e+00> : vector<1024x16xf32>
    %66 = tpu.matmul %65, %64, %cst_15 {dimension_numbers = #tpu.dot_dimension_numbers<[1], [0], [0], [1], [0, 0, 1, 1], [], []>} : vector<1024x16xf32>, vector<16x16xf32>, vector<1024x16xf32> -> vector<1024x16xf32>
    %67 = vector.shape_cast %66 : vector<1024x16xf32> to vector<8x8x16x16xf32>
    %cst_16 = arith.constant 0.000000e+00 : f32
    %68 = vector.broadcast %cst_16 : f32 to vector<8x8x1x16xf32>
    %69 = vector.extract_strided_slice %67 {offsets = [0, 0, 0, 0], sizes = [8, 8, 15, 16], strides = [1, 1, 1, 1]} : vector<8x8x16x16xf32> to vector<8x8x15x16xf32>
    %70 = tpu.concatenate %68, %69 in 2 : vector<8x8x1x16xf32>, vector<8x8x15x16xf32> -> vector<8x8x16x16xf32>
    %71 = arith.maximumf %67, %70 : vector<8x8x16x16xf32>
    %cst_17 = arith.constant 0.000000e+00 : f32
    %72 = vector.broadcast %cst_17 : f32 to vector<8x8x1x16xf32>
    %73 = vector.extract_strided_slice %67 {offsets = [0, 0, 1, 0], sizes = [8, 8, 15, 16], strides = [1, 1, 1, 1]} : vector<8x8x16x16xf32> to vector<8x8x15x16xf32>
    %74 = tpu.concatenate %73, %72 in 2 : vector<8x8x15x16xf32>, vector<8x8x1x16xf32> -> vector<8x8x16x16xf32>
    %75 = arith.maximumf %71, %74 : vector<8x8x16x16xf32>
    %cst_18 = arith.constant 0.000000e+00 : f32
    %76 = vector.broadcast %cst_18 : f32 to vector<8x1x16x16xf32>
    %77 = vector.extract_strided_slice %75 {offsets = [0, 0, 0, 0], sizes = [8, 7, 16, 16], strides = [1, 1, 1, 1]} : vector<8x8x16x16xf32> to vector<8x7x16x16xf32>
    %78 = tpu.concatenate %76, %77 in 1 : vector<8x1x16x16xf32>, vector<8x7x16x16xf32> -> vector<8x8x16x16xf32>
    %79 = arith.maximumf %75, %78 : vector<8x8x16x16xf32>
    %cst_19 = arith.constant 0.000000e+00 : f32
    %80 = vector.broadcast %cst_19 : f32 to vector<8x1x16x16xf32>
    %81 = vector.extract_strided_slice %75 {offsets = [0, 1, 0, 0], sizes = [8, 7, 16, 16], strides = [1, 1, 1, 1]} : vector<8x8x16x16xf32> to vector<8x7x16x16xf32>
    %82 = tpu.concatenate %81, %80 in 1 : vector<8x7x16x16xf32>, vector<8x1x16x16xf32> -> vector<8x8x16x16xf32>
    %83 = arith.maximumf %79, %82 : vector<8x8x16x16xf32>
    %cst_20 = arith.constant 5.000000e-01 : f32
    %84 = vector.broadcast %cst_20 : f32 to vector<8x8x16x16xf32>
    %85 = arith.cmpf ogt, %83, %84 : vector<8x8x16x16xf32>
    %cst_21 = arith.constant 0.000000e+00 : f32
    %cst_22 = arith.constant 1.000000e+00 : f32
    %86 = vector.broadcast %cst_21 : f32 to vector<8x8x16x16xf32>
    %87 = vector.broadcast %cst_22 : f32 to vector<8x8x16x16xf32>
    %88 = arith.select %85, %86, %87 : vector<8x8x16x16xi1>, vector<8x8x16x16xf32>
    %89 = vector.shape_cast %88 : vector<8x8x16x16xf32> to vector<1x8x8x16x16xf32>
    %cst_23 = arith.constant dense<0.000000e+00> : vector<1xf32>
    %90 = vector.multi_reduction <add>, %89, %cst_23 [1, 2, 3, 4] : vector<1x8x8x16x16xf32> to vector<1xf32>
    %91 = vector.shape_cast %90 : vector<1xf32> to vector<1x1x1x1x1xf32>
    %92 = vector.extract %91[0, 0, 0, 0, 0] : f32 from vector<1x1x1x1x1xf32>
    %93 = vector.broadcast %92 : f32 to vector<1x1x128xf32>
    %c0_24 = arith.constant 0 : index
    %c0_25 = arith.constant 0 : index
    %c0_26 = arith.constant 0 : index
    %94 = vector.load %arg2[%c0_24, %c0_25, %c0_26] : memref<1x1x128xf32, #tpu.memory_space<vmem>>, vector<1x1x128xf32>
    tpu.vector_store %arg2[%c0_24, %c0_25, %c0_26], %93 {strides = array<i32>} : memref<1x1x128xf32, #tpu.memory_space<vmem>>, vector<1x1x128xf32>,
    return
  }
  func.func @transform_0(%arg0: i32, %arg1: memref<1xi32, #tpu.memory_space<smem>>) -> (i32, i32, i32) {
    %c0_i32 = arith.constant 0 : i32
    %c0_i32_0 = arith.constant 0 : i32
    %c0_i32_1 = arith.constant 0 : i32
    return %arg0, %c0_i32, %c0_i32_0 : i32, i32, i32
  }
}

</mosaic_0001>

<bundles_post_ra>
// kernel: tpu_custom_call.1
= control target key start
LH: loop header
LB: loop body
LE: loop exit
PB: predicated region body
PF: predicated region fallthrough
CT: control target
= control target key end

     0   :  { %v18_v0 = vlaneseq  ;;  %s9066_s0 = inlined_call_operand.<no memory space> [shape: s32[1], index: 0, kind: input, shape index: {}]   ;;  %s9067_s1 = inlined_call_operand.hbm [shape: f32[1,1,128], index: 1, kind: output, shape index: {}]  }
   0x1   :  { %s535_s8 = smul.u32 2654435769, %s9066_s0 }
   0x2   :  { %7 = vsyncpa [#allocation5], 0  ;;  %v6906_v1 = vshrl.u32 %v18_v0, 7  ;;  %v6908_v2 = vand.u32 127, %v18_v0  ;;  %v6890_v38 = vmov 1.0   ;;  %vm3365_vm2 = vcmask 130048  }
   0x3   :  { %v6910_v3 = vstv %s535_s8  ;;  %s6892_s0 = smov [#allocation4]  }
   0x4   :  { %v6913_v4 = vadd.s32 8, %v6906_v1  ;;  %v3353_v5 = vsub.s32 %v6906_v1, %v6908_v2  ;;  %v279_v6 = vmul.u32 16, %v6906_v1  ;;  %v153_v7 = vadd.s32 16, %v6906_v1  ;;  %s6393_s9 = sshll.u32 %s6892_s0, 4  ;;  %s6394_s9 = int_to_ptr.vmem [resolvable:$true] %s6393_s9 }
   0x5   :  { %v155_v8 = vadd.s32 32, %v6906_v1  ;;  %v157_v9 = vadd.s32 48, %v6906_v1  ;;  %v6922_v10 = vadd.s32 64, %v6906_v1  ;;  %v6925_v11 = vadd.s32 80, %v6906_v1  ;;  %s6868_s11 = scalar_lea.vmem %s6394_s9, 16  ;;  %s6872_s12 = scalar_lea.vmem %s6394_s9, 32 }
   0x6   :  { %v3354_v12 = vsub.s32 %v6913_v4, %v6908_v2  ;;  %v3356_v13 = vsub.s32 0, %v3353_v5  ;;  %v407_v14 = vadd.s32 %v279_v6, %v6908_v2  ;;  %v280_v15 = vmul.u32 16, %v6913_v4  ;;  %p6869_p0 = scmp.ne.s32.totalorder %s6394_s9, %s6868_s11  ;;  %p6873_p1 = scmp.lt.s32.totalorder %s6394_s9, %s6394_s9 }
   0x7   :  { %v281_v16 = vmul.u32 16, %v153_v7  ;;  %v154_v17 = vadd.s32 16, %v6913_v4  ;;  %v283_v18 = vmul.u32 16, %v155_v8  ;;  %v156_v19 = vadd.s32 32, %v6913_v4  ;;  %p6874_p2 = scmp.lt.s32.totalorder %s6872_s12, %s6868_s11 }
   0x8   :  { %v3359_v20 = vsub.s32 0, %v3354_v12  ;;  %v6401_v21 = vmin.u32 %v3356_v13, %v3353_v5  ;;  %v537_v22 = vxor.u32 %v6910_v3, %v407_v14  ;;  %v408_v23 = vadd.s32 %v280_v15, %v6908_v2 }
   0x9   :  { %v409_v24 = vadd.s32 %v281_v16, %v6908_v2  ;;  %v282_v25 = vmul.u32 16, %v154_v17  ;;  %v411_v26 = vadd.s32 %v283_v18, %v6908_v2  ;;  %v284_v27 = vmul.u32 16, %v156_v19  ;;  %p6875_p3 = por %p6874_p2, %p6873_p1 }
   0xa   :  { %v6402_v28 = vmin.u32 %v3359_v20, %v3354_v12  ;;  %vm3361_vm0 = vcmp.le.s32.totalorder %v6401_v21, 1  ;;  %v665_v29 = vshrl.u32 %v537_v22, 16  ;;  %v538_v30 = vxor.u32 %v6910_v3, %v408_v23 }
   0xb   :  { %v539_v31 = vxor.u32 %v6910_v3, %v409_v24  ;;  %v410_v32 = vadd.s32 %v282_v25, %v6908_v2  ;;  %v541_v33 = vxor.u32 %v6910_v3, %v411_v26  ;;  %v412_v34 = vadd.s32 %v284_v27, %v6908_v2  ;;  %p6876_p4 = pnand %p6875_p3, %p6869_p0 }
   0xc   :  { %vm3362_vm1 = vcmp.le.s32.totalorder %v6402_v28, 1  ;;  %v793_v35 = vxor.u32 %v665_v29, %v537_v22  ;;  %v666_v36 = vshrl.u32 %v538_v30, 16  ;;  %v285_v37 = vmul.u32 16, %v157_v9 }
   0xd   :  { %6663 = vmatprep.subr.msk.mxu0 %vm3362_vm1, %v6890_v38  ;;  %v667_v39 = vshrl.u32 %v539_v31, 16  ;;  %v540_v40 = vxor.u32 %v6910_v3, %v410_v32  ;;  %v669_v41 = vshrl.u32 %v541_v33, 16  ;;  %v542_v42 = vxor.u32 %v6910_v3, %v412_v34  ;;  %6859 = vmatprep.subr.msk.mxu1 %vm3362_vm1, %v6890_v38 }
   0xe   :  { %6664 = vmatpush3.msk.msra.mxu0 %vm3362_vm1, %v6890_v38  ;;  %v921_v43 = vmul.u32 2146121005, %v793_v35  ;;  %v794_v44 = vxor.u32 %v666_v36, %v538_v30  ;;  %v413_v45 = vadd.s32 %v285_v37, %v6908_v2  ;;  %v158_v46 = vadd.s32 48, %v6913_v4  ;;  %6861 = vmatpush3.msk.msra.mxu1 %vm3362_vm1, %v6890_v38 }
   0xf   :  { %6665 = vmatprep.subr.msk.mxu0 %vm3361_vm0, %v6890_v38  ;;  %v795_v47 = vxor.u32 %v667_v39, %v539_v31  ;;  %v668_v48 = vshrl.u32 %v540_v40, 16  ;;  %v797_v49 = vxor.u32 %v669_v41, %v541_v33  ;;  %v670_v50 = vshrl.u32 %v542_v42, 16  ;;  %6860 = vmatprep.subr.msk.mxu1 %vm3361_vm0, %v6890_v38 }
  0x10   :  { %6666 = vmatpush3.msk.msra.mxu0 %vm3361_vm0, %v6890_v38  ;;  %v1049_v51 = vshrl.u32 %v921_v43, 15  ;;  %v922_v52 = vmul.u32 2146121005, %v794_v44  ;;  %v543_v53 = vxor.u32 %v6910_v3, %v413_v45  ;;  %v286_v54 = vmul.u32 16, %v158_v46  ;;  %6862 = vmatpush3.msk.msra.mxu1 %vm3361_vm0, %v6890_v38 }
  0x11   :  { %v923_v55 = vmul.u32 2146121005, %v795_v47  ;;  %v796_v56 = vxor.u32 %v668_v48, %v540_v40  ;;  %v925_v57 = vmul.u32 2146121005, %v797_v49  ;;  %v798_v58 = vxor.u32 %v670_v50, %v542_v42 }
  0x12   :  { %v1177_v59 = vxor.u32 %v1049_v51, %v921_v43  ;;  %v1050_v60 = vshrl.u32 %v922_v52, 15  ;;  %v671_v61 = vshrl.u32 %v543_v53, 16  ;;  %v414_v62 = vadd.s32 %v286_v54, %v6908_v2 }
  0x13   :  { %v1051_v63 = vshrl.u32 %v923_v55, 15  ;;  %v924_v0 = vmul.u32 2146121005, %v796_v56  ;;  %v1053_v5 = vshrl.u32 %v925_v57, 15  ;;  %v926_v6 = vmul.u32 2146121005, %v798_v58 }
  0x14   :  { %v1305_v7 = vmul.u32 2221713035, %v1177_v59  ;;  %v1178_v8 = vxor.u32 %v1050_v60, %v922_v52  ;;  %v799_v9 = vxor.u32 %v671_v61, %v543_v53  ;;  %v544_v12 = vxor.u32 %v6910_v3, %v414_v62 }
  0x15   :  { %v1179_v13 = vxor.u32 %v1051_v63, %v923_v55  ;;  %v1052_v14 = vshrl.u32 %v924_v0, 15  ;;  %v1181_v15 = vxor.u32 %v1053_v5, %v925_v57  ;;  %v1054_v16 = vshrl.u32 %v926_v6, 15 }
  0x16   :  { %v1433_v17 = vshrl.u32 %v1305_v7, 16  ;;  %v1306_v18 = vmul.u32 2221713035, %v1178_v8  ;;  %v927_v19 = vmul.u32 2146121005, %v799_v9  ;;  %v672_v20 = vshrl.u32 %v544_v12, 16 }
  0x17   :  { %v1307_v21 = vmul.u32 2221713035, %v1179_v13  ;;  %v1180_v22 = vxor.u32 %v1052_v14, %v924_v0  ;;  %v1309_v23 = vmul.u32 2221713035, %v1181_v15  ;;  %v1182_v24 = vxor.u32 %v1054_v16, %v926_v6 }
  0x18   :  { %v1561_v25 = vxor.u32 %v1433_v17, %v1305_v7  ;;  %v1434_v26 = vshrl.u32 %v1306_v18, 16  ;;  %v1055_v27 = vshrl.u32 %v927_v19, 15  ;;  %v800_v28 = vxor.u32 %v672_v20, %v544_v12 }
  0x19   :  { %v1435_v29 = vshrl.u32 %v1307_v21, 16  ;;  %v1308_v30 = vmul.u32 2221713035, %v1180_v22  ;;  %v1437_v31 = vshrl.u32 %v1309_v23, 16  ;;  %v1310_v32 = vmul.u32 2221713035, %v1182_v24 }
  0x1a   :  { %v1689_v33 = vshrl.u32 %v1561_v25, 16  ;;  %v1562_v34 = vxor.u32 %v1434_v26, %v1306_v18  ;;  %v1183_v35 = vxor.u32 %v1055_v27, %v927_v19  ;;  %v928_v36 = vmul.u32 2146121005, %v800_v28 }
  0x1b   :  { %v1563_v37 = vxor.u32 %v1435_v29, %v1307_v21  ;;  %v1436_v39 = vshrl.u32 %v1308_v30, 16  ;;  %v1565_v40 = vxor.u32 %v1437_v31, %v1309_v23  ;;  %v1438_v41 = vshrl.u32 %v1310_v32, 16 }
  0x1c   :  { %v1817_v42 = vxor.u32 %v1689_v33, %v1561_v25  ;;  %v1690_v43 = vshrl.u32 %v1562_v34, 16  ;;  %v1311_v44 = vmul.u32 2221713035, %v1183_v35  ;;  %v1056_v45 = vshrl.u32 %v928_v36, 15 }
  0x1d   :  { %v1691_v46 = vshrl.u32 %v1563_v37, 16  ;;  %v1564_v47 = vxor.u32 %v1436_v39, %v1308_v30  ;;  %v1693_v48 = vshrl.u32 %v1565_v40, 16  ;;  %v1566_v49 = vxor.u32 %v1438_v41, %v1310_v32 }
  0x1e   :  { %v1945_v50 = vmul.u32 2146121005, %v1817_v42  ;;  %v1818_v51 = vxor.u32 %v1690_v43, %v1562_v34  ;;  %v1439_v52 = vshrl.u32 %v1311_v44, 16  ;;  %v1184_v53 = vxor.u32 %v1056_v45, %v928_v36 }
  0x1f   :  { %v1819_v54 = vxor.u32 %v1691_v46, %v1563_v37  ;;  %v1692_v55 = vshrl.u32 %v1564_v47, 16  ;;  %v1821_v56 = vxor.u32 %v1693_v48, %v1565_v40  ;;  %v1694_v57 = vshrl.u32 %v1566_v49, 16 }
  0x20   :  { %v2073_v58 = vshrl.u32 %v1945_v50, 15  ;;  %v1946_v59 = vmul.u32 2146121005, %v1818_v51  ;;  %v1567_v60 = vxor.u32 %v1439_v52, %v1311_v44  ;;  %v1312_v61 = vmul.u32 2221713035, %v1184_v53 }
  0x21   :  { %v1947_v62 = vmul.u32 2146121005, %v1819_v54  ;;  %v1820_v63 = vxor.u32 %v1692_v55, %v1564_v47  ;;  %v1949_v0 = vmul.u32 2146121005, %v1821_v56  ;;  %v1822_v5 = vxor.u32 %v1694_v57, %v1566_v49 }
  0x22   :  { %v2201_v6 = vxor.u32 %v2073_v58, %v1945_v50  ;;  %v2074_v7 = vshrl.u32 %v1946_v59, 15  ;;  %v1695_v8 = vshrl.u32 %v1567_v60, 16  ;;  %v1440_v9 = vshrl.u32 %v1312_v61, 16 }
  0x23   :  { %v2075_v12 = vshrl.u32 %v1947_v62, 15  ;;  %v1948_v13 = vmul.u32 2146121005, %v1820_v63  ;;  %v2077_v14 = vshrl.u32 %v1949_v0, 15  ;;  %v1950_v15 = vmul.u32 2146121005, %v1822_v5 }
  0x24   :  { %v2329_v16 = vmul.u32 2221713035, %v2201_v6  ;;  %v2202_v17 = vxor.u32 %v2074_v7, %v1946_v59  ;;  %v1823_v18 = vxor.u32 %v1695_v8, %v1567_v60  ;;  %v1568_v19 = vxor.u32 %v1440_v9, %v1312_v61 }
  0x25   :  { %v2203_v20 = vxor.u32 %v2075_v12, %v1947_v62  ;;  %v2076_v21 = vshrl.u32 %v1948_v13, 15  ;;  %v2205_v22 = vxor.u32 %v2077_v14, %v1949_v0  ;;  %v2078_v23 = vshrl.u32 %v1950_v15, 15 }
  0x26   :  { %v2457_v24 = vshrl.u32 %v2329_v16, 16  ;;  %v2330_v25 = vmul.u32 2221713035, %v2202_v17  ;;  %v1951_v26 = vmul.u32 2146121005, %v1823_v18  ;;  %v1696_v27 = vshrl.u32 %v1568_v19, 16 }
  0x27   :  { %v2331_v28 = vmul.u32 2221713035, %v2203_v20  ;;  %v2204_v29 = vxor.u32 %v2076_v21, %v1948_v13  ;;  %v2333_v30 = vmul.u32 2221713035, %v2205_v22  ;;  %v2206_v31 = vxor.u32 %v2078_v23, %v1950_v15 }
  0x28   :  { %v2585_v32 = vxor.u32 %v2457_v24, %v2329_v16  ;;  %v2458_v33 = vshrl.u32 %v2330_v25, 16  ;;  %v2079_v34 = vshrl.u32 %v1951_v26, 15  ;;  %v1824_v35 = vxor.u32 %v1696_v27, %v1568_v19 }
  0x29   :  { %v2459_v36 = vshrl.u32 %v2331_v28, 16  ;;  %v2332_v37 = vmul.u32 2221713035, %v2204_v29  ;;  %v2461_v39 = vshrl.u32 %v2333_v30, 16  ;;  %v2334_v40 = vmul.u32 2221713035, %v2206_v31 }
  0x2a   :  { %v2713_v41 = vshrl.u32 %v2585_v32, 8  ;;  %v2586_v42 = vxor.u32 %v2458_v33, %v2330_v25  ;;  %v2207_v43 = vxor.u32 %v2079_v34, %v1951_v26  ;;  %v1952_v44 = vmul.u32 2146121005, %v1824_v35 }
  0x2b   :  { %v2587_v45 = vxor.u32 %v2459_v36, %v2331_v28  ;;  %v2460_v46 = vshrl.u32 %v2332_v37, 16  ;;  %v2589_v47 = vxor.u32 %v2461_v39, %v2333_v30  ;;  %v2462_v48 = vshrl.u32 %v2334_v40, 16 }
  0x2c   :  { %v2841_v49 = vcvt.s32.f32 %v2713_v41  ;;  %v2714_v50 = vshrl.u32 %v2586_v42, 8  ;;  %v2335_v51 = vmul.u32 2221713035, %v2207_v43  ;;  %v2080_v52 = vshrl.u32 %v1952_v44, 15 }
  0x2d   :  { %v2715_v53 = vshrl.u32 %v2587_v45, 8  ;;  %v2588_v54 = vxor.u32 %v2460_v46, %v2332_v37  ;;  %v2717_v55 = vshrl.u32 %v2589_v47, 8  ;;  %v2590_v56 = vxor.u32 %v2462_v48, %v2334_v40 }
  0x2e   :  { %v2969_v57 = vmul.f32 5.9604645e-08, %v2841_v49  ;;  %v2842_v58 = vcvt.s32.f32 %v2714_v50  ;;  %v2463_v59 = vshrl.u32 %v2335_v51, 16  ;;  %v2208_v60 = vxor.u32 %v2080_v52, %v1952_v44 }
  0x2f   :  { %v2843_v61 = vcvt.s32.f32 %v2715_v53  ;;  %v2716_v62 = vshrl.u32 %v2588_v54, 8  ;;  %v2845_v63 = vcvt.s32.f32 %v2717_v55  ;;  %v2718_v0 = vshrl.u32 %v2590_v56, 8 }
  0x30   :  { %vm3097_vm3 = vcmp.lt.f32.partialorder %v2969_v57, 0.006449987  ;;  %v2970_v5 = vmul.f32 5.9604645e-08, %v2842_v58  ;;  %v2591_v6 = vxor.u32 %v2463_v59, %v2335_v51  ;;  %v2336_v7 = vmul.u32 2221713035, %v2208_v60 }
  0x31   :  { %v6891_v8 = vmov 0.0   ;;  %v2971_v12 = vmul.f32 5.9604645e-08, %v2843_v61  ;;  %v2844_v13 = vcvt.s32.f32 %v2716_v62  ;;  %v2973_v14 = vmul.f32 5.9604645e-08, %v2845_v63 }
  0x32   :  { %v3225_v9 = vsel %vm3097_vm3, 1.0, %v6891_v8  ;;  %vm3098_vm4 = vcmp.lt.f32.partialorder %v2970_v5, 0.006449987  ;;  %v2846_v15 = vcvt.s32.f32 %v2718_v0  ;;  %v2719_v16 = vshrl.u32 %v2591_v6, 8 }
  0x33   :  { %6667 = vmatprep.mubr.msk.f32.mxu0 %vm3365_vm2, %v3225_v9  ;;  %v2464_v17 = vshrl.u32 %v2336_v7, 16  ;;  %v3226_v18 = vsel %vm3098_vm4, 1.0, %v6891_v8  ;;  %vm3099_vm5 = vcmp.lt.f32.partialorder %v2971_v12, 0.006449987  ;;  %v2972_v19 = vmul.f32 5.9604645e-08, %v2844_v13 }
  0x34   :  { %vm3101_vm6 = vcmp.lt.f32.partialorder %v2973_v14, 0.006449987  ;;  %6668 = vmatmul.mubr.msk.f32.vlgmr.msra.gmra.mxu0 %vm3365_vm2, %v3226_v18  ;;  %v3227_v20 = vsel %vm3099_vm5, 1.0, %v6891_v8  ;;  %v2974_v22 = vmul.f32 5.9604645e-08, %v2846_v15  ;;  %v2847_v23 = vcvt.s32.f32 %v2719_v16 }
  0x35   :  { %v3229_v21 = vsel %vm3101_vm6, 1.0, %v6891_v8  ;;  %6670 = vmatprep.mubr.msk.f32.mxu0 %vm3365_vm2, %v3227_v20  ;;  %vm3100_vm7 = vcmp.lt.f32.partialorder %v2972_v19, 0.006449987  ;;  %v2592_v24 = vxor.u32 %v2464_v17, %v2336_v7  ;;  %v287_v25 = vmul.u32 16, %v6922_v10 }
  0x36   :  { %v160_v26 = vadd.s32 64, %v6913_v4  ;;  %v3228_v27 = vsel %vm3100_vm7, 1.0, %v6891_v8  ;;  %vm3102_vm8 = vcmp.lt.f32.partialorder %v2974_v22, 0.006449987  ;;  %v2975_v28 = vmul.f32 5.9604645e-08, %v2847_v23 }
  0x37   :  { %v289_v29 = vmul.u32 16, %v6925_v11  ;;  %v3230_v30 = vsel %vm3102_vm8, 1.0, %v6891_v8  ;;  %v2720_v31 = vshrl.u32 %v2592_v24, 8  ;;  %v415_v32 = vadd.s32 %v287_v25, %v6908_v2 }
  0x38   :  { %v288_v33 = vmul.u32 16, %v160_v26  ;;  %6671 = vmatmul.mubr.msk.f32.gmra.mxu0 %vm3365_vm2, %v3228_v27  ;;  %vm3103_vm9 = vcmp.lt.f32.partialorder %v2975_v28, 0.006449987  ;;  %v162_v10 = vadd.s32 80, %v6913_v4  ;;  %v163_v35 = vadd.s32 96, %v6906_v1 }
  0x39   :  { %v417_v34 = vadd.s32 %v289_v29, %v6908_v2  ;;  %6673 = vmatprep.mubr.msk.f32.mxu0 %vm3365_vm2, %v3229_v21  ;;  %v3231_v36 = vsel %vm3103_vm9, 1.0, %v6891_v8  ;;  %v2848_v11 = vcvt.s32.f32 %v2720_v31  ;;  %v545_v37 = vxor.u32 %v6910_v3, %v415_v32 }
  0x3a   :  { %v416_v39 = vadd.s32 %v288_v33, %v6908_v2  ;;  %v290_v41 = vmul.u32 16, %v162_v10  ;;  %v291_v42 = vmul.u32 16, %v163_v35  ;;  %v164_v43 = vadd.s32 96, %v6913_v4 }
  0x3b   :  { %v547_v40 = vxor.u32 %v6910_v3, %v417_v34  ;;  %v2976_v44 = vmul.f32 5.9604645e-08, %v2848_v11  ;;  %v673_v45 = vshrl.u32 %v545_v37, 16  ;;  %v165_v47 = vadd.s32 112, %v6906_v1 }
  0x3c   :  { %v546_v46 = vxor.u32 %v6910_v3, %v416_v39  ;;  %6674 = vmatmul.mubr.msk.f32.gmra.mxu0 %vm3365_vm2, %v3230_v30  ;;  %v418_v49 = vadd.s32 %v290_v41, %v6908_v2  ;;  %v419_v50 = vadd.s32 %v291_v42, %v6908_v2  ;;  %v292_v51 = vmul.u32 16, %v164_v43 }
  0x3d   :  { %v675_v48 = vshrl.u32 %v547_v40, 16  ;;  %6676 = vmatprep.mubr.msk.f32.mxu0 %vm3365_vm2, %v3231_v36  ;;  %vm3104_vm10 = vcmp.lt.f32.partialorder %v2976_v44, 0.006449987  ;;  %v801_v52 = vxor.u32 %v673_v45, %v545_v37  ;;  %v293_v54 = vmul.u32 16, %v165_v47 }
  0x3e   :  { %v674_v53 = vshrl.u32 %v546_v46, 16  ;;  %v3232_v55 = vsel %vm3104_vm10, 1.0, %v6891_v8  ;;  %v548_v57 = vxor.u32 %v6910_v3, %v418_v49  ;;  %v549_v58 = vxor.u32 %v6910_v3, %v419_v50 }
  0x3f   :  { %v803_v56 = vxor.u32 %v675_v48, %v547_v40  ;;  %v929_v59 = vmul.u32 2146121005, %v801_v52  ;;  %v420_v61 = vadd.s32 %v292_v51, %v6908_v2  ;;  %v421_v62 = vadd.s32 %v293_v54, %v6908_v2 }
  0x40   :  { %v802_v60 = vxor.u32 %v674_v53, %v546_v46  ;;  %6677 = vmatmul.mubr.msk.f32.gmra.mxu0 %vm3365_vm2, %v3232_v55  ;;  %v676_v0 = vshrl.u32 %v548_v57, 16  ;;  %v677_v5 = vshrl.u32 %v549_v58, 16  ;;  %v166_v6 = vadd.s32 112, %v6913_v4 }
  0x41   :  { %v931_v63 = vmul.u32 2146121005, %v803_v56  ;;  %v1057_v7 = vshrl.u32 %v929_v59, 15  ;;  %v550_v12 = vxor.u32 %v6910_v3, %v420_v61  ;;  %v551_v13 = vxor.u32 %v6910_v3, %v421_v62 }
  0x42   :  { %v930_v9 = vmul.u32 2146121005, %v802_v60  ;;  %v804_v15 = vxor.u32 %v676_v0, %v548_v57  ;;  %v805_v16 = vxor.u32 %v677_v5, %v549_v58  ;;  %v294_v17 = vmul.u32 16, %v166_v6 }
  0x43   :  { %v1059_v14 = vshrl.u32 %v931_v63, 15  ;;  %v1185_v18 = vxor.u32 %v1057_v7, %v929_v59  ;;  %v678_v20 = vshrl.u32 %v550_v12, 16  ;;  %v679_v21 = vshrl.u32 %v551_v13, 16 }
  0x44   :  { %v1058_v19 = vshrl.u32 %v930_v9, 15  ;;  %v932_v23 = vmul.u32 2146121005, %v804_v15  ;;  %v933_v24 = vmul.u32 2146121005, %v805_v16  ;;  %v422_v25 = vadd.s32 %v294_v17, %v6908_v2 }
  0x45   :  { %v1187_v22 = vxor.u32 %v1059_v14, %v931_v63  ;;  %v1313_v26 = vmul.u32 2221713035, %v1185_v18  ;;  %v806_v28 = vxor.u32 %v678_v20, %v550_v12  ;;  %v807_v29 = vxor.u32 %v679_v21, %v551_v13 }
  0x46   :  { %v1186_v27 = vxor.u32 %v1058_v19, %v930_v9  ;;  %v1060_v31 = vshrl.u32 %v932_v23, 15  ;;  %v1061_v32 = vshrl.u32 %v933_v24, 15  ;;  %v552_v33 = vxor.u32 %v6910_v3, %v422_v25 }
  0x47   :  { %v1315_v30 = vmul.u32 2221713035, %v1187_v22  ;;  %v1441_v34 = vshrl.u32 %v1313_v26, 16  ;;  %v934_v35 = vmul.u32 2146121005, %v806_v28  ;;  %v7006_v36 = vadd.s32 128, %v6906_v1 }
  0x48   :  { %v1314_v10 = vmul.u32 2221713035, %v1186_v27  ;;  %v1188_v37 = vxor.u32 %v1060_v31, %v932_v23  ;;  %v1189_v39 = vxor.u32 %v1061_v32, %v933_v24  ;;  %v935_v40 = vmul.u32 2146121005, %v807_v29 }
  0x49   :  { %v1443_v11 = vshrl.u32 %v1315_v30, 16  ;;  %v1569_v41 = vxor.u32 %v1441_v34, %v1313_v26  ;;  %v1062_v43 = vshrl.u32 %v934_v35, 15  ;;  %v680_v44 = vshrl.u32 %v552_v33, 16 }
  0x4a   :  { %v1442_v42 = vshrl.u32 %v1314_v10, 16  ;;  %v1316_v46 = vmul.u32 2221713035, %v1188_v37  ;;  %v1317_v47 = vmul.u32 2221713035, %v1189_v39  ;;  %v1063_v48 = vshrl.u32 %v935_v40, 15 }
  0x4b   :  { %v1571_v45 = vxor.u32 %v1443_v11, %v1315_v30  ;;  %v1697_v49 = vshrl.u32 %v1569_v41, 16  ;;  %v1190_v51 = vxor.u32 %v1062_v43, %v934_v35  ;;  %v808_v52 = vxor.u32 %v680_v44, %v552_v33 }
  0x4c   :  { %v1570_v50 = vxor.u32 %v1442_v42, %v1314_v10  ;;  %v1444_v54 = vshrl.u32 %v1316_v46, 16  ;;  %v1445_v55 = vshrl.u32 %v1317_v47, 16  ;;  %v1191_v56 = vxor.u32 %v1063_v48, %v935_v40 }
  0x4d   :  { %v1699_v53 = vshrl.u32 %v1571_v45, 16  ;;  %v1825_v57 = vxor.u32 %v1697_v49, %v1569_v41  ;;  %v1318_v59 = vmul.u32 2221713035, %v1190_v51  ;;  %v936_v60 = vmul.u32 2146121005, %v808_v52 }
  0x4e   :  { %v1698_v58 = vshrl.u32 %v1570_v50, 16  ;;  %v1572_v62 = vxor.u32 %v1444_v54, %v1316_v46  ;;  %v1573_v63 = vxor.u32 %v1445_v55, %v1317_v47  ;;  %v1319_v0 = vmul.u32 2221713035, %v1191_v56 }
  0x4f   :  { %v1827_v61 = vxor.u32 %v1699_v53, %v1571_v45  ;;  %v1953_v5 = vmul.u32 2146121005, %v1825_v57  ;;  %v1446_v7 = vshrl.u32 %v1318_v59, 16  ;;  %v1064_v9 = vshrl.u32 %v936_v60, 15 }
  0x50   :  { %v1826_v6 = vxor.u32 %v1698_v58, %v1570_v50  ;;  %v1700_v13 = vshrl.u32 %v1572_v62, 16  ;;  %v1701_v14 = vshrl.u32 %v1573_v63, 16  ;;  %v1447_v15 = vshrl.u32 %v1319_v0, 16 }
  0x51   :  { %v1955_v12 = vmul.u32 2146121005, %v1827_v61  ;;  %v2081_v16 = vshrl.u32 %v1953_v5, 15  ;;  %v1574_v18 = vxor.u32 %v1446_v7, %v1318_v59  ;;  %v1192_v19 = vxor.u32 %v1064_v9, %v936_v60 }
  0x52   :  { %v1954_v17 = vmul.u32 2146121005, %v1826_v6  ;;  %v1828_v21 = vxor.u32 %v1700_v13, %v1572_v62  ;;  %v1829_v22 = vxor.u32 %v1701_v14, %v1573_v63  ;;  %v1575_v23 = vxor.u32 %v1447_v15, %v1319_v0 }
  0x53   :  { %v2083_v20 = vshrl.u32 %v1955_v12, 15  ;;  %v2209_v24 = vxor.u32 %v2081_v16, %v1953_v5  ;;  %v1702_v26 = vshrl.u32 %v1574_v18, 16  ;;  %v1320_v27 = vmul.u32 2221713035, %v1192_v19 }
  0x54   :  { %v2082_v25 = vshrl.u32 %v1954_v17, 15  ;;  %v1956_v29 = vmul.u32 2146121005, %v1828_v21  ;;  %v1957_v30 = vmul.u32 2146121005, %v1829_v22  ;;  %v1703_v31 = vshrl.u32 %v1575_v23, 16 }
  0x55   :  { %v2211_v28 = vxor.u32 %v2083_v20, %v1955_v12  ;;  %v2337_v32 = vmul.u32 2221713035, %v2209_v24  ;;  %v1830_v34 = vxor.u32 %v1702_v26, %v1574_v18  ;;  %v1448_v10 = vshrl.u32 %v1320_v27, 16 }
  0x56   :  { %v2210_v33 = vxor.u32 %v2082_v25, %v1954_v17  ;;  %v2084_v11 = vshrl.u32 %v1956_v29, 15  ;;  %v2085_v37 = vshrl.u32 %v1957_v30, 15  ;;  %v1831_v39 = vxor.u32 %v1703_v31, %v1575_v23 }
  0x57   :  { %v2339_v35 = vmul.u32 2221713035, %v2211_v28  ;;  %v2465_v40 = vshrl.u32 %v2337_v32, 16  ;;  %v1958_v42 = vmul.u32 2146121005, %v1830_v34  ;;  %v1576_v43 = vxor.u32 %v1448_v10, %v1320_v27 }
  0x58   :  { %v2338_v41 = vmul.u32 2221713035, %v2210_v33  ;;  %v2212_v45 = vxor.u32 %v2084_v11, %v1956_v29  ;;  %v2213_v46 = vxor.u32 %v2085_v37, %v1957_v30  ;;  %v1959_v47 = vmul.u32 2146121005, %v1831_v39 }
  0x59   :  { %v2467_v44 = vshrl.u32 %v2339_v35, 16  ;;  %v2593_v48 = vxor.u32 %v2465_v40, %v2337_v32  ;;  %v2086_v50 = vshrl.u32 %v1958_v42, 15  ;;  %v1704_v51 = vshrl.u32 %v1576_v43, 16 }
  0x5a   :  { %v2466_v49 = vshrl.u32 %v2338_v41, 16  ;;  %v2340_v53 = vmul.u32 2221713035, %v2212_v45  ;;  %v2341_v54 = vmul.u32 2221713035, %v2213_v46  ;;  %v2087_v55 = vshrl.u32 %v1959_v47, 15 }
  0x5b   :  { %v2595_v52 = vxor.u32 %v2467_v44, %v2339_v35  ;;  %v2721_v56 = vshrl.u32 %v2593_v48, 8  ;;  %v2214_v58 = vxor.u32 %v2086_v50, %v1958_v42  ;;  %v1832_v59 = vxor.u32 %v1704_v51, %v1576_v43 }
  0x5c   :  { %v2594_v57 = vxor.u32 %v2466_v49, %v2338_v41  ;;  %v2468_v61 = vshrl.u32 %v2340_v53, 16  ;;  %v2469_v62 = vshrl.u32 %v2341_v54, 16  ;;  %v2215_v63 = vxor.u32 %v2087_v55, %v1959_v47 }
  0x5d   :  { %v2723_v60 = vshrl.u32 %v2595_v52, 8  ;;  %v2849_v0 = vcvt.s32.f32 %v2721_v56  ;;  %v2342_v6 = vmul.u32 2221713035, %v2214_v58  ;;  %v1960_v7 = vmul.u32 2146121005, %v1832_v59 }
  0x5e   :  { %v2722_v5 = vshrl.u32 %v2594_v57, 8  ;;  %v2596_v12 = vxor.u32 %v2468_v61, %v2340_v53  ;;  %v2597_v13 = vxor.u32 %v2469_v62, %v2341_v54  ;;  %v2343_v14 = vmul.u32 2221713035, %v2215_v63 }
  0x5f   :  { %v2851_v9 = vcvt.s32.f32 %v2723_v60  ;;  %v2977_v15 = vmul.f32 5.9604645e-08, %v2849_v0  ;;  %v2470_v17 = vshrl.u32 %v2342_v6, 16  ;;  %v2088_v18 = vshrl.u32 %v1960_v7, 15 }
  0x60   :  { %v2850_v16 = vcvt.s32.f32 %v2722_v5  ;;  %v2724_v20 = vshrl.u32 %v2596_v12, 8  ;;  %v2725_v21 = vshrl.u32 %v2597_v13, 8  ;;  %v2471_v22 = vshrl.u32 %v2343_v14, 16 }
  0x61   :  { %v2979_v19 = vmul.f32 5.9604645e-08, %v2851_v9  ;;  %vm3105_vm11 = vcmp.lt.f32.partialorder %v2977_v15, 0.006449987  ;;  %v2598_v24 = vxor.u32 %v2470_v17, %v2342_v6  ;;  %v2216_v25 = vxor.u32 %v2088_v18, %v1960_v7 }
  0x62   :  { %v2978_v23 = vmul.f32 5.9604645e-08, %v2850_v16  ;;  %v3233_v26 = vsel %vm3105_vm11, 1.0, %v6891_v8  ;;  %v2852_v27 = vcvt.s32.f32 %v2724_v20  ;;  %v2853_v28 = vcvt.s32.f32 %v2725_v21 }
  0x63   :  { %vm3107_vm12 = vcmp.lt.f32.partialorder %v2979_v19, 0.006449987  ;;  %6679 = vmatprep.mubr.msk.f32.mxu0 %vm3365_vm2, %v3233_v26  ;;  %v2726_v30 = vshrl.u32 %v2598_v24, 8  ;;  %v2599_v31 = vxor.u32 %v2471_v22, %v2343_v14  ;;  %v2344_v10 = vmul.u32 2221713035, %v2216_v25 }
  0x64   :  { %vm3106_vm13 = vcmp.lt.f32.partialorder %v2978_v23, 0.006449987  ;;  %v3235_v29 = vsel %vm3107_vm12, 1.0, %v6891_v8  ;;  %v2980_v33 = vmul.f32 5.9604645e-08, %v2852_v27  ;;  %v2981_v34 = vmul.f32 5.9604645e-08, %v2853_v28 }
  0x65   :  { %v3234_v32 = vsel %vm3106_vm13, 1.0, %v6891_v8  ;;  %v2854_v35 = vcvt.s32.f32 %v2726_v30  ;;  %v2727_v11 = vshrl.u32 %v2599_v31, 8  ;;  %v295_v37 = vmul.u32 16, %v7006_v36 }
  0x66   :  { %6680 = vmatmul.mubr.msk.f32.gmra.mxu0 %vm3365_vm2, %v3234_v32  ;;  %v168_v39 = vadd.s32 128, %v6913_v4  ;;  %vm3108_vm14 = vcmp.lt.f32.partialorder %v2980_v33, 0.006449987  ;;  %vm3109_vm15 = vcmp.lt.f32.partialorder %v2981_v34, 0.006449987  ;;  %v2472_v40 = vshrl.u32 %v2344_v10, 16 }
  0x67   :  { %6682 = vmatprep.mubr.msk.f32.mxu0 %vm3365_vm2, %v3235_v29  ;;  %v169_v41 = vadd.s32 144, %v6906_v1  ;;  %v3236_v42 = vsel %vm3108_vm14, 1.0, %v6891_v8  ;;  %v3237_v43 = vsel %vm3109_vm15, 1.0, %v6891_v8  ;;  %v2982_v44 = vmul.f32 5.9604645e-08, %v2854_v35 }
  0x68   :  { %v2855_v45 = vcvt.s32.f32 %v2727_v11  ;;  %v2600_v46 = vxor.u32 %v2472_v40, %v2344_v10  ;;  %v423_v47 = vadd.s32 %v295_v37, %v6908_v2  ;;  %v296_v48 = vmul.u32 16, %v168_v39 }
  0x69   :  { %v297_v36 = vmul.u32 16, %v169_v41  ;;  %vm3110_vm0 = vcmp.lt.f32.partialorder %v2982_v44, 0.006449987  ;;  %v170_v50 = vadd.s32 144, %v6913_v4  ;;  %v171_v51 = vadd.s32 160, %v6906_v1 }
  0x6a   :  { %6683 = vmatmul.mubr.msk.f32.gmra.mxu0 %vm3365_vm2, %v3236_v42  ;;  %v2983_v49 = vmul.f32 5.9604645e-08, %v2855_v45  ;;  %v3238_v52 = vsel %vm3110_vm0, 1.0, %v6891_v8  ;;  %v2728_v53 = vshrl.u32 %v2600_v46, 8  ;;  %v553_v54 = vxor.u32 %v6910_v3, %v423_v47 }
  0x6b   :  { %6685 = vmatprep.mubr.msk.f32.mxu0 %vm3365_vm2, %v3237_v43  ;;  %v424_v55 = vadd.s32 %v296_v48, %v6908_v2  ;;  %v425_v56 = vadd.s32 %v297_v36, %v6908_v2  ;;  %v298_v57 = vmul.u32 16, %v170_v50  ;;  %v299_v58 = vmul.u32 16, %v171_v51 }
  0x6c   :  { %vm3111_vm1 = vcmp.lt.f32.partialorder %v2983_v49, 0.006449987  ;;  %v2856_v60 = vcvt.s32.f32 %v2728_v53  ;;  %v681_v61 = vshrl.u32 %v553_v54, 16  ;;  %v172_v6 = vadd.s32 160, %v6913_v4 }
  0x6d   :  { %v3239_v59 = vsel %vm3111_vm1, 1.0, %v6891_v8  ;;  %v554_v62 = vxor.u32 %v6910_v3, %v424_v55  ;;  %v555_v63 = vxor.u32 %v6910_v3, %v425_v56  ;;  %v426_v0 = vadd.s32 %v298_v57, %v6908_v2 }
  0x6e   :  { %6686 = vmatmul.mubr.msk.f32.gmra.mxu0 %vm3365_vm2, %v3238_v52  ;;  %v427_v5 = vadd.s32 %v299_v58, %v6908_v2  ;;  %v2984_v7 = vmul.f32 5.9604645e-08, %v2856_v60  ;;  %v809_v9 = vxor.u32 %v681_v61, %v553_v54  ;;  %v173_v13 = vadd.s32 176, %v6906_v1 }
  0x6f   :  { %6688 = vmatprep.mubr.msk.f32.mxu0 %vm3365_vm2, %v3239_v59  ;;  %v682_v12 = vshrl.u32 %v554_v62, 16  ;;  %v683_v14 = vshrl.u32 %v555_v63, 16  ;;  %v556_v15 = vxor.u32 %v6910_v3, %v426_v0  ;;  %v300_v17 = vmul.u32 16, %v172_v6 }
  0x70   :  { %v557_v16 = vxor.u32 %v6910_v3, %v427_v5  ;;  %vm3112_vm3 = vcmp.lt.f32.partialorder %v2984_v7, 0.006449987  ;;  %v937_v18 = vmul.u32 2146121005, %v809_v9  ;;  %v301_v20 = vmul.u32 16, %v173_v13 }
  0x71   :  { %v810_v19 = vxor.u32 %v682_v12, %v554_v62  ;;  %v3240_v21 = vsel %vm3112_vm3, 1.0, %v6891_v8  ;;  %v811_v22 = vxor.u32 %v683_v14, %v555_v63  ;;  %v684_v23 = vshrl.u32 %v556_v15, 16 }
  0x72   :  { %v685_v24 = vshrl.u32 %v557_v16, 16  ;;  %6689 = vmatmul.mubr.msk.f32.gmra.mxu0 %vm3365_vm2, %v3240_v21  ;;  %v1065_v25 = vshrl.u32 %v937_v18, 15  ;;  %v428_v27 = vadd.s32 %v300_v17, %v6908_v2  ;;  %v429_v28 = vadd.s32 %v301_v20, %v6908_v2 }
  0x73   :  { %v938_v26 = vmul.u32 2146121005, %v810_v19  ;;  %v939_v29 = vmul.u32 2146121005, %v811_v22  ;;  %v812_v30 = vxor.u32 %v684_v23, %v556_v15  ;;  %v174_v32 = vadd.s32 176, %v6913_v4 }
  0x74   :  { %v813_v31 = vxor.u32 %v685_v24, %v557_v16  ;;  %v1193_v33 = vxor.u32 %v1065_v25, %v937_v18  ;;  %v558_v10 = vxor.u32 %v6910_v3, %v428_v27  ;;  %v559_v35 = vxor.u32 %v6910_v3, %v429_v28 }
  0x75   :  { %v1066_v34 = vshrl.u32 %v938_v26, 15  ;;  %v1067_v11 = vshrl.u32 %v939_v29, 15  ;;  %v940_v37 = vmul.u32 2146121005, %v812_v30  ;;  %v7047_v40 = vadd.s32 192, %v6906_v1 }
  0x76   :  { %v941_v39 = vmul.u32 2146121005, %v813_v31  ;;  %v1321_v41 = vmul.u32 2221713035, %v1193_v33  ;;  %v686_v43 = vshrl.u32 %v558_v10, 16  ;;  %v687_v44 = vshrl.u32 %v559_v35, 16 }
  0x77   :  { %v1194_v42 = vxor.u32 %v1066_v34, %v938_v26  ;;  %v1195_v45 = vxor.u32 %v1067_v11, %v939_v29  ;;  %v1068_v46 = vshrl.u32 %v940_v37, 15  ;;  %v302_v48 = vmul.u32 16, %v174_v32 }
  0x78   :  { %v1069_v47 = vshrl.u32 %v941_v39, 15  ;;  %v1449_v36 = vshrl.u32 %v1321_v41, 16  ;;  %v814_v50 = vxor.u32 %v686_v43, %v558_v10  ;;  %v815_v51 = vxor.u32 %v687_v44, %v559_v35 }
  0x79   :  { %v1322_v49 = vmul.u32 2221713035, %v1194_v42  ;;  %v1323_v52 = vmul.u32 2221713035, %v1195_v45  ;;  %v1196_v53 = vxor.u32 %v1068_v46, %v940_v37  ;;  %v430_v55 = vadd.s32 %v302_v48, %v6908_v2 }
  0x7a   :  { %v1197_v54 = vxor.u32 %v1069_v47, %v941_v39  ;;  %v1577_v56 = vxor.u32 %v1449_v36, %v1321_v41  ;;  %v942_v58 = vmul.u32 2146121005, %v814_v50  ;;  %v943_v59 = vmul.u32 2146121005, %v815_v51 }
  0x7b   :  { %v1450_v57 = vshrl.u32 %v1322_v49, 16  ;;  %v1451_v60 = vshrl.u32 %v1323_v52, 16  ;;  %v1324_v61 = vmul.u32 2221713035, %v1196_v53  ;;  %v560_v63 = vxor.u32 %v6910_v3, %v430_v55 }
  0x7c   :  { %v1325_v62 = vmul.u32 2221713035, %v1197_v54  ;;  %v1705_v0 = vshrl.u32 %v1577_v56, 16  ;;  %v1070_v6 = vshrl.u32 %v942_v58, 15  ;;  %v1071_v7 = vshrl.u32 %v943_v59, 15 }
  0x7d   :  { %v1578_v5 = vxor.u32 %v1450_v57, %v1322_v49  ;;  %v1579_v9 = vxor.u32 %v1451_v60, %v1323_v52  ;;  %v1452_v12 = vshrl.u32 %v1324_v61, 16  ;;  %v688_v14 = vshrl.u32 %v560_v63, 16 }
  0x7e   :  { %v1453_v13 = vshrl.u32 %v1325_v62, 16  ;;  %v1833_v15 = vxor.u32 %v1705_v0, %v1577_v56  ;;  %v1198_v17 = vxor.u32 %v1070_v6, %v942_v58  ;;  %v1199_v18 = vxor.u32 %v1071_v7, %v943_v59 }
  0x7f   :  { %v1706_v16 = vshrl.u32 %v1578_v5, 16  ;;  %v1707_v19 = vshrl.u32 %v1579_v9, 16  ;;  %v1580_v20 = vxor.u32 %v1452_v12, %v1324_v61  ;;  %v816_v22 = vxor.u32 %v688_v14, %v560_v63 }
  0x80   :  { %v1581_v21 = vxor.u32 %v1453_v13, %v1325_v62  ;;  %v1961_v23 = vmul.u32 2146121005, %v1833_v15  ;;  %v1326_v25 = vmul.u32 2221713035, %v1198_v17  ;;  %v7052_v26 = vadd.s32 192, %v6913_v4 }
  0x81   :  { %v1834_v24 = vxor.u32 %v1706_v16, %v1578_v5  ;;  %v1835_v27 = vxor.u32 %v1707_v19, %v1579_v9  ;;  %v1708_v28 = vshrl.u32 %v1580_v20, 16  ;;  %v1327_v30 = vmul.u32 2221713035, %v1199_v18 }
  0x82   :  { %v1709_v29 = vshrl.u32 %v1581_v21, 16  ;;  %v2089_v31 = vshrl.u32 %v1961_v23, 15  ;;  %v1454_v33 = vshrl.u32 %v1326_v25, 16  ;;  %v944_v34 = vmul.u32 2146121005, %v816_v22 }
  0x83   :  { %v1962_v32 = vmul.u32 2146121005, %v1834_v24  ;;  %v1963_v10 = vmul.u32 2146121005, %v1835_v27  ;;  %v1836_v35 = vxor.u32 %v1708_v28, %v1580_v20  ;;  %v1455_v37 = vshrl.u32 %v1327_v30, 16 }
  0x84   :  { %v1837_v11 = vxor.u32 %v1709_v29, %v1581_v21  ;;  %v2217_v39 = vxor.u32 %v2089_v31, %v1961_v23  ;;  %v1582_v42 = vxor.u32 %v1454_v33, %v1326_v25  ;;  %v1072_v43 = vshrl.u32 %v944_v34, 15 }
  0x85   :  { %v2090_v41 = vshrl.u32 %v1962_v32, 15  ;;  %v2091_v44 = vshrl.u32 %v1963_v10, 15  ;;  %v1964_v45 = vmul.u32 2146121005, %v1836_v35  ;;  %v1583_v47 = vxor.u32 %v1455_v37, %v1327_v30 }
  0x86   :  { %v1965_v46 = vmul.u32 2146121005, %v1837_v11  ;;  %v2345_v48 = vmul.u32 2221713035, %v2217_v39  ;;  %v1710_v49 = vshrl.u32 %v1582_v42, 16  ;;  %v1200_v50 = vxor.u32 %v1072_v43, %v944_v34 }
  0x87   :  { %v2218_v36 = vxor.u32 %v2090_v41, %v1962_v32  ;;  %v2219_v51 = vxor.u32 %v2091_v44, %v1963_v10  ;;  %v2092_v52 = vshrl.u32 %v1964_v45, 15  ;;  %v1711_v54 = vshrl.u32 %v1583_v47, 16 }
  0x88   :  { %v2093_v53 = vshrl.u32 %v1965_v46, 15  ;;  %v2473_v55 = vshrl.u32 %v2345_v48, 16  ;;  %v1838_v57 = vxor.u32 %v1710_v49, %v1582_v42  ;;  %v1328_v58 = vmul.u32 2221713035, %v1200_v50 }
  0x89   :  { %v2346_v56 = vmul.u32 2221713035, %v2218_v36  ;;  %v2347_v59 = vmul.u32 2221713035, %v2219_v51  ;;  %v2220_v60 = vxor.u32 %v2092_v52, %v1964_v45  ;;  %v1839_v62 = vxor.u32 %v1711_v54, %v1583_v47 }
  0x8a   :  { %v2221_v61 = vxor.u32 %v2093_v53, %v1965_v46  ;;  %v2601_v63 = vxor.u32 %v2473_v55, %v2345_v48  ;;  %v1966_v5 = vmul.u32 2146121005, %v1838_v57  ;;  %v1456_v6 = vshrl.u32 %v1328_v58, 16 }
  0x8b   :  { %v2474_v0 = vshrl.u32 %v2346_v56, 16  ;;  %v2475_v7 = vshrl.u32 %v2347_v59, 16  ;;  %v2348_v9 = vmul.u32 2221713035, %v2220_v60  ;;  %v7055_v13 = vadd.s32 208, %v6906_v1 }
  0x8c   :  { %v2349_v12 = vmul.u32 2221713035, %v2221_v61  ;;  %v2729_v14 = vshrl.u32 %v2601_v63, 8  ;;  %v2094_v16 = vshrl.u32 %v1966_v5, 15  ;;  %v1967_v17 = vmul.u32 2146121005, %v1839_v62 }
  0x8d   :  { %v2602_v15 = vxor.u32 %v2474_v0, %v2346_v56  ;;  %v2603_v18 = vxor.u32 %v2475_v7, %v2347_v59  ;;  %v2476_v19 = vshrl.u32 %v2348_v9, 16  ;;  %v1584_v21 = vxor.u32 %v1456_v6, %v1328_v58 }
  0x8e   :  { %v2477_v20 = vshrl.u32 %v2349_v12, 16  ;;  %v2857_v22 = vcvt.s32.f32 %v2729_v14  ;;  %v2222_v24 = vxor.u32 %v2094_v16, %v1966_v5  ;;  %v2095_v25 = vshrl.u32 %v1967_v17, 15 }
  0x8f   :  { %v2730_v23 = vshrl.u32 %v2602_v15, 8  ;;  %v2731_v27 = vshrl.u32 %v2603_v18, 8  ;;  %v2604_v28 = vxor.u32 %v2476_v19, %v2348_v9  ;;  %v1712_v30 = vshrl.u32 %v1584_v21, 16 }
  0x90   :  { %v2605_v29 = vxor.u32 %v2477_v20, %v2349_v12  ;;  %v2985_v31 = vmul.f32 5.9604645e-08, %v2857_v22  ;;  %v2350_v33 = vmul.u32 2221713035, %v2222_v24  ;;  %v2223_v34 = vxor.u32 %v2095_v25, %v1967_v17 }
  0x91   :  { %v2858_v32 = vcvt.s32.f32 %v2730_v23  ;;  %v2859_v10 = vcvt.s32.f32 %v2731_v27  ;;  %v2732_v35 = vshrl.u32 %v2604_v28, 8  ;;  %v1840_v37 = vxor.u32 %v1712_v30, %v1584_v21 }
  0x92   :  { %v2733_v11 = vshrl.u32 %v2605_v29, 8  ;;  %vm3113_vm4 = vcmp.lt.f32.partialorder %v2985_v31, 0.006449987  ;;  %v2478_v41 = vshrl.u32 %v2350_v33, 16  ;;  %v2351_v42 = vmul.u32 2221713035, %v2223_v34 }
  0x93   :  { %v2986_v39 = vmul.f32 5.9604645e-08, %v2858_v32  ;;  %v3241_v43 = vsel %vm3113_vm4, 1.0, %v6891_v8  ;;  %v2987_v44 = vmul.f32 5.9604645e-08, %v2859_v10  ;;  %v2860_v45 = vcvt.s32.f32 %v2732_v35 }
  0x94   :  { %v2861_v46 = vcvt.s32.f32 %v2733_v11  ;;  %6691 = vmatprep.mubr.msk.f32.mxu0 %vm3365_vm2, %v3241_v43  ;;  %v2606_v47 = vxor.u32 %v2478_v41, %v2350_v33  ;;  %v2479_v48 = vshrl.u32 %v2351_v42, 16  ;;  %v1968_v36 = vmul.u32 2146121005, %v1840_v37 }
  0x95   :  { %vm3114_vm5 = vcmp.lt.f32.partialorder %v2986_v39, 0.006449987  ;;  %vm3115_vm6 = vcmp.lt.f32.partialorder %v2987_v44, 0.006449987  ;;  %v2988_v50 = vmul.f32 5.9604645e-08, %v2860_v45  ;;  %v303_v56 = vmul.u32 16, %v7047_v40 }
  0x96   :  { %v3242_v49 = vsel %vm3114_vm5, 1.0, %v6891_v8  ;;  %v2989_v51 = vmul.f32 5.9604645e-08, %v2861_v46  ;;  %v3243_v52 = vsel %vm3115_vm6, 1.0, %v6891_v8  ;;  %v2734_v53 = vshrl.u32 %v2606_v47, 8 }
  0x97   :  { %6692 = vmatmul.mubr.msk.f32.gmra.mxu0 %vm3365_vm2, %v3242_v49  ;;  %v2607_v54 = vxor.u32 %v2479_v48, %v2351_v42  ;;  %v2096_v55 = vshrl.u32 %v1968_v36, 15  ;;  %vm3116_vm7 = vcmp.lt.f32.partialorder %v2988_v50, 0.006449987  ;;  %v304_v57 = vmul.u32 16, %v7052_v26 }
  0x98   :  { %6694 = vmatprep.mubr.msk.f32.mxu0 %vm3365_vm2, %v3243_v52  ;;  %vm3117_vm8 = vcmp.lt.f32.partialorder %v2989_v51, 0.006449987  ;;  %v3244_v58 = vsel %vm3116_vm7, 1.0, %v6891_v8  ;;  %v2862_v60 = vcvt.s32.f32 %v2734_v53  ;;  %v431_v63 = vadd.s32 %v303_v56, %v6908_v2 }
  0x99   :  { %v3245_v59 = vsel %vm3117_vm8, 1.0, %v6891_v8  ;;  %v2735_v61 = vshrl.u32 %v2607_v54, 8  ;;  %v2224_v62 = vxor.u32 %v2096_v55, %v1968_v36  ;;  %v432_v0 = vadd.s32 %v304_v57, %v6908_v2 }
  0x9a   :  { %v305_v5 = vmul.u32 16, %v7055_v13  ;;  %v2990_v6 = vmul.f32 5.9604645e-08, %v2862_v60  ;;  %v178_v40 = vadd.s32 208, %v6913_v4  ;;  %v179_v26 = vadd.s32 224, %v6906_v1 }
  0x9b   :  { %6695 = vmatmul.mubr.msk.f32.gmra.mxu0 %vm3365_vm2, %v3244_v58  ;;  %v2863_v7 = vcvt.s32.f32 %v2735_v61  ;;  %v2352_v9 = vmul.u32 2221713035, %v2224_v62  ;;  %v561_v12 = vxor.u32 %v6910_v3, %v431_v63  ;;  %v562_v14 = vxor.u32 %v6910_v3, %v432_v0 }
  0x9c   :  { %6697 = vmatprep.mubr.msk.f32.mxu0 %vm3365_vm2, %v3245_v59  ;;  %v433_v15 = vadd.s32 %v305_v5, %v6908_v2  ;;  %vm3118_vm9 = vcmp.lt.f32.partialorder %v2990_v6, 0.006449987  ;;  %v306_v13 = vmul.u32 16, %v178_v40  ;;  %v307_v17 = vmul.u32 16, %v179_v26 }
  0x9d   :  { %v2991_v16 = vmul.f32 5.9604645e-08, %v2863_v7  ;;  %v3246_v18 = vsel %vm3118_vm9, 1.0, %v6891_v8  ;;  %v2480_v19 = vshrl.u32 %v2352_v9, 16  ;;  %v689_v20 = vshrl.u32 %v561_v12, 16 }
  0x9e   :  { %v690_v21 = vshrl.u32 %v562_v14, 16  ;;  %v563_v22 = vxor.u32 %v6910_v3, %v433_v15  ;;  %v434_v23 = vadd.s32 %v306_v13, %v6908_v2  ;;  %v435_v24 = vadd.s32 %v307_v17, %v6908_v2 }
  0x9f   :  { %6698 = vmatmul.mubr.msk.f32.gmra.mxu0 %vm3365_vm2, %v3246_v18  ;;  %vm3119_vm10 = vcmp.lt.f32.partialorder %v2991_v16, 0.006449987  ;;  %v2608_v27 = vxor.u32 %v2480_v19, %v2352_v9  ;;  %v817_v28 = vxor.u32 %v689_v20, %v561_v12  ;;  %v180_v33 = vadd.s32 224, %v6913_v4 }
  0xa0   :  { %v3247_v25 = vsel %vm3119_vm10, 1.0, %v6891_v8  ;;  %v818_v29 = vxor.u32 %v690_v21, %v562_v14  ;;  %v691_v30 = vshrl.u32 %v563_v22, 16  ;;  %v564_v31 = vxor.u32 %v6910_v3, %v434_v23 }
  0xa1   :  { %6700 = vmatprep.mubr.msk.f32.mxu0 %vm3365_vm2, %v3247_v25  ;;  %v565_v32 = vxor.u32 %v6910_v3, %v435_v24  ;;  %v2736_v34 = vshrl.u32 %v2608_v27, 8  ;;  %v945_v10 = vmul.u32 2146121005, %v817_v28  ;;  %v181_v11 = vadd.s32 240, %v6906_v1 }
  0xa2   :  { %v946_v35 = vmul.u32 2146121005, %v818_v29  ;;  %v819_v37 = vxor.u32 %v691_v30, %v563_v22  ;;  %v692_v39 = vshrl.u32 %v564_v31, 16  ;;  %v308_v42 = vmul.u32 16, %v180_v33 }
  0xa3   :  { %v693_v41 = vshrl.u32 %v565_v32, 16  ;;  %v2864_v43 = vcvt.s32.f32 %v2736_v34  ;;  %v1073_v44 = vshrl.u32 %v945_v10, 15  ;;  %v309_v46 = vmul.u32 16, %v181_v11 }
  0xa4   :  { %v1074_v45 = vshrl.u32 %v946_v35, 15  ;;  %v947_v47 = vmul.u32 2146121005, %v819_v37  ;;  %v820_v48 = vxor.u32 %v692_v39, %v564_v31  ;;  %v436_v49 = vadd.s32 %v308_v42, %v6908_v2 }
  0xa5   :  { %v821_v36 = vxor.u32 %v693_v41, %v565_v32  ;;  %v2992_v50 = vmul.f32 5.9604645e-08, %v2864_v43  ;;  %v1201_v51 = vxor.u32 %v1073_v44, %v945_v10  ;;  %v437_v53 = vadd.s32 %v309_v46, %v6908_v2 }
  0xa6   :  { %v1202_v52 = vxor.u32 %v1074_v45, %v946_v35  ;;  %v1075_v54 = vshrl.u32 %v947_v47, 15  ;;  %v948_v55 = vmul.u32 2146121005, %v820_v48  ;;  %v566_v57 = vxor.u32 %v6910_v3, %v436_v49 }
  0xa7   :  { %v949_v56 = vmul.u32 2146121005, %v821_v36  ;;  %vm3120_vm11 = vcmp.lt.f32.partialorder %v2992_v50, 0.006449987  ;;  %v1329_v58 = vmul.u32 2221713035, %v1201_v51  ;;  %v567_v60 = vxor.u32 %v6910_v3, %v437_v53 }
  0xa8   :  { %v1330_v59 = vmul.u32 2221713035, %v1202_v52  ;;  %v3248_v61 = vsel %vm3120_vm11, 1.0, %v6891_v8  ;;  %v1203_v62 = vxor.u32 %v1075_v54, %v947_v47  ;;  %v1076_v63 = vshrl.u32 %v948_v55, 15 }
  0xa9   :  { %v1077_v0 = vshrl.u32 %v949_v56, 15  ;;  %6701 = vmatmul.mubr.msk.f32.gmra.mxu0 %vm3365_vm2, %v3248_v61  ;;  %v1457_v5 = vshrl.u32 %v1329_v58, 16  ;;  %v694_v7 = vshrl.u32 %v566_v57, 16  ;;  %v695_v40 = vshrl.u32 %v567_v60, 16 }
  0xaa   :  { %v1458_v6 = vshrl.u32 %v1330_v59, 16  ;;  %v1331_v26 = vmul.u32 2221713035, %v1203_v62  ;;  %v1204_v9 = vxor.u32 %v1076_v63, %v948_v55  ;;  %v182_v14 = vadd.s32 240, %v6913_v4 }
  0xab   :  { %v1205_v12 = vxor.u32 %v1077_v0, %v949_v56  ;;  %v1585_v15 = vxor.u32 %v1457_v5, %v1329_v58  ;;  %v822_v13 = vxor.u32 %v694_v7, %v566_v57  ;;  %v823_v17 = vxor.u32 %v695_v40, %v567_v60 }
  0xac   :  { %v1586_v16 = vxor.u32 %v1458_v6, %v1330_v59  ;;  %v1459_v18 = vshrl.u32 %v1331_v26, 16  ;;  %v1332_v19 = vmul.u32 2221713035, %v1204_v9  ;;  %v7096_v21 = vadd.s32 256, %v6906_v1 }
  0xad   :  { %v1333_v20 = vmul.u32 2221713035, %v1205_v12  ;;  %v1713_v22 = vshrl.u32 %v1585_v15, 16  ;;  %v950_v24 = vmul.u32 2146121005, %v822_v13 }
  0xae   :  { %v1714_v23 = vshrl.u32 %v1586_v16, 16  ;;  %v951_v25 = vmul.u32 2146121005, %v823_v17  ;;  %v1587_v27 = vxor.u32 %v1459_v18, %v1331_v26  ;;  %v1460_v28 = vshrl.u32 %v1332_v19, 16 }
  0xaf   :  { %v1461_v29 = vshrl.u32 %v1333_v20, 16  ;;  %v310_v30 = vmul.u32 16, %v182_v14  ;;  %v1841_v31 = vxor.u32 %v1713_v22, %v1585_v15  ;;  %v1078_v33 = vshrl.u32 %v950_v24, 15 }
  0xb0   :  { %v1842_v32 = vxor.u32 %v1714_v23, %v1586_v16  ;;  %v1079_v34 = vshrl.u32 %v951_v25, 15  ;;  %v1715_v10 = vshrl.u32 %v1587_v27, 16  ;;  %v1588_v35 = vxor.u32 %v1460_v28, %v1332_v19 }
  0xb1   :  { %v1589_v11 = vxor.u32 %v1461_v29, %v1333_v20  ;;  %v438_v37 = vadd.s32 %v310_v30, %v6908_v2  ;;  %v1969_v39 = vmul.u32 2146121005, %v1841_v31  ;;  %v1206_v42 = vxor.u32 %v1078_v33, %v950_v24 }
  0xb2   :  { %v1970_v41 = vmul.u32 2146121005, %v1842_v32  ;;  %v1207_v43 = vxor.u32 %v1079_v34, %v951_v25  ;;  %v1843_v44 = vxor.u32 %v1715_v10, %v1587_v27  ;;  %v1716_v45 = vshrl.u32 %v1588_v35, 16 }
  0xb3   :  { %v1717_v46 = vshrl.u32 %v1589_v11, 16  ;;  %v568_v47 = vxor.u32 %v6910_v3, %v438_v37  ;;  %v2097_v48 = vshrl.u32 %v1969_v39, 15  ;;  %v1334_v49 = vmul.u32 2221713035, %v1206_v42 }
  0xb4   :  { %v2098_v36 = vshrl.u32 %v1970_v41, 15  ;;  %v1335_v50 = vmul.u32 2221713035, %v1207_v43  ;;  %v1971_v51 = vmul.u32 2146121005, %v1843_v44  ;;  %v1844_v52 = vxor.u32 %v1716_v45, %v1588_v35 }
  0xb5   :  { %v1845_v53 = vxor.u32 %v1717_v46, %v1589_v11  ;;  %v696_v54 = vshrl.u32 %v568_v47, 16  ;;  %v2225_v55 = vxor.u32 %v2097_v48, %v1969_v39  ;;  %v1462_v57 = vshrl.u32 %v1334_v49, 16 }
  0xb6   :  { %v2226_v56 = vxor.u32 %v2098_v36, %v1970_v41  ;;  %v1463_v58 = vshrl.u32 %v1335_v50, 16  ;;  %v2099_v59 = vshrl.u32 %v1971_v51, 15  ;;  %v1972_v60 = vmul.u32 2146121005, %v1844_v52 }
  0xb7   :  { %v1973_v61 = vmul.u32 2146121005, %v1845_v53  ;;  %v824_v62 = vxor.u32 %v696_v54, %v568_v47  ;;  %v2353_v63 = vmul.u32 2221713035, %v2225_v55  ;;  %v1590_v5 = vxor.u32 %v1462_v57, %v1334_v49 }
  0xb8   :  { %v2354_v0 = vmul.u32 2221713035, %v2226_v56  ;;  %v1591_v6 = vxor.u32 %v1463_v58, %v1335_v50  ;;  %v2227_v7 = vxor.u32 %v2099_v59, %v1971_v51  ;;  %v2100_v40 = vshrl.u32 %v1972_v60, 15 }
  0xb9   :  { %v2101_v26 = vshrl.u32 %v1973_v61, 15  ;;  %v952_v9 = vmul.u32 2146121005, %v824_v62  ;;  %v2481_v12 = vshrl.u32 %v2353_v63, 16  ;;  %v1718_v15 = vshrl.u32 %v1590_v5, 16 }
  0xba   :  { %v2482_v14 = vshrl.u32 %v2354_v0, 16  ;;  %v1719_v16 = vshrl.u32 %v1591_v6, 16  ;;  %v2355_v13 = vmul.u32 2221713035, %v2227_v7  ;;  %v2228_v17 = vxor.u32 %v2100_v40, %v1972_v60 }
  0xbb   :  { %v2229_v18 = vxor.u32 %v2101_v26, %v1973_v61  ;;  %v1080_v19 = vshrl.u32 %v952_v9, 15  ;;  %v2609_v20 = vxor.u32 %v2481_v12, %v2353_v63  ;;  %v1846_v23 = vxor.u32 %v1718_v15, %v1590_v5 }
  0xbc   :  { %v2610_v22 = vxor.u32 %v2482_v14, %v2354_v0  ;;  %v1847_v24 = vxor.u32 %v1719_v16, %v1591_v6  ;;  %v2483_v25 = vshrl.u32 %v2355_v13, 16  ;;  %v2356_v27 = vmul.u32 2221713035, %v2228_v17 }
  0xbd   :  { %v2357_v28 = vmul.u32 2221713035, %v2229_v18  ;;  %v1208_v29 = vxor.u32 %v1080_v19, %v952_v9  ;;  %v2737_v30 = vshrl.u32 %v2609_v20, 8  ;;  %v1974_v32 = vmul.u32 2146121005, %v1846_v23 }
  0xbe   :  { %v2738_v31 = vshrl.u32 %v2610_v22, 8  ;;  %v1975_v33 = vmul.u32 2146121005, %v1847_v24  ;;  %v2611_v34 = vxor.u32 %v2483_v25, %v2355_v13  ;;  %v2484_v10 = vshrl.u32 %v2356_v27, 16 }
  0xbf   :  { %v2485_v35 = vshrl.u32 %v2357_v28, 16  ;;  %v1336_v11 = vmul.u32 2221713035, %v1208_v29  ;;  %v2865_v37 = vcvt.s32.f32 %v2737_v30  ;;  %v2102_v41 = vshrl.u32 %v1974_v32, 15 }
  0xc0   :  { %v2866_v39 = vcvt.s32.f32 %v2738_v31  ;;  %v2103_v42 = vshrl.u32 %v1975_v33, 15  ;;  %v2739_v43 = vshrl.u32 %v2611_v34, 8  ;;  %v2612_v44 = vxor.u32 %v2484_v10, %v2356_v27 }
  0xc1   :  { %v2613_v45 = vxor.u32 %v2485_v35, %v2357_v28  ;;  %v1464_v46 = vshrl.u32 %v1336_v11, 16  ;;  %v2993_v47 = vmul.f32 5.9604645e-08, %v2865_v37  ;;  %v2230_v36 = vxor.u32 %v2102_v41, %v1974_v32 }
  0xc2   :  { %v2994_v48 = vmul.f32 5.9604645e-08, %v2866_v39  ;;  %v2231_v49 = vxor.u32 %v2103_v42, %v1975_v33  ;;  %v2867_v50 = vcvt.s32.f32 %v2739_v43  ;;  %v2740_v51 = vshrl.u32 %v2612_v44, 8 }
  0xc3   :  { %v2741_v52 = vshrl.u32 %v2613_v45, 8  ;;  %v1592_v53 = vxor.u32 %v1464_v46, %v1336_v11  ;;  %vm3121_vm12 = vcmp.lt.f32.partialorder %v2993_v47, 0.006449987  ;;  %v2358_v54 = vmul.u32 2221713035, %v2230_v36 }
  0xc4   :  { %vm3122_vm13 = vcmp.lt.f32.partialorder %v2994_v48, 0.006449987  ;;  %v3249_v55 = vsel %vm3121_vm12, 1.0, %v6891_v8  ;;  %v2995_v57 = vmul.f32 5.9604645e-08, %v2867_v50  ;;  %v2868_v58 = vcvt.s32.f32 %v2740_v51 }
  0xc5   :  { %v3250_v56 = vsel %vm3122_vm13, 1.0, %v6891_v8  ;;  %6703 = vmatprep.mubr.msk.f32.mxu0 %vm3365_vm2, %v3249_v55  ;;  %v2869_v59 = vcvt.s32.f32 %v2741_v52  ;;  %v2486_v60 = vshrl.u32 %v2358_v54, 16  ;;  %v2359_v61 = vmul.u32 2221713035, %v2231_v49 }
  0xc6   :  { %v1720_v62 = vshrl.u32 %v1592_v53, 16  ;;  %6704 = vmatmul.mubr.msk.f32.gmra.mxu0 %vm3365_vm2, %v3250_v56  ;;  %vm3123_vm14 = vcmp.lt.f32.partialorder %v2995_v57, 0.006449987  ;;  %v2996_v63 = vmul.f32 5.9604645e-08, %v2868_v58  ;;  %v311_v0 = vmul.u32 16, %v7096_v21 }
  0xc7   :  { %v184_v5 = vadd.s32 256, %v6913_v4  ;;  %v3251_v6 = vsel %vm3123_vm14, 1.0, %v6891_v8  ;;  %v2997_v7 = vmul.f32 5.9604645e-08, %v2869_v59  ;;  %v2614_v40 = vxor.u32 %v2486_v60, %v2358_v54 }
  0xc8   :  { %v2487_v26 = vshrl.u32 %v2359_v61, 16  ;;  %6706 = vmatprep.mubr.msk.f32.mxu0 %vm3365_vm2, %v3251_v6  ;;  %vm3124_vm15 = vcmp.lt.f32.partialorder %v2996_v63, 0.006449987  ;;  %v1848_v9 = vxor.u32 %v1720_v62, %v1592_v53  ;;  %v439_v12 = vadd.s32 %v311_v0, %v6908_v2 }
  0xc9   :  { %v312_v14 = vmul.u32 16, %v184_v5  ;;  %v3252_v15 = vsel %vm3124_vm15, 1.0, %v6891_v8  ;;  %vm3125_vm0 = vcmp.lt.f32.partialorder %v2997_v7, 0.006449987  ;;  %v2742_v16 = vshrl.u32 %v2614_v40, 8 }
  0xca   :  { %v2615_v13 = vxor.u32 %v2487_v26, %v2359_v61  ;;  %6707 = vmatmul.mubr.msk.f32.gmra.mxu0 %vm3365_vm2, %v3252_v15  ;;  %v3253_v21 = vsel %vm3125_vm0, 1.0, %v6891_v8  ;;  %v1976_v17 = vmul.u32 2146121005, %v1848_v9  ;;  %v569_v18 = vxor.u32 %v6910_v3, %v439_v12 }
  0xcb   :  { %v440_v19 = vadd.s32 %v312_v14, %v6908_v2  ;;  %6709 = vmatprep.mubr.msk.f32.mxu0 %vm3365_vm2, %v3253_v21  ;;  %v2870_v20 = vcvt.s32.f32 %v2742_v16  ;;  %v185_v23 = vadd.s32 272, %v6906_v1  ;;  %v186_v24 = vadd.s32 272, %v6913_v4 }
  0xcc   :  { %v2743_v22 = vshrl.u32 %v2615_v13, 8  ;;  %v2104_v25 = vshrl.u32 %v1976_v17, 15  ;;  %v697_v27 = vshrl.u32 %v569_v18, 16  ;;  %v187_v29 = vadd.s32 288, %v6906_v1 }
  0xcd   :  { %v570_v28 = vxor.u32 %v6910_v3, %v440_v19  ;;  %v2998_v30 = vmul.f32 5.9604645e-08, %v2870_v20  ;;  %v313_v32 = vmul.u32 16, %v185_v23  ;;  %v314_v33 = vmul.u32 16, %v186_v24 }
  0xce   :  { %v2871_v31 = vcvt.s32.f32 %v2743_v22  ;;  %v2232_v34 = vxor.u32 %v2104_v25, %v1976_v17  ;;  %v825_v10 = vxor.u32 %v697_v27, %v569_v18  ;;  %v315_v11 = vmul.u32 16, %v187_v29 }
  0xcf   :  { %v698_v35 = vshrl.u32 %v570_v28, 16  ;;  %vm3126_vm1 = vcmp.lt.f32.partialorder %v2998_v30, 0.006449987  ;;  %v441_v39 = vadd.s32 %v313_v32, %v6908_v2  ;;  %v442_v41 = vadd.s32 %v314_v33, %v6908_v2 }
  0xd0   :  { %v2999_v37 = vmul.f32 5.9604645e-08, %v2871_v31  ;;  %v3254_v42 = vsel %vm3126_vm1, 1.0, %v6891_v8  ;;  %v2360_v43 = vmul.u32 2221713035, %v2232_v34  ;;  %v953_v44 = vmul.u32 2146121005, %v825_v10 }
  0xd1   :  { %v826_v45 = vxor.u32 %v698_v35, %v570_v28  ;;  %6710 = vmatmul.mubr.msk.f32.gmra.mxu0 %vm3365_vm2, %v3254_v42  ;;  %v571_v46 = vxor.u32 %v6910_v3, %v441_v39  ;;  %v572_v47 = vxor.u32 %v6910_v3, %v442_v41  ;;  %v443_v48 = vadd.s32 %v315_v11, %v6908_v2 }
  0xd2   :  { %vm3127_vm3 = vcmp.lt.f32.partialorder %v2999_v37, 0.006449987  ;;  %v2488_v49 = vshrl.u32 %v2360_v43, 16  ;;  %v1081_v50 = vshrl.u32 %v953_v44, 15  ;;  %v188_v55 = vadd.s32 288, %v6913_v4 }
  0xd3   :  { %v3255_v36 = vsel %vm3127_vm3, 1.0, %v6891_v8  ;;  %v954_v51 = vmul.u32 2146121005, %v826_v45  ;;  %v699_v52 = vshrl.u32 %v571_v46, 16  ;;  %v700_v53 = vshrl.u32 %v572_v47, 16 }
  0xd4   :  { %6712 = vmatprep.mubr.msk.f32.mxu0 %vm3365_vm2, %v3255_v36  ;;  %v573_v54 = vxor.u32 %v6910_v3, %v443_v48  ;;  %v2616_v56 = vxor.u32 %v2488_v49, %v2360_v43  ;;  %v1209_v57 = vxor.u32 %v1081_v50, %v953_v44  ;;  %v189_v59 = vadd.s32 304, %v6906_v1 }
  0xd5   :  { %v1082_v58 = vshrl.u32 %v954_v51, 15  ;;  %v827_v60 = vxor.u32 %v699_v52, %v571_v46  ;;  %v828_v61 = vxor.u32 %v700_v53, %v572_v47  ;;  %v316_v63 = vmul.u32 16, %v188_v55 }
  0xd6   :  { %v701_v62 = vshrl.u32 %v573_v54, 16  ;;  %v2744_v0 = vshrl.u32 %v2616_v56, 8  ;;  %v1337_v5 = vmul.u32 2221713035, %v1209_v57  ;;  %v317_v7 = vmul.u32 16, %v189_v59 }
  0xd7   :  { %v1210_v6 = vxor.u32 %v1082_v58, %v954_v51  ;;  %v955_v40 = vmul.u32 2146121005, %v827_v60  ;;  %v956_v26 = vmul.u32 2146121005, %v828_v61  ;;  %v444_v12 = vadd.s32 %v316_v63, %v6908_v2 }
  0xd8   :  { %v829_v9 = vxor.u32 %v701_v62, %v573_v54  ;;  %v2872_v14 = vcvt.s32.f32 %v2744_v0  ;;  %v1465_v15 = vshrl.u32 %v1337_v5, 16  ;;  %v445_v13 = vadd.s32 %v317_v7, %v6908_v2 }
  0xd9   :  { %v1338_v16 = vmul.u32 2221713035, %v1210_v6  ;;  %v1083_v21 = vshrl.u32 %v955_v40, 15  ;;  %v1084_v17 = vshrl.u32 %v956_v26, 15  ;;  %v574_v19 = vxor.u32 %v6910_v3, %v444_v12 }
  0xda   :  { %v957_v18 = vmul.u32 2146121005, %v829_v9  ;;  %v3000_v20 = vmul.f32 5.9604645e-08, %v2872_v14  ;;  %v1593_v22 = vxor.u32 %v1465_v15, %v1337_v5  ;;  %v575_v24 = vxor.u32 %v6910_v3, %v445_v13 }
  0xdb   :  { %v1466_v23 = vshrl.u32 %v1338_v16, 16  ;;  %v1211_v25 = vxor.u32 %v1083_v21, %v955_v40  ;;  %v1212_v27 = vxor.u32 %v1084_v17, %v956_v26  ;;  %v702_v29 = vshrl.u32 %v574_v19, 16 }
  0xdc   :  { %v1085_v28 = vshrl.u32 %v957_v18, 15  ;;  %vm3128_vm4 = vcmp.lt.f32.partialorder %v3000_v20, 0.006449987  ;;  %v1721_v30 = vshrl.u32 %v1593_v22, 16  ;;  %v703_v32 = vshrl.u32 %v575_v24, 16 }
  0xdd   :  { %v1594_v31 = vxor.u32 %v1466_v23, %v1338_v16  ;;  %v3256_v33 = vsel %vm3128_vm4, 1.0, %v6891_v8  ;;  %v1339_v34 = vmul.u32 2221713035, %v1211_v25  ;;  %v1340_v10 = vmul.u32 2221713035, %v1212_v27 }
  0xde   :  { %v1213_v35 = vxor.u32 %v1085_v28, %v957_v18  ;;  %6713 = vmatmul.mubr.msk.f32.gmra.mxu0 %vm3365_vm2, %v3256_v33  ;;  %v1849_v11 = vxor.u32 %v1721_v30, %v1593_v22  ;;  %v830_v39 = vxor.u32 %v702_v29, %v574_v19  ;;  %v831_v41 = vxor.u32 %v703_v32, %v575_v24 }
  0xdf   :  { %v1722_v37 = vshrl.u32 %v1594_v31, 16  ;;  %v1467_v42 = vshrl.u32 %v1339_v34, 16  ;;  %v1468_v43 = vshrl.u32 %v1340_v10, 16  ;;  %v190_v45 = vadd.s32 304, %v6913_v4 }
  0xe0   :  { %v1341_v44 = vmul.u32 2221713035, %v1213_v35  ;;  %v1977_v46 = vmul.u32 2146121005, %v1849_v11  ;;  %v7139_v36 = vadd.s32 320, %v6906_v1  ;;  %v7144_v21 = vadd.s32 320, %v6913_v4 }
  0xe1   :  { %v1850_v47 = vxor.u32 %v1722_v37, %v1594_v31  ;;  %v958_v48 = vmul.u32 2146121005, %v830_v39  ;;  %v1595_v49 = vxor.u32 %v1467_v42, %v1339_v34  ;;  %v1596_v50 = vxor.u32 %v1468_v43, %v1340_v10 }
  0xe2   :  { %v1469_v51 = vshrl.u32 %v1341_v44, 16  ;;  %v959_v52 = vmul.u32 2146121005, %v831_v41  ;;  %v2105_v53 = vshrl.u32 %v1977_v46, 15  ;;  %v318_v56 = vmul.u32 16, %v190_v45 }
  0xe3   :  { %v1978_v54 = vmul.u32 2146121005, %v1850_v47  ;;  %v1086_v55 = vshrl.u32 %v958_v48, 15  ;;  %v1723_v57 = vshrl.u32 %v1595_v49, 16  ;;  %v1724_v58 = vshrl.u32 %v1596_v50, 16 }
  0xe4   :  { %v1597_v59 = vxor.u32 %v1469_v51, %v1341_v44  ;;  %v1087_v60 = vshrl.u32 %v959_v52, 15  ;;  %v2233_v61 = vxor.u32 %v2105_v53, %v1977_v46  ;;  %v446_v0 = vadd.s32 %v318_v56, %v6908_v2 }
  0xe5   :  { %v2106_v62 = vshrl.u32 %v1978_v54, 15  ;;  %v1214_v63 = vxor.u32 %v1086_v55, %v958_v48  ;;  %v1851_v5 = vxor.u32 %v1723_v57, %v1595_v49  ;;  %v1852_v6 = vxor.u32 %v1724_v58, %v1596_v50 }
  0xe6   :  { %v1725_v7 = vshrl.u32 %v1597_v59, 16  ;;  %v1215_v40 = vxor.u32 %v1087_v60, %v959_v52  ;;  %v2361_v26 = vmul.u32 2221713035, %v2233_v61  ;;  %v576_v14 = vxor.u32 %v6910_v3, %v446_v0 }
  0xe7   :  { %v2234_v9 = vxor.u32 %v2106_v62, %v1978_v54  ;;  %v1342_v12 = vmul.u32 2221713035, %v1214_v63  ;;  %v1979_v15 = vmul.u32 2146121005, %v1851_v5  ;;  %v7147_v43 = vadd.s32 336, %v6906_v1 }
  0xe8   :  { %v1980_v16 = vmul.u32 2146121005, %v1852_v6  ;;  %v1853_v13 = vxor.u32 %v1725_v7, %v1597_v59  ;;  %v2489_v17 = vshrl.u32 %v2361_v26, 16  ;;  %v1343_v20 = vmul.u32 2221713035, %v1215_v40 }
  0xe9   :  { %v2362_v18 = vmul.u32 2221713035, %v2234_v9  ;;  %v1470_v19 = vshrl.u32 %v1342_v12, 16  ;;  %v2107_v22 = vshrl.u32 %v1979_v15, 15  ;;  %v704_v25 = vshrl.u32 %v576_v14, 16 }
  0xea   :  { %v2108_v23 = vshrl.u32 %v1980_v16, 15  ;;  %v1981_v24 = vmul.u32 2146121005, %v1853_v13  ;;  %v2617_v27 = vxor.u32 %v2489_v17, %v2361_v26  ;;  %v1471_v30 = vshrl.u32 %v1343_v20, 16 }
  0xeb   :  { %v2490_v28 = vshrl.u32 %v2362_v18, 16  ;;  %v1598_v29 = vxor.u32 %v1470_v19, %v1342_v12  ;;  %v2235_v31 = vxor.u32 %v2107_v22, %v1979_v15  ;;  %v832_v34 = vxor.u32 %v704_v25, %v576_v14 }
  0xec   :  { %v2236_v32 = vxor.u32 %v2108_v23, %v1980_v16  ;;  %v2109_v33 = vshrl.u32 %v1981_v24, 15  ;;  %v2745_v10 = vshrl.u32 %v2617_v27, 8  ;;  %v1599_v37 = vxor.u32 %v1471_v30, %v1343_v20 }
  0xed   :  { %v2618_v35 = vxor.u32 %v2490_v28, %v2362_v18  ;;  %v1726_v11 = vshrl.u32 %v1598_v29, 16  ;;  %v2363_v39 = vmul.u32 2221713035, %v2235_v31  ;;  %v960_v51 = vmul.u32 2146121005, %v832_v34 }
  0xee   :  { %v2364_v41 = vmul.u32 2221713035, %v2236_v32  ;;  %v2237_v42 = vxor.u32 %v2109_v33, %v1981_v24  ;;  %v2873_v44 = vcvt.s32.f32 %v2745_v10  ;;  %v1727_v47 = vshrl.u32 %v1599_v37, 16 }
  0xef   :  { %v2746_v45 = vshrl.u32 %v2618_v35, 8  ;;  %v1854_v46 = vxor.u32 %v1726_v11, %v1598_v29  ;;  %v2491_v48 = vshrl.u32 %v2363_v39, 16  ;;  %v1088_v59 = vshrl.u32 %v960_v51, 15 }
  0xf0   :  { %v2492_v49 = vshrl.u32 %v2364_v41, 16  ;;  %v2365_v50 = vmul.u32 2221713035, %v2237_v42  ;;  %v3001_v52 = vmul.f32 5.9604645e-08, %v2873_v44  ;;  %v1855_v55 = vxor.u32 %v1727_v47, %v1599_v37 }
  0xf1   :  { %v2874_v53 = vcvt.s32.f32 %v2746_v45  ;;  %v1982_v54 = vmul.u32 2146121005, %v1854_v46  ;;  %v2619_v56 = vxor.u32 %v2491_v48, %v2363_v39  ;;  %v1216_v26 = vxor.u32 %v1088_v59, %v960_v51 }
  0xf2   :  { %v2620_v57 = vxor.u32 %v2492_v49, %v2364_v41  ;;  %v2493_v58 = vshrl.u32 %v2365_v50, 16  ;;  %vm3129_vm5 = vcmp.lt.f32.partialorder %v3001_v52, 0.006449987  ;;  %v1983_v62 = vmul.u32 2146121005, %v1855_v55 }
  0xf3   :  { %v3002_v60 = vmul.f32 5.9604645e-08, %v2874_v53  ;;  %v2110_v61 = vshrl.u32 %v1982_v54, 15  ;;  %v3257_v63 = vsel %vm3129_vm5, 1.0, %v6891_v8  ;;  %v2747_v0 = vshrl.u32 %v2619_v56, 8 }
  0xf4   :  { %v2748_v5 = vshrl.u32 %v2620_v57, 8  ;;  %v2621_v6 = vxor.u32 %v2493_v58, %v2365_v50  ;;  %6715 = vmatprep.mubr.msk.f32.mxu0 %vm3365_vm2, %v3257_v63  ;;  %v2111_v40 = vshrl.u32 %v1983_v62, 15  ;;  %v1344_v17 = vmul.u32 2221713035, %v1216_v26 }
  0xf5   :  { %vm3130_vm6 = vcmp.lt.f32.partialorder %v3002_v60, 0.006449987  ;;  %v2238_v7 = vxor.u32 %v2110_v61, %v1982_v54  ;;  %v2875_v12 = vcvt.s32.f32 %v2747_v0  ;;  %v194_v18 = vadd.s32 336, %v6913_v4 }
  0xf6   :  { %v3258_v9 = vsel %vm3130_vm6, 1.0, %v6891_v8  ;;  %v2876_v14 = vcvt.s32.f32 %v2748_v5  ;;  %v2749_v15 = vshrl.u32 %v2621_v6, 8  ;;  %v2239_v13 = vxor.u32 %v2111_v40, %v1983_v62 }
  0xf7   :  { %6716 = vmatmul.mubr.msk.f32.gmra.mxu0 %vm3365_vm2, %v3258_v9  ;;  %v2366_v16 = vmul.u32 2221713035, %v2238_v7  ;;  %v3003_v19 = vmul.f32 5.9604645e-08, %v2875_v12  ;;  %v319_v23 = vmul.u32 16, %v7139_v36  ;;  %v1472_v27 = vshrl.u32 %v1344_v17, 16 }
  0xf8   :  { %v3004_v20 = vmul.f32 5.9604645e-08, %v2876_v14  ;;  %v2877_v22 = vcvt.s32.f32 %v2749_v15  ;;  %v2367_v25 = vmul.u32 2221713035, %v2239_v13  ;;  %v320_v28 = vmul.u32 16, %v7144_v21 }
  0xf9   :  { %v2494_v24 = vshrl.u32 %v2366_v16, 16  ;;  %vm3131_vm7 = vcmp.lt.f32.partialorder %v3003_v19, 0.006449987  ;;  %v447_v30 = vadd.s32 %v319_v23, %v6908_v2  ;;  %v1600_v36 = vxor.u32 %v1472_v27, %v1344_v17 }
  0xfa   :  { %vm3132_vm8 = vcmp.lt.f32.partialorder %v3004_v20, 0.006449987  ;;  %v3005_v29 = vmul.f32 5.9604645e-08, %v2877_v22  ;;  %v3259_v31 = vsel %vm3131_vm7, 1.0, %v6891_v8  ;;  %v2495_v34 = vshrl.u32 %v2367_v25, 16 }
  0xfb   :  { %v3260_v32 = vsel %vm3132_vm8, 1.0, %v6891_v8  ;;  %v2622_v33 = vxor.u32 %v2494_v24, %v2366_v16  ;;  %6718 = vmatprep.mubr.msk.f32.mxu0 %vm3365_vm2, %v3259_v31  ;;  %v577_v10 = vxor.u32 %v6910_v3, %v447_v30  ;;  %v448_v35 = vadd.s32 %v320_v28, %v6908_v2 }
  0xfc   :  { %vm3133_vm9 = vcmp.lt.f32.partialorder %v3005_v29, 0.006449987  ;;  %6719 = vmatmul.mubr.msk.f32.gmra.mxu0 %vm3365_vm2, %v3260_v32  ;;  %v2623_v37 = vxor.u32 %v2495_v34, %v2367_v25  ;;  %v321_v39 = vmul.u32 16, %v7147_v43  ;;  %v1728_v41 = vshrl.u32 %v1600_v36, 16 }
  0xfd   :  { %v3261_v21 = vsel %vm3133_vm9, 1.0, %v6891_v8  ;;  %v2750_v11 = vshrl.u32 %v2622_v33, 8  ;;  %v705_v42 = vshrl.u32 %v577_v10, 16  ;;  %v578_v44 = vxor.u32 %v6910_v3, %v448_v35 }
  0xfe   :  { %6721 = vmatprep.mubr.msk.f32.mxu0 %vm3365_vm2, %v3261_v21  ;;  %v322_v45 = vmul.u32 16, %v194_v18  ;;  %v2751_v47 = vshrl.u32 %v2623_v37, 8  ;;  %v449_v48 = vadd.s32 %v321_v39, %v6908_v2  ;;  %v195_v49 = vadd.s32 352, %v6906_v1 }
  0xff   :  { %v2878_v46 = vcvt.s32.f32 %v2750_v11  ;;  %v1856_v50 = vxor.u32 %v1728_v41, %v1600_v36  ;;  %v833_v51 = vxor.u32 %v705_v42, %v577_v10  ;;  %v706_v52 = vshrl.u32 %v578_v44, 16 }
 0x100   :  { %v450_v53 = vadd.s32 %v322_v45, %v6908_v2  ;;  %v2879_v43 = vcvt.s32.f32 %v2751_v47  ;;  %v579_v55 = vxor.u32 %v6910_v3, %v449_v48  ;;  %v323_v56 = vmul.u32 16, %v195_v49 }
 0x101   :  { %v3006_v54 = vmul.f32 5.9604645e-08, %v2878_v46  ;;  %v1984_v57 = vmul.u32 2146121005, %v1856_v50  ;;  %v961_v58 = vmul.u32 2146121005, %v833_v51  ;;  %v834_v59 = vxor.u32 %v706_v52, %v578_v44 }
 0x102   :  { %v580_v60 = vxor.u32 %v6910_v3, %v450_v53  ;;  %v3007_v61 = vmul.f32 5.9604645e-08, %v2879_v43  ;;  %v707_v62 = vshrl.u32 %v579_v55, 16  ;;  %v451_v63 = vadd.s32 %v323_v56, %v6908_v2 }
 0x103   :  { %vm3134_vm10 = vcmp.lt.f32.partialorder %v3006_v54, 0.006449987  ;;  %v2112_v5 = vshrl.u32 %v1984_v57, 15  ;;  %v1089_v6 = vshrl.u32 %v961_v58, 15  ;;  %v962_v7 = vmul.u32 2146121005, %v834_v59 }
 0x104   :  { %v3262_v0 = vsel %vm3134_vm10, 1.0, %v6891_v8  ;;  %vm3135_vm11 = vcmp.lt.f32.partialorder %v3007_v61, 0.006449987  ;;  %v835_v40 = vxor.u32 %v707_v62, %v579_v55  ;;  %v708_v26 = vshrl.u32 %v580_v60, 16 }
 0x105   :  { %6722 = vmatmul.mubr.msk.f32.gmra.mxu0 %vm3365_vm2, %v3262_v0  ;;  %v581_v9 = vxor.u32 %v6910_v3, %v451_v63  ;;  %v3263_v12 = vsel %vm3135_vm11, 1.0, %v6891_v8  ;;  %v2240_v14 = vxor.u32 %v2112_v5, %v1984_v57  ;;  %v1217_v15 = vxor.u32 %v1089_v6, %v961_v58 }
 0x106   :  { %v1090_v16 = vshrl.u32 %v962_v7, 15  ;;  %6724 = vmatprep.mubr.msk.f32.mxu0 %vm3365_vm2, %v3263_v12  ;;  %v963_v13 = vmul.u32 2146121005, %v835_v40  ;;  %v836_v17 = vxor.u32 %v708_v26, %v580_v60  ;;  %v196_v19 = vadd.s32 352, %v6913_v4 }
 0x107   :  { %v709_v18 = vshrl.u32 %v581_v9, 16  ;;  %v2368_v20 = vmul.u32 2221713035, %v2240_v14  ;;  %v1345_v22 = vmul.u32 2221713035, %v1217_v15  ;;  %v197_v24 = vadd.s32 368, %v6906_v1 }
 0x108   :  { %v1218_v23 = vxor.u32 %v1090_v16, %v962_v7  ;;  %v1091_v25 = vshrl.u32 %v963_v13, 15  ;;  %v964_v27 = vmul.u32 2146121005, %v836_v17  ;;  %v324_v29 = vmul.u32 16, %v196_v19 }
 0x109   :  { %v837_v28 = vxor.u32 %v709_v18, %v581_v9  ;;  %v2496_v30 = vshrl.u32 %v2368_v20, 16  ;;  %v1473_v31 = vshrl.u32 %v1345_v22, 16  ;;  %v325_v33 = vmul.u32 16, %v197_v24 }
 0x10a   :  { %v1346_v32 = vmul.u32 2221713035, %v1218_v23  ;;  %v1219_v34 = vxor.u32 %v1091_v25, %v963_v13  ;;  %v1092_v36 = vshrl.u32 %v964_v27, 15  ;;  %v452_v35 = vadd.s32 %v324_v29, %v6908_v2 }
 0x10b   :  { %v965_v10 = vmul.u32 2146121005, %v837_v28  ;;  %v2624_v21 = vxor.u32 %v2496_v30, %v2368_v20  ;;  %v1601_v11 = vxor.u32 %v1473_v31, %v1345_v22  ;;  %v453_v39 = vadd.s32 %v325_v33, %v6908_v2 }
 0x10c   :  { %v1474_v37 = vshrl.u32 %v1346_v32, 16  ;;  %v1347_v41 = vmul.u32 2221713035, %v1219_v34  ;;  %v1220_v42 = vxor.u32 %v1092_v36, %v964_v27  ;;  %v582_v45 = vxor.u32 %v6910_v3, %v452_v35 }
 0x10d   :  { %v1093_v44 = vshrl.u32 %v965_v10, 15  ;;  %v2752_v46 = vshrl.u32 %v2624_v21, 8  ;;  %v1729_v47 = vshrl.u32 %v1601_v11, 16  ;;  %v583_v49 = vxor.u32 %v6910_v3, %v453_v39 }
 0x10e   :  { %v1602_v48 = vxor.u32 %v1474_v37, %v1346_v32  ;;  %v1475_v50 = vshrl.u32 %v1347_v41, 16  ;;  %v1348_v51 = vmul.u32 2221713035, %v1220_v42  ;;  %v710_v53 = vshrl.u32 %v582_v45, 16 }
 0x10f   :  { %v1221_v52 = vxor.u32 %v1093_v44, %v965_v10  ;;  %v2880_v54 = vcvt.s32.f32 %v2752_v46  ;;  %v1857_v43 = vxor.u32 %v1729_v47, %v1601_v11  ;;  %v711_v56 = vshrl.u32 %v583_v49, 16 }
 0x110   :  { %v1730_v55 = vshrl.u32 %v1602_v48, 16  ;;  %v1603_v57 = vxor.u32 %v1475_v50, %v1347_v41  ;;  %v1476_v58 = vshrl.u32 %v1348_v51, 16  ;;  %v838_v60 = vxor.u32 %v710_v53, %v582_v45 }
 0x111   :  { %v1349_v59 = vmul.u32 2221713035, %v1221_v52  ;;  %v3008_v61 = vmul.f32 5.9604645e-08, %v2880_v54  ;;  %v1985_v62 = vmul.u32 2146121005, %v1857_v43  ;;  %v839_v0 = vxor.u32 %v711_v56, %v583_v49 }
 0x112   :  { %v1858_v63 = vxor.u32 %v1730_v55, %v1602_v48  ;;  %v1731_v5 = vshrl.u32 %v1603_v57, 16  ;;  %v1604_v6 = vxor.u32 %v1476_v58, %v1348_v51  ;;  %v966_v40 = vmul.u32 2146121005, %v838_v60 }
 0x113   :  { %v1477_v7 = vshrl.u32 %v1349_v59, 16  ;;  %vm3136_vm12 = vcmp.lt.f32.partialorder %v3008_v61, 0.006449987  ;;  %v2113_v26 = vshrl.u32 %v1985_v62, 15  ;;  %v198_v12 = vadd.s32 368, %v6913_v4 }
 0x114   :  { %v1986_v9 = vmul.u32 2146121005, %v1858_v63  ;;  %v3264_v14 = vsel %vm3136_vm12, 1.0, %v6891_v8  ;;  %v1859_v15 = vxor.u32 %v1731_v5, %v1603_v57  ;;  %v1732_v16 = vshrl.u32 %v1604_v6, 16 }
 0x115   :  { %v1605_v13 = vxor.u32 %v1477_v7, %v1349_v59  ;;  %6725 = vmatmul.mubr.msk.f32.gmra.mxu0 %vm3365_vm2, %v3264_v14  ;;  %v2241_v17 = vxor.u32 %v2113_v26, %v1985_v62  ;;  %v1094_v19 = vshrl.u32 %v966_v40, 15  ;;  %v967_v20 = vmul.u32 2146121005, %v839_v0 }
 0x116   :  { %v2114_v18 = vshrl.u32 %v1986_v9, 15  ;;  %v1987_v22 = vmul.u32 2146121005, %v1859_v15  ;;  %v1860_v23 = vxor.u32 %v1732_v16, %v1604_v6  ;;  %v326_v25 = vmul.u32 16, %v198_v12 }
 0x117   :  { %v1733_v24 = vshrl.u32 %v1605_v13, 16  ;;  %v2369_v27 = vmul.u32 2221713035, %v2241_v17  ;;  %v1222_v29 = vxor.u32 %v1094_v19, %v966_v40  ;;  %v1095_v30 = vshrl.u32 %v967_v20, 15 }
 0x118   :  { %v2242_v28 = vxor.u32 %v2114_v18, %v1986_v9  ;;  %v2115_v31 = vshrl.u32 %v1987_v22, 15  ;;  %v1988_v32 = vmul.u32 2146121005, %v1860_v23  ;;  %v454_v34 = vadd.s32 %v326_v25, %v6908_v2 }
 0x119   :  { %v1861_v33 = vxor.u32 %v1733_v24, %v1605_v13  ;;  %v2497_v36 = vshrl.u32 %v2369_v27, 16  ;;  %v1350_v35 = vmul.u32 2221713035, %v1222_v29  ;;  %v1223_v21 = vxor.u32 %v1095_v30, %v967_v20 }
 0x11a   :  { %v2370_v10 = vmul.u32 2221713035, %v2242_v28  ;;  %v2243_v11 = vxor.u32 %v2115_v31, %v1987_v22  ;;  %v2116_v37 = vshrl.u32 %v1988_v32, 15  ;;  %v584_v41 = vxor.u32 %v6910_v3, %v454_v34 }
 0x11b   :  { %v1989_v39 = vmul.u32 2146121005, %v1861_v33  ;;  %v2625_v42 = vxor.u32 %v2497_v36, %v2369_v27  ;;  %v1478_v45 = vshrl.u32 %v1350_v35, 16  ;;  %v1351_v46 = vmul.u32 2221713035, %v1223_v21 }
 0x11c   :  { %v2498_v44 = vshrl.u32 %v2370_v10, 16  ;;  %v2371_v47 = vmul.u32 2221713035, %v2243_v11  ;;  %v2244_v48 = vxor.u32 %v2116_v37, %v1988_v32  ;;  %v712_v50 = vshrl.u32 %v584_v41, 16 }
 0x11d   :  { %v2117_v49 = vshrl.u32 %v1989_v39, 15  ;;  %v2753_v51 = vshrl.u32 %v2625_v42, 8  ;;  %v1606_v53 = vxor.u32 %v1478_v45, %v1350_v35  ;;  %v1479_v54 = vshrl.u32 %v1351_v46, 16 }
 0x11e   :  { %v2626_v52 = vxor.u32 %v2498_v44, %v2370_v10  ;;  %v2499_v43 = vshrl.u32 %v2371_v47, 16  ;;  %v2372_v55 = vmul.u32 2221713035, %v2244_v48  ;;  %v840_v57 = vxor.u32 %v712_v50, %v584_v41 }
 0x11f   :  { %v2245_v56 = vxor.u32 %v2117_v49, %v1989_v39  ;;  %v2881_v58 = vcvt.s32.f32 %v2753_v51  ;;  %v1734_v60 = vshrl.u32 %v1606_v53, 16  ;;  %v1607_v61 = vxor.u32 %v1479_v54, %v1351_v46 }
 0x120   :  { %v2754_v59 = vshrl.u32 %v2626_v52, 8  ;;  %v2627_v62 = vxor.u32 %v2499_v43, %v2371_v47  ;;  %v2500_v63 = vshrl.u32 %v2372_v55, 16  ;;  %v968_v5 = vmul.u32 2146121005, %v840_v57 }
 0x121   :  { %v2373_v0 = vmul.u32 2221713035, %v2245_v56  ;;  %v3009_v6 = vmul.f32 5.9604645e-08, %v2881_v58  ;;  %v1862_v40 = vxor.u32 %v1734_v60, %v1606_v53  ;;  %v1735_v26 = vshrl.u32 %v1607_v61, 16 }
 0x122   :  { %v2882_v7 = vcvt.s32.f32 %v2754_v59  ;;  %v2755_v9 = vshrl.u32 %v2627_v62, 8  ;;  %v2628_v12 = vxor.u32 %v2500_v63, %v2372_v55  ;;  %v1096_v15 = vshrl.u32 %v968_v5, 15 }
 0x123   :  { %v2501_v14 = vshrl.u32 %v2373_v0, 16  ;;  %vm3137_vm13 = vcmp.lt.f32.partialorder %v3009_v6, 0.006449987  ;;  %v1990_v13 = vmul.u32 2146121005, %v1862_v40  ;;  %v1863_v17 = vxor.u32 %v1735_v26, %v1607_v61 }
 0x124   :  { %v3010_v16 = vmul.f32 5.9604645e-08, %v2882_v7  ;;  %v3265_v18 = vsel %vm3137_vm13, 1.0, %v6891_v8  ;;  %v2883_v19 = vcvt.s32.f32 %v2755_v9  ;;  %v2756_v20 = vshrl.u32 %v2628_v12, 8 }
 0x125   :  { %v2629_v22 = vxor.u32 %v2501_v14, %v2373_v0  ;;  %6727 = vmatprep.mubr.msk.f32.mxu0 %vm3365_vm2, %v3265_v18  ;;  %v2118_v23 = vshrl.u32 %v1990_v13, 15  ;;  %v1991_v24 = vmul.u32 2146121005, %v1863_v17  ;;  %v1224_v25 = vxor.u32 %v1096_v15, %v968_v5 }
 0x126   :  { %vm3138_vm14 = vcmp.lt.f32.partialorder %v3010_v16, 0.006449987  ;;  %v3011_v28 = vmul.f32 5.9604645e-08, %v2883_v19  ;;  %v2884_v29 = vcvt.s32.f32 %v2756_v20  ;;  %v199_v34 = vadd.s32 384, %v6906_v1 }
 0x127   :  { %v3266_v27 = vsel %vm3138_vm14, 1.0, %v6891_v8  ;;  %v2757_v30 = vshrl.u32 %v2629_v22, 8  ;;  %v2246_v31 = vxor.u32 %v2118_v23, %v1990_v13  ;;  %v2119_v32 = vshrl.u32 %v1991_v24, 15 }
 0x128   :  { %6728 = vmatmul.mubr.msk.f32.gmra.mxu0 %vm3365_vm2, %v3266_v27  ;;  %v1352_v33 = vmul.u32 2221713035, %v1224_v25  ;;  %vm3139_vm15 = vcmp.lt.f32.partialorder %v3011_v28, 0.006449987  ;;  %v3012_v36 = vmul.f32 5.9604645e-08, %v2884_v29  ;;  %v200_v35 = vadd.s32 384, %v6913_v4 }
 0x129   :  { %v2885_v10 = vcvt.s32.f32 %v2757_v30  ;;  %v3267_v21 = vsel %vm3139_vm15, 1.0, %v6891_v8  ;;  %v2374_v11 = vmul.u32 2221713035, %v2246_v31  ;;  %v2247_v37 = vxor.u32 %v2119_v32, %v1991_v24 }
 0x12a   :  { %v1480_v39 = vshrl.u32 %v1352_v33, 16  ;;  %6730 = vmatprep.mubr.msk.f32.mxu0 %vm3365_vm2, %v3267_v21  ;;  %vm3140_vm0 = vcmp.lt.f32.partialorder %v3012_v36, 0.006449987  ;;  %v327_v42 = vmul.u32 16, %v199_v34  ;;  %v328_v44 = vmul.u32 16, %v200_v35 }
 0x12b   :  { %v3013_v41 = vmul.f32 5.9604645e-08, %v2885_v10  ;;  %v3268_v45 = vsel %vm3140_vm0, 1.0, %v6891_v8  ;;  %v2502_v46 = vshrl.u32 %v2374_v11, 16  ;;  %v2375_v47 = vmul.u32 2221713035, %v2247_v37 }
 0x12c   :  { %v1608_v48 = vxor.u32 %v1480_v39, %v1352_v33  ;;  %6731 = vmatmul.mubr.msk.f32.gmra.mxu0 %vm3365_vm2, %v3268_v45  ;;  %v455_v49 = vadd.s32 %v327_v42, %v6908_v2  ;;  %v456_v50 = vadd.s32 %v328_v44, %v6908_v2  ;;  %v201_v51 = vadd.s32 400, %v6906_v1 }
 0x12d   :  { %vm3141_vm1 = vcmp.lt.f32.partialorder %v3013_v41, 0.006449987  ;;  %v2630_v53 = vxor.u32 %v2502_v46, %v2374_v11  ;;  %v2503_v54 = vshrl.u32 %v2375_v47, 16  ;;  %v202_v58 = vadd.s32 400, %v6913_v4 }
 0x12e   :  { %v3269_v52 = vsel %vm3141_vm1, 1.0, %v6891_v8  ;;  %v1736_v43 = vshrl.u32 %v1608_v48, 16  ;;  %v585_v55 = vxor.u32 %v6910_v3, %v455_v49  ;;  %v586_v56 = vxor.u32 %v6910_v3, %v456_v50 }
 0x12f   :  { %6733 = vmatprep.mubr.msk.f32.mxu0 %vm3365_vm2, %v3269_v52  ;;  %v329_v57 = vmul.u32 16, %v201_v51  ;;  %v2758_v59 = vshrl.u32 %v2630_v53, 8  ;;  %v2631_v60 = vxor.u32 %v2503_v54, %v2375_v47  ;;  %v203_v62 = vadd.s32 416, %v6906_v1 }
 0x130   :  { %v1864_v61 = vxor.u32 %v1736_v43, %v1608_v48  ;;  %v713_v63 = vshrl.u32 %v585_v55, 16  ;;  %v714_v0 = vshrl.u32 %v586_v56, 16  ;;  %v330_v6 = vmul.u32 16, %v202_v58 }
 0x131   :  { %v457_v5 = vadd.s32 %v329_v57, %v6908_v2  ;;  %v2886_v7 = vcvt.s32.f32 %v2758_v59  ;;  %v2759_v40 = vshrl.u32 %v2631_v60, 8  ;;  %v331_v9 = vmul.u32 16, %v203_v62 }
 0x132   :  { %v1992_v26 = vmul.u32 2146121005, %v1864_v61  ;;  %v841_v12 = vxor.u32 %v713_v63, %v585_v55  ;;  %v842_v14 = vxor.u32 %v714_v0, %v586_v56  ;;  %v458_v16 = vadd.s32 %v330_v6, %v6908_v2 }
 0x133   :  { %v587_v15 = vxor.u32 %v6910_v3, %v457_v5  ;;  %v3014_v13 = vmul.f32 5.9604645e-08, %v2886_v7  ;;  %v2887_v17 = vcvt.s32.f32 %v2759_v40  ;;  %v459_v19 = vadd.s32 %v331_v9, %v6908_v2 }
 0x134   :  { %v2120_v18 = vshrl.u32 %v1992_v26, 15  ;;  %v969_v20 = vmul.u32 2146121005, %v841_v12  ;;  %v970_v22 = vmul.u32 2146121005, %v842_v14  ;;  %v588_v24 = vxor.u32 %v6910_v3, %v458_v16 }
 0x135   :  { %v715_v23 = vshrl.u32 %v587_v15, 16  ;;  %vm3142_vm3 = vcmp.lt.f32.partialorder %v3014_v13, 0.006449987  ;;  %v3015_v25 = vmul.f32 5.9604645e-08, %v2887_v17  ;;  %v589_v28 = vxor.u32 %v6910_v3, %v459_v19 }
 0x136   :  { %v2248_v27 = vxor.u32 %v2120_v18, %v1992_v26  ;;  %v3270_v29 = vsel %vm3142_vm3, 1.0, %v6891_v8  ;;  %v1097_v30 = vshrl.u32 %v969_v20, 15  ;;  %v1098_v31 = vshrl.u32 %v970_v22, 15 }
 0x137   :  { %v843_v32 = vxor.u32 %v715_v23, %v587_v15  ;;  %6734 = vmatmul.mubr.msk.f32.gmra.mxu0 %vm3365_vm2, %v3270_v29  ;;  %vm3143_vm4 = vcmp.lt.f32.partialorder %v3015_v25, 0.006449987  ;;  %v716_v34 = vshrl.u32 %v588_v24, 16  ;;  %v717_v36 = vshrl.u32 %v589_v28, 16 }
 0x138   :  { %v2376_v33 = vmul.u32 2221713035, %v2248_v27  ;;  %v3271_v10 = vsel %vm3143_vm4, 1.0, %v6891_v8  ;;  %v1225_v35 = vxor.u32 %v1097_v30, %v969_v20  ;;  %v1226_v21 = vxor.u32 %v1098_v31, %v970_v22 }
 0x139   :  { %v971_v11 = vmul.u32 2146121005, %v843_v32  ;;  %6736 = vmatprep.mubr.msk.f32.mxu0 %vm3365_vm2, %v3271_v10  ;;  %v844_v39 = vxor.u32 %v716_v34, %v588_v24  ;;  %v845_v41 = vxor.u32 %v717_v36, %v589_v28  ;;  %v204_v42 = vadd.s32 416, %v6913_v4 }
 0x13a   :  { %v2504_v37 = vshrl.u32 %v2376_v33, 16  ;;  %v1353_v44 = vmul.u32 2221713035, %v1225_v35  ;;  %v1354_v45 = vmul.u32 2221713035, %v1226_v21  ;;  %v205_v47 = vadd.s32 432, %v6906_v1 }
 0x13b   :  { %v1099_v46 = vshrl.u32 %v971_v11, 15  ;;  %v972_v49 = vmul.u32 2146121005, %v844_v39  ;;  %v973_v50 = vmul.u32 2146121005, %v845_v41  ;;  %v206_v51 = vadd.s32 432, %v6913_v4 }
 0x13c   :  { %v2632_v48 = vxor.u32 %v2504_v37, %v2376_v33  ;;  %v1481_v52 = vshrl.u32 %v1353_v44, 16  ;;  %v1482_v53 = vshrl.u32 %v1354_v45, 16  ;;  %v332_v43 = vmul.u32 16, %v204_v42 }
 0x13d   :  { %v1227_v54 = vxor.u32 %v1099_v46, %v971_v11  ;;  %v1100_v56 = vshrl.u32 %v972_v49, 15  ;;  %v1101_v57 = vshrl.u32 %v973_v50, 15  ;;  %v333_v58 = vmul.u32 16, %v205_v47 }
 0x13e   :  { %v2760_v55 = vshrl.u32 %v2632_v48, 8  ;;  %v1609_v59 = vxor.u32 %v1481_v52, %v1353_v44  ;;  %v1610_v60 = vxor.u32 %v1482_v53, %v1354_v45  ;;  %v460_v62 = vadd.s32 %v332_v43, %v6908_v2 }
 0x13f   :  { %v1355_v61 = vmul.u32 2221713035, %v1227_v54  ;;  %v1228_v0 = vxor.u32 %v1100_v56, %v972_v49  ;;  %v1229_v5 = vxor.u32 %v1101_v57, %v973_v50  ;;  %v461_v6 = vadd.s32 %v333_v58, %v6908_v2 }
 0x140   :  { %v2888_v63 = vcvt.s32.f32 %v2760_v55  ;;  %v1737_v7 = vshrl.u32 %v1609_v59, 16  ;;  %v1738_v40 = vshrl.u32 %v1610_v60, 16  ;;  %v590_v9 = vxor.u32 %v6910_v3, %v460_v62 }
 0x141   :  { %v1483_v26 = vshrl.u32 %v1355_v61, 16  ;;  %v1356_v14 = vmul.u32 2221713035, %v1228_v0  ;;  %v1357_v15 = vmul.u32 2221713035, %v1229_v5  ;;  %v591_v16 = vxor.u32 %v6910_v3, %v461_v6 }
 0x142   :  { %v3016_v12 = vmul.f32 5.9604645e-08, %v2888_v63  ;;  %v1865_v13 = vxor.u32 %v1737_v7, %v1609_v59  ;;  %v1866_v17 = vxor.u32 %v1738_v40, %v1610_v60  ;;  %v718_v19 = vshrl.u32 %v590_v9, 16 }
 0x143   :  { %v1611_v18 = vxor.u32 %v1483_v26, %v1355_v61  ;;  %v1484_v20 = vshrl.u32 %v1356_v14, 16  ;;  %v1485_v22 = vshrl.u32 %v1357_v15, 16  ;;  %v719_v23 = vshrl.u32 %v591_v16, 16 }
 0x144   :  { %vm3144_vm5 = vcmp.lt.f32.partialorder %v3016_v12, 0.006449987  ;;  %v1993_v25 = vmul.u32 2146121005, %v1865_v13  ;;  %v1994_v27 = vmul.u32 2146121005, %v1866_v17  ;;  %v846_v31 = vxor.u32 %v718_v19, %v590_v9 }
 0x145   :  { %v3272_v24 = vsel %vm3144_vm5, 1.0, %v6891_v8  ;;  %v1739_v28 = vshrl.u32 %v1611_v18, 16  ;;  %v1612_v29 = vxor.u32 %v1484_v20, %v1356_v14  ;;  %v1613_v30 = vxor.u32 %v1485_v22, %v1357_v15 }
 0x146   :  { %6737 = vmatmul.mubr.msk.f32.gmra.mxu0 %vm3365_vm2, %v3272_v24  ;;  %v847_v32 = vxor.u32 %v719_v23, %v591_v16  ;;  %v2121_v33 = vshrl.u32 %v1993_v25, 15  ;;  %v2122_v34 = vshrl.u32 %v1994_v27, 15  ;;  %v334_v10 = vmul.u32 16, %v206_v51 }
 0x147   :  { %v1867_v36 = vxor.u32 %v1739_v28, %v1611_v18  ;;  %v1740_v35 = vshrl.u32 %v1612_v29, 16  ;;  %v1741_v21 = vshrl.u32 %v1613_v30, 16  ;;  %v974_v11 = vmul.u32 2146121005, %v846_v31 }
 0x148   :  { %v975_v37 = vmul.u32 2146121005, %v847_v32  ;;  %v2249_v39 = vxor.u32 %v2121_v33, %v1993_v25  ;;  %v2250_v41 = vxor.u32 %v2122_v34, %v1994_v27  ;;  %v462_v44 = vadd.s32 %v334_v10, %v6908_v2 }
 0x149   :  { %v1995_v42 = vmul.u32 2146121005, %v1867_v36  ;;  %v1868_v45 = vxor.u32 %v1740_v35, %v1612_v29  ;;  %v1869_v46 = vxor.u32 %v1741_v21, %v1613_v30  ;;  %v1102_v47 = vshrl.u32 %v974_v11, 15 }
 0x14a   :  { %v1103_v48 = vshrl.u32 %v975_v37, 15  ;;  %v2377_v49 = vmul.u32 2221713035, %v2249_v39  ;;  %v2378_v50 = vmul.u32 2221713035, %v2250_v41  ;;  %v592_v53 = vxor.u32 %v6910_v3, %v462_v44 }
 0x14b   :  { %v2123_v52 = vshrl.u32 %v1995_v42, 15  ;;  %v1996_v54 = vmul.u32 2146121005, %v1868_v45  ;;  %v1997_v51 = vmul.u32 2146121005, %v1869_v46  ;;  %v1230_v43 = vxor.u32 %v1102_v47, %v974_v11 }
 0x14c   :  { %v1231_v55 = vxor.u32 %v1103_v48, %v975_v37  ;;  %v2505_v56 = vshrl.u32 %v2377_v49, 16  ;;  %v2506_v57 = vshrl.u32 %v2378_v50, 16  ;;  %v720_v59 = vshrl.u32 %v592_v53, 16 }
 0x14d   :  { %v2251_v58 = vxor.u32 %v2123_v52, %v1995_v42  ;;  %v2124_v60 = vshrl.u32 %v1996_v54, 15  ;;  %v2125_v61 = vshrl.u32 %v1997_v51, 15  ;;  %v1358_v62 = vmul.u32 2221713035, %v1230_v43 }
 0x14e   :  { %v1359_v63 = vmul.u32 2221713035, %v1231_v55  ;;  %v2633_v0 = vxor.u32 %v2505_v56, %v2377_v49  ;;  %v2634_v5 = vxor.u32 %v2506_v57, %v2378_v50  ;;  %v848_v7 = vxor.u32 %v720_v59, %v592_v53 }
 0x14f   :  { %v2379_v6 = vmul.u32 2221713035, %v2251_v58  ;;  %v2252_v40 = vxor.u32 %v2124_v60, %v1996_v54  ;;  %v2253_v26 = vxor.u32 %v2125_v61, %v1997_v51  ;;  %v1486_v9 = vshrl.u32 %v1358_v62, 16 }
 0x150   :  { %v1487_v12 = vshrl.u32 %v1359_v63, 16  ;;  %v2761_v14 = vshrl.u32 %v2633_v0, 8  ;;  %v2762_v15 = vshrl.u32 %v2634_v5, 8  ;;  %v976_v13 = vmul.u32 2146121005, %v848_v7 }
 0x151   :  { %v2507_v16 = vshrl.u32 %v2379_v6, 16  ;;  %v2380_v17 = vmul.u32 2221713035, %v2252_v40  ;;  %v2381_v18 = vmul.u32 2221713035, %v2253_v26  ;;  %v1614_v19 = vxor.u32 %v1486_v9, %v1358_v62 }
 0x152   :  { %v1615_v20 = vxor.u32 %v1487_v12, %v1359_v63  ;;  %v2889_v22 = vcvt.s32.f32 %v2761_v14  ;;  %v2890_v23 = vcvt.s32.f32 %v2762_v15  ;;  %v1104_v25 = vshrl.u32 %v976_v13, 15 }
 0x153   :  { %v2635_v24 = vxor.u32 %v2507_v16, %v2379_v6  ;;  %v2508_v27 = vshrl.u32 %v2380_v17, 16  ;;  %v2509_v28 = vshrl.u32 %v2381_v18, 16  ;;  %v1742_v29 = vshrl.u32 %v1614_v19, 16 }
 0x154   :  { %v1743_v30 = vshrl.u32 %v1615_v20, 16  ;;  %v3017_v31 = vmul.f32 5.9604645e-08, %v2889_v22  ;;  %v3018_v32 = vmul.f32 5.9604645e-08, %v2890_v23  ;;  %v1232_v34 = vxor.u32 %v1104_v25, %v976_v13 }
 0x155   :  { %v2763_v33 = vshrl.u32 %v2635_v24, 8  ;;  %v2636_v36 = vxor.u32 %v2508_v27, %v2380_v17  ;;  %v2637_v10 = vxor.u32 %v2509_v28, %v2381_v18  ;;  %v1870_v35 = vxor.u32 %v1742_v29, %v1614_v19 }
 0x156   :  { %v1871_v21 = vxor.u32 %v1743_v30, %v1615_v20  ;;  %vm3145_vm6 = vcmp.lt.f32.partialorder %v3017_v31, 0.006449987  ;;  %vm3146_vm7 = vcmp.lt.f32.partialorder %v3018_v32, 0.006449987  ;;  %v1360_v37 = vmul.u32 2221713035, %v1232_v34 }
 0x157   :  { %v2891_v11 = vcvt.s32.f32 %v2763_v33  ;;  %v3273_v39 = vsel %vm3145_vm6, 1.0, %v6891_v8  ;;  %v3274_v41 = vsel %vm3146_vm7, 1.0, %v6891_v8  ;;  %v2764_v42 = vshrl.u32 %v2636_v36, 8 }
 0x158   :  { %v2765_v44 = vshrl.u32 %v2637_v10, 8  ;;  %6739 = vmatprep.mubr.msk.f32.mxu0 %vm3365_vm2, %v3273_v39  ;;  %v1998_v46 = vmul.u32 2146121005, %v1870_v35  ;;  %v1999_v47 = vmul.u32 2146121005, %v1871_v21  ;;  %v1488_v48 = vshrl.u32 %v1360_v37, 16 }
 0x159   :  { %v3019_v45 = vmul.f32 5.9604645e-08, %v2891_v11  ;;  %6740 = vmatmul.mubr.msk.f32.gmra.mxu0 %vm3365_vm2, %v3274_v41  ;;  %v2892_v49 = vcvt.s32.f32 %v2764_v42  ;;  %v207_v52 = vadd.s32 448, %v6906_v1  ;;  %v208_v53 = vadd.s32 448, %v6913_v4 }
 0x15a   :  { %v2893_v50 = vcvt.s32.f32 %v2765_v44  ;;  %v2126_v54 = vshrl.u32 %v1998_v46, 15  ;;  %v2127_v51 = vshrl.u32 %v1999_v47, 15  ;;  %v1616_v43 = vxor.u32 %v1488_v48, %v1360_v37 }
 0x15b   :  { %vm3147_vm8 = vcmp.lt.f32.partialorder %v3019_v45, 0.006449987  ;;  %v3020_v56 = vmul.f32 5.9604645e-08, %v2892_v49  ;;  %v335_v58 = vmul.u32 16, %v207_v52  ;;  %v336_v62 = vmul.u32 16, %v208_v53 }
 0x15c   :  { %v3275_v55 = vsel %vm3147_vm8, 1.0, %v6891_v8  ;;  %v3021_v57 = vmul.f32 5.9604645e-08, %v2893_v50  ;;  %v2254_v59 = vxor.u32 %v2126_v54, %v1998_v46  ;;  %v2255_v60 = vxor.u32 %v2127_v51, %v1999_v47 }
 0x15d   :  { %6742 = vmatprep.mubr.msk.f32.mxu0 %vm3365_vm2, %v3275_v55  ;;  %v1744_v61 = vshrl.u32 %v1616_v43, 16  ;;  %vm3148_vm9 = vcmp.lt.f32.partialorder %v3020_v56, 0.006449987  ;;  %v463_v63 = vadd.s32 %v335_v58, %v6908_v2  ;;  %v209_v0 = vadd.s32 464, %v6906_v1 }
 0x15e   :  { %vm3149_vm10 = vcmp.lt.f32.partialorder %v3021_v57, 0.006449987  ;;  %v3276_v5 = vsel %vm3148_vm9, 1.0, %v6891_v8  ;;  %v2382_v7 = vmul.u32 2221713035, %v2254_v59  ;;  %v464_v12 = vadd.s32 %v336_v62, %v6908_v2 }
 0x15f   :  { %v3277_v6 = vsel %vm3149_vm10, 1.0, %v6891_v8  ;;  %v2383_v40 = vmul.u32 2221713035, %v2255_v60  ;;  %6743 = vmatmul.mubr.msk.f32.gmra.mxu0 %vm3365_vm2, %v3276_v5  ;;  %v1872_v26 = vxor.u32 %v1744_v61, %v1616_v43  ;;  %v593_v9 = vxor.u32 %v6910_v3, %v463_v63 }
 0x160   :  { %v337_v14 = vmul.u32 16, %v209_v0  ;;  %6745 = vmatprep.mubr.msk.f32.mxu0 %vm3365_vm2, %v3277_v6  ;;  %v2510_v15 = vshrl.u32 %v2382_v7, 16  ;;  %v210_v13 = vadd.s32 464, %v6913_v4  ;;  %v215_v17 = vadd.s32 512, %v6906_v1 }
 0x161   :  { %v2511_v16 = vshrl.u32 %v2383_v40, 16  ;;  %v2000_v18 = vmul.u32 2146121005, %v1872_v26  ;;  %v721_v19 = vshrl.u32 %v593_v9, 16  ;;  %v594_v20 = vxor.u32 %v6910_v3, %v464_v12 }
 0x162   :  { %v465_v22 = vadd.s32 %v337_v14, %v6908_v2  ;;  %v2638_v23 = vxor.u32 %v2510_v15, %v2382_v7  ;;  %v338_v25 = vmul.u32 16, %v210_v13  ;;  %v343_v27 = vmul.u32 16, %v215_v17 }
 0x163   :  { %v2639_v24 = vxor.u32 %v2511_v16, %v2383_v40  ;;  %v2128_v28 = vshrl.u32 %v2000_v18, 15  ;;  %v849_v29 = vxor.u32 %v721_v19, %v593_v9  ;;  %v722_v30 = vshrl.u32 %v594_v20, 16 }
 0x164   :  { %v595_v31 = vxor.u32 %v6910_v3, %v465_v22  ;;  %v2766_v32 = vshrl.u32 %v2638_v23, 8  ;;  %v466_v34 = vadd.s32 %v338_v25, %v6908_v2  ;;  %v471_v36 = vadd.s32 %v343_v27, %v6908_v2 }
 0x165   :  { %v2767_v33 = vshrl.u32 %v2639_v24, 8  ;;  %v2256_v10 = vxor.u32 %v2128_v28, %v2000_v18  ;;  %v977_v35 = vmul.u32 2146121005, %v849_v29  ;;  %v850_v21 = vxor.u32 %v722_v30, %v594_v20 }
 0x166   :  { %v723_v11 = vshrl.u32 %v595_v31, 16  ;;  %v2894_v37 = vcvt.s32.f32 %v2766_v32  ;;  %v596_v41 = vxor.u32 %v6910_v3, %v466_v34  ;;  %v601_v42 = vxor.u32 %v6910_v3, %v471_v36 }
 0x167   :  { %v2895_v39 = vcvt.s32.f32 %v2767_v33  ;;  %v2384_v44 = vmul.u32 2221713035, %v2256_v10  ;;  %v1105_v45 = vshrl.u32 %v977_v35, 15  ;;  %v978_v46 = vmul.u32 2146121005, %v850_v21 }
 0x168   :  { %v851_v47 = vxor.u32 %v723_v11, %v595_v31  ;;  %v3022_v48 = vmul.f32 5.9604645e-08, %v2894_v37  ;;  %v724_v50 = vshrl.u32 %v596_v41, 16  ;;  %v729_v52 = vshrl.u32 %v601_v42, 16 }
 0x169   :  { %v3023_v49 = vmul.f32 5.9604645e-08, %v2895_v39  ;;  %v2512_v53 = vshrl.u32 %v2384_v44, 16  ;;  %v1233_v54 = vxor.u32 %v1105_v45, %v977_v35  ;;  %v1106_v51 = vshrl.u32 %v978_v46, 15 }
 0x16a   :  { %v979_v43 = vmul.u32 2146121005, %v851_v47  ;;  %vm3150_vm11 = vcmp.lt.f32.partialorder %v3022_v48, 0.006449987  ;;  %v852_v55 = vxor.u32 %v724_v50, %v596_v41  ;;  %v857_v56 = vxor.u32 %v729_v52, %v601_v42 }
 0x16b   :  { %vm3151_vm12 = vcmp.lt.f32.partialorder %v3023_v49, 0.006449987  ;;  %v3278_v57 = vsel %vm3150_vm11, 1.0, %v6891_v8  ;;  %v2640_v59 = vxor.u32 %v2512_v53, %v2384_v44  ;;  %v1361_v60 = vmul.u32 2221713035, %v1233_v54 }
 0x16c   :  { %v3279_v58 = vsel %vm3151_vm12, 1.0, %v6891_v8  ;;  %6746 = vmatmul.mubr.msk.f32.gmra.mxu0 %vm3365_vm2, %v3278_v57  ;;  %v1234_v61 = vxor.u32 %v1106_v51, %v978_v46  ;;  %v1107_v62 = vshrl.u32 %v979_v43, 15  ;;  %v980_v63 = vmul.u32 2146121005, %v852_v55 }
 0x16d   :  { %v985_v0 = vmul.u32 2146121005, %v857_v56  ;;  %6748 = vmatprep.mubr.msk.f32.mxu0 %vm3365_vm2, %v3279_v58  ;;  %v2768_v5 = vshrl.u32 %v2640_v59, 8  ;;  %v1489_v6 = vshrl.u32 %v1361_v60, 16  ;;  %v216_v7 = vadd.s32 512, %v6913_v4 }
 0x16e   :  { %v211_v40 = vadd.s32 480, %v6906_v1  ;;  %v1362_v26 = vmul.u32 2221713035, %v1234_v61  ;;  %v1235_v9 = vxor.u32 %v1107_v62, %v979_v43  ;;  %v1108_v12 = vshrl.u32 %v980_v63, 15 }
 0x16f   :  { %v1113_v14 = vshrl.u32 %v985_v0, 15  ;;  %v2896_v15 = vcvt.s32.f32 %v2768_v5  ;;  %v1617_v16 = vxor.u32 %v1489_v6, %v1361_v60  ;;  %v344_v13 = vmul.u32 16, %v216_v7 }
 0x170   :  { %v339_v17 = vmul.u32 16, %v211_v40  ;;  %v1490_v18 = vshrl.u32 %v1362_v26, 16  ;;  %v1363_v19 = vmul.u32 2221713035, %v1235_v9  ;;  %v1236_v20 = vxor.u32 %v1108_v12, %v980_v63 }
 0x171   :  { %v1241_v22 = vxor.u32 %v1113_v14, %v985_v0  ;;  %v3024_v23 = vmul.f32 5.9604645e-08, %v2896_v15  ;;  %v1745_v24 = vshrl.u32 %v1617_v16, 16  ;;  %v472_v25 = vadd.s32 %v344_v13, %v6908_v2 }
 0x172   :  { %v467_v27 = vadd.s32 %v339_v17, %v6908_v2  ;;  %v1618_v28 = vxor.u32 %v1490_v18, %v1362_v26  ;;  %v1491_v29 = vshrl.u32 %v1363_v19, 16  ;;  %v1364_v30 = vmul.u32 2221713035, %v1236_v20 }
 0x173   :  { %v1369_v31 = vmul.u32 2221713035, %v1241_v22  ;;  %vm3152_vm13 = vcmp.lt.f32.partialorder %v3024_v23, 0.006449987  ;;  %v1873_v32 = vxor.u32 %v1745_v24, %v1617_v16  ;;  %v602_v33 = vxor.u32 %v6910_v3, %v472_v25 }
 0x174   :  { %v597_v34 = vxor.u32 %v6910_v3, %v467_v27  ;;  %v3280_v36 = vsel %vm3152_vm13, 1.0, %v6891_v8  ;;  %v1746_v10 = vshrl.u32 %v1618_v28, 16  ;;  %v1619_v35 = vxor.u32 %v1491_v29, %v1363_v19 }
 0x175   :  { %v1492_v21 = vshrl.u32 %v1364_v30, 16  ;;  %6749 = vmatmul.mubr.msk.f32.gmra.mxu0 %vm3365_vm2, %v3280_v36  ;;  %v2001_v11 = vmul.u32 2146121005, %v1873_v32  ;;  %v1497_v37 = vshrl.u32 %v1369_v31, 16  ;;  %v730_v39 = vshrl.u32 %v602_v33, 16 }
 0x176   :  { %v725_v41 = vshrl.u32 %v597_v34, 16  ;;  %v1874_v42 = vxor.u32 %v1746_v10, %v1618_v28  ;;  %v1747_v44 = vshrl.u32 %v1619_v35, 16  ;;  %v212_v46 = vadd.s32 480, %v6913_v4 }
 0x177   :  { %v1620_v45 = vxor.u32 %v1492_v21, %v1364_v30  ;;  %v2129_v47 = vshrl.u32 %v2001_v11, 15  ;;  %v1625_v48 = vxor.u32 %v1497_v37, %v1369_v31  ;;  %v858_v49 = vxor.u32 %v730_v39, %v602_v33 }
 0x178   :  { %v853_v50 = vxor.u32 %v725_v41, %v597_v34  ;;  %v2002_v52 = vmul.u32 2146121005, %v1874_v42  ;;  %v1875_v53 = vxor.u32 %v1747_v44, %v1619_v35  ;;  %v340_v51 = vmul.u32 16, %v212_v46 }
 0x179   :  { %v1748_v54 = vshrl.u32 %v1620_v45, 16  ;;  %v2257_v43 = vxor.u32 %v2129_v47, %v2001_v11  ;;  %v1753_v55 = vshrl.u32 %v1625_v48, 16  ;;  %v986_v56 = vmul.u32 2146121005, %v858_v49 }
 0x17a   :  { %v981_v57 = vmul.u32 2146121005, %v853_v50  ;;  %v2130_v58 = vshrl.u32 %v2002_v52, 15  ;;  %v2003_v59 = vmul.u32 2146121005, %v1875_v53  ;;  %v468_v61 = vadd.s32 %v340_v51, %v6908_v2 }
 0x17b   :  { %v1876_v60 = vxor.u32 %v1748_v54, %v1620_v45  ;;  %v2385_v62 = vmul.u32 2221713035, %v2257_v43  ;;  %v1881_v63 = vxor.u32 %v1753_v55, %v1625_v48  ;;  %v1114_v0 = vshrl.u32 %v986_v56, 15 }
 0x17c   :  { %v1109_v5 = vshrl.u32 %v981_v57, 15  ;;  %v2258_v6 = vxor.u32 %v2130_v58, %v2002_v52  ;;  %v2131_v7 = vshrl.u32 %v2003_v59, 15  ;;  %v598_v26 = vxor.u32 %v6910_v3, %v468_v61 }
 0x17d   :  { %v2004_v40 = vmul.u32 2146121005, %v1876_v60  ;;  %v2513_v9 = vshrl.u32 %v2385_v62, 16  ;;  %v2009_v12 = vmul.u32 2146121005, %v1881_v63  ;;  %v1242_v14 = vxor.u32 %v1114_v0, %v986_v56 }
 0x17e   :  { %v1237_v15 = vxor.u32 %v1109_v5, %v981_v57  ;;  %v2386_v16 = vmul.u32 2221713035, %v2258_v6  ;;  %v2259_v13 = vxor.u32 %v2131_v7, %v2003_v59  ;;  %v726_v18 = vshrl.u32 %v598_v26, 16 }
 0x17f   :  { %v2132_v17 = vshrl.u32 %v2004_v40, 15  ;;  %v2641_v19 = vxor.u32 %v2513_v9, %v2385_v62  ;;  %v2137_v20 = vshrl.u32 %v2009_v12, 15  ;;  %v1370_v22 = vmul.u32 2221713035, %v1242_v14 }
 0x180   :  { %v1365_v23 = vmul.u32 2221713035, %v1237_v15  ;;  %v2514_v24 = vshrl.u32 %v2386_v16, 16  ;;  %v2387_v25 = vmul.u32 2221713035, %v2259_v13  ;;  %v854_v28 = vxor.u32 %v726_v18, %v598_v26 }
 0x181   :  { %v2260_v27 = vxor.u32 %v2132_v17, %v2004_v40  ;;  %v2769_v29 = vshrl.u32 %v2641_v19, 8  ;;  %v2265_v30 = vxor.u32 %v2137_v20, %v2009_v12  ;;  %v1498_v31 = vshrl.u32 %v1370_v22, 16 }
 0x182   :  { %v1493_v32 = vshrl.u32 %v1365_v23, 16  ;;  %v2642_v33 = vxor.u32 %v2514_v24, %v2386_v16  ;;  %v2515_v34 = vshrl.u32 %v2387_v25, 16  ;;  %v982_v10 = vmul.u32 2146121005, %v854_v28 }
 0x183   :  { %v2388_v36 = vmul.u32 2221713035, %v2260_v27  ;;  %v2897_v35 = vcvt.s32.f32 %v2769_v29  ;;  %v2393_v21 = vmul.u32 2221713035, %v2265_v30  ;;  %v1626_v11 = vxor.u32 %v1498_v31, %v1370_v22 }
 0x184   :  { %v1621_v37 = vxor.u32 %v1493_v32, %v1365_v23  ;;  %v2770_v39 = vshrl.u32 %v2642_v33, 8  ;;  %v2643_v41 = vxor.u32 %v2515_v34, %v2387_v25  ;;  %v1110_v44 = vshrl.u32 %v982_v10, 15 }
 0x185   :  { %v2516_v42 = vshrl.u32 %v2388_v36, 16  ;;  %v3025_v45 = vmul.f32 5.9604645e-08, %v2897_v35  ;;  %v2521_v46 = vshrl.u32 %v2393_v21, 16  ;;  %v1754_v47 = vshrl.u32 %v1626_v11, 16 }
 0x186   :  { %v1749_v48 = vshrl.u32 %v1621_v37, 16  ;;  %v2898_v49 = vcvt.s32.f32 %v2770_v39  ;;  %v2771_v50 = vshrl.u32 %v2643_v41, 8  ;;  %v1238_v53 = vxor.u32 %v1110_v44, %v982_v10 }
 0x187   :  { %v2644_v52 = vxor.u32 %v2516_v42, %v2388_v36  ;;  %vm3153_vm14 = vcmp.lt.f32.partialorder %v3025_v45, 0.006449987  ;;  %v2649_v54 = vxor.u32 %v2521_v46, %v2393_v21  ;;  %v1882_v51 = vxor.u32 %v1754_v47, %v1626_v11 }
 0x188   :  { %v1877_v43 = vxor.u32 %v1749_v48, %v1621_v37  ;;  %v3281_v55 = vsel %vm3153_vm14, 1.0, %v6891_v8  ;;  %v3026_v56 = vmul.f32 5.9604645e-08, %v2898_v49  ;;  %v2899_v57 = vcvt.s32.f32 %v2771_v50 }
 0x189   :  { %v2772_v58 = vshrl.u32 %v2644_v52, 8  ;;  %6751 = vmatprep.mubr.msk.f32.mxu0 %vm3365_vm2, %v3281_v55  ;;  %v2777_v59 = vshrl.u32 %v2649_v54, 8  ;;  %v2010_v60 = vmul.u32 2146121005, %v1882_v51  ;;  %v217_v62 = vadd.s32 528, %v6906_v1 }
 0x18a   :  { %v2005_v61 = vmul.u32 2146121005, %v1877_v43  ;;  %vm3154_vm15 = vcmp.lt.f32.partialorder %v3026_v56, 0.006449987  ;;  %v3027_v63 = vmul.f32 5.9604645e-08, %v2899_v57  ;;  %v218_v20 = vadd.s32 528, %v6913_v4 }
 0x18b   :  { %v2900_v0 = vcvt.s32.f32 %v2772_v58  ;;  %v1366_v5 = vmul.u32 2221713035, %v1238_v53  ;;  %v3282_v6 = vsel %vm3154_vm15, 1.0, %v6891_v8  ;;  %v2905_v7 = vcvt.s32.f32 %v2777_v59 }
 0x18c   :  { %v2138_v40 = vshrl.u32 %v2010_v60, 15  ;;  %v2133_v26 = vshrl.u32 %v2005_v61, 15  ;;  %6752 = vmatmul.mubr.msk.f32.gmra.mxu0 %vm3365_vm2, %v3282_v6  ;;  %vm3155_vm0 = vcmp.lt.f32.partialorder %v3027_v63, 0.006449987  ;;  %v345_v14 = vmul.u32 16, %v217_v62 }
 0x18d   :  { %v3028_v9 = vmul.f32 5.9604645e-08, %v2900_v0  ;;  %v1494_v12 = vshrl.u32 %v1366_v5, 16  ;;  %v3283_v15 = vsel %vm3155_vm0, 1.0, %v6891_v8  ;;  %v3033_v16 = vmul.f32 5.9604645e-08, %v2905_v7 }
 0x18e   :  { %v2266_v13 = vxor.u32 %v2138_v40, %v2010_v60  ;;  %v2261_v17 = vxor.u32 %v2133_v26, %v2005_v61  ;;  %6754 = vmatprep.mubr.msk.f32.mxu0 %vm3365_vm2, %v3283_v15  ;;  %v473_v19 = vadd.s32 %v345_v14, %v6908_v2  ;;  %v213_v24 = vadd.s32 496, %v6906_v1 }
 0x18f   :  { %vm3156_vm1 = vcmp.lt.f32.partialorder %v3028_v9, 0.006449987  ;;  %v1622_v18 = vxor.u32 %v1494_v12, %v1366_v5  ;;  %vm3161_vm3 = vcmp.lt.f32.partialorder %v3033_v16, 0.006449987  ;;  %v346_v31 = vmul.u32 16, %v218_v20 }
 0x190   :  { %v3284_v22 = vsel %vm3156_vm1, 1.0, %v6891_v8  ;;  %v2394_v23 = vmul.u32 2221713035, %v2266_v13  ;;  %v3289_v25 = vsel %vm3161_vm3, 1.0, %v6891_v8  ;;  %v2389_v27 = vmul.u32 2221713035, %v2261_v17 }
 0x191   :  { %6755 = vmatmul.mubr.msk.f32.gmra.mxu0 %vm3365_vm2, %v3284_v22  ;;  %v1750_v28 = vshrl.u32 %v1622_v18, 16  ;;  %v603_v29 = vxor.u32 %v6910_v3, %v473_v19  ;;  %6763 = vmatprep.mubr.msk.f32.mxu1 %vm3365_vm2, %v3289_v25  ;;  %v341_v32 = vmul.u32 16, %v213_v24  ;;  %v214_v33 = vadd.s32 496, %v6913_v4 }
 0x192   :  { %v2522_v30 = vshrl.u32 %v2394_v23, 16  ;;  %v2517_v34 = vshrl.u32 %v2389_v27, 16  ;;  %v219_v35 = vadd.s32 544, %v6906_v1  ;;  %v474_v11 = vadd.s32 %v346_v31, %v6908_v2 }
 0x193   :  { %v1878_v36 = vxor.u32 %v1750_v28, %v1622_v18  ;;  %v731_v10 = vshrl.u32 %v603_v29, 16  ;;  %v469_v37 = vadd.s32 %v341_v32, %v6908_v2  ;;  %v342_v39 = vmul.u32 16, %v214_v33 }
 0x194   :  { %v2650_v21 = vxor.u32 %v2522_v30, %v2394_v23  ;;  %v2645_v41 = vxor.u32 %v2517_v34, %v2389_v27  ;;  %v347_v45 = vmul.u32 16, %v219_v35  ;;  %v604_v47 = vxor.u32 %v6910_v3, %v474_v11 }
 0x195   :  { %v2006_v42 = vmul.u32 2146121005, %v1878_v36  ;;  %v859_v44 = vxor.u32 %v731_v10, %v603_v29  ;;  %v599_v48 = vxor.u32 %v6910_v3, %v469_v37  ;;  %v470_v49 = vadd.s32 %v342_v39, %v6908_v2 }
 0x196   :  { %v2778_v46 = vshrl.u32 %v2650_v21, 8  ;;  %v2773_v50 = vshrl.u32 %v2645_v41, 8  ;;  %v475_v54 = vadd.s32 %v347_v45, %v6908_v2  ;;  %v732_v43 = vshrl.u32 %v604_v47, 16 }
 0x197   :  { %v2134_v52 = vshrl.u32 %v2006_v42, 15  ;;  %v987_v53 = vmul.u32 2146121005, %v859_v44  ;;  %v727_v55 = vshrl.u32 %v599_v48, 16  ;;  %v600_v56 = vxor.u32 %v6910_v3, %v470_v49 }
 0x198   :  { %v2906_v51 = vcvt.s32.f32 %v2778_v46  ;;  %v2901_v57 = vcvt.s32.f32 %v2773_v50  ;;  %v605_v60 = vxor.u32 %v6910_v3, %v475_v54  ;;  %v860_v62 = vxor.u32 %v732_v43, %v604_v47 }
 0x199   :  { %v2262_v58 = vxor.u32 %v2134_v52, %v2006_v42  ;;  %v1115_v59 = vshrl.u32 %v987_v53, 15  ;;  %v855_v63 = vxor.u32 %v727_v55, %v599_v48  ;;  %v728_v0 = vshrl.u32 %v600_v56, 16 }
 0x19a   :  { %v3034_v61 = vmul.f32 5.9604645e-08, %v2906_v51  ;;  %v3029_v5 = vmul.f32 5.9604645e-08, %v2901_v57  ;;  %v733_v40 = vshrl.u32 %v605_v60, 16  ;;  %v988_v26 = vmul.u32 2146121005, %v860_v62 }
 0x19b   :  { %v2390_v6 = vmul.u32 2221713035, %v2262_v58  ;;  %v1243_v7 = vxor.u32 %v1115_v59, %v987_v53  ;;  %v983_v9 = vmul.u32 2146121005, %v855_v63  ;;  %v856_v12 = vxor.u32 %v728_v0, %v600_v56 }
 0x19c   :  { %vm3162_vm4 = vcmp.lt.f32.partialorder %v3034_v61, 0.006449987  ;;  %vm3157_vm5 = vcmp.lt.f32.partialorder %v3029_v5, 0.006449987  ;;  %v1116_v17 = vshrl.u32 %v988_v26, 15  ;;  %v861_v23 = vxor.u32 %v733_v40, %v605_v60 }
 0x19d   :  { %v3290_v14 = vsel %vm3162_vm4, 1.0, %v6891_v8  ;;  %v2518_v15 = vshrl.u32 %v2390_v6, 16  ;;  %v1371_v16 = vmul.u32 2221713035, %v1243_v7  ;;  %v3285_v13 = vsel %vm3157_vm5, 1.0, %v6891_v8 }
 0x19e   :  { %6764 = vmatmul.mubr.msk.f32.vlgmr.msra.gmra.mxu1 %vm3365_vm2, %v3290_v14  ;;  %v1111_v18 = vshrl.u32 %v983_v9, 15  ;;  %v984_v19 = vmul.u32 2146121005, %v856_v12  ;;  %6757 = vmatprep.mubr.msk.f32.mxu0 %vm3365_vm2, %v3285_v13  ;;  %v220_v24 = vadd.s32 544, %v6913_v4  ;;  %v1244_v25 = vxor.u32 %v1116_v17, %v988_v26 }
 0x19f   :  { %v2646_v20 = vxor.u32 %v2518_v15, %v2390_v6  ;;  %v1499_v22 = vshrl.u32 %v1371_v16, 16  ;;  %v221_v29 = vadd.s32 560, %v6906_v1  ;;  %v989_v32 = vmul.u32 2146121005, %v861_v23 }
 0x1a0   :  { %v1239_v27 = vxor.u32 %v1111_v18, %v983_v9  ;;  %v1112_v28 = vshrl.u32 %v984_v19, 15  ;;  %v348_v33 = vmul.u32 16, %v220_v24  ;;  %v1372_v34 = vmul.u32 2221713035, %v1244_v25 }
 0x1a1   :  { %v2774_v30 = vshrl.u32 %v2646_v20, 8  ;;  %v1627_v31 = vxor.u32 %v1499_v22, %v1371_v16  ;;  %v222_v35 = vadd.s32 560, %v6913_v4  ;;  %v1117_v37 = vshrl.u32 %v989_v32, 15 }
 0x1a2   :  { %v1367_v36 = vmul.u32 2221713035, %v1239_v27  ;;  %v1240_v10 = vxor.u32 %v1112_v28, %v984_v19  ;;  %v476_v39 = vadd.s32 %v348_v33, %v6908_v2  ;;  %v1500_v41 = vshrl.u32 %v1372_v34, 16 }
 0x1a3   :  { %v2902_v21 = vcvt.s32.f32 %v2774_v30  ;;  %v1755_v11 = vshrl.u32 %v1627_v31, 16  ;;  %v349_v45 = vmul.u32 16, %v221_v29  ;;  %v1245_v48 = vxor.u32 %v1117_v37, %v989_v32 }
 0x1a4   :  { %v1495_v42 = vshrl.u32 %v1367_v36, 16  ;;  %v1368_v44 = vmul.u32 2221713035, %v1240_v10  ;;  %v606_v49 = vxor.u32 %v6910_v3, %v476_v39  ;;  %v1628_v50 = vxor.u32 %v1500_v41, %v1372_v34 }
 0x1a5   :  { %v3030_v46 = vmul.f32 5.9604645e-08, %v2902_v21  ;;  %v1883_v47 = vxor.u32 %v1755_v11, %v1627_v31  ;;  %v477_v54 = vadd.s32 %v349_v45, %v6908_v2  ;;  %v1373_v43 = vmul.u32 2221713035, %v1245_v48 }
 0x1a6   :  { %v1623_v52 = vxor.u32 %v1495_v42, %v1367_v36  ;;  %v1496_v53 = vshrl.u32 %v1368_v44, 16  ;;  %v1756_v56 = vshrl.u32 %v1628_v50, 16  ;;  %v734_v61 = vshrl.u32 %v606_v49, 16 }
 0x1a7   :  { %vm3158_vm6 = vcmp.lt.f32.partialorder %v3030_v46, 0.006449987  ;;  %v2011_v51 = vmul.u32 2146121005, %v1883_v47  ;;  %v1501_v60 = vshrl.u32 %v1373_v43, 16  ;;  %v607_v62 = vxor.u32 %v6910_v3, %v477_v54 }
 0x1a8   :  { %v3286_v55 = vsel %vm3158_vm6, 1.0, %v6891_v8  ;;  %v1751_v57 = vshrl.u32 %v1623_v52, 16  ;;  %v1624_v58 = vxor.u32 %v1496_v53, %v1368_v44  ;;  %v1884_v63 = vxor.u32 %v1756_v56, %v1628_v50 }
 0x1a9   :  { %6758 = vmatmul.mubr.msk.f32.gmra.mxu0 %vm3365_vm2, %v3286_v55  ;;  %v2139_v59 = vshrl.u32 %v2011_v51, 15  ;;  %v350_v6 = vmul.u32 16, %v222_v35  ;;  %v1629_v40 = vxor.u32 %v1501_v60, %v1373_v43  ;;  %v862_v26 = vxor.u32 %v734_v61, %v606_v49 }
 0x1aa   :  { %v1879_v0 = vxor.u32 %v1751_v57, %v1623_v52  ;;  %v1752_v5 = vshrl.u32 %v1624_v58, 16  ;;  %v735_v9 = vshrl.u32 %v607_v62, 16  ;;  %v2012_v12 = vmul.u32 2146121005, %v1884_v63 }
 0x1ab   :  { %v2267_v7 = vxor.u32 %v2139_v59, %v2011_v51  ;;  %v478_v16 = vadd.s32 %v350_v6, %v6908_v2  ;;  %v1757_v17 = vshrl.u32 %v1629_v40, 16  ;;  %v990_v18 = vmul.u32 2146121005, %v862_v26 }
 0x1ac   :  { %v2007_v14 = vmul.u32 2146121005, %v1879_v0  ;;  %v1880_v15 = vxor.u32 %v1752_v5, %v1624_v58  ;;  %v863_v19 = vxor.u32 %v735_v9, %v607_v62  ;;  %v2140_v20 = vshrl.u32 %v2012_v12, 15 }
 0x1ad   :  { %v2395_v13 = vmul.u32 2221713035, %v2267_v7  ;;  %v608_v24 = vxor.u32 %v6910_v3, %v478_v16  ;;  %v1885_v27 = vxor.u32 %v1757_v17, %v1629_v40  ;;  %v1118_v28 = vshrl.u32 %v990_v18, 15 }
 0x1ae   :  { %v2135_v22 = vshrl.u32 %v2007_v14, 15  ;;  %v2008_v23 = vmul.u32 2146121005, %v1880_v15  ;;  %v991_v29 = vmul.u32 2146121005, %v863_v19  ;;  %v2268_v30 = vxor.u32 %v2140_v20, %v2012_v12 }
 0x1af   :  { %v2523_v25 = vshrl.u32 %v2395_v13, 16  ;;  %v736_v33 = vshrl.u32 %v608_v24, 16  ;;  %v2013_v36 = vmul.u32 2146121005, %v1885_v27  ;;  %v1246_v10 = vxor.u32 %v1118_v28, %v990_v18 }
 0x1b0   :  { %v2263_v31 = vxor.u32 %v2135_v22, %v2007_v14  ;;  %v2136_v32 = vshrl.u32 %v2008_v23, 15  ;;  %v1119_v35 = vshrl.u32 %v991_v29, 15  ;;  %v2396_v21 = vmul.u32 2221713035, %v2268_v30 }
 0x1b1   :  { %v2651_v34 = vxor.u32 %v2523_v25, %v2395_v13  ;;  %v864_v39 = vxor.u32 %v736_v33, %v608_v24  ;;  %v2141_v42 = vshrl.u32 %v2013_v36, 15  ;;  %v1374_v44 = vmul.u32 2221713035, %v1246_v10 }
 0x1b2   :  { %v2391_v11 = vmul.u32 2221713035, %v2263_v31  ;;  %v2264_v37 = vxor.u32 %v2136_v32, %v2008_v23  ;;  %v1247_v45 = vxor.u32 %v1119_v35, %v991_v29  ;;  %v2524_v46 = vshrl.u32 %v2396_v21, 16 }
 0x1b3   :  { %v2779_v41 = vshrl.u32 %v2651_v34, 8  ;;  %v992_v49 = vmul.u32 2146121005, %v864_v39  ;;  %v2269_v52 = vxor.u32 %v2141_v42, %v2013_v36  ;;  %v1502_v53 = vshrl.u32 %v1374_v44, 16 }
 0x1b4   :  { %v2519_v47 = vshrl.u32 %v2391_v11, 16  ;;  %v2392_v48 = vmul.u32 2221713035, %v2264_v37  ;;  %v1375_v54 = vmul.u32 2221713035, %v1247_v45  ;;  %v2652_v51 = vxor.u32 %v2524_v46, %v2396_v21 }
 0x1b5   :  { %v2907_v50 = vcvt.s32.f32 %v2779_v41  ;;  %v1120_v56 = vshrl.u32 %v992_v49, 15  ;;  %v2397_v58 = vmul.u32 2221713035, %v2269_v52  ;;  %v1630_v59 = vxor.u32 %v1502_v53, %v1374_v44 }
 0x1b6   :  { %v2647_v43 = vxor.u32 %v2519_v47, %v2391_v11  ;;  %v2520_v55 = vshrl.u32 %v2392_v48, 16  ;;  %v1503_v60 = vshrl.u32 %v1375_v54, 16  ;;  %v2780_v61 = vshrl.u32 %v2652_v51, 8 }
 0x1b7   :  { %v3035_v57 = vmul.f32 5.9604645e-08, %v2907_v50  ;;  %v1248_v0 = vxor.u32 %v1120_v56, %v992_v49  ;;  %v2525_v5 = vshrl.u32 %v2397_v58, 16  ;;  %v1758_v6 = vshrl.u32 %v1630_v59, 16 }
 0x1b8   :  { %v2775_v62 = vshrl.u32 %v2647_v43, 8  ;;  %v2648_v63 = vxor.u32 %v2520_v55, %v2392_v48  ;;  %v1631_v7 = vxor.u32 %v1503_v60, %v1375_v54  ;;  %v2908_v26 = vcvt.s32.f32 %v2780_v61 }
 0x1b9   :  { %vm3163_vm7 = vcmp.lt.f32.partialorder %v3035_v57, 0.006449987  ;;  %v2653_v14 = vxor.u32 %v2525_v5, %v2397_v58  ;;  %v1886_v15 = vxor.u32 %v1758_v6, %v1630_v59  ;;  %v1376_v13 = vmul.u32 2221713035, %v1248_v0 }
 0x1ba   :  { %v3291_v40 = vsel %vm3163_vm7, 1.0, %v6891_v8  ;;  %v2903_v9 = vcvt.s32.f32 %v2775_v62  ;;  %v2776_v12 = vshrl.u32 %v2648_v63, 8  ;;  %v1759_v16 = vshrl.u32 %v1631_v7, 16 }
 0x1bb   :  { %6766 = vmatprep.mubr.msk.f32.mxu1 %vm3365_vm2, %v3291_v40  ;;  %v3036_v17 = vmul.f32 5.9604645e-08, %v2908_v26  ;;  %v223_v20 = vadd.s32 576, %v6906_v1  ;;  %v2781_v22 = vshrl.u32 %v2653_v14, 8  ;;  %v2014_v23 = vmul.u32 2146121005, %v1886_v15 }
 0x1bc   :  { %v3031_v18 = vmul.f32 5.9604645e-08, %v2903_v9  ;;  %v2904_v19 = vcvt.s32.f32 %v2776_v12  ;;  %v1887_v24 = vxor.u32 %v1759_v16, %v1631_v7  ;;  %v1504_v25 = vshrl.u32 %v1376_v13, 16 }
 0x1bd   :  { %vm3164_vm8 = vcmp.lt.f32.partialorder %v3036_v17, 0.006449987  ;;  %v351_v28 = vmul.u32 16, %v223_v20  ;;  %v2909_v31 = vcvt.s32.f32 %v2781_v22  ;;  %v2142_v32 = vshrl.u32 %v2014_v23, 15 }
 0x1be   :  { %vm3159_vm9 = vcmp.lt.f32.partialorder %v3031_v18, 0.006449987  ;;  %v3032_v27 = vmul.f32 5.9604645e-08, %v2904_v19  ;;  %v3292_v29 = vsel %vm3164_vm8, 1.0, %v6891_v8  ;;  %v2015_v33 = vmul.u32 2146121005, %v1887_v24 }
 0x1bf   :  { %v3287_v30 = vsel %vm3159_vm9, 1.0, %v6891_v8  ;;  %6767 = vmatmul.mubr.msk.f32.gmra.mxu1 %vm3365_vm2, %v3292_v29  ;;  %v1632_v34 = vxor.u32 %v1504_v25, %v1376_v13  ;;  %v479_v36 = vadd.s32 %v351_v28, %v6908_v2  ;;  %v3037_v35 = vmul.f32 5.9604645e-08, %v2909_v31 }
 0x1c0   :  { %6760 = vmatprep.mubr.msk.f32.mxu0 %vm3365_vm2, %v3287_v30  ;;  %vm3160_vm10 = vcmp.lt.f32.partialorder %v3032_v27, 0.006449987  ;;  %v2270_v21 = vxor.u32 %v2142_v32, %v2014_v23  ;;  %v224_v11 = vadd.s32 576, %v6913_v4  ;;  %v2143_v37 = vshrl.u32 %v2015_v33, 15 }
 0x1c1   :  { %v3288_v10 = vsel %vm3160_vm10, 1.0, %v6891_v8  ;;  %v1760_v39 = vshrl.u32 %v1632_v34, 16  ;;  %v609_v41 = vxor.u32 %v6910_v3, %v479_v36  ;;  %v225_v42 = vadd.s32 592, %v6906_v1 }
 0x1c2   :  { %6761 = vmatmul.mubr.msk.f32.gmra.mxu0 %vm3365_vm2, %v3288_v10  ;;  %vm3165_vm11 = vcmp.lt.f32.partialorder %v3037_v35, 0.006449987  ;;  %v2398_v44 = vmul.u32 2221713035, %v2270_v21  ;;  %v352_v45 = vmul.u32 16, %v224_v11  ;;  %v226_v46 = vadd.s32 592, %v6913_v4 }
 0x1c3   :  { %v3293_v47 = vsel %vm3165_vm11, 1.0, %v6891_v8  ;;  %v2271_v48 = vxor.u32 %v2143_v37, %v2015_v33  ;;  %v1888_v49 = vxor.u32 %v1760_v39, %v1632_v34  ;;  %v737_v50 = vshrl.u32 %v609_v41, 16 }
 0x1c4   :  { %6769 = vmatprep.mubr.msk.f32.mxu1 %vm3365_vm2, %v3293_v47  ;;  %v2526_v52 = vshrl.u32 %v2398_v44, 16  ;;  %v480_v53 = vadd.s32 %v352_v45, %v6908_v2  ;;  %v353_v54 = vmul.u32 16, %v225_v42  ;;  %v354_v51 = vmul.u32 16, %v226_v46 }
 0x1c5   :  { %v2399_v43 = vmul.u32 2221713035, %v2271_v48  ;;  %v2016_v55 = vmul.u32 2146121005, %v1888_v49  ;;  %v865_v56 = vxor.u32 %v737_v50, %v609_v41  ;;  %v227_v57 = vadd.s32 608, %v6906_v1 }
 0x1c6   :  { %v2654_v58 = vxor.u32 %v2526_v52, %v2398_v44  ;;  %v610_v59 = vxor.u32 %v6910_v3, %v480_v53  ;;  %v481_v60 = vadd.s32 %v353_v54, %v6908_v2  ;;  %v482_v61 = vadd.s32 %v354_v51, %v6908_v2 }
 0x1c7   :  { %v2527_v62 = vshrl.u32 %v2399_v43, 16  ;;  %v2144_v63 = vshrl.u32 %v2016_v55, 15  ;;  %v993_v0 = vmul.u32 2146121005, %v865_v56  ;;  %v355_v5 = vmul.u32 16, %v227_v57 }
 0x1c8   :  { %v2782_v6 = vshrl.u32 %v2654_v58, 8  ;;  %v738_v7 = vshrl.u32 %v610_v59, 16  ;;  %v611_v40 = vxor.u32 %v6910_v3, %v481_v60  ;;  %v612_v26 = vxor.u32 %v6910_v3, %v482_v61 }
 0x1c9   :  { %v2655_v9 = vxor.u32 %v2527_v62, %v2399_v43  ;;  %v2272_v12 = vxor.u32 %v2144_v63, %v2016_v55  ;;  %v1121_v14 = vshrl.u32 %v993_v0, 15  ;;  %v483_v15 = vadd.s32 %v355_v5, %v6908_v2 }
 0x1ca   :  { %v2910_v16 = vcvt.s32.f32 %v2782_v6  ;;  %v866_v13 = vxor.u32 %v738_v7, %v610_v59  ;;  %v739_v17 = vshrl.u32 %v611_v40, 16  ;;  %v740_v18 = vshrl.u32 %v612_v26, 16 }
 0x1cb   :  { %v2783_v19 = vshrl.u32 %v2655_v9, 8  ;;  %v2400_v20 = vmul.u32 2221713035, %v2272_v12  ;;  %v1249_v22 = vxor.u32 %v1121_v14, %v993_v0  ;;  %v613_v23 = vxor.u32 %v6910_v3, %v483_v15 }
 0x1cc   :  { %v3038_v24 = vmul.f32 5.9604645e-08, %v2910_v16  ;;  %v994_v25 = vmul.u32 2146121005, %v866_v13  ;;  %v867_v27 = vxor.u32 %v739_v17, %v611_v40  ;;  %v868_v28 = vxor.u32 %v740_v18, %v612_v26 }
 0x1cd   :  { %v2911_v29 = vcvt.s32.f32 %v2783_v19  ;;  %v2528_v30 = vshrl.u32 %v2400_v20, 16  ;;  %v1377_v31 = vmul.u32 2221713035, %v1249_v22  ;;  %v741_v32 = vshrl.u32 %v613_v23, 16 }
 0x1ce   :  { %vm3166_vm12 = vcmp.lt.f32.partialorder %v3038_v24, 0.006449987  ;;  %v1122_v33 = vshrl.u32 %v994_v25, 15  ;;  %v995_v34 = vmul.u32 2146121005, %v867_v27  ;;  %v228_v36 = vadd.s32 608, %v6913_v4 }
 0x1cf   :  { %v3294_v10 = vsel %vm3166_vm12, 1.0, %v6891_v8  ;;  %v3039_v35 = vmul.f32 5.9604645e-08, %v2911_v29  ;;  %v2656_v21 = vxor.u32 %v2528_v30, %v2400_v20  ;;  %v1505_v11 = vshrl.u32 %v1377_v31, 16 }
 0x1d0   :  { %6770 = vmatmul.mubr.msk.f32.gmra.mxu1 %vm3365_vm2, %v3294_v10  ;;  %v1250_v37 = vxor.u32 %v1122_v33, %v994_v25  ;;  %v1123_v39 = vshrl.u32 %v995_v34, 15  ;;  %v996_v41 = vmul.u32 2146121005, %v868_v28  ;;  %v869_v42 = vxor.u32 %v741_v32, %v613_v23 }
 0x1d1   :  { %vm3167_vm13 = vcmp.lt.f32.partialorder %v3039_v35, 0.006449987  ;;  %v2784_v44 = vshrl.u32 %v2656_v21, 8  ;;  %v1633_v45 = vxor.u32 %v1505_v11, %v1377_v31  ;;  %v356_v46 = vmul.u32 16, %v228_v36 }
 0x1d2   :  { %v3295_v47 = vsel %vm3167_vm13, 1.0, %v6891_v8  ;;  %v1378_v48 = vmul.u32 2221713035, %v1250_v37  ;;  %v1251_v49 = vxor.u32 %v1123_v39, %v995_v34  ;;  %v1124_v50 = vshrl.u32 %v996_v41, 15 }
 0x1d3   :  { %6772 = vmatprep.mubr.msk.f32.mxu1 %vm3365_vm2, %v3295_v47  ;;  %v2912_v52 = vcvt.s32.f32 %v2784_v44  ;;  %v1761_v53 = vshrl.u32 %v1633_v45, 16  ;;  %v997_v54 = vmul.u32 2146121005, %v869_v42  ;;  %v484_v51 = vadd.s32 %v356_v46, %v6908_v2 }
 0x1d4   :  { %v1506_v43 = vshrl.u32 %v1378_v48, 16  ;;  %v1379_v55 = vmul.u32 2221713035, %v1251_v49  ;;  %v1252_v56 = vxor.u32 %v1124_v50, %v996_v41  ;;  %v229_v57 = vadd.s32 624, %v6906_v1 }
 0x1d5   :  { %v3040_v58 = vmul.f32 5.9604645e-08, %v2912_v52  ;;  %v1889_v59 = vxor.u32 %v1761_v53, %v1633_v45  ;;  %v1125_v60 = vshrl.u32 %v997_v54, 15  ;;  %v614_v61 = vxor.u32 %v6910_v3, %v484_v51 }
 0x1d6   :  { %v1634_v62 = vxor.u32 %v1506_v43, %v1378_v48  ;;  %v1507_v63 = vshrl.u32 %v1379_v55, 16  ;;  %v1380_v0 = vmul.u32 2221713035, %v1252_v56  ;;  %v357_v5 = vmul.u32 16, %v229_v57 }
 0x1d7   :  { %vm3168_vm14 = vcmp.lt.f32.partialorder %v3040_v58, 0.006449987  ;;  %v2017_v6 = vmul.u32 2146121005, %v1889_v59  ;;  %v1253_v7 = vxor.u32 %v1125_v60, %v997_v54  ;;  %v742_v40 = vshrl.u32 %v614_v61, 16 }
 0x1d8   :  { %v3296_v26 = vsel %vm3168_vm14, 1.0, %v6891_v8  ;;  %v1762_v9 = vshrl.u32 %v1634_v62, 16  ;;  %v1635_v12 = vxor.u32 %v1507_v63, %v1379_v55  ;;  %v1508_v14 = vshrl.u32 %v1380_v0, 16 }
 0x1d9   :  { %6773 = vmatmul.mubr.msk.f32.gmra.mxu1 %vm3365_vm2, %v3296_v26  ;;  %v2145_v15 = vshrl.u32 %v2017_v6, 15  ;;  %v1381_v16 = vmul.u32 2221713035, %v1253_v7  ;;  %v870_v13 = vxor.u32 %v742_v40, %v614_v61  ;;  %v485_v17 = vadd.s32 %v357_v5, %v6908_v2 }
 0x1da   :  { %v1890_v18 = vxor.u32 %v1762_v9, %v1634_v62  ;;  %v1763_v19 = vshrl.u32 %v1635_v12, 16  ;;  %v1636_v20 = vxor.u32 %v1508_v14, %v1380_v0  ;;  %v230_v22 = vadd.s32 624, %v6913_v4 }
 0x1db   :  { %v2273_v23 = vxor.u32 %v2145_v15, %v2017_v6  ;;  %v1509_v24 = vshrl.u32 %v1381_v16, 16  ;;  %v998_v25 = vmul.u32 2146121005, %v870_v13  ;;  %v615_v27 = vxor.u32 %v6910_v3, %v485_v17 }
 0x1dc   :  { %v2018_v28 = vmul.u32 2146121005, %v1890_v18  ;;  %v1891_v29 = vxor.u32 %v1763_v19, %v1635_v12  ;;  %v1764_v30 = vshrl.u32 %v1636_v20, 16  ;;  %v358_v31 = vmul.u32 16, %v230_v22 }
 0x1dd   :  { %v2401_v32 = vmul.u32 2221713035, %v2273_v23  ;;  %v1637_v33 = vxor.u32 %v1509_v24, %v1381_v16  ;;  %v1126_v34 = vshrl.u32 %v998_v25, 15  ;;  %v743_v36 = vshrl.u32 %v615_v27, 16 }
 0x1de   :  { %v2146_v10 = vshrl.u32 %v2018_v28, 15  ;;  %v2019_v35 = vmul.u32 2146121005, %v1891_v29  ;;  %v1892_v21 = vxor.u32 %v1764_v30, %v1636_v20  ;;  %v486_v11 = vadd.s32 %v358_v31, %v6908_v2 }
 0x1df   :  { %v2529_v37 = vshrl.u32 %v2401_v32, 16  ;;  %v1765_v39 = vshrl.u32 %v1637_v33, 16  ;;  %v1254_v41 = vxor.u32 %v1126_v34, %v998_v25  ;;  %v871_v42 = vxor.u32 %v743_v36, %v615_v27 }
 0x1e0   :  { %v2274_v44 = vxor.u32 %v2146_v10, %v2018_v28  ;;  %v2147_v45 = vshrl.u32 %v2019_v35, 15  ;;  %v2020_v46 = vmul.u32 2146121005, %v1892_v21  ;;  %v616_v47 = vxor.u32 %v6910_v3, %v486_v11 }
 0x1e1   :  { %v2657_v48 = vxor.u32 %v2529_v37, %v2401_v32  ;;  %v1893_v49 = vxor.u32 %v1765_v39, %v1637_v33  ;;  %v1382_v50 = vmul.u32 2221713035, %v1254_v41  ;;  %v999_v52 = vmul.u32 2146121005, %v871_v42 }
 0x1e2   :  { %v2402_v53 = vmul.u32 2221713035, %v2274_v44  ;;  %v2275_v54 = vxor.u32 %v2147_v45, %v2019_v35  ;;  %v2148_v51 = vshrl.u32 %v2020_v46, 15  ;;  %v744_v43 = vshrl.u32 %v616_v47, 16 }
 0x1e3   :  { %v2785_v55 = vshrl.u32 %v2657_v48, 8  ;;  %v2021_v56 = vmul.u32 2146121005, %v1893_v49  ;;  %v1510_v57 = vshrl.u32 %v1382_v50, 16  ;;  %v1127_v58 = vshrl.u32 %v999_v52, 15 }
 0x1e4   :  { %v2530_v59 = vshrl.u32 %v2402_v53, 16  ;;  %v2403_v60 = vmul.u32 2221713035, %v2275_v54  ;;  %v2276_v61 = vxor.u32 %v2148_v51, %v2020_v46  ;;  %v872_v62 = vxor.u32 %v744_v43, %v616_v47 }
 0x1e5   :  { %v2913_v63 = vcvt.s32.f32 %v2785_v55  ;;  %v2149_v0 = vshrl.u32 %v2021_v56, 15  ;;  %v1638_v5 = vxor.u32 %v1510_v57, %v1382_v50  ;;  %v1255_v6 = vxor.u32 %v1127_v58, %v999_v52 }
 0x1e6   :  { %v2658_v7 = vxor.u32 %v2530_v59, %v2402_v53  ;;  %v2531_v40 = vshrl.u32 %v2403_v60, 16  ;;  %v2404_v26 = vmul.u32 2221713035, %v2276_v61  ;;  %v1000_v9 = vmul.u32 2146121005, %v872_v62 }
 0x1e7   :  { %v3041_v12 = vmul.f32 5.9604645e-08, %v2913_v63  ;;  %v2277_v14 = vxor.u32 %v2149_v0, %v2021_v56  ;;  %v1766_v15 = vshrl.u32 %v1638_v5, 16  ;;  %v1383_v16 = vmul.u32 2221713035, %v1255_v6 }
 0x1e8   :  { %v2786_v13 = vshrl.u32 %v2658_v7, 8  ;;  %v2659_v17 = vxor.u32 %v2531_v40, %v2403_v60  ;;  %v2532_v18 = vshrl.u32 %v2404_v26, 16  ;;  %v1128_v19 = vshrl.u32 %v1000_v9, 15 }
 0x1e9   :  { %vm3169_vm15 = vcmp.lt.f32.partialorder %v3041_v12, 0.006449987  ;;  %v2405_v20 = vmul.u32 2221713035, %v2277_v14  ;;  %v1894_v22 = vxor.u32 %v1766_v15, %v1638_v5  ;;  %v1511_v23 = vshrl.u32 %v1383_v16, 16 }
 0x1ea   :  { %v3297_v24 = vsel %vm3169_vm15, 1.0, %v6891_v8  ;;  %v2914_v25 = vcvt.s32.f32 %v2786_v13  ;;  %v2787_v27 = vshrl.u32 %v2659_v17, 8  ;;  %v2660_v28 = vxor.u32 %v2532_v18, %v2404_v26 }
 0x1eb   :  { %6775 = vmatprep.mubr.msk.f32.mxu1 %vm3365_vm2, %v3297_v24  ;;  %v2533_v29 = vshrl.u32 %v2405_v20, 16  ;;  %v2022_v30 = vmul.u32 2146121005, %v1894_v22  ;;  %v1639_v31 = vxor.u32 %v1511_v23, %v1383_v16  ;;  %v1256_v32 = vxor.u32 %v1128_v19, %v1000_v9 }
 0x1ec   :  { %v3042_v33 = vmul.f32 5.9604645e-08, %v2914_v25  ;;  %v2915_v34 = vcvt.s32.f32 %v2787_v27  ;;  %v2788_v36 = vshrl.u32 %v2660_v28, 8  ;;  %v231_v10 = vadd.s32 640, %v6906_v1 }
 0x1ed   :  { %v2661_v35 = vxor.u32 %v2533_v29, %v2405_v20  ;;  %v2150_v21 = vshrl.u32 %v2022_v30, 15  ;;  %v1767_v11 = vshrl.u32 %v1639_v31, 16  ;;  %v1384_v37 = vmul.u32 2221713035, %v1256_v32 }
 0x1ee   :  { %vm3170_vm0 = vcmp.lt.f32.partialorder %v3042_v33, 0.006449987  ;;  %v3043_v39 = vmul.f32 5.9604645e-08, %v2915_v34  ;;  %v2916_v41 = vcvt.s32.f32 %v2788_v36  ;;  %v359_v42 = vmul.u32 16, %v231_v10 }
 0x1ef   :  { %v3298_v44 = vsel %vm3170_vm0, 1.0, %v6891_v8  ;;  %v2789_v45 = vshrl.u32 %v2661_v35, 8  ;;  %v2278_v46 = vxor.u32 %v2150_v21, %v2022_v30  ;;  %v1895_v47 = vxor.u32 %v1767_v11, %v1639_v31 }
 0x1f0   :  { %6776 = vmatmul.mubr.msk.f32.gmra.mxu1 %vm3365_vm2, %v3298_v44  ;;  %vm3171_vm1 = vcmp.lt.f32.partialorder %v3043_v39, 0.006449987  ;;  %v3044_v48 = vmul.f32 5.9604645e-08, %v2916_v41  ;;  %v1512_v49 = vshrl.u32 %v1384_v37, 16  ;;  %v487_v50 = vadd.s32 %v359_v42, %v6908_v2 }
 0x1f1   :  { %v3299_v52 = vsel %vm3171_vm1, 1.0, %v6891_v8  ;;  %v2917_v53 = vcvt.s32.f32 %v2789_v45  ;;  %v2406_v54 = vmul.u32 2221713035, %v2278_v46  ;;  %v2023_v51 = vmul.u32 2146121005, %v1895_v47 }
 0x1f2   :  { %6778 = vmatprep.mubr.msk.f32.mxu1 %vm3365_vm2, %v3299_v52  ;;  %vm3172_vm3 = vcmp.lt.f32.partialorder %v3044_v48, 0.006449987  ;;  %v1640_v43 = vxor.u32 %v1512_v49, %v1384_v37  ;;  %v617_v55 = vxor.u32 %v6910_v3, %v487_v50  ;;  %v232_v56 = vadd.s32 640, %v6913_v4 }
 0x1f3   :  { %v3300_v57 = vsel %vm3172_vm3, 1.0, %v6891_v8  ;;  %v3045_v58 = vmul.f32 5.9604645e-08, %v2917_v53  ;;  %v2534_v59 = vshrl.u32 %v2406_v54, 16  ;;  %v2151_v60 = vshrl.u32 %v2023_v51, 15 }
 0x1f4   :  { %6779 = vmatmul.mubr.msk.f32.gmra.mxu1 %vm3365_vm2, %v3300_v57  ;;  %v1768_v61 = vshrl.u32 %v1640_v43, 16  ;;  %v745_v62 = vshrl.u32 %v617_v55, 16  ;;  %v360_v63 = vmul.u32 16, %v232_v56  ;;  %v233_v0 = vadd.s32 656, %v6906_v1 }
 0x1f5   :  { %vm3173_vm4 = vcmp.lt.f32.partialorder %v3045_v58, 0.006449987  ;;  %v2662_v5 = vxor.u32 %v2534_v59, %v2406_v54  ;;  %v2279_v6 = vxor.u32 %v2151_v60, %v2023_v51  ;;  %v234_v7 = vadd.s32 656, %v6913_v4 }
 0x1f6   :  { %v3301_v40 = vsel %vm3173_vm4, 1.0, %v6891_v8  ;;  %v1896_v26 = vxor.u32 %v1768_v61, %v1640_v43  ;;  %v873_v9 = vxor.u32 %v745_v62, %v617_v55  ;;  %v488_v12 = vadd.s32 %v360_v63, %v6908_v2 }
 0x1f7   :  { %6781 = vmatprep.mubr.msk.f32.mxu1 %vm3365_vm2, %v3301_v40  ;;  %v2790_v14 = vshrl.u32 %v2662_v5, 8  ;;  %v2407_v15 = vmul.u32 2221713035, %v2279_v6  ;;  %v361_v16 = vmul.u32 16, %v233_v0  ;;  %v235_v13 = vadd.s32 672, %v6906_v1 }
 0x1f8   :  { %v2024_v17 = vmul.u32 2146121005, %v1896_v26  ;;  %v1001_v18 = vmul.u32 2146121005, %v873_v9  ;;  %v618_v19 = vxor.u32 %v6910_v3, %v488_v12  ;;  %v236_v20 = vadd.s32 672, %v6913_v4 }
 0x1f9   :  { %v2918_v22 = vcvt.s32.f32 %v2790_v14  ;;  %v2535_v23 = vshrl.u32 %v2407_v15, 16  ;;  %v489_v24 = vadd.s32 %v361_v16, %v6908_v2  ;;  %v362_v25 = vmul.u32 16, %v234_v7 }
 0x1fa   :  { %v2152_v27 = vshrl.u32 %v2024_v17, 15  ;;  %v1129_v28 = vshrl.u32 %v1001_v18, 15  ;;  %v746_v29 = vshrl.u32 %v618_v19, 16  ;;  %v363_v30 = vmul.u32 16, %v235_v13 }
 0x1fb   :  { %v3046_v31 = vmul.f32 5.9604645e-08, %v2918_v22  ;;  %v2663_v32 = vxor.u32 %v2535_v23, %v2407_v15  ;;  %v619_v33 = vxor.u32 %v6910_v3, %v489_v24  ;;  %v490_v34 = vadd.s32 %v362_v25, %v6908_v2 }
 0x1fc   :  { %v2280_v36 = vxor.u32 %v2152_v27, %v2024_v17  ;;  %v1257_v10 = vxor.u32 %v1129_v28, %v1001_v18  ;;  %v874_v35 = vxor.u32 %v746_v29, %v618_v19  ;;  %v491_v21 = vadd.s32 %v363_v30, %v6908_v2 }
 0x1fd   :  { %vm3174_vm5 = vcmp.lt.f32.partialorder %v3046_v31, 0.006449987  ;;  %v2791_v11 = vshrl.u32 %v2663_v32, 8  ;;  %v747_v37 = vshrl.u32 %v619_v33, 16  ;;  %v620_v39 = vxor.u32 %v6910_v3, %v490_v34 }
 0x1fe   :  { %v3302_v41 = vsel %vm3174_vm5, 1.0, %v6891_v8  ;;  %v2408_v42 = vmul.u32 2221713035, %v2280_v36  ;;  %v1385_v44 = vmul.u32 2221713035, %v1257_v10  ;;  %v621_v45 = vxor.u32 %v6910_v3, %v491_v21 }
 0x1ff   :  { %6782 = vmatmul.mubr.msk.f32.gmra.mxu1 %vm3365_vm2, %v3302_v41  ;;  %v2919_v46 = vcvt.s32.f32 %v2791_v11  ;;  %v1002_v47 = vmul.u32 2146121005, %v874_v35  ;;  %v875_v48 = vxor.u32 %v747_v37, %v619_v33  ;;  %v748_v49 = vshrl.u32 %v620_v39, 16 }
 0x200   :  { %v2536_v50 = vshrl.u32 %v2408_v42, 16  ;;  %v1513_v52 = vshrl.u32 %v1385_v44, 16  ;;  %v749_v53 = vshrl.u32 %v621_v45, 16  ;;  %v364_v54 = vmul.u32 16, %v236_v20 }
 0x201   :  { %v3047_v51 = vmul.f32 5.9604645e-08, %v2919_v46  ;;  %v1130_v43 = vshrl.u32 %v1002_v47, 15  ;;  %v1003_v55 = vmul.u32 2146121005, %v875_v48  ;;  %v876_v56 = vxor.u32 %v748_v49, %v620_v39 }
 0x202   :  { %v2664_v57 = vxor.u32 %v2536_v50, %v2408_v42  ;;  %v1641_v58 = vxor.u32 %v1513_v52, %v1385_v44  ;;  %v877_v59 = vxor.u32 %v749_v53, %v621_v45  ;;  %v492_v60 = vadd.s32 %v364_v54, %v6908_v2 }
 0x203   :  { %vm3175_vm6 = vcmp.lt.f32.partialorder %v3047_v51, 0.006449987  ;;  %v1258_v61 = vxor.u32 %v1130_v43, %v1002_v47  ;;  %v1131_v62 = vshrl.u32 %v1003_v55, 15  ;;  %v1004_v63 = vmul.u32 2146121005, %v876_v56 }
 0x204   :  { %v3303_v0 = vsel %vm3175_vm6, 1.0, %v6891_v8  ;;  %v2792_v5 = vshrl.u32 %v2664_v57, 8  ;;  %v1769_v6 = vshrl.u32 %v1641_v58, 16  ;;  %v1005_v7 = vmul.u32 2146121005, %v877_v59 }
 0x205   :  { %6784 = vmatprep.mubr.msk.f32.mxu1 %vm3365_vm2, %v3303_v0  ;;  %v1386_v40 = vmul.u32 2221713035, %v1258_v61  ;;  %v1259_v26 = vxor.u32 %v1131_v62, %v1003_v55  ;;  %v1132_v9 = vshrl.u32 %v1004_v63, 15  ;;  %v622_v12 = vxor.u32 %v6910_v3, %v492_v60 }
 0x206   :  { %v2920_v14 = vcvt.s32.f32 %v2792_v5  ;;  %v1897_v15 = vxor.u32 %v1769_v6, %v1641_v58  ;;  %v1133_v16 = vshrl.u32 %v1005_v7, 15  ;;  %v237_v13 = vadd.s32 688, %v6906_v1 }
 0x207   :  { %v1514_v17 = vshrl.u32 %v1386_v40, 16  ;;  %v1387_v18 = vmul.u32 2221713035, %v1259_v26  ;;  %v1260_v19 = vxor.u32 %v1132_v9, %v1004_v63  ;;  %v750_v20 = vshrl.u32 %v622_v12, 16 }
 0x208   :  { %v3048_v22 = vmul.f32 5.9604645e-08, %v2920_v14  ;;  %v2025_v23 = vmul.u32 2146121005, %v1897_v15  ;;  %v1261_v24 = vxor.u32 %v1133_v16, %v1005_v7  ;;  %v365_v25 = vmul.u32 16, %v237_v13 }
 0x209   :  { %v1642_v27 = vxor.u32 %v1514_v17, %v1386_v40  ;;  %v1515_v28 = vshrl.u32 %v1387_v18, 16  ;;  %v1388_v29 = vmul.u32 2221713035, %v1260_v19  ;;  %v878_v30 = vxor.u32 %v750_v20, %v622_v12 }
 0x20a   :  { %vm3176_vm7 = vcmp.lt.f32.partialorder %v3048_v22, 0.006449987  ;;  %v2153_v31 = vshrl.u32 %v2025_v23, 15  ;;  %v1389_v32 = vmul.u32 2221713035, %v1261_v24  ;;  %v493_v33 = vadd.s32 %v365_v25, %v6908_v2 }
 0x20b   :  { %v3304_v34 = vsel %vm3176_vm7, 1.0, %v6891_v8  ;;  %v1770_v36 = vshrl.u32 %v1642_v27, 16  ;;  %v1643_v10 = vxor.u32 %v1515_v28, %v1387_v18  ;;  %v1516_v35 = vshrl.u32 %v1388_v29, 16 }
 0x20c   :  { %6785 = vmatmul.mubr.msk.f32.gmra.mxu1 %vm3365_vm2, %v3304_v34  ;;  %v2281_v21 = vxor.u32 %v2153_v31, %v2025_v23  ;;  %v1517_v11 = vshrl.u32 %v1389_v32, 16  ;;  %v1006_v37 = vmul.u32 2146121005, %v878_v30  ;;  %v623_v39 = vxor.u32 %v6910_v3, %v493_v33 }
 0x20d   :  { %v1898_v41 = vxor.u32 %v1770_v36, %v1642_v27  ;;  %v1771_v42 = vshrl.u32 %v1643_v10, 16  ;;  %v1644_v44 = vxor.u32 %v1516_v35, %v1388_v29  ;;  %v238_v45 = vadd.s32 688, %v6913_v4 }
 0x20e   :  { %v2409_v46 = vmul.u32 2221713035, %v2281_v21  ;;  %v1645_v47 = vxor.u32 %v1517_v11, %v1389_v32  ;;  %v1134_v48 = vshrl.u32 %v1006_v37, 15  ;;  %v751_v49 = vshrl.u32 %v623_v39, 16 }
 0x20f   :  { %v2026_v50 = vmul.u32 2146121005, %v1898_v41  ;;  %v1899_v52 = vxor.u32 %v1771_v42, %v1643_v10  ;;  %v1772_v53 = vshrl.u32 %v1644_v44, 16  ;;  %v366_v54 = vmul.u32 16, %v238_v45 }
 0x210   :  { %v2537_v51 = vshrl.u32 %v2409_v46, 16  ;;  %v1773_v43 = vshrl.u32 %v1645_v47, 16  ;;  %v1262_v55 = vxor.u32 %v1134_v48, %v1006_v37  ;;  %v879_v56 = vxor.u32 %v751_v49, %v623_v39 }
 0x211   :  { %v2154_v57 = vshrl.u32 %v2026_v50, 15  ;;  %v2027_v58 = vmul.u32 2146121005, %v1899_v52  ;;  %v1900_v59 = vxor.u32 %v1772_v53, %v1644_v44  ;;  %v494_v60 = vadd.s32 %v366_v54, %v6908_v2 }
 0x212   :  { %v2665_v61 = vxor.u32 %v2537_v51, %v2409_v46  ;;  %v1901_v62 = vxor.u32 %v1773_v43, %v1645_v47  ;;  %v1390_v63 = vmul.u32 2221713035, %v1262_v55  ;;  %v1007_v0 = vmul.u32 2146121005, %v879_v56 }
 0x213   :  { %v2282_v5 = vxor.u32 %v2154_v57, %v2026_v50  ;;  %v2155_v6 = vshrl.u32 %v2027_v58, 15  ;;  %v2028_v7 = vmul.u32 2146121005, %v1900_v59  ;;  %v624_v40 = vxor.u32 %v6910_v3, %v494_v60 }
 0x214   :  { %v2793_v26 = vshrl.u32 %v2665_v61, 8  ;;  %v2029_v9 = vmul.u32 2146121005, %v1901_v62  ;;  %v1518_v12 = vshrl.u32 %v1390_v63, 16  ;;  %v1135_v14 = vshrl.u32 %v1007_v0, 15 }
 0x215   :  { %v2410_v15 = vmul.u32 2221713035, %v2282_v5  ;;  %v2283_v16 = vxor.u32 %v2155_v6, %v2027_v58  ;;  %v2156_v13 = vshrl.u32 %v2028_v7, 15  ;;  %v752_v17 = vshrl.u32 %v624_v40, 16 }
 0x216   :  { %v2921_v18 = vcvt.s32.f32 %v2793_v26  ;;  %v2157_v19 = vshrl.u32 %v2029_v9, 15  ;;  %v1646_v20 = vxor.u32 %v1518_v12, %v1390_v63  ;;  %v1263_v22 = vxor.u32 %v1135_v14, %v1007_v0 }
 0x217   :  { %v2538_v23 = vshrl.u32 %v2410_v15, 16  ;;  %v2411_v24 = vmul.u32 2221713035, %v2283_v16  ;;  %v2284_v25 = vxor.u32 %v2156_v13, %v2028_v7  ;;  %v880_v27 = vxor.u32 %v752_v17, %v624_v40 }
 0x218   :  { %v3049_v28 = vmul.f32 5.9604645e-08, %v2921_v18  ;;  %v2285_v29 = vxor.u32 %v2157_v19, %v2029_v9  ;;  %v1774_v30 = vshrl.u32 %v1646_v20, 16  ;;  %v1391_v31 = vmul.u32 2221713035, %v1263_v22 }
 0x219   :  { %v2666_v32 = vxor.u32 %v2538_v23, %v2410_v15  ;;  %v2539_v33 = vshrl.u32 %v2411_v24, 16  ;;  %v2412_v34 = vmul.u32 2221713035, %v2284_v25  ;;  %v1008_v36 = vmul.u32 2146121005, %v880_v27 }
 0x21a   :  { %vm3177_vm8 = vcmp.lt.f32.partialorder %v3049_v28, 0.006449987  ;;  %v2413_v10 = vmul.u32 2221713035, %v2285_v29  ;;  %v1902_v35 = vxor.u32 %v1774_v30, %v1646_v20  ;;  %v1519_v21 = vshrl.u32 %v1391_v31, 16 }
 0x21b   :  { %v3305_v11 = vsel %vm3177_vm8, 1.0, %v6891_v8  ;;  %v2794_v37 = vshrl.u32 %v2666_v32, 8  ;;  %v2667_v39 = vxor.u32 %v2539_v33, %v2411_v24  ;;  %v2540_v41 = vshrl.u32 %v2412_v34, 16 }
 0x21c   :  { %6787 = vmatprep.mubr.msk.f32.mxu1 %vm3365_vm2, %v3305_v11  ;;  %v2541_v42 = vshrl.u32 %v2413_v10, 16  ;;  %v2030_v44 = vmul.u32 2146121005, %v1902_v35  ;;  %v1647_v45 = vxor.u32 %v1519_v21, %v1391_v31  ;;  %v1136_v46 = vshrl.u32 %v1008_v36, 15 }
 0x21d   :  { %v2922_v47 = vcvt.s32.f32 %v2794_v37  ;;  %v2795_v48 = vshrl.u32 %v2667_v39, 8  ;;  %v2668_v49 = vxor.u32 %v2540_v41, %v2412_v34  ;;  %v239_v50 = vadd.s32 704, %v6906_v1 }
 0x21e   :  { %v2669_v52 = vxor.u32 %v2541_v42, %v2413_v10  ;;  %v2158_v53 = vshrl.u32 %v2030_v44, 15  ;;  %v1775_v54 = vshrl.u32 %v1647_v45, 16  ;;  %v1264_v51 = vxor.u32 %v1136_v46, %v1008_v36 }
 0x21f   :  { %v3050_v43 = vmul.f32 5.9604645e-08, %v2922_v47  ;;  %v2923_v55 = vcvt.s32.f32 %v2795_v48  ;;  %v2796_v56 = vshrl.u32 %v2668_v49, 8  ;;  %v367_v57 = vmul.u32 16, %v239_v50 }
 0x220   :  { %v2797_v58 = vshrl.u32 %v2669_v52, 8  ;;  %v2286_v59 = vxor.u32 %v2158_v53, %v2030_v44  ;;  %v1903_v60 = vxor.u32 %v1775_v54, %v1647_v45  ;;  %v1392_v61 = vmul.u32 2221713035, %v1264_v51 }
 0x221   :  { %vm3178_vm9 = vcmp.lt.f32.partialorder %v3050_v43, 0.006449987  ;;  %v3051_v62 = vmul.f32 5.9604645e-08, %v2923_v55  ;;  %v2924_v63 = vcvt.s32.f32 %v2796_v56  ;;  %v495_v0 = vadd.s32 %v367_v57, %v6908_v2 }
 0x222   :  { %v3306_v5 = vsel %vm3178_vm9, 1.0, %v6891_v8  ;;  %v2925_v6 = vcvt.s32.f32 %v2797_v58  ;;  %v2414_v7 = vmul.u32 2221713035, %v2286_v59  ;;  %v2031_v40 = vmul.u32 2146121005, %v1903_v60 }
 0x223   :  { %6788 = vmatmul.mubr.msk.f32.gmra.mxu1 %vm3365_vm2, %v3306_v5  ;;  %vm3179_vm10 = vcmp.lt.f32.partialorder %v3051_v62, 0.006449987  ;;  %v3052_v26 = vmul.f32 5.9604645e-08, %v2924_v63  ;;  %v1520_v9 = vshrl.u32 %v1392_v61, 16  ;;  %v625_v12 = vxor.u32 %v6910_v3, %v495_v0 }
 0x224   :  { %v3307_v14 = vsel %vm3179_vm10, 1.0, %v6891_v8  ;;  %v3053_v15 = vmul.f32 5.9604645e-08, %v2925_v6  ;;  %v2542_v16 = vshrl.u32 %v2414_v7, 16  ;;  %v2159_v13 = vshrl.u32 %v2031_v40, 15 }
 0x225   :  { %6790 = vmatprep.mubr.msk.f32.mxu1 %vm3365_vm2, %v3307_v14  ;;  %vm3180_vm11 = vcmp.lt.f32.partialorder %v3052_v26, 0.006449987  ;;  %v1648_v17 = vxor.u32 %v1520_v9, %v1392_v61  ;;  %v753_v18 = vshrl.u32 %v625_v12, 16  ;;  %v240_v19 = vadd.s32 704, %v6913_v4 }
 0x226   :  { %v3308_v20 = vsel %vm3180_vm11, 1.0, %v6891_v8  ;;  %vm3181_vm12 = vcmp.lt.f32.partialorder %v3053_v15, 0.006449987  ;;  %v2670_v22 = vxor.u32 %v2542_v16, %v2414_v7  ;;  %v2287_v23 = vxor.u32 %v2159_v13, %v2031_v40 }
 0x227   :  { %6791 = vmatmul.mubr.msk.f32.gmra.mxu1 %vm3365_vm2, %v3308_v20  ;;  %v3309_v24 = vsel %vm3181_vm12, 1.0, %v6891_v8  ;;  %v1776_v25 = vshrl.u32 %v1648_v17, 16  ;;  %v881_v27 = vxor.u32 %v753_v18, %v625_v12  ;;  %v368_v28 = vmul.u32 16, %v240_v19 }
 0x228   :  { %6793 = vmatprep.mubr.msk.f32.mxu1 %vm3365_vm2, %v3309_v24  ;;  %v2798_v29 = vshrl.u32 %v2670_v22, 8  ;;  %v2415_v30 = vmul.u32 2221713035, %v2287_v23  ;;  %v241_v31 = vadd.s32 720, %v6906_v1  ;;  %v242_v32 = vadd.s32 720, %v6913_v4 }
 0x229   :  { %v1904_v33 = vxor.u32 %v1776_v25, %v1648_v17  ;;  %v1009_v34 = vmul.u32 2146121005, %v881_v27  ;;  %v496_v36 = vadd.s32 %v368_v28, %v6908_v2  ;;  %v243_v10 = vadd.s32 736, %v6906_v1 }
 0x22a   :  { %v2926_v35 = vcvt.s32.f32 %v2798_v29  ;;  %v2543_v21 = vshrl.u32 %v2415_v30, 16  ;;  %v369_v11 = vmul.u32 16, %v241_v31  ;;  %v370_v37 = vmul.u32 16, %v242_v32 }
 0x22b   :  { %v2032_v39 = vmul.u32 2146121005, %v1904_v33  ;;  %v1137_v41 = vshrl.u32 %v1009_v34, 15  ;;  %v626_v42 = vxor.u32 %v6910_v3, %v496_v36  ;;  %v371_v44 = vmul.u32 16, %v243_v10 }
 0x22c   :  { %v3054_v45 = vmul.f32 5.9604645e-08, %v2926_v35  ;;  %v2671_v46 = vxor.u32 %v2543_v21, %v2415_v30  ;;  %v497_v47 = vadd.s32 %v369_v11, %v6908_v2  ;;  %v498_v48 = vadd.s32 %v370_v37, %v6908_v2 }
 0x22d   :  { %v2160_v49 = vshrl.u32 %v2032_v39, 15  ;;  %v1265_v50 = vxor.u32 %v1137_v41, %v1009_v34  ;;  %v754_v52 = vshrl.u32 %v626_v42, 16  ;;  %v499_v53 = vadd.s32 %v371_v44, %v6908_v2 }
 0x22e   :  { %vm3182_vm13 = vcmp.lt.f32.partialorder %v3054_v45, 0.006449987  ;;  %v2799_v54 = vshrl.u32 %v2671_v46, 8  ;;  %v627_v51 = vxor.u32 %v6910_v3, %v497_v47  ;;  %v628_v43 = vxor.u32 %v6910_v3, %v498_v48 }
 0x22f   :  { %v3310_v55 = vsel %vm3182_vm13, 1.0, %v6891_v8  ;;  %v2288_v56 = vxor.u32 %v2160_v49, %v2032_v39  ;;  %v1393_v57 = vmul.u32 2221713035, %v1265_v50  ;;  %v882_v58 = vxor.u32 %v754_v52, %v626_v42 }
 0x230   :  { %6794 = vmatmul.mubr.msk.f32.gmra.mxu1 %vm3365_vm2, %v3310_v55  ;;  %v2927_v59 = vcvt.s32.f32 %v2799_v54  ;;  %v755_v60 = vshrl.u32 %v627_v51, 16  ;;  %v756_v61 = vshrl.u32 %v628_v43, 16  ;;  %v629_v62 = vxor.u32 %v6910_v3, %v499_v53 }
 0x231   :  { %v2416_v63 = vmul.u32 2221713035, %v2288_v56  ;;  %v1521_v0 = vshrl.u32 %v1393_v57, 16  ;;  %v1010_v5 = vmul.u32 2146121005, %v882_v58  ;;  %v244_v6 = vadd.s32 736, %v6913_v4 }
 0x232   :  { %v3055_v7 = vmul.f32 5.9604645e-08, %v2927_v59  ;;  %v883_v40 = vxor.u32 %v755_v60, %v627_v51  ;;  %v884_v26 = vxor.u32 %v756_v61, %v628_v43  ;;  %v757_v9 = vshrl.u32 %v629_v62, 16 }
 0x233   :  { %v2544_v12 = vshrl.u32 %v2416_v63, 16  ;;  %v1649_v14 = vxor.u32 %v1521_v0, %v1393_v57  ;;  %v1138_v15 = vshrl.u32 %v1010_v5, 15  ;;  %v372_v16 = vmul.u32 16, %v244_v6 }
 0x234   :  { %vm3183_vm14 = vcmp.lt.f32.partialorder %v3055_v7, 0.006449987  ;;  %v1011_v13 = vmul.u32 2146121005, %v883_v40  ;;  %v1012_v17 = vmul.u32 2146121005, %v884_v26  ;;  %v885_v18 = vxor.u32 %v757_v9, %v629_v62 }
 0x235   :  { %v3311_v19 = vsel %vm3183_vm14, 1.0, %v6891_v8  ;;  %v2672_v20 = vxor.u32 %v2544_v12, %v2416_v63  ;;  %v1777_v22 = vshrl.u32 %v1649_v14, 16  ;;  %v1266_v23 = vxor.u32 %v1138_v15, %v1010_v5 }
 0x236   :  { %6796 = vmatprep.mubr.msk.f32.mxu1 %vm3365_vm2, %v3311_v19  ;;  %v1139_v24 = vshrl.u32 %v1011_v13, 15  ;;  %v1140_v25 = vshrl.u32 %v1012_v17, 15  ;;  %v1013_v27 = vmul.u32 2146121005, %v885_v18  ;;  %v500_v28 = vadd.s32 %v372_v16, %v6908_v2 }
 0x237   :  { %v2800_v29 = vshrl.u32 %v2672_v20, 8  ;;  %v1905_v30 = vxor.u32 %v1777_v22, %v1649_v14  ;;  %v1394_v31 = vmul.u32 2221713035, %v1266_v23  ;;  %v245_v32 = vadd.s32 752, %v6906_v1 }
 0x238   :  { %v1267_v33 = vxor.u32 %v1139_v24, %v1011_v13  ;;  %v1268_v34 = vxor.u32 %v1140_v25, %v1012_v17  ;;  %v1141_v36 = vshrl.u32 %v1013_v27, 15  ;;  %v630_v10 = vxor.u32 %v6910_v3, %v500_v28 }
 0x239   :  { %v2928_v35 = vcvt.s32.f32 %v2800_v29  ;;  %v2033_v21 = vmul.u32 2146121005, %v1905_v30  ;;  %v1522_v11 = vshrl.u32 %v1394_v31, 16  ;;  %v373_v37 = vmul.u32 16, %v245_v32 }
 0x23a   :  { %v1395_v39 = vmul.u32 2221713035, %v1267_v33  ;;  %v1396_v41 = vmul.u32 2221713035, %v1268_v34  ;;  %v1269_v42 = vxor.u32 %v1141_v36, %v1013_v27  ;;  %v758_v44 = vshrl.u32 %v630_v10, 16 }
 0x23b   :  { %v3056_v45 = vmul.f32 5.9604645e-08, %v2928_v35  ;;  %v2161_v46 = vshrl.u32 %v2033_v21, 15  ;;  %v1650_v47 = vxor.u32 %v1522_v11, %v1394_v31  ;;  %v501_v48 = vadd.s32 %v373_v37, %v6908_v2 }
 0x23c   :  { %v1523_v49 = vshrl.u32 %v1395_v39, 16  ;;  %v1524_v50 = vshrl.u32 %v1396_v41, 16  ;;  %v1397_v52 = vmul.u32 2221713035, %v1269_v42  ;;  %v886_v53 = vxor.u32 %v758_v44, %v630_v10 }
 0x23d   :  { %vm3184_vm15 = vcmp.lt.f32.partialorder %v3056_v45, 0.006449987  ;;  %v2289_v54 = vxor.u32 %v2161_v46, %v2033_v21  ;;  %v1778_v51 = vshrl.u32 %v1650_v47, 16  ;;  %v631_v43 = vxor.u32 %v6910_v3, %v501_v48 }
 0x23e   :  { %v3312_v55 = vsel %vm3184_vm15, 1.0, %v6891_v8  ;;  %v1651_v56 = vxor.u32 %v1523_v49, %v1395_v39  ;;  %v1652_v57 = vxor.u32 %v1524_v50, %v1396_v41  ;;  %v1525_v58 = vshrl.u32 %v1397_v52, 16 }
 0x23f   :  { %6797 = vmatmul.mubr.msk.f32.gmra.mxu1 %vm3365_vm2, %v3312_v55  ;;  %v2417_v59 = vmul.u32 2221713035, %v2289_v54  ;;  %v1906_v60 = vxor.u32 %v1778_v51, %v1650_v47  ;;  %v1014_v61 = vmul.u32 2146121005, %v886_v53  ;;  %v759_v62 = vshrl.u32 %v631_v43, 16 }
 0x240   :  { %v1779_v63 = vshrl.u32 %v1651_v56, 16  ;;  %v1780_v0 = vshrl.u32 %v1652_v57, 16  ;;  %v1653_v5 = vxor.u32 %v1525_v58, %v1397_v52  ;;  %v246_v6 = vadd.s32 752, %v6913_v4 }
 0x241   :  { %v2545_v7 = vshrl.u32 %v2417_v59, 16  ;;  %v2034_v40 = vmul.u32 2146121005, %v1906_v60  ;;  %v1142_v26 = vshrl.u32 %v1014_v61, 15  ;;  %v887_v9 = vxor.u32 %v759_v62, %v631_v43 }
 0x242   :  { %v1907_v12 = vxor.u32 %v1779_v63, %v1651_v56  ;;  %v1908_v14 = vxor.u32 %v1780_v0, %v1652_v57  ;;  %v1781_v15 = vshrl.u32 %v1653_v5, 16  ;;  %v374_v16 = vmul.u32 16, %v246_v6 }
 0x243   :  { %v2673_v13 = vxor.u32 %v2545_v7, %v2417_v59  ;;  %v2162_v17 = vshrl.u32 %v2034_v40, 15  ;;  %v1270_v18 = vxor.u32 %v1142_v26, %v1014_v61  ;;  %v1015_v19 = vmul.u32 2146121005, %v887_v9 }
 0x244   :  { %v2035_v20 = vmul.u32 2146121005, %v1907_v12  ;;  %v2036_v22 = vmul.u32 2146121005, %v1908_v14  ;;  %v1909_v23 = vxor.u32 %v1781_v15, %v1653_v5  ;;  %v502_v24 = vadd.s32 %v374_v16, %v6908_v2 }
 0x245   :  { %v2801_v25 = vshrl.u32 %v2673_v13, 8  ;;  %v2290_v27 = vxor.u32 %v2162_v17, %v2034_v40  ;;  %v1398_v28 = vmul.u32 2221713035, %v1270_v18  ;;  %v1143_v29 = vshrl.u32 %v1015_v19, 15 }
 0x246   :  { %v2163_v30 = vshrl.u32 %v2035_v20, 15  ;;  %v2164_v31 = vshrl.u32 %v2036_v22, 15  ;;  %v2037_v32 = vmul.u32 2146121005, %v1909_v23  ;;  %v632_v33 = vxor.u32 %v6910_v3, %v502_v24 }
 0x247   :  { %v2929_v34 = vcvt.s32.f32 %v2801_v25  ;;  %v2418_v36 = vmul.u32 2221713035, %v2290_v27  ;;  %v1526_v10 = vshrl.u32 %v1398_v28, 16  ;;  %v1271_v35 = vxor.u32 %v1143_v29, %v1015_v19 }
 0x248   :  { %v2291_v21 = vxor.u32 %v2163_v30, %v2035_v20  ;;  %v2292_v11 = vxor.u32 %v2164_v31, %v2036_v22  ;;  %v2165_v37 = vshrl.u32 %v2037_v32, 15  ;;  %v760_v39 = vshrl.u32 %v632_v33, 16 }
 0x249   :  { %v3057_v41 = vmul.f32 5.9604645e-08, %v2929_v34  ;;  %v2546_v42 = vshrl.u32 %v2418_v36, 16  ;;  %v1654_v44 = vxor.u32 %v1526_v10, %v1398_v28  ;;  %v1399_v45 = vmul.u32 2221713035, %v1271_v35 }
 0x24a   :  { %v2419_v46 = vmul.u32 2221713035, %v2291_v21  ;;  %v2420_v47 = vmul.u32 2221713035, %v2292_v11  ;;  %v2293_v48 = vxor.u32 %v2165_v37, %v2037_v32  ;;  %v888_v49 = vxor.u32 %v760_v39, %v632_v33 }
 0x24b   :  { %vm3185_vm0 = vcmp.lt.f32.partialorder %v3057_v41, 0.006449987  ;;  %v2674_v50 = vxor.u32 %v2546_v42, %v2418_v36  ;;  %v1782_v52 = vshrl.u32 %v1654_v44, 16  ;;  %v1527_v53 = vshrl.u32 %v1399_v45, 16 }
 0x24c   :  { %v3313_v54 = vsel %vm3185_vm0, 1.0, %v6891_v8  ;;  %v2547_v51 = vshrl.u32 %v2419_v46, 16  ;;  %v2548_v43 = vshrl.u32 %v2420_v47, 16  ;;  %v2421_v55 = vmul.u32 2221713035, %v2293_v48 }
 0x24d   :  { %6799 = vmatprep.mubr.msk.f32.mxu1 %vm3365_vm2, %v3313_v54  ;;  %v2802_v56 = vshrl.u32 %v2674_v50, 8  ;;  %v1910_v57 = vxor.u32 %v1782_v52, %v1654_v44  ;;  %v1655_v58 = vxor.u32 %v1527_v53, %v1399_v45  ;;  %v1016_v59 = vmul.u32 2146121005, %v888_v49 }
 0x24e   :  { %v2675_v60 = vxor.u32 %v2547_v51, %v2419_v46  ;;  %v2676_v61 = vxor.u32 %v2548_v43, %v2420_v47  ;;  %v2549_v62 = vshrl.u32 %v2421_v55, 16  ;;  %v247_v63 = vadd.s32 768, %v6906_v1 }
 0x24f   :  { %v2930_v0 = vcvt.s32.f32 %v2802_v56  ;;  %v2038_v5 = vmul.u32 2146121005, %v1910_v57  ;;  %v1783_v6 = vshrl.u32 %v1655_v58, 16  ;;  %v1144_v7 = vshrl.u32 %v1016_v59, 15 }
 0x250   :  { %v2803_v40 = vshrl.u32 %v2675_v60, 8  ;;  %v2804_v26 = vshrl.u32 %v2676_v61, 8  ;;  %v2677_v9 = vxor.u32 %v2549_v62, %v2421_v55  ;;  %v375_v12 = vmul.u32 16, %v247_v63 }
 0x251   :  { %v3058_v14 = vmul.f32 5.9604645e-08, %v2930_v0  ;;  %v2166_v15 = vshrl.u32 %v2038_v5, 15  ;;  %v1911_v16 = vxor.u32 %v1783_v6, %v1655_v58  ;;  %v1272_v13 = vxor.u32 %v1144_v7, %v1016_v59 }
 0x252   :  { %v2931_v17 = vcvt.s32.f32 %v2803_v40  ;;  %v2932_v18 = vcvt.s32.f32 %v2804_v26  ;;  %v2805_v19 = vshrl.u32 %v2677_v9, 8  ;;  %v503_v20 = vadd.s32 %v375_v12, %v6908_v2 }
 0x253   :  { %vm3186_vm1 = vcmp.lt.f32.partialorder %v3058_v14, 0.006449987  ;;  %v2294_v22 = vxor.u32 %v2166_v15, %v2038_v5  ;;  %v2039_v23 = vmul.u32 2146121005, %v1911_v16  ;;  %v1400_v24 = vmul.u32 2221713035, %v1272_v13 }
 0x254   :  { %v3314_v25 = vsel %vm3186_vm1, 1.0, %v6891_v8  ;;  %v3059_v27 = vmul.f32 5.9604645e-08, %v2931_v17  ;;  %v3060_v28 = vmul.f32 5.9604645e-08, %v2932_v18  ;;  %v2933_v29 = vcvt.s32.f32 %v2805_v19 }
 0x255   :  { %6800 = vmatmul.mubr.msk.f32.gmra.mxu1 %vm3365_vm2, %v3314_v25  ;;  %v2422_v30 = vmul.u32 2221713035, %v2294_v22  ;;  %v2167_v31 = vshrl.u32 %v2039_v23, 15  ;;  %v1528_v32 = vshrl.u32 %v1400_v24, 16  ;;  %v633_v33 = vxor.u32 %v6910_v3, %v503_v20 }
 0x256   :  { %vm3187_vm3 = vcmp.lt.f32.partialorder %v3059_v27, 0.006449987  ;;  %vm3188_vm4 = vcmp.lt.f32.partialorder %v3060_v28, 0.006449987  ;;  %v3061_v34 = vmul.f32 5.9604645e-08, %v2933_v29  ;;  %v248_v36 = vadd.s32 768, %v6913_v4 }
 0x257   :  { %v3315_v10 = vsel %vm3187_vm3, 1.0, %v6891_v8  ;;  %v3316_v35 = vsel %vm3188_vm4, 1.0, %v6891_v8  ;;  %v2550_v21 = vshrl.u32 %v2422_v30, 16  ;;  %v2295_v11 = vxor.u32 %v2167_v31, %v2039_v23 }
 0x258   :  { %6802 = vmatprep.mubr.msk.f32.mxu1 %vm3365_vm2, %v3315_v10  ;;  %vm3189_vm5 = vcmp.lt.f32.partialorder %v3061_v34, 0.006449987  ;;  %v1656_v37 = vxor.u32 %v1528_v32, %v1400_v24  ;;  %v761_v39 = vshrl.u32 %v633_v33, 16  ;;  %v376_v41 = vmul.u32 16, %v248_v36 }
 0x259   :  { %6803 = vmatmul.mubr.msk.f32.gmra.mxu1 %vm3365_vm2, %v3316_v35  ;;  %v3317_v42 = vsel %vm3189_vm5, 1.0, %v6891_v8  ;;  %v2678_v44 = vxor.u32 %v2550_v21, %v2422_v30  ;;  %v2423_v45 = vmul.u32 2221713035, %v2295_v11  ;;  %v249_v46 = vadd.s32 784, %v6906_v1  ;;  %v7458_v11 = vpop.f32.mrf.mxu0 }
 0x25a   :  { %6805 = vmatprep.mubr.msk.f32.mxu1 %vm3365_vm2, %v3317_v42  ;;  %v1784_v47 = vshrl.u32 %v1656_v37, 16  ;;  %v889_v48 = vxor.u32 %v761_v39, %v633_v33  ;;  %v504_v49 = vadd.s32 %v376_v41, %v6908_v2  ;;  %v250_v50 = vadd.s32 784, %v6913_v4 }
 0x25b   :  { %v2806_v52 = vshrl.u32 %v2678_v44, 8  ;;  %v2551_v53 = vshrl.u32 %v2423_v45, 16  ;;  %v377_v54 = vmul.u32 16, %v249_v46  ;;  %v251_v51 = vadd.s32 800, %v6906_v1 }
 0x25c   :  { %v1912_v43 = vxor.u32 %v1784_v47, %v1656_v37  ;;  %v1017_v55 = vmul.u32 2146121005, %v889_v48  ;;  %v634_v56 = vxor.u32 %v6910_v3, %v504_v49  ;;  %v378_v57 = vmul.u32 16, %v250_v50 }
 0x25d   :  { %v2934_v58 = vcvt.s32.f32 %v2806_v52  ;;  %v2679_v59 = vxor.u32 %v2551_v53, %v2423_v45  ;;  %v505_v60 = vadd.s32 %v377_v54, %v6908_v2  ;;  %v379_v61 = vmul.u32 16, %v251_v51 }
 0x25e   :  { %v2040_v62 = vmul.u32 2146121005, %v1912_v43  ;;  %v1145_v63 = vshrl.u32 %v1017_v55, 15  ;;  %v762_v0 = vshrl.u32 %v634_v56, 16  ;;  %v506_v5 = vadd.s32 %v378_v57, %v6908_v2 }
 0x25f   :  { %v3062_v6 = vmul.f32 5.9604645e-08, %v2934_v58  ;;  %v2807_v7 = vshrl.u32 %v2679_v59, 8  ;;  %v635_v40 = vxor.u32 %v6910_v3, %v505_v60  ;;  %v507_v26 = vadd.s32 %v379_v61, %v6908_v2 }
 0x260   :  { %v2168_v9 = vshrl.u32 %v2040_v62, 15  ;;  %v1273_v12 = vxor.u32 %v1145_v63, %v1017_v55  ;;  %v890_v14 = vxor.u32 %v762_v0, %v634_v56  ;;  %v636_v15 = vxor.u32 %v6910_v3, %v506_v5 }
 0x261   :  { %vm3190_vm6 = vcmp.lt.f32.partialorder %v3062_v6, 0.006449987  ;;  %v2935_v16 = vcvt.s32.f32 %v2807_v7  ;;  %v763_v13 = vshrl.u32 %v635_v40, 16  ;;  %v637_v17 = vxor.u32 %v6910_v3, %v507_v26 }
 0x262   :  { %v3318_v18 = vsel %vm3190_vm6, 1.0, %v6891_v8  ;;  %v2296_v19 = vxor.u32 %v2168_v9, %v2040_v62  ;;  %v1401_v20 = vmul.u32 2221713035, %v1273_v12  ;;  %v1018_v22 = vmul.u32 2146121005, %v890_v14 }
 0x263   :  { %6806 = vmatmul.mubr.msk.f32.gmra.mxu1 %vm3365_vm2, %v3318_v18  ;;  %v3063_v23 = vmul.f32 5.9604645e-08, %v2935_v16  ;;  %v891_v24 = vxor.u32 %v763_v13, %v635_v40  ;;  %v764_v25 = vshrl.u32 %v636_v15, 16  ;;  %v765_v27 = vshrl.u32 %v637_v17, 16 }
 0x264   :  { %v2424_v28 = vmul.u32 2221713035, %v2296_v19  ;;  %v1529_v29 = vshrl.u32 %v1401_v20, 16  ;;  %v1146_v30 = vshrl.u32 %v1018_v22, 15  ;;  %v252_v31 = vadd.s32 800, %v6913_v4 }
 0x265   :  { %vm3191_vm7 = vcmp.lt.f32.partialorder %v3063_v23, 0.006449987  ;;  %v1019_v32 = vmul.u32 2146121005, %v891_v24  ;;  %v892_v33 = vxor.u32 %v764_v25, %v636_v15  ;;  %v893_v34 = vxor.u32 %v765_v27, %v637_v17 }
 0x266   :  { %v3319_v36 = vsel %vm3191_vm7, 1.0, %v6891_v8  ;;  %v2552_v10 = vshrl.u32 %v2424_v28, 16  ;;  %v1657_v35 = vxor.u32 %v1529_v29, %v1401_v20  ;;  %v1274_v21 = vxor.u32 %v1146_v30, %v1018_v22 }
 0x267   :  { %6808 = vmatprep.mubr.msk.f32.mxu1 %vm3365_vm2, %v3319_v36  ;;  %v1147_v37 = vshrl.u32 %v1019_v32, 15  ;;  %v1020_v39 = vmul.u32 2146121005, %v892_v33  ;;  %v1021_v41 = vmul.u32 2146121005, %v893_v34  ;;  %v4585_v50 = vrot.slane %v7458_v11, 7 }
 0x268   :  { %v2680_v42 = vxor.u32 %v2552_v10, %v2424_v28  ;;  %v1785_v44 = vshrl.u32 %v1657_v35, 16  ;;  %v1402_v45 = vmul.u32 2221713035, %v1274_v21  ;;  %v380_v46 = vmul.u32 16, %v252_v31 }
 0x269   :  { %v1275_v47 = vxor.u32 %v1147_v37, %v1019_v32  ;;  %v1148_v48 = vshrl.u32 %v1020_v39, 15  ;;  %v1149_v49 = vshrl.u32 %v1021_v41, 15  ;;  %vm5096_vm8 = vcmask 1046528  }
 0x26a   :  { %v2808_v52 = vshrl.u32 %v2680_v42, 8  ;;  %v1913_v53 = vxor.u32 %v1785_v44, %v1657_v35  ;;  %v1530_v54 = vshrl.u32 %v1402_v45, 16  ;;  %v508_v51 = vadd.s32 %v380_v46, %v6908_v2 }
 0x26b   :  { %v1403_v43 = vmul.u32 2221713035, %v1275_v47  ;;  %v1276_v55 = vxor.u32 %v1148_v48, %v1020_v39  ;;  %v1277_v56 = vxor.u32 %v1149_v49, %v1021_v41  ;;  %v5098_v0 = vrot.slane %v7458_v11, 1 }
 0x26c   :  { %v2936_v57 = vcvt.s32.f32 %v2808_v52  ;;  %v2041_v58 = vmul.u32 2146121005, %v1913_v53  ;;  %v1658_v59 = vxor.u32 %v1530_v54, %v1402_v45  ;;  %v638_v60 = vxor.u32 %v6910_v3, %v508_v51 }
 0x26d   :  { %v1531_v61 = vshrl.u32 %v1403_v43, 16  ;;  %v1404_v62 = vmul.u32 2221713035, %v1276_v55  ;;  %v1405_v63 = vmul.u32 2221713035, %v1277_v56  ;;  %v253_v14 = vadd.s32 816, %v6906_v1 }
 0x26e   :  { %v3064_v5 = vmul.f32 5.9604645e-08, %v2936_v57  ;;  %v2169_v6 = vshrl.u32 %v2041_v58, 15  ;;  %v1786_v7 = vshrl.u32 %v1658_v59, 16  ;;  %v766_v40 = vshrl.u32 %v638_v60, 16 }
 0x26f   :  { %v1659_v26 = vxor.u32 %v1531_v61, %v1403_v43  ;;  %v1532_v9 = vshrl.u32 %v1404_v62, 16  ;;  %v1533_v12 = vshrl.u32 %v1405_v63, 16  ;;  %v7471_v24 = vsel %vm5096_vm8, %v5098_v0, 0.0 }
 0x270   :  { %vm3192_vm9 = vcmp.lt.f32.partialorder %v3064_v5, 0.006449987  ;;  %v2297_v15 = vxor.u32 %v2169_v6, %v2041_v58  ;;  %v1914_v16 = vxor.u32 %v1786_v7, %v1658_v59  ;;  %v894_v13 = vxor.u32 %v766_v40, %v638_v60  ;;  %v7478_v5 = vpop.f32.mrf.mxu0 }
 0x271   :  { %v3320_v17 = vsel %vm3192_vm9, 1.0, %v6891_v8  ;;  %v1787_v18 = vshrl.u32 %v1659_v26, 16  ;;  %v1660_v19 = vxor.u32 %v1532_v9, %v1404_v62  ;;  %v1661_v20 = vxor.u32 %v1533_v12, %v1405_v63 }
 0x272   :  { %6809 = vmatmul.mubr.msk.f32.gmra.mxu1 %vm3365_vm2, %v3320_v17  ;;  %v2425_v22 = vmul.u32 2221713035, %v2297_v15  ;;  %v2042_v23 = vmul.u32 2146121005, %v1914_v16  ;;  %v254_v25 = vadd.s32 816, %v6913_v4  ;;  %vm4583_vm10 = vcmask 1040384  }
 0x273   :  { %v1915_v27 = vxor.u32 %v1787_v18, %v1659_v26  ;;  %v1788_v28 = vshrl.u32 %v1660_v19, 16  ;;  %v1789_v29 = vshrl.u32 %v1661_v20, 16  ;;  %v1022_v30 = vmul.u32 2146121005, %v894_v13 }
 0x274   :  { %v2553_v31 = vshrl.u32 %v2425_v22, 16  ;;  %v2170_v32 = vshrl.u32 %v2042_v23, 15  ;;  %v381_v33 = vmul.u32 16, %v253_v14  ;;  %v382_v34 = vmul.u32 16, %v254_v25 }
 0x275   :  { %v2043_v36 = vmul.u32 2146121005, %v1915_v27  ;;  %v1916_v10 = vxor.u32 %v1788_v28, %v1660_v19  ;;  %v1917_v35 = vxor.u32 %v1789_v29, %v1661_v20  ;;  %v1150_v21 = vshrl.u32 %v1022_v30, 15 }
 0x276   :  { %v2681_v37 = vxor.u32 %v2553_v31, %v2425_v22  ;;  %v2298_v39 = vxor.u32 %v2170_v32, %v2042_v23  ;;  %v509_v41 = vadd.s32 %v381_v33, %v6908_v2  ;;  %v510_v42 = vadd.s32 %v382_v34, %v6908_v2 }
 0x277   :  { %v2171_v44 = vshrl.u32 %v2043_v36, 15  ;;  %v2044_v45 = vmul.u32 2146121005, %v1916_v10  ;;  %v2045_v46 = vmul.u32 2146121005, %v1917_v35  ;;  %v1278_v47 = vxor.u32 %v1150_v21, %v1022_v30 }
 0x278   :  { %v2809_v48 = vshrl.u32 %v2681_v37, 8  ;;  %v2426_v49 = vmul.u32 2221713035, %v2298_v39  ;;  %v639_v52 = vxor.u32 %v6910_v3, %v509_v41  ;;  %v640_v53 = vxor.u32 %v6910_v3, %v510_v42 }
 0x279   :  { %v2299_v54 = vxor.u32 %v2171_v44, %v2043_v36  ;;  %v2172_v51 = vshrl.u32 %v2044_v45, 15  ;;  %v2173_v43 = vshrl.u32 %v2045_v46, 15  ;;  %v1406_v55 = vmul.u32 2221713035, %v1278_v47 }
 0x27a   :  { %v2937_v56 = vcvt.s32.f32 %v2809_v48  ;;  %v2554_v57 = vshrl.u32 %v2426_v49, 16  ;;  %v767_v58 = vshrl.u32 %v639_v52, 16  ;;  %v768_v59 = vshrl.u32 %v640_v53, 16 }
 0x27b   :  { %v2427_v60 = vmul.u32 2221713035, %v2299_v54  ;;  %v2300_v61 = vxor.u32 %v2172_v51, %v2044_v45  ;;  %v2301_v62 = vxor.u32 %v2173_v43, %v2045_v46  ;;  %v1534_v63 = vshrl.u32 %v1406_v55, 16  ;;  %v6672_v54 = vpop.f32.mrf.mxu0 }
 0x27c   :  { %v3065_v6 = vmul.f32 5.9604645e-08, %v2937_v56  ;;  %v2682_v7 = vxor.u32 %v2554_v57, %v2426_v49  ;;  %v895_v40 = vxor.u32 %v767_v58, %v639_v52  ;;  %v896_v26 = vxor.u32 %v768_v59, %v640_v53 }
 0x27d   :  { %v2555_v9 = vshrl.u32 %v2427_v60, 16  ;;  %v2428_v12 = vmul.u32 2221713035, %v2300_v61  ;;  %v2429_v14 = vmul.u32 2221713035, %v2301_v62  ;;  %v1662_v15 = vxor.u32 %v1534_v63, %v1406_v55 }
 0x27e   :  { %vm3193_vm11 = vcmp.lt.f32.partialorder %v3065_v6, 0.006449987  ;;  %v2810_v16 = vshrl.u32 %v2682_v7, 8  ;;  %v1023_v13 = vmul.u32 2146121005, %v895_v40  ;;  %v4584_v17 = vrot.slane %v7478_v5, 7  ;;  %v3826_v40 = vpop.f32.mrf.mxu0 }
 0x27f   :  { %v3321_v18 = vsel %vm3193_vm11, 1.0, %v6891_v8  ;;  %v2683_v19 = vxor.u32 %v2555_v9, %v2427_v60  ;;  %v2556_v20 = vshrl.u32 %v2428_v12, 16  ;;  %v2557_v22 = vshrl.u32 %v2429_v14, 16 }
 0x280   :  { %6811 = vmatprep.mubr.msk.f32.mxu1 %vm3365_vm2, %v3321_v18  ;;  %v2938_v23 = vcvt.s32.f32 %v2810_v16  ;;  %v1790_v25 = vshrl.u32 %v1662_v15, 16  ;;  %v1151_v27 = vshrl.u32 %v1023_v13, 15  ;;  %v1024_v28 = vmul.u32 2146121005, %v896_v26 }
 0x281   :  { %v2811_v29 = vshrl.u32 %v2683_v19, 8  ;;  %v2684_v30 = vxor.u32 %v2556_v20, %v2428_v12  ;;  %v2685_v31 = vxor.u32 %v2557_v22, %v2429_v14  ;;  %v4586_v32 = vsel %vm4583_vm10, %v4584_v17, %v4585_v50 }
 0x282   :  { %v3066_v33 = vmul.f32 5.9604645e-08, %v2938_v23  ;;  %v1918_v34 = vxor.u32 %v1790_v25, %v1662_v15  ;;  %v1279_v36 = vxor.u32 %v1151_v27, %v1023_v13  ;;  %v1152_v10 = vshrl.u32 %v1024_v28, 15 }
 0x283   :  { %v2939_v35 = vcvt.s32.f32 %v2811_v29  ;;  %v2812_v21 = vshrl.u32 %v2684_v30, 8  ;;  %v2813_v37 = vshrl.u32 %v2685_v31, 8  ;;  %v4904_v39 = vsel %vm4583_vm10, 0.0, %v4584_v17 }
 0x284   :  { %vm3194_vm12 = vcmp.lt.f32.partialorder %v3066_v33, 0.006449987  ;;  %v2046_v41 = vmul.u32 2146121005, %v1918_v34  ;;  %v1407_v42 = vmul.u32 2221713035, %v1279_v36  ;;  %v1280_v44 = vxor.u32 %v1152_v10, %v1024_v28  ;;  %v7513_v33 = vpop.f32.mrf.mxu0 }
 0x285   :  { %v3322_v45 = vsel %vm3194_vm12, 1.0, %v6891_v8  ;;  %v3067_v46 = vmul.f32 5.9604645e-08, %v2939_v35  ;;  %v2940_v47 = vcvt.s32.f32 %v2812_v21  ;;  %v2941_v48 = vcvt.s32.f32 %v2813_v37 }
 0x286   :  { %6812 = vmatmul.mubr.msk.f32.gmra.mxu1 %vm3365_vm2, %v3322_v45  ;;  %v2174_v50 = vshrl.u32 %v2046_v41, 15  ;;  %v1535_v49 = vshrl.u32 %v1407_v42, 16  ;;  %v1408_v52 = vmul.u32 2221713035, %v1280_v44  ;;  %v4968_v53 = vmax.f32 %v7478_v5, %v4904_v39 }
 0x287   :  { %vm3195_vm13 = vcmp.lt.f32.partialorder %v3067_v46, 0.006449987  ;;  %v3068_v51 = vmul.f32 5.9604645e-08, %v2940_v47  ;;  %v3069_v43 = vmul.f32 5.9604645e-08, %v2941_v48  ;;  %v4969_v55 = vmax.f32 %v7458_v11, %v4586_v32 }
 0x288   :  { %v3323_v56 = vsel %vm3195_vm13, 1.0, %v6891_v8  ;;  %v2302_v57 = vxor.u32 %v2174_v50, %v2046_v41  ;;  %v1663_v58 = vxor.u32 %v1535_v49, %v1407_v42  ;;  %v1536_v59 = vshrl.u32 %v1408_v52, 16 }
 0x289   :  { %6814 = vmatprep.mubr.msk.f32.mxu1 %vm3365_vm2, %v3323_v56  ;;  %vm3196_vm14 = vcmp.lt.f32.partialorder %v3068_v51, 0.006449987  ;;  %vm3197_vm15 = vcmp.lt.f32.partialorder %v3069_v43, 0.006449987  ;;  %v5097_v60 = vrot.slane %v7478_v5, 1  ;;  %v7495_v61 = vmax.f32 %v4969_v55, %v7471_v24 }
 0x28a   :  { %v3324_v62 = vsel %vm3196_vm14, 1.0, %v6891_v8  ;;  %v3325_v63 = vsel %vm3197_vm15, 1.0, %v6891_v8  ;;  %v2430_v6 = vmul.u32 2221713035, %v2302_v57  ;;  %v1791_v7 = vshrl.u32 %v1663_v58, 16 }
 0x28b   :  { %6815 = vmatmul.mubr.msk.f32.gmra.mxu1 %vm3365_vm2, %v3324_v62  ;;  %v1664_v26 = vxor.u32 %v1536_v59, %v1408_v52  ;;  %v5099_v9 = vsel %vm5096_vm8, %v5097_v60, %v5098_v0  ;;  %v5610_v12 = vmax.f32 %v7495_v61, 0.0  ;;  %v4588_v5 = vrot.slane %v6672_v54, 7 }
 0x28c   :  { %6817 = vmatprep.mubr.msk.f32.mxu1 %vm3365_vm2, %v3325_v63  ;;  %v2558_v24 = vshrl.u32 %v2430_v6, 16  ;;  %v1919_v14 = vxor.u32 %v1791_v7, %v1663_v58  ;;  %v7505_v15 = vmax.f32 %v4968_v53, %v5099_v9  ;;  %v5101_v16 = vrot.slane %v6672_v54, 1 }
 0x28d   :  { %v1792_v13 = vshrl.u32 %v1664_v26, 16  ;;  %v255_v17 = vadd.s32 832, %v6906_v1  ;;  %v256_v18 = vadd.s32 832, %v6913_v4  ;;  %v4587_v19 = vrot.slane %v3826_v40, 7 }
 0x28e   :  { %v2686_v20 = vxor.u32 %v2558_v24, %v2430_v6  ;;  %v2047_v11 = vmul.u32 2146121005, %v1919_v14  ;;  %v5609_v0 = vmax.f32 %v7505_v15, 0.0  ;;  %v5418_v22 = vsel %vm5096_vm8, %v5101_v16, 0.0 }
 0x28f   :  { %v1920_v23 = vxor.u32 %v1792_v13, %v1664_v26  ;;  %v383_v25 = vmul.u32 16, %v255_v17  ;;  %v384_v27 = vmul.u32 16, %v256_v18  ;;  %v4589_v28 = vsel %vm4583_vm10, %v4587_v19, %v4588_v5  ;;  %v3836_v18 = vpop.f32.mrf.mxu0 }
 0x290   :  { %v2814_v29 = vshrl.u32 %v2686_v20, 8  ;;  %v2175_v30 = vshrl.u32 %v2047_v11, 15  ;;  %v4905_v31 = vsel %vm4583_vm10, 0.0, %v4587_v19  ;;  %v4971_v32 = vmax.f32 %v6672_v54, %v4589_v28 }
 0x291   :  { %v2048_v34 = vmul.u32 2146121005, %v1920_v23  ;;  %v511_v36 = vadd.s32 %v383_v25, %v6908_v2  ;;  %v512_v10 = vadd.s32 %v384_v27, %v6908_v2  ;;  %v4970_v35 = vmax.f32 %v3826_v40, %v4905_v31 }
 0x292   :  { %v2942_v21 = vcvt.s32.f32 %v2814_v29  ;;  %v2303_v37 = vxor.u32 %v2175_v30, %v2047_v11  ;;  %v5100_v39 = vrot.slane %v3826_v40, 1  ;;  %v7517_v41 = vmax.f32 %v4971_v32, %v5418_v22 }
 0x293   :  { %v2176_v42 = vshrl.u32 %v2048_v34, 15  ;;  %v641_v44 = vxor.u32 %v6910_v3, %v511_v36  ;;  %v642_v45 = vxor.u32 %v6910_v3, %v512_v10  ;;  %v4591_v46 = vrot.slane %v7513_v33, 7 }
 0x294   :  { %v3070_v47 = vmul.f32 5.9604645e-08, %v2942_v21  ;;  %v2431_v48 = vmul.u32 2221713035, %v2303_v37  ;;  %v5102_v50 = vsel %vm5096_vm8, %v5100_v39, %v5101_v16  ;;  %v5612_v49 = vmax.f32 %v7517_v41, %v7495_v61 }
 0x295   :  { %v2304_v52 = vxor.u32 %v2176_v42, %v2048_v34  ;;  %v769_v53 = vshrl.u32 %v641_v44, 16  ;;  %v770_v54 = vshrl.u32 %v642_v45, 16  ;;  %v7525_v51 = vmax.f32 %v4970_v35, %v5102_v50 }
 0x296   :  { %vm3198_vm0 = vcmp.lt.f32.partialorder %v3070_v47, 0.006449987  ;;  %v2559_v43 = vshrl.u32 %v2431_v48, 16  ;;  %v5738_v55 = vmax.f32 %v5610_v12, %v7517_v41  ;;  %v5104_v56 = vrot.slane %v7513_v33, 1 }
 0x297   :  { %v3326_v57 = vsel %vm3198_vm0, 1.0, %v6891_v8  ;;  %v2432_v58 = vmul.u32 2221713035, %v2304_v52  ;;  %v897_v59 = vxor.u32 %v769_v53, %v641_v44  ;;  %v898_v60 = vxor.u32 %v770_v54, %v642_v45 }
 0x298   :  { %6818 = vmatmul.mubr.msk.f32.gmra.mxu1 %vm3365_vm2, %v3326_v57  ;;  %v2687_v62 = vxor.u32 %v2559_v43, %v2431_v48  ;;  %v5611_v63 = vmax.f32 %v7525_v51, %v7505_v15  ;;  %v5737_v6 = vmax.f32 %v5609_v0, %v7525_v51  ;;  %vm5866_vm1 = vcmp.gt.f32.partialorder %v5738_v55, 0.5 }
 0x299   :  { %v2560_v7 = vshrl.u32 %v2432_v58, 16  ;;  %v1025_v40 = vmul.u32 2146121005, %v897_v59  ;;  %v1026_v26 = vmul.u32 2146121005, %v898_v60  ;;  %v5994_v9 = vsel %vm5866_vm1, 0.0, %v6890_v38 }
 0x29a   :  { %v2815_v12 = vshrl.u32 %v2687_v62, 8  ;;  %vm5865_vm3 = vcmp.gt.f32.partialorder %v5737_v6, 0.5  ;;  %v6122_v5 = vsel %vm3365_vm2, %v5994_v9, 0.0  ;;  %v5419_v24 = vsel %vm5096_vm8, %v5104_v56, 0.0 }
 0x29b   :  { %v2688_v14 = vxor.u32 %v2560_v7, %v2432_v58  ;;  %v1153_v16 = vshrl.u32 %v1025_v40, 15  ;;  %v1154_v13 = vshrl.u32 %v1026_v26, 15  ;;  %v5993_v17 = vsel %vm5865_vm3, 0.0, %v6890_v38 }
 0x29c   :  { %v2943_v19 = vcvt.s32.f32 %v2815_v12  ;;  %v6121_v20 = vsel %vm3365_vm2, %v5993_v17, 0.0  ;;  %v257_v11 = vadd.s32 848, %v6906_v1  ;;  %v258_v0 = vadd.s32 848, %v6913_v4 }
 0x29d   :  { %v2816_v22 = vshrl.u32 %v2688_v14, 8  ;;  %v1281_v23 = vxor.u32 %v1153_v16, %v1025_v40  ;;  %v1282_v25 = vxor.u32 %v1154_v13, %v1026_v26  ;;  %v7541_v27 = vadd.f32 %v6122_v5, %v6121_v20 }
 0x29e   :  { %v3071_v28 = vmul.f32 5.9604645e-08, %v2943_v19  ;;  %v385_v29 = vmul.u32 16, %v257_v11  ;;  %v386_v30 = vmul.u32 16, %v258_v0  ;;  %v4590_v31 = vrot.slane %v3836_v18, 7 }
 0x29f   :  { %v2944_v32 = vcvt.s32.f32 %v2816_v22  ;;  %v1409_v34 = vmul.u32 2221713035, %v1281_v23  ;;  %v1410_v36 = vmul.u32 2221713035, %v1282_v25  ;;  %v5103_v10 = vrot.slane %v3836_v18, 1 }
 0x2a0   :  { %vm3199_vm4 = vcmp.lt.f32.partialorder %v3071_v28, 0.006449987  ;;  %v513_v35 = vadd.s32 %v385_v29, %v6908_v2  ;;  %v514_v21 = vadd.s32 %v386_v30, %v6908_v2  ;;  %v4592_v37 = vsel %vm4583_vm10, %v4590_v31, %v4591_v46  ;;  %v7552_v46 = vpop.f32.mrf.mxu0 }
 0x2a1   :  { %v3327_v39 = vsel %vm3199_vm4, 1.0, %v6891_v8  ;;  %v3072_v42 = vmul.f32 5.9604645e-08, %v2944_v32  ;;  %v1537_v44 = vshrl.u32 %v1409_v34, 16  ;;  %v1538_v45 = vshrl.u32 %v1410_v36, 16 }
 0x2a2   :  { %6820 = vmatprep.mubr.msk.f32.mxu1 %vm3365_vm2, %v3327_v39  ;;  %v643_v47 = vxor.u32 %v6910_v3, %v513_v35  ;;  %v644_v48 = vxor.u32 %v6910_v3, %v514_v21  ;;  %v4906_v50 = vsel %vm4583_vm10, 0.0, %v4590_v31  ;;  %v4973_v52 = vmax.f32 %v7513_v33, %v4592_v37  ;;  %v3846_v28 = vpop.f32.mrf.mxu0 }
 0x2a3   :  { %vm3200_vm5 = vcmp.lt.f32.partialorder %v3072_v42, 0.006449987  ;;  %v1665_v53 = vxor.u32 %v1537_v44, %v1409_v34  ;;  %v1666_v54 = vxor.u32 %v1538_v45, %v1410_v36  ;;  %v4972_v43 = vmax.f32 %v3836_v18, %v4906_v50 }
 0x2a4   :  { %v3328_v55 = vsel %vm3200_vm5, 1.0, %v6891_v8  ;;  %v771_v57 = vshrl.u32 %v643_v47, 16  ;;  %v772_v58 = vshrl.u32 %v644_v48, 16  ;;  %v5105_v59 = vsel %vm5096_vm8, %v5103_v10, %v5104_v56 }
 0x2a5   :  { %6821 = vmatmul.mubr.msk.f32.gmra.mxu1 %vm3365_vm2, %v3328_v55  ;;  %v1793_v60 = vshrl.u32 %v1665_v53, 16  ;;  %v1794_v62 = vshrl.u32 %v1666_v54, 16  ;;  %v7557_v6 = vmax.f32 %v4972_v43, %v5105_v59  ;;  %v7559_v7 = vmax.f32 %v4973_v52, %v5419_v24 }
 0x2a6   :  { %v899_v33 = vxor.u32 %v771_v57, %v643_v47  ;;  %v900_v40 = vxor.u32 %v772_v58, %v644_v48  ;;  %v4594_v26 = vrot.slane %v7552_v46, 7  ;;  %v5107_v9 = vrot.slane %v7552_v46, 1 }
 0x2a7   :  { %v1921_v12 = vxor.u32 %v1793_v60, %v1665_v53  ;;  %v1922_v5 = vxor.u32 %v1794_v62, %v1666_v54  ;;  %v5613_v14 = vmax.f32 %v7557_v6, %v7525_v51  ;;  %v5614_v56 = vmax.f32 %v7559_v7, %v7517_v41 }
 0x2a8   :  { %v1027_v16 = vmul.u32 2146121005, %v899_v33  ;;  %v1028_v13 = vmul.u32 2146121005, %v900_v40  ;;  %v5739_v24 = vmax.f32 %v5611_v63, %v7557_v6  ;;  %v5740_v17 = vmax.f32 %v5612_v49, %v7559_v7 }
 0x2a9   :  { %v2049_v18 = vmul.u32 2146121005, %v1921_v12  ;;  %v2050_v19 = vmul.u32 2146121005, %v1922_v5  ;;  %v5420_v20 = vsel %vm5096_vm8, %v5107_v9, 0.0  ;;  %v259_v11 = vadd.s32 864, %v6906_v1 }
 0x2aa   :  { %v1155_v0 = vshrl.u32 %v1027_v16, 15  ;;  %v1156_v22 = vshrl.u32 %v1028_v13, 15  ;;  %vm5867_vm6 = vcmp.gt.f32.partialorder %v5739_v24, 0.5  ;;  %vm5868_vm7 = vcmp.gt.f32.partialorder %v5740_v17, 0.5 }
 0x2ab   :  { %v2177_v23 = vshrl.u32 %v2049_v18, 15  ;;  %v2178_v25 = vshrl.u32 %v2050_v19, 15  ;;  %v5995_v15 = vsel %vm5867_vm6, 0.0, %v6890_v38  ;;  %v5996_v63 = vsel %vm5868_vm7, 0.0, %v6890_v38 }
 0x2ac   :  { %v1283_v29 = vxor.u32 %v1155_v0, %v1027_v16  ;;  %v1284_v61 = vxor.u32 %v1156_v22, %v1028_v13  ;;  %v6124_v49 = vsel %vm3365_vm2, %v5995_v15, 0.0  ;;  %v387_v30 = vmul.u32 16, %v259_v11 }
 0x2ad   :  { %v2305_v31 = vxor.u32 %v2177_v23, %v2049_v18  ;;  %v2306_v32 = vxor.u32 %v2178_v25, %v2050_v19  ;;  %v7581_v34 = vadd.f32 %v6124_v49, %v7541_v27  ;;  %v260_v36 = vadd.s32 864, %v6913_v4 }
 0x2ae   :  { %v1411_v10 = vmul.u32 2221713035, %v1283_v29  ;;  %v1412_v35 = vmul.u32 2221713035, %v1284_v61  ;;  %v515_v21 = vadd.s32 %v387_v30, %v6908_v2  ;;  %v4593_v37 = vrot.slane %v3846_v28, 7 }
 0x2af   :  { %v2433_v39 = vmul.u32 2221713035, %v2305_v31  ;;  %v2434_v42 = vmul.u32 2221713035, %v2306_v32  ;;  %v5106_v44 = vrot.slane %v3846_v28, 1  ;;  %v7586_v45 = vsel %vm3365_vm2, %v5996_v63, 0.0 }
 0x2b0   :  { %v1539_v47 = vshrl.u32 %v1411_v10, 16  ;;  %v1540_v48 = vshrl.u32 %v1412_v35, 16  ;;  %v645_v50 = vxor.u32 %v6910_v3, %v515_v21  ;;  %v388_v52 = vmul.u32 16, %v260_v36  ;;  %v7611_v21 = vpop.f32.mrf.mxu0 }
 0x2b1   :  { %v2561_v27 = vshrl.u32 %v2433_v39, 16  ;;  %v2562_v53 = vshrl.u32 %v2434_v42, 16  ;;  %v4595_v54 = vsel %vm4583_vm10, %v4593_v37, %v4594_v26  ;;  %v4907_v43 = vsel %vm4583_vm10, 0.0, %v4593_v37 }
 0x2b2   :  { %v1667_v55 = vxor.u32 %v1539_v47, %v1411_v10  ;;  %v1668_v57 = vxor.u32 %v1540_v48, %v1412_v35  ;;  %v773_v58 = vshrl.u32 %v645_v50, 16  ;;  %v516_v59 = vadd.s32 %v388_v52, %v6908_v2 }
 0x2b3   :  { %v2689_v60 = vxor.u32 %v2561_v27, %v2433_v39  ;;  %v2690_v62 = vxor.u32 %v2562_v53, %v2434_v42  ;;  %v4974_v33 = vmax.f32 %v3846_v28, %v4907_v43  ;;  %v4975_v40 = vmax.f32 %v7552_v46, %v4595_v54  ;;  %v3856_v43 = vpop.f32.mrf.mxu0 }
 0x2b4   :  { %v1795_v12 = vshrl.u32 %v1667_v55, 16  ;;  %v1796_v5 = vshrl.u32 %v1668_v57, 16  ;;  %v901_v16 = vxor.u32 %v773_v58, %v645_v50  ;;  %v646_v13 = vxor.u32 %v6910_v3, %v516_v59 }
 0x2b5   :  { %v2817_v24 = vshrl.u32 %v2689_v60, 8  ;;  %v2818_v17 = vshrl.u32 %v2690_v62, 8  ;;  %v5108_v26 = vsel %vm5096_vm8, %v5106_v44, %v5107_v9  ;;  %v7595_v18 = vmax.f32 %v4975_v40, %v5420_v20 }
 0x2b6   :  { %v1923_v19 = vxor.u32 %v1795_v12, %v1667_v55  ;;  %v1924_v11 = vxor.u32 %v1796_v5, %v1668_v57  ;;  %v1029_v0 = vmul.u32 2146121005, %v901_v16  ;;  %v774_v22 = vshrl.u32 %v646_v13, 16 }
 0x2b7   :  { %v2945_v23 = vcvt.s32.f32 %v2817_v24  ;;  %v2946_v25 = vcvt.s32.f32 %v2818_v17  ;;  %v7597_v15 = vmax.f32 %v4974_v33, %v5108_v26  ;;  %v5616_v46 = vmax.f32 %v7595_v18, %v7559_v7 }
 0x2b8   :  { %v2051_v63 = vmul.u32 2146121005, %v1923_v19  ;;  %v2052_v28 = vmul.u32 2146121005, %v1924_v11  ;;  %v1157_v29 = vshrl.u32 %v1029_v0, 15  ;;  %v902_v61 = vxor.u32 %v774_v22, %v646_v13 }
 0x2b9   :  { %v3073_v49 = vmul.f32 5.9604645e-08, %v2945_v23  ;;  %v3074_v30 = vmul.f32 5.9604645e-08, %v2946_v25  ;;  %v5615_v9 = vmax.f32 %v7597_v15, %v7557_v6  ;;  %v5741_v20 = vmax.f32 %v5613_v14, %v7597_v15 }
 0x2ba   :  { %v2179_v31 = vshrl.u32 %v2051_v63, 15  ;;  %v2180_v32 = vshrl.u32 %v2052_v28, 15  ;;  %v1285_v36 = vxor.u32 %v1157_v29, %v1029_v0  ;;  %v1030_v10 = vmul.u32 2146121005, %v902_v61 }
 0x2bb   :  { %vm3201_vm9 = vcmp.lt.f32.partialorder %v3073_v49, 0.006449987  ;;  %vm3202_vm11 = vcmp.lt.f32.partialorder %v3074_v30, 0.006449987  ;;  %v5742_v35 = vmax.f32 %v5614_v56, %v7595_v18  ;;  %vm5869_vm12 = vcmp.gt.f32.partialorder %v5741_v20, 0.5 }
 0x2bc   :  { %v3329_v37 = vsel %vm3201_vm9, 1.0, %v6891_v8  ;;  %v3330_v39 = vsel %vm3202_vm11, 1.0, %v6891_v8  ;;  %v2307_v51 = vxor.u32 %v2179_v31, %v2051_v63  ;;  %v2308_v14 = vxor.u32 %v2180_v32, %v2052_v28 }
 0x2bd   :  { %6823 = vmatprep.mubr.msk.f32.mxu1 %vm3365_vm2, %v3329_v37  ;;  %v1413_v42 = vmul.u32 2221713035, %v1285_v36  ;;  %v1158_v44 = vshrl.u32 %v1030_v10, 15  ;;  %vm5870_vm13 = vcmp.gt.f32.partialorder %v5742_v35, 0.5  ;;  %v5997_v47 = vsel %vm5869_vm12, 0.0, %v6890_v38 }
 0x2be   :  { %6824 = vmatmul.mubr.msk.f32.gmra.mxu1 %vm3365_vm2, %v3330_v39  ;;  %v2435_v41 = vmul.u32 2221713035, %v2307_v51  ;;  %v2436_v56 = vmul.u32 2221713035, %v2308_v14  ;;  %v7619_v48 = vsel %vm5870_vm13, 0.0, %v6890_v38  ;;  %v6127_v50 = vadd.f32 %v7586_v45, %v7581_v34 }
 0x2bf   :  { %v1541_v52 = vshrl.u32 %v1413_v42, 16  ;;  %v1286_v27 = vxor.u32 %v1158_v44, %v1030_v10  ;;  %v6128_v53 = vsel %vm3365_vm2, %v5997_v47, 0.0  ;;  %v4597_v54 = vrot.slane %v7611_v21, 7  ;;  %v7643_v47 = vpop.f32.mrf.mxu0 }
 0x2c0   :  { %v2563_v55 = vshrl.u32 %v2435_v41, 16  ;;  %v2564_v57 = vshrl.u32 %v2436_v56, 16  ;;  %v7625_v58 = vadd.f32 %v6128_v53, %v6127_v50  ;;  %v5110_v59 = vrot.slane %v7611_v21, 1 }
 0x2c1   :  { %v1669_v60 = vxor.u32 %v1541_v52, %v1413_v42  ;;  %v1414_v62 = vmul.u32 2221713035, %v1286_v27  ;;  %v261_v33 = vadd.s32 880, %v6906_v1  ;;  %v262_v40 = vadd.s32 880, %v6913_v4 }
 0x2c2   :  { %v2691_v34 = vxor.u32 %v2563_v55, %v2435_v41  ;;  %v2692_v45 = vxor.u32 %v2564_v57, %v2436_v56  ;;  %v5421_v12 = vsel %vm5096_vm8, %v5110_v59, 0.0  ;;  %v4596_v5 = vrot.slane %v3856_v43, 7 }
 0x2c3   :  { %v1797_v16 = vshrl.u32 %v1669_v60, 16  ;;  %v1542_v13 = vshrl.u32 %v1414_v62, 16  ;;  %v389_v24 = vmul.u32 16, %v261_v33  ;;  %v390_v17 = vmul.u32 16, %v262_v40 }
 0x2c4   :  { %v2819_v26 = vshrl.u32 %v2691_v34, 8  ;;  %v2820_v19 = vshrl.u32 %v2692_v45, 8  ;;  %v4598_v11 = vsel %vm4583_vm10, %v4596_v5, %v4597_v54  ;;  %v4908_v0 = vsel %vm4583_vm10, 0.0, %v4596_v5 }
 0x2c5   :  { %v1925_v22 = vxor.u32 %v1797_v16, %v1669_v60  ;;  %v1670_v23 = vxor.u32 %v1542_v13, %v1414_v62  ;;  %v517_v25 = vadd.s32 %v389_v24, %v6908_v2  ;;  %v518_v63 = vadd.s32 %v390_v17, %v6908_v2 }
 0x2c6   :  { %v2947_v28 = vcvt.s32.f32 %v2819_v26  ;;  %v2948_v29 = vcvt.s32.f32 %v2820_v19  ;;  %v4976_v61 = vmax.f32 %v3856_v43, %v4908_v0  ;;  %v4977_v49 = vmax.f32 %v7611_v21, %v4598_v11  ;;  %v3866_v26 = vpop.f32.mrf.mxu0 }
 0x2c7   :  { %v2053_v30 = vmul.u32 2146121005, %v1925_v22  ;;  %v1798_v20 = vshrl.u32 %v1670_v23, 16  ;;  %v647_v31 = vxor.u32 %v6910_v3, %v517_v25  ;;  %v648_v32 = vxor.u32 %v6910_v3, %v518_v63 }
 0x2c8   :  { %v3075_v36 = vmul.f32 5.9604645e-08, %v2947_v28  ;;  %v3076_v10 = vmul.f32 5.9604645e-08, %v2948_v29  ;;  %v5109_v35 = vrot.slane %v3856_v43, 1  ;;  %v7638_v37 = vmax.f32 %v4977_v49, %v5421_v12 }
 0x2c9   :  { %v2181_v39 = vshrl.u32 %v2053_v30, 15  ;;  %v1926_v51 = vxor.u32 %v1798_v20, %v1670_v23  ;;  %v775_v14 = vshrl.u32 %v647_v31, 16  ;;  %v776_v42 = vshrl.u32 %v648_v32, 16 }
 0x2ca   :  { %vm3203_vm14 = vcmp.lt.f32.partialorder %v3075_v36, 0.006449987  ;;  %vm3204_vm15 = vcmp.lt.f32.partialorder %v3076_v10, 0.006449987  ;;  %v5111_v44 = vsel %vm5096_vm8, %v5109_v35, %v5110_v59  ;;  %v5618_v21 = vmax.f32 %v7638_v37, %v7595_v18 }
 0x2cb   :  { %v3331_v41 = vsel %vm3203_vm14, 1.0, %v6891_v8  ;;  %v3332_v56 = vsel %vm3204_vm15, 1.0, %v6891_v8  ;;  %v2309_v50 = vxor.u32 %v2181_v39, %v2053_v30  ;;  %v2054_v52 = vmul.u32 2146121005, %v1926_v51 }
 0x2cc   :  { %6826 = vmatprep.mubr.msk.f32.mxu1 %vm3365_vm2, %v3331_v41  ;;  %v903_v27 = vxor.u32 %v775_v14, %v647_v31  ;;  %v904_v53 = vxor.u32 %v776_v42, %v648_v32  ;;  %v7648_v54 = vmax.f32 %v4976_v61, %v5111_v44  ;;  %v5744_v43 = vmax.f32 %v5616_v46, %v7638_v37 }
 0x2cd   :  { %6827 = vmatmul.mubr.msk.f32.gmra.mxu1 %vm3365_vm2, %v3332_v56  ;;  %v2437_v55 = vmul.u32 2221713035, %v2309_v50  ;;  %v2182_v57 = vshrl.u32 %v2054_v52, 15  ;;  %v6130_v59 = vsel %vm3365_vm2, %v7619_v48, 0.0  ;;  %v4600_v60 = vrot.slane %v7643_v47, 7 }
 0x2ce   :  { %v1031_v62 = vmul.u32 2146121005, %v903_v27  ;;  %v1032_v33 = vmul.u32 2146121005, %v904_v53  ;;  %v5617_v40 = vmax.f32 %v7648_v54, %v7597_v15  ;;  %v5743_v7 = vmax.f32 %v5615_v9, %v7648_v54 }
 0x2cf   :  { %v2565_v46 = vshrl.u32 %v2437_v55, 16  ;;  %v2310_v34 = vxor.u32 %v2182_v57, %v2054_v52  ;;  %vm5872_vm0 = vcmp.gt.f32.partialorder %v5744_v43, 0.5  ;;  %v6131_v45 = vadd.f32 %v6130_v59, %v7625_v58 }
 0x2d0   :  { %v1159_v12 = vshrl.u32 %v1031_v62, 15  ;;  %v1160_v5 = vshrl.u32 %v1032_v33, 15  ;;  %vm5871_vm1 = vcmp.gt.f32.partialorder %v5743_v7, 0.5  ;;  %v7666_v48 = vsel %vm5872_vm0, 0.0, %v6890_v38 }
 0x2d1   :  { %v2693_v16 = vxor.u32 %v2565_v46, %v2437_v55  ;;  %v2438_v13 = vmul.u32 2221713035, %v2310_v34  ;;  %v5999_v24 = vsel %vm5871_vm1, 0.0, %v6890_v38  ;;  %v5113_v17 = vrot.slane %v7643_v47, 1 }
 0x2d2   :  { %v1287_v6 = vxor.u32 %v1159_v12, %v1031_v62  ;;  %v1288_v9 = vxor.u32 %v1160_v5, %v1032_v33  ;;  %v6132_v19 = vsel %vm3365_vm2, %v5999_v24, 0.0  ;;  %v263_v11 = vadd.s32 896, %v6906_v1 }
 0x2d3   :  { %v2821_v58 = vshrl.u32 %v2693_v16, 8  ;;  %v2566_v0 = vshrl.u32 %v2438_v13, 16  ;;  %v7672_v22 = vadd.f32 %v6132_v19, %v6131_v45  ;;  %v5422_v23 = vsel %vm5096_vm8, %v5113_v17, 0.0 }
 0x2d4   :  { %v1415_v25 = vmul.u32 2221713035, %v1287_v6  ;;  %v1416_v63 = vmul.u32 2221713035, %v1288_v9  ;;  %v264_v28 = vadd.s32 896, %v6913_v4  ;;  %v4599_v29 = vrot.slane %v3866_v26, 7 }
 0x2d5   :  { %v2949_v61 = vcvt.s32.f32 %v2821_v58  ;;  %v2694_v49 = vxor.u32 %v2566_v0, %v2438_v13  ;;  %v391_v30 = vmul.u32 16, %v263_v11  ;;  %v5112_v20 = vrot.slane %v3866_v26, 1 }
 0x2d6   :  { %v1543_v31 = vshrl.u32 %v1415_v25, 16  ;;  %v1544_v32 = vshrl.u32 %v1416_v63, 16  ;;  %v392_v36 = vmul.u32 16, %v264_v28  ;;  %v4601_v10 = vsel %vm4583_vm10, %v4599_v29, %v4600_v60 }
 0x2d7   :  { %v3077_v35 = vmul.f32 5.9604645e-08, %v2949_v61  ;;  %v2822_v39 = vshrl.u32 %v2694_v49, 8  ;;  %v519_v51 = vadd.s32 %v391_v30, %v6908_v2  ;;  %v4909_v14 = vsel %vm4583_vm10, 0.0, %v4599_v29 }
 0x2d8   :  { %v1671_v42 = vxor.u32 %v1543_v31, %v1415_v25  ;;  %v1672_v44 = vxor.u32 %v1544_v32, %v1416_v63  ;;  %v520_v41 = vadd.s32 %v392_v36, %v6908_v2  ;;  %v4978_v56 = vmax.f32 %v3866_v26, %v4909_v14  ;;  %v7697_v26 = vpop.f32.mrf.mxu0 }
 0x2d9   :  { %vm3205_vm3 = vcmp.lt.f32.partialorder %v3077_v35, 0.006449987  ;;  %v2950_v50 = vcvt.s32.f32 %v2822_v39  ;;  %v649_v52 = vxor.u32 %v6910_v3, %v519_v51  ;;  %v4979_v27 = vmax.f32 %v7643_v47, %v4601_v10 }
 0x2da   :  { %v3333_v53 = vsel %vm3205_vm3, 1.0, %v6891_v8  ;;  %v1799_v43 = vshrl.u32 %v1671_v42, 16  ;;  %v1800_v55 = vshrl.u32 %v1672_v44, 16  ;;  %v650_v57 = vxor.u32 %v6910_v3, %v520_v41 }
 0x2db   :  { %6829 = vmatprep.mubr.msk.f32.mxu1 %vm3365_vm2, %v3333_v53  ;;  %v3078_v59 = vmul.f32 5.9604645e-08, %v2950_v50  ;;  %v777_v60 = vshrl.u32 %v649_v52, 16  ;;  %v5114_v62 = vsel %vm5096_vm8, %v5112_v20, %v5113_v17  ;;  %v7686_v33 = vmax.f32 %v4979_v27, %v5422_v23 }
 0x2dc   :  { %v1927_v7 = vxor.u32 %v1799_v43, %v1671_v42  ;;  %v1928_v46 = vxor.u32 %v1800_v55, %v1672_v44  ;;  %v778_v34 = vshrl.u32 %v650_v57, 16  ;;  %v7688_v45 = vmax.f32 %v4978_v56, %v5114_v62 }
 0x2dd   :  { %vm3206_vm4 = vcmp.lt.f32.partialorder %v3078_v59, 0.006449987  ;;  %v905_v47 = vxor.u32 %v777_v60, %v649_v52  ;;  %v5620_v12 = vmax.f32 %v7686_v33, %v7638_v37  ;;  %v5746_v5 = vmax.f32 %v5618_v21, %v7686_v33 }
 0x2de   :  { %v3334_v16 = vsel %vm3206_vm4, 1.0, %v6891_v8  ;;  %v2055_v13 = vmul.u32 2146121005, %v1927_v7  ;;  %v2056_v24 = vmul.u32 2146121005, %v1928_v46  ;;  %v906_v17 = vxor.u32 %v778_v34, %v650_v57 }
 0x2df   :  { %6830 = vmatmul.mubr.msk.f32.gmra.mxu1 %vm3365_vm2, %v3334_v16  ;;  %v1033_v6 = vmul.u32 2146121005, %v905_v47  ;;  %v5619_v9 = vmax.f32 %v7688_v45, %v7648_v54  ;;  %v5745_v19 = vmax.f32 %v5617_v40, %v7688_v45  ;;  %vm5874_vm5 = vcmp.gt.f32.partialorder %v5746_v5, 0.5 }
 0x2e0   :  { %v2183_v18 = vshrl.u32 %v2055_v13, 15  ;;  %v2184_v21 = vshrl.u32 %v2056_v24, 15  ;;  %v1034_v11 = vmul.u32 2146121005, %v906_v17  ;;  %v7707_v58 = vsel %vm5874_vm5, 0.0, %v6890_v38 }
 0x2e1   :  { %v1161_v0 = vshrl.u32 %v1033_v6, 15  ;;  %vm5873_vm6 = vcmp.gt.f32.partialorder %v5745_v19, 0.5  ;;  %v6134_v23 = vsel %vm3365_vm2, %v7666_v48, 0.0  ;;  %v4603_v25 = vrot.slane %v7697_v26, 7  ;;  %v3876_v48 = vpop.f32.mrf.mxu0 }
 0x2e2   :  { %v2311_v63 = vxor.u32 %v2183_v18, %v2055_v13  ;;  %v2312_v28 = vxor.u32 %v2184_v21, %v2056_v24  ;;  %v1162_v29 = vshrl.u32 %v1034_v11, 15  ;;  %v6001_v15 = vsel %vm5873_vm6, 0.0, %v6890_v38 }
 0x2e3   :  { %v1289_v40 = vxor.u32 %v1161_v0, %v1033_v6  ;;  %v6135_v61 = vadd.f32 %v6134_v23, %v7672_v22  ;;  %v6136_v49 = vsel %vm3365_vm2, %v6001_v15, 0.0  ;;  %v5116_v30 = vrot.slane %v7697_v26, 1 }
 0x2e4   :  { %v2439_v20 = vmul.u32 2221713035, %v2311_v63  ;;  %v2440_v31 = vmul.u32 2221713035, %v2312_v28  ;;  %v1290_v32 = vxor.u32 %v1162_v29, %v1034_v11  ;;  %v265_v36 = vadd.s32 912, %v6906_v1 }
 0x2e5   :  { %v1417_v10 = vmul.u32 2221713035, %v1289_v40  ;;  %v6137_v35 = vadd.f32 %v6136_v49, %v6135_v61  ;;  %v5423_v39 = vsel %vm5096_vm8, %v5116_v30, 0.0  ;;  %v266_v51 = vadd.s32 912, %v6913_v4 }
 0x2e6   :  { %v2567_v14 = vshrl.u32 %v2439_v20, 16  ;;  %v2568_v42 = vshrl.u32 %v2440_v31, 16  ;;  %v1418_v44 = vmul.u32 2221713035, %v1290_v32  ;;  %v393_v22 = vmul.u32 16, %v265_v36 }
 0x2e7   :  { %v1545_v41 = vshrl.u32 %v1417_v10, 16  ;;  %v394_v56 = vmul.u32 16, %v266_v51  ;;  %v4602_v50 = vrot.slane %v3876_v48, 7  ;;  %v5115_v52 = vrot.slane %v3876_v48, 1 }
 0x2e8   :  { %v2695_v27 = vxor.u32 %v2567_v14, %v2439_v20  ;;  %v2696_v53 = vxor.u32 %v2568_v42, %v2440_v31  ;;  %v1546_v43 = vshrl.u32 %v1418_v44, 16  ;;  %v521_v55 = vadd.s32 %v393_v22, %v6908_v2 }
 0x2e9   :  { %v1673_v57 = vxor.u32 %v1545_v41, %v1417_v10  ;;  %v522_v59 = vadd.s32 %v394_v56, %v6908_v2  ;;  %v4604_v60 = vsel %vm4583_vm10, %v4602_v50, %v4603_v25  ;;  %v4910_v62 = vsel %vm4583_vm10, 0.0, %v4602_v50 }
 0x2ea   :  { %v2823_v7 = vshrl.u32 %v2695_v27, 8  ;;  %v2824_v46 = vshrl.u32 %v2696_v53, 8  ;;  %v1674_v34 = vxor.u32 %v1546_v43, %v1418_v44  ;;  %v651_v47 = vxor.u32 %v6910_v3, %v521_v55 }
 0x2eb   :  { %v1801_v5 = vshrl.u32 %v1673_v57, 16  ;;  %v652_v16 = vxor.u32 %v6910_v3, %v522_v59  ;;  %v4980_v13 = vmax.f32 %v3876_v48, %v4910_v62  ;;  %v4981_v24 = vmax.f32 %v7697_v26, %v4604_v60 }
 0x2ec   :  { %v2951_v17 = vcvt.s32.f32 %v2823_v7  ;;  %v2952_v6 = vcvt.s32.f32 %v2824_v46  ;;  %v1802_v19 = vshrl.u32 %v1674_v34, 16  ;;  %v779_v18 = vshrl.u32 %v651_v47, 16 }
 0x2ed   :  { %v1929_v21 = vxor.u32 %v1801_v5, %v1673_v57  ;;  %v780_v11 = vshrl.u32 %v652_v16, 16  ;;  %v5117_v0 = vsel %vm5096_vm8, %v5115_v52, %v5116_v30  ;;  %v7727_v23 = vmax.f32 %v4981_v24, %v5423_v39  ;;  %v7737_v30 = vpop.f32.mrf.mxu0 }
 0x2ee   :  { %v3079_v25 = vmul.f32 5.9604645e-08, %v2951_v17  ;;  %v3080_v63 = vmul.f32 5.9604645e-08, %v2952_v6  ;;  %v1930_v28 = vxor.u32 %v1802_v19, %v1674_v34  ;;  %v907_v29 = vxor.u32 %v779_v18, %v651_v47 }
 0x2ef   :  { %v2057_v15 = vmul.u32 2146121005, %v1929_v21  ;;  %v908_v40 = vxor.u32 %v780_v11, %v652_v16  ;;  %v7729_v61 = vmax.f32 %v4980_v13, %v5117_v0  ;;  %v7735_v26 = vmax.f32 %v5620_v12, %v7727_v23  ;;  %v3886_v27 = vpop.f32.mrf.mxu0 }
 0x2f0   :  { %vm3207_vm7 = vcmp.lt.f32.partialorder %v3079_v25, 0.006449987  ;;  %vm3208_vm9 = vcmp.lt.f32.partialorder %v3080_v63, 0.006449987  ;;  %v2058_v49 = vmul.u32 2146121005, %v1930_v28  ;;  %v5622_v20 = vmax.f32 %v7727_v23, %v7686_v33 }
 0x2f1   :  { %v3335_v31 = vsel %vm3207_vm7, 1.0, %v6891_v8  ;;  %v3336_v32 = vsel %vm3208_vm9, 1.0, %v6891_v8  ;;  %v2185_v36 = vshrl.u32 %v2057_v15, 15  ;;  %v1035_v48 = vmul.u32 2146121005, %v907_v29 }
 0x2f2   :  { %6832 = vmatprep.mubr.msk.f32.mxu1 %vm3365_vm2, %v3335_v31  ;;  %v2186_v10 = vshrl.u32 %v2058_v49, 15  ;;  %v1036_v37 = vmul.u32 2146121005, %v908_v40  ;;  %v5747_v12 = vmax.f32 %v5619_v9, %v7729_v61  ;;  %v6138_v39 = vsel %vm3365_vm2, %v7707_v58, 0.0 }
 0x2f3   :  { %6833 = vmatmul.mubr.msk.f32.gmra.mxu1 %vm3365_vm2, %v3336_v32  ;;  %v2313_v51 = vxor.u32 %v2185_v36, %v2057_v15  ;;  %v1163_v14 = vshrl.u32 %v1035_v48, 15  ;;  %v6139_v42 = vadd.f32 %v6138_v39, %v6137_v35  ;;  %v4606_v44 = vrot.slane %v7737_v30, 7 }
 0x2f4   :  { %v2314_v22 = vxor.u32 %v2186_v10, %v2058_v49  ;;  %v1164_v41 = vshrl.u32 %v1036_v37, 15  ;;  %vm5875_vm11 = vcmp.gt.f32.partialorder %v5747_v12, 0.5  ;;  %v5119_v56 = vrot.slane %v7737_v30, 1 }
 0x2f5   :  { %v2441_v50 = vmul.u32 2221713035, %v2313_v51  ;;  %v1291_v52 = vxor.u32 %v1163_v14, %v1035_v48  ;;  %v6003_v54 = vsel %vm5875_vm11, 0.0, %v6890_v38  ;;  %v267_v9 = vadd.s32 928, %v6906_v1 }
 0x2f6   :  { %v2442_v58 = vmul.u32 2221713035, %v2314_v22  ;;  %v1292_v53 = vxor.u32 %v1164_v41, %v1036_v37  ;;  %v6140_v43 = vsel %vm3365_vm2, %v6003_v54, 0.0  ;;  %v5424_v35 = vsel %vm5096_vm8, %v5119_v56, 0.0 }
 0x2f7   :  { %v2569_v55 = vshrl.u32 %v2441_v50, 16  ;;  %v1419_v57 = vmul.u32 2221713035, %v1291_v52  ;;  %v7757_v59 = vadd.f32 %v6140_v43, %v6139_v42  ;;  %v395_v60 = vmul.u32 16, %v267_v9 }
 0x2f8   :  { %v2570_v62 = vshrl.u32 %v2442_v58, 16  ;;  %v1420_v7 = vmul.u32 2221713035, %v1292_v53  ;;  %v268_v46 = vadd.s32 928, %v6913_v4  ;;  %v4605_v34 = vrot.slane %v3886_v27, 7 }
 0x2f9   :  { %v2697_v47 = vxor.u32 %v2569_v55, %v2441_v50  ;;  %v1547_v5 = vshrl.u32 %v1419_v57, 16  ;;  %v523_v16 = vadd.s32 %v395_v60, %v6908_v2  ;;  %v5118_v13 = vrot.slane %v3886_v27, 1 }
 0x2fa   :  { %v2698_v24 = vxor.u32 %v2570_v62, %v2442_v58  ;;  %v1548_v17 = vshrl.u32 %v1420_v7, 16  ;;  %v396_v6 = vmul.u32 16, %v268_v46  ;;  %v4607_v19 = vsel %vm4583_vm10, %v4605_v34, %v4606_v44 }
 0x2fb   :  { %v2825_v18 = vshrl.u32 %v2697_v47, 8  ;;  %v1675_v21 = vxor.u32 %v1547_v5, %v1419_v57  ;;  %v653_v11 = vxor.u32 %v6910_v3, %v523_v16  ;;  %v4911_v0 = vsel %vm4583_vm10, 0.0, %v4605_v34 }
 0x2fc   :  { %v2826_v25 = vshrl.u32 %v2698_v24, 8  ;;  %v1676_v63 = vxor.u32 %v1548_v17, %v1420_v7  ;;  %v524_v28 = vadd.s32 %v396_v6, %v6908_v2  ;;  %v4982_v29 = vmax.f32 %v3886_v27, %v4911_v0 }
 0x2fd   :  { %v2953_v15 = vcvt.s32.f32 %v2825_v18  ;;  %v1803_v40 = vshrl.u32 %v1675_v21, 16  ;;  %v781_v49 = vshrl.u32 %v653_v11, 16  ;;  %v4983_v31 = vmax.f32 %v7737_v30, %v4607_v19 }
 0x2fe   :  { %v2954_v32 = vcvt.s32.f32 %v2826_v25  ;;  %v1804_v36 = vshrl.u32 %v1676_v63, 16  ;;  %v654_v48 = vxor.u32 %v6910_v3, %v524_v28  ;;  %v5120_v10 = vsel %vm5096_vm8, %v5118_v13, %v5119_v56 }
 0x2ff   :  { %v3081_v37 = vmul.f32 5.9604645e-08, %v2953_v15  ;;  %v1931_v12 = vxor.u32 %v1803_v40, %v1675_v21  ;;  %v909_v39 = vxor.u32 %v781_v49, %v653_v11  ;;  %v5495_v51 = vmax.f32 %v4982_v29, %v5120_v10  ;;  %v7788_v15 = vpop.f32.mrf.mxu0 }
 0x300   :  { %v3082_v14 = vmul.f32 5.9604645e-08, %v2954_v32  ;;  %v1932_v42 = vxor.u32 %v1804_v36, %v1676_v63  ;;  %v782_v44 = vshrl.u32 %v654_v48, 16  ;;  %v5496_v22 = vmax.f32 %v4983_v31, %v5424_v35 }
 0x301   :  { %vm3209_vm12 = vcmp.lt.f32.partialorder %v3081_v37, 0.006449987  ;;  %v2059_v41 = vmul.u32 2146121005, %v1931_v12  ;;  %v1037_v50 = vmul.u32 2146121005, %v909_v39  ;;  %v5621_v30 = vmax.f32 %v7729_v61, %v7688_v45 }
 0x302   :  { %v3337_v52 = vsel %vm3209_vm12, 1.0, %v6891_v8  ;;  %vm3210_vm13 = vcmp.lt.f32.partialorder %v3082_v14, 0.006449987  ;;  %v2060_v54 = vmul.u32 2146121005, %v1932_v42  ;;  %v910_v9 = vxor.u32 %v782_v44, %v654_v48 }
 0x303   :  { %6835 = vmatprep.mubr.msk.f32.mxu1 %vm3365_vm2, %v3337_v52  ;;  %v3338_v56 = vsel %vm3210_vm13, 1.0, %v6891_v8  ;;  %v2187_v27 = vshrl.u32 %v2059_v41, 15  ;;  %v1165_v58 = vshrl.u32 %v1037_v50, 15  ;;  %v5623_v53 = vmax.f32 %v5495_v51, %v7729_v61 }
 0x304   :  { %6836 = vmatmul.mubr.msk.f32.gmra.mxu1 %vm3365_vm2, %v3338_v56  ;;  %v2188_v43 = vshrl.u32 %v2060_v54, 15  ;;  %v1038_v35 = vmul.u32 2146121005, %v910_v9  ;;  %v5624_v55 = vmax.f32 %v5496_v22, %v7727_v23  ;;  %v5749_v45 = vmax.f32 %v5621_v30, %v5495_v51 }
 0x305   :  { %v2315_v57 = vxor.u32 %v2187_v27, %v2059_v41  ;;  %v1293_v60 = vxor.u32 %v1165_v58, %v1037_v50  ;;  %v5750_v62 = vmax.f32 %v5622_v20, %v5496_v22  ;;  %v5751_v7 = vmax.f32 %v5623_v53, 0.0  ;;  %v3896_v22 = vpop.f32.mrf.mxu0 }
 0x306   :  { %v2316_v46 = vxor.u32 %v2188_v43, %v2060_v54  ;;  %v1166_v34 = vshrl.u32 %v1038_v35, 15  ;;  %v5752_v47 = vmax.f32 %v5624_v55, 0.0  ;;  %vm5876_vm14 = vcmp.gt.f32.partialorder %v7735_v26, 0.5 }
 0x307   :  { %v2443_v61 = vmul.u32 2221713035, %v2315_v57  ;;  %v1421_v5 = vmul.u32 2221713035, %v1293_v60  ;;  %vm5877_vm15 = vcmp.gt.f32.partialorder %v5749_v45, 0.5  ;;  %vm5878_vm0 = vcmp.gt.f32.partialorder %v5750_v62, 0.5 }
 0x308   :  { %v2444_v16 = vmul.u32 2221713035, %v2316_v46  ;;  %v1294_v13 = vxor.u32 %v1166_v34, %v1038_v35  ;;  %vm5879_vm1 = vcmp.gt.f32.partialorder %v5751_v7, 0.5  ;;  %vm5880_vm3 = vcmp.gt.f32.partialorder %v5752_v47, 0.5 }
 0x309   :  { %v2571_v24 = vshrl.u32 %v2443_v61, 16  ;;  %v1549_v17 = vshrl.u32 %v1421_v5, 16  ;;  %v6004_v6 = vsel %vm5876_vm14, 0.0, %v6890_v38  ;;  %v6005_v33 = vsel %vm5877_vm15, 0.0, %v6890_v38 }
 0x30a   :  { %v2572_v23 = vshrl.u32 %v2444_v16, 16  ;;  %v1422_v20 = vmul.u32 2221713035, %v1294_v13  ;;  %v6006_v19 = vsel %vm5878_vm0, 0.0, %v6890_v38  ;;  %v6007_v26 = vsel %vm5879_vm1, 0.0, %v6890_v38 }
 0x30b   :  { %v2699_v18 = vxor.u32 %v2571_v24, %v2443_v61  ;;  %v1677_v21 = vxor.u32 %v1549_v17, %v1421_v5  ;;  %v6008_v11 = vsel %vm5880_vm3, 0.0, %v6890_v38  ;;  %v6142_v0 = vsel %vm3365_vm2, %v6004_v6, 0.0  ;;  %v7808_v17 = vpop.f32.mrf.mxu0 }
 0x30c   :  { %v2700_v25 = vxor.u32 %v2572_v23, %v2444_v16  ;;  %v1550_v63 = vshrl.u32 %v1422_v20, 16  ;;  %v6143_v28 = vadd.f32 %v6142_v0, %v7757_v59  ;;  %v6144_v29 = vsel %vm3365_vm2, %v6005_v33, 0.0 }
 0x30d   :  { %v2827_v40 = vshrl.u32 %v2699_v18, 8  ;;  %v1805_v49 = vshrl.u32 %v1677_v21, 16  ;;  %v6146_v31 = vsel %vm3365_vm2, %v6006_v19, 0.0  ;;  %v6148_v10 = vsel %vm3365_vm2, %v6007_v26, 0.0 }
 0x30e   :  { %v2828_v32 = vshrl.u32 %v2700_v25, 8  ;;  %v1678_v36 = vxor.u32 %v1550_v63, %v1422_v20  ;;  %v6145_v48 = vadd.f32 %v6144_v29, %v6143_v28  ;;  %v6150_v39 = vsel %vm3365_vm2, %v6008_v11, 0.0 }
 0x30f   :  { %v2955_v37 = vcvt.s32.f32 %v2827_v40  ;;  %v1933_v12 = vxor.u32 %v1805_v49, %v1677_v21  ;;  %v5122_v51 = vrot.slane %v7788_v15, 1  ;;  %v269_v44 = vadd.s32 944, %v6906_v1 }
 0x310   :  { %v2956_v59 = vcvt.s32.f32 %v2828_v32  ;;  %v1806_v14 = vshrl.u32 %v1678_v36, 16  ;;  %v6147_v42 = vadd.f32 %v6146_v31, %v6145_v48  ;;  %v4609_v30 = vrot.slane %v7788_v15, 7 }
 0x311   :  { %v3083_v41 = vmul.f32 5.9604645e-08, %v2955_v37  ;;  %v2061_v50 = vmul.u32 2146121005, %v1933_v12  ;;  %v270_v52 = vadd.s32 944, %v6913_v4  ;;  %v5425_v56 = vsel %vm5096_vm8, %v5122_v51, 0.0 }
 0x312   :  { %v3084_v54 = vmul.f32 5.9604645e-08, %v2956_v59  ;;  %v1934_v9 = vxor.u32 %v1806_v14, %v1678_v36  ;;  %v397_v27 = vmul.u32 16, %v269_v44  ;;  %v4608_v43 = vrot.slane %v3896_v22, 7 }
 0x313   :  { %vm3211_vm4 = vcmp.lt.f32.partialorder %v3083_v41, 0.006449987  ;;  %v2189_v58 = vshrl.u32 %v2061_v50, 15  ;;  %v398_v53 = vmul.u32 16, %v270_v52  ;;  %v6149_v45 = vadd.f32 %v6148_v10, %v6147_v42 }
 0x314   :  { %v3339_v35 = vsel %vm3211_vm4, 1.0, %v6891_v8  ;;  %vm3212_vm5 = vcmp.lt.f32.partialorder %v3084_v54, 0.006449987  ;;  %v2062_v55 = vmul.u32 2146121005, %v1934_v9  ;;  %v525_v62 = vadd.s32 %v397_v27, %v6908_v2 }
 0x315   :  { %6838 = vmatprep.mubr.msk.f32.mxu1 %vm3365_vm2, %v3339_v35  ;;  %v3340_v57 = vsel %vm3212_vm5, 1.0, %v6891_v8  ;;  %v2317_v60 = vxor.u32 %v2189_v58, %v2061_v50  ;;  %v526_v7 = vadd.s32 %v398_v53, %v6908_v2  ;;  %v4610_v34 = vsel %vm4583_vm10, %v4608_v43, %v4609_v30 }
 0x316   :  { %6839 = vmatmul.mubr.msk.f32.gmra.mxu1 %vm3365_vm2, %v3340_v57  ;;  %v2190_v46 = vshrl.u32 %v2062_v55, 15  ;;  %v4912_v47 = vsel %vm4583_vm10, 0.0, %v4608_v43  ;;  %v5121_v61 = vrot.slane %v3896_v22, 1  ;;  %v655_v16 = vxor.u32 %v6910_v3, %v525_v62 }
 0x317   :  { %v2445_v5 = vmul.u32 2221713035, %v2317_v60  ;;  %v656_v13 = vxor.u32 %v6910_v3, %v526_v7  ;;  %v4984_v24 = vmax.f32 %v3896_v22, %v4912_v47  ;;  %v7810_v33 = vadd.f32 %v6150_v39, %v6149_v45 }
 0x318   :  { %v2318_v6 = vxor.u32 %v2190_v46, %v2062_v55  ;;  %v4985_v23 = vmax.f32 %v7788_v15, %v4610_v34  ;;  %v5123_v20 = vsel %vm5096_vm8, %v5121_v61, %v5122_v51  ;;  %v783_v26 = vshrl.u32 %v655_v16, 16  ;;  %v3906_v15 = vpop.f32.mrf.mxu0 }
 0x319   :  { %v2573_v19 = vshrl.u32 %v2445_v5, 16  ;;  %v784_v18 = vshrl.u32 %v656_v13, 16  ;;  %v7814_v21 = vmax.f32 %v4984_v24, %v5123_v20  ;;  %v4612_v0 = vrot.slane %v7808_v17, 7 }
 0x31a   :  { %v2446_v11 = vmul.u32 2221713035, %v2318_v6  ;;  %v5125_v25 = vrot.slane %v7808_v17, 1  ;;  %v271_v63 = vadd.s32 960, %v6906_v1  ;;  %v911_v29 = vxor.u32 %v783_v26, %v655_v16  ;;  %v7836_v24 = vpop.f32.mrf.mxu0 }
 0x31b   :  { %v2701_v28 = vxor.u32 %v2573_v19, %v2445_v5  ;;  %v912_v40 = vxor.u32 %v784_v18, %v656_v13  ;;  %v7819_v49 = vmax.f32 %v4985_v23, %v5425_v56  ;;  %v5625_v32 = vmax.f32 %v7814_v21, 0.0 }
 0x31c   :  { %v2574_v31 = vshrl.u32 %v2446_v11, 16  ;;  %v5426_v36 = vsel %vm5096_vm8, %v5125_v25, 0.0  ;;  %v399_v48 = vmul.u32 16, %v271_v63  ;;  %v1039_v37 = vmul.u32 2146121005, %v911_v29 }
 0x31d   :  { %v2829_v10 = vshrl.u32 %v2701_v28, 8  ;;  %v1040_v12 = vmul.u32 2146121005, %v912_v40  ;;  %v272_v39 = vadd.s32 960, %v6913_v4  ;;  %v4611_v14 = vrot.slane %v3906_v15, 7 }
 0x31e   :  { %v2702_v51 = vxor.u32 %v2574_v31, %v2446_v11  ;;  %v527_v59 = vadd.s32 %v399_v48, %v6908_v2  ;;  %v5124_v42 = vrot.slane %v3906_v15, 1  ;;  %v1167_v22 = vshrl.u32 %v1039_v37, 15 }
 0x31f   :  { %v2957_v44 = vcvt.s32.f32 %v2829_v10  ;;  %v1168_v41 = vshrl.u32 %v1040_v12, 15  ;;  %v400_v50 = vmul.u32 16, %v272_v39  ;;  %v4613_v54 = vsel %vm4583_vm10, %v4611_v14, %v4612_v0 }
 0x320   :  { %v2830_v30 = vshrl.u32 %v2702_v51, 8  ;;  %v657_v52 = vxor.u32 %v6910_v3, %v527_v59  ;;  %v4913_v9 = vsel %vm4583_vm10, 0.0, %v4611_v14  ;;  %v1295_v27 = vxor.u32 %v1167_v22, %v1039_v37  ;;  %v3916_v14 = vpop.f32.mrf.mxu0 }
 0x321   :  { %v3085_v56 = vmul.f32 5.9604645e-08, %v2957_v44  ;;  %v1296_v58 = vxor.u32 %v1168_v41, %v1040_v12  ;;  %v528_v53 = vadd.s32 %v400_v50, %v6908_v2  ;;  %v4986_v55 = vmax.f32 %v3906_v15, %v4913_v9 }
 0x322   :  { %v2958_v43 = vcvt.s32.f32 %v2830_v30  ;;  %v785_v35 = vshrl.u32 %v657_v52, 16  ;;  %v4987_v45 = vmax.f32 %v7808_v17, %v4613_v54  ;;  %v1423_v57 = vmul.u32 2221713035, %v1295_v27 }
 0x323   :  { %vm3213_vm6 = vcmp.lt.f32.partialorder %v3085_v56, 0.006449987  ;;  %v1424_v60 = vmul.u32 2221713035, %v1296_v58  ;;  %v658_v62 = vxor.u32 %v6910_v3, %v528_v53  ;;  %v5126_v47 = vsel %vm5096_vm8, %v5124_v42, %v5125_v25 }
 0x324   :  { %v3341_v7 = vsel %vm3213_vm6, 1.0, %v6891_v8  ;;  %v3086_v46 = vmul.f32 5.9604645e-08, %v2958_v43  ;;  %v913_v34 = vxor.u32 %v785_v35, %v657_v52  ;;  %v1551_v61 = vshrl.u32 %v1423_v57, 16 }
 0x325   :  { %6841 = vmatprep.mubr.msk.f32.mxu1 %vm3365_vm2, %v3341_v7  ;;  %v1552_v5 = vshrl.u32 %v1424_v60, 16  ;;  %v786_v16 = vshrl.u32 %v658_v62, 16  ;;  %v7834_v13 = vmax.f32 %v4986_v55, %v5126_v47  ;;  %v5626_v17 = vmax.f32 %v7819_v49, 0.0 }
 0x326   :  { %vm3214_vm7 = vcmp.lt.f32.partialorder %v3086_v46, 0.006449987  ;;  %v1041_v6 = vmul.u32 2146121005, %v913_v34  ;;  %v7839_v23 = vmax.f32 %v4987_v45, %v5426_v36  ;;  %v1679_v19 = vxor.u32 %v1551_v61, %v1423_v57 }
 0x327   :  { %v3342_v20 = vsel %vm3214_vm7, 1.0, %v6891_v8  ;;  %v1680_v26 = vxor.u32 %v1552_v5, %v1424_v60  ;;  %v914_v18 = vxor.u32 %v786_v16, %v658_v62  ;;  %v5627_v0 = vmax.f32 %v7834_v13, %v7814_v21 }
 0x328   :  { %6842 = vmatmul.mubr.msk.f32.gmra.mxu1 %vm3365_vm2, %v3342_v20  ;;  %v1169_v11 = vshrl.u32 %v1041_v6, 15  ;;  %v5753_v25 = vmax.f32 %v5625_v32, %v7834_v13  ;;  %v4615_v63 = vrot.slane %v7836_v24, 7  ;;  %v1807_v28 = vshrl.u32 %v1679_v19, 16 }
 0x329   :  { %v1808_v29 = vshrl.u32 %v1680_v26, 16  ;;  %v1042_v40 = vmul.u32 2146121005, %v914_v18  ;;  %v5754_v15 = vmax.f32 %v5626_v17, %v7839_v23  ;;  %v5128_v36 = vrot.slane %v7836_v24, 1 }
 0x32a   :  { %v1297_v31 = vxor.u32 %v1169_v11, %v1041_v6  ;;  %vm5881_vm9 = vcmp.gt.f32.partialorder %v5753_v25, 0.5  ;;  %v273_v48 = vadd.s32 976, %v6906_v1  ;;  %v1935_v10 = vxor.u32 %v1807_v28, %v1679_v19 }
 0x32b   :  { %v1936_v37 = vxor.u32 %v1808_v29, %v1680_v26  ;;  %v1170_v12 = vshrl.u32 %v1042_v40, 15  ;;  %vm5882_vm11 = vcmp.gt.f32.partialorder %v5754_v15, 0.5  ;;  %v5628_v32 = vmax.f32 %v7839_v23, %v7819_v49 }
 0x32c   :  { %v1425_v39 = vmul.u32 2221713035, %v1297_v31  ;;  %v6009_v51 = vsel %vm5881_vm9, 0.0, %v6890_v38  ;;  %v7854_v59 = vsel %vm5882_vm11, 0.0, %v6890_v38  ;;  %v2063_v42 = vmul.u32 2146121005, %v1935_v10 }
 0x32d   :  { %v2064_v44 = vmul.u32 2146121005, %v1936_v37  ;;  %v1298_v22 = vxor.u32 %v1170_v12, %v1042_v40  ;;  %v5427_v41 = vsel %vm5096_vm8, %v5128_v36, 0.0  ;;  %v6152_v30 = vsel %vm3365_vm2, %v6009_v51, 0.0 }
 0x32e   :  { %v1553_v50 = vshrl.u32 %v1425_v39, 16  ;;  %v401_v52 = vmul.u32 16, %v273_v48  ;;  %v274_v54 = vadd.s32 976, %v6913_v4  ;;  %v2191_v9 = vshrl.u32 %v2063_v42, 15 }
 0x32f   :  { %v2192_v56 = vshrl.u32 %v2064_v44, 15  ;;  %v1426_v27 = vmul.u32 2221713035, %v1298_v22  ;;  %v4614_v58 = vrot.slane %v3916_v14, 7  ;;  %v5127_v55 = vrot.slane %v3916_v14, 1 }
 0x330   :  { %v1681_v53 = vxor.u32 %v1553_v50, %v1425_v39  ;;  %v529_v43 = vadd.s32 %v401_v52, %v6908_v2  ;;  %v402_v35 = vmul.u32 16, %v274_v54  ;;  %v2319_v45 = vxor.u32 %v2191_v9, %v2063_v42 }
 0x331   :  { %v2320_v57 = vxor.u32 %v2192_v56, %v2064_v44  ;;  %v1554_v60 = vshrl.u32 %v1426_v27, 16  ;;  %v4616_v62 = vsel %vm4583_vm10, %v4614_v58, %v4615_v63  ;;  %v4914_v47 = vsel %vm4583_vm10, 0.0, %v4614_v58 }
 0x332   :  { %v1809_v7 = vshrl.u32 %v1681_v53, 16  ;;  %v659_v46 = vxor.u32 %v6910_v3, %v529_v43  ;;  %v530_v34 = vadd.s32 %v402_v35, %v6908_v2  ;;  %v2447_v61 = vmul.u32 2221713035, %v2319_v45 }
 0x333   :  { %v2448_v5 = vmul.u32 2221713035, %v2320_v57  ;;  %v1682_v16 = vxor.u32 %v1554_v60, %v1426_v27  ;;  %v4988_v17 = vmax.f32 %v3916_v14, %v4914_v47  ;;  %v4989_v26 = vmax.f32 %v7836_v24, %v4616_v62  ;;  %v7872_v14 = vpop.f32.mrf.mxu0 }
 0x334   :  { %v1937_v6 = vxor.u32 %v1809_v7, %v1681_v53  ;;  %v787_v20 = vshrl.u32 %v659_v46, 16  ;;  %v660_v19 = vxor.u32 %v6910_v3, %v530_v34  ;;  %v2575_v18 = vshrl.u32 %v2447_v61, 16 }
 0x335   :  { %v2576_v11 = vshrl.u32 %v2448_v5, 16  ;;  %v1810_v25 = vshrl.u32 %v1682_v16, 16  ;;  %v5129_v63 = vsel %vm5096_vm8, %v5127_v55, %v5128_v36  ;;  %v7869_v37 = vmax.f32 %v4989_v26, %v5427_v41  ;;  %v7884_v43 = vpop.f32.mrf.mxu0 }
 0x336   :  { %v2065_v28 = vmul.u32 2146121005, %v1937_v6  ;;  %v915_v29 = vxor.u32 %v787_v20, %v659_v46  ;;  %v788_v40 = vshrl.u32 %v660_v19, 16  ;;  %v7867_v15 = vmax.f32 %v4988_v17, %v5129_v63 }
 0x337   :  { %v2703_v31 = vxor.u32 %v2575_v18, %v2447_v61  ;;  %v2704_v48 = vxor.u32 %v2576_v11, %v2448_v5  ;;  %v1938_v10 = vxor.u32 %v1810_v25, %v1682_v16  ;;  %v6153_v39 = vadd.f32 %v6152_v30, %v7810_v33  ;;  %v7891_v47 = vpop.f32.mrf.mxu0 }
 0x338   :  { %v2193_v12 = vshrl.u32 %v2065_v28, 15  ;;  %v1043_v51 = vmul.u32 2146121005, %v915_v29  ;;  %v916_v24 = vxor.u32 %v788_v40, %v660_v19  ;;  %v5629_v22 = vmax.f32 %v7867_v15, %v7834_v13 }
 0x339   :  { %v2831_v42 = vshrl.u32 %v2703_v31, 8  ;;  %v2832_v44 = vshrl.u32 %v2704_v48, 8  ;;  %v2066_v36 = vmul.u32 2146121005, %v1938_v10  ;;  %v5755_v41 = vmax.f32 %v5627_v0, %v7867_v15  ;;  %v7903_v48 = vpop.f32.mrf.mxu0 }
 0x33a   :  { %v2321_v50 = vxor.u32 %v2193_v12, %v2065_v28  ;;  %v1171_v52 = vshrl.u32 %v1043_v51, 15  ;;  %v1044_v54 = vmul.u32 2146121005, %v916_v24  ;;  %v5756_v56 = vmax.f32 %v5628_v32, %v7869_v37 }
 0x33b   :  { %v2959_v9 = vcvt.s32.f32 %v2831_v42  ;;  %v2960_v33 = vcvt.s32.f32 %v2832_v44  ;;  %v2194_v30 = vshrl.u32 %v2066_v36, 15  ;;  %vm5883_vm12 = vcmp.gt.f32.partialorder %v5755_v41, 0.5 }
 0x33c   :  { %v2449_v27 = vmul.u32 2221713035, %v2321_v50  ;;  %v1299_v58 = vxor.u32 %v1171_v52, %v1043_v51  ;;  %v1172_v53 = vshrl.u32 %v1044_v54, 15  ;;  %vm5884_vm13 = vcmp.gt.f32.partialorder %v5756_v56, 0.5 }
 0x33d   :  { %v3087_v35 = vmul.f32 5.9604645e-08, %v2959_v9  ;;  %v3088_v55 = vmul.f32 5.9604645e-08, %v2960_v33  ;;  %v2322_v45 = vxor.u32 %v2194_v30, %v2066_v36  ;;  %v6011_v60 = vsel %vm5883_vm12, 0.0, %v6890_v38  ;;  %v7911_v30 = vpop.f32.mrf.mxu0 }
 0x33e   :  { %v2577_v21 = vshrl.u32 %v2449_v27, 16  ;;  %v1427_v0 = vmul.u32 2221713035, %v1299_v58  ;;  %v1300_v57 = vxor.u32 %v1172_v53, %v1044_v54  ;;  %v5630_v49 = vmax.f32 %v7869_v37, %v7839_v23 }
 0x33f   :  { %vm3215_vm14 = vcmp.lt.f32.partialorder %v3087_v35, 0.006449987  ;;  %vm3216_vm15 = vcmp.lt.f32.partialorder %v3088_v55, 0.006449987  ;;  %v2450_v62 = vmul.u32 2221713035, %v2322_v45 }
 0x340   :  { %v3343_v32 = vsel %vm3215_vm14, 1.0, %v6891_v8  ;;  %v3344_v7 = vsel %vm3216_vm15, 1.0, %v6891_v8  ;;  %v2705_v46 = vxor.u32 %v2577_v21, %v2449_v27  ;;  %v1555_v34 = vshrl.u32 %v1427_v0, 16 }
 0x341   :  { %6844 = vmatprep.mubr.msk.f32.mxu1 %vm3365_vm2, %v3343_v32  ;;  %v2578_v61 = vshrl.u32 %v2450_v62, 16  ;;  %v1428_v5 = vmul.u32 2221713035, %v1300_v57  ;;  %v6012_v16 = vsel %vm5884_vm13, 0.0, %v6890_v38  ;;  %v6154_v17 = vsel %vm3365_vm2, %v7854_v59, 0.0 }
 0x342   :  { %6845 = vmatmul.mubr.msk.f32.gmra.mxu1 %vm3365_vm2, %v3344_v7  ;;  %v2833_v6 = vshrl.u32 %v2705_v46, 8  ;;  %v1683_v20 = vxor.u32 %v1555_v34, %v1427_v0  ;;  %v6155_v19 = vadd.f32 %v6154_v17, %v6153_v39  ;;  %v6156_v26 = vsel %vm3365_vm2, %v6011_v60, 0.0  ;;  %v7923_v34 = vpop.f32.mrf.mxu0 }
 0x343   :  { %v2706_v18 = vxor.u32 %v2578_v61, %v2450_v62  ;;  %v1556_v11 = vshrl.u32 %v1428_v5, 16  ;;  %v4618_v25 = vrot.slane %v7872_v14, 7  ;;  %v5131_v63 = vrot.slane %v7872_v14, 1 }
 0x344   :  { %v2961_v28 = vcvt.s32.f32 %v2833_v6  ;;  %v1811_v29 = vshrl.u32 %v1683_v20, 16  ;;  %v6157_v40 = vadd.f32 %v6156_v26, %v6155_v19  ;;  %v275_v31 = vadd.s32 992, %v6906_v1 }
 0x345   :  { %v2834_v59 = vshrl.u32 %v2706_v18, 8  ;;  %v1684_v10 = vxor.u32 %v1556_v11, %v1428_v5  ;;  %v5428_v12 = vsel %vm5096_vm8, %v5131_v63, 0.0  ;;  %v276_v39 = vadd.s32 992, %v6913_v4 }
 0x346   :  { %v3089_v51 = vmul.f32 5.9604645e-08, %v2961_v28  ;;  %v1939_v24 = vxor.u32 %v1811_v29, %v1683_v20  ;;  %v403_v42 = vmul.u32 16, %v275_v31  ;;  %v4617_v44 = vrot.slane %v7884_v43, 7  ;;  %v7944_v31 = vpop.f32.mrf.mxu0 }
 0x347   :  { %v2962_v36 = vcvt.s32.f32 %v2834_v59  ;;  %v1812_v50 = vshrl.u32 %v1684_v10, 16  ;;  %v404_v52 = vmul.u32 16, %v276_v39  ;;  %v5130_v54 = vrot.slane %v7884_v43, 1 }
 0x348   :  { %vm3217_vm0 = vcmp.lt.f32.partialorder %v3089_v51, 0.006449987  ;;  %v2067_v41 = vmul.u32 2146121005, %v1939_v24  ;;  %v531_v9 = vadd.s32 %v403_v42, %v6908_v2  ;;  %v4619_v33 = vsel %vm4583_vm10, %v4617_v44, %v4618_v25 }
 0x349   :  { %v3345_v56 = vsel %vm3217_vm0, 1.0, %v6891_v8  ;;  %v3090_v27 = vmul.f32 5.9604645e-08, %v2962_v36  ;;  %v1940_v58 = vxor.u32 %v1812_v50, %v1684_v10  ;;  %v532_v53 = vadd.s32 %v404_v52, %v6908_v2  ;;  %v7951_v52 = vpop.f32.mrf.mxu0 }
 0x34a   :  { %6847 = vmatprep.mubr.msk.f32.mxu1 %vm3365_vm2, %v3345_v56  ;;  %v2195_v35 = vshrl.u32 %v2067_v41, 15  ;;  %v661_v55 = vxor.u32 %v6910_v3, %v531_v9  ;;  %v4915_v45 = vsel %vm4583_vm10, 0.0, %v4617_v44  ;;  %v4991_v21 = vmax.f32 %v7872_v14, %v4619_v33 }
 0x34b   :  { %vm3218_vm1 = vcmp.lt.f32.partialorder %v3090_v27, 0.006449987  ;;  %v2068_v0 = vmul.u32 2146121005, %v1940_v58  ;;  %v662_v57 = vxor.u32 %v6910_v3, %v532_v53  ;;  %v4990_v60 = vmax.f32 %v7884_v43, %v4915_v45 }
 0x34c   :  { %v3346_v62 = vsel %vm3218_vm1, 1.0, %v6891_v8  ;;  %v2323_v32 = vxor.u32 %v2195_v35, %v2067_v41  ;;  %v789_v7 = vshrl.u32 %v661_v55, 16  ;;  %v5132_v46 = vsel %vm5096_vm8, %v5130_v54, %v5131_v63 }
 0x34d   :  { %6848 = vmatmul.mubr.msk.f32.gmra.mxu1 %vm3365_vm2, %v3346_v62  ;;  %v2196_v61 = vshrl.u32 %v2068_v0, 15  ;;  %v790_v5 = vshrl.u32 %v662_v57, 16  ;;  %v7926_v17 = vmax.f32 %v4990_v60, %v5132_v46  ;;  %v7928_v14 = vmax.f32 %v4991_v21, %v5428_v12  ;;  %v7958_v62 = vpop.f32.mrf.mxu0 }
 0x34e   :  { %v2451_v6 = vmul.u32 2221713035, %v2323_v32  ;;  %v917_v20 = vxor.u32 %v789_v7, %v661_v55  ;;  %v6158_v43 = vsel %vm3365_vm2, %v6012_v16, 0.0  ;;  %v4621_v19 = vrot.slane %v7891_v47, 7 }
 0x34f   :  { %v2324_v26 = vxor.u32 %v2196_v61, %v2068_v0  ;;  %v918_v18 = vxor.u32 %v790_v5, %v662_v57  ;;  %v5631_v11 = vmax.f32 %v7926_v17, %v7867_v15  ;;  %v5632_v25 = vmax.f32 %v7928_v14, %v7869_v37 }
 0x350   :  { %v2579_v63 = vshrl.u32 %v2451_v6, 16  ;;  %v1045_v28 = vmul.u32 2146121005, %v917_v20  ;;  %v5757_v29 = vmax.f32 %v5629_v22, %v7926_v17  ;;  %v5758_v16 = vmax.f32 %v5630_v49, %v7928_v14 }
 0x351   :  { %v2452_v59 = vmul.u32 2221713035, %v2324_v26  ;;  %v1046_v10 = vmul.u32 2146121005, %v918_v18  ;;  %v6159_v12 = vadd.f32 %v6158_v43, %v6157_v40  ;;  %v5134_v39 = vrot.slane %v7891_v47, 1 }
 0x352   :  { %v2707_v51 = vxor.u32 %v2579_v63, %v2451_v6  ;;  %v1173_v24 = vshrl.u32 %v1045_v28, 15  ;;  %vm5885_vm3 = vcmp.gt.f32.partialorder %v5757_v29, 0.5  ;;  %vm5886_vm4 = vcmp.gt.f32.partialorder %v5758_v16, 0.5  ;;  %v7970_v29 = vpop.f32.mrf.mxu0 }
 0x353   :  { %v2580_v42 = vshrl.u32 %v2452_v59, 16  ;;  %v1174_v44 = vshrl.u32 %v1046_v10, 15  ;;  %v6013_v13 = vsel %vm5885_vm3, 0.0, %v6890_v38  ;;  %v6014_v22 = vsel %vm5886_vm4, 0.0, %v6890_v38 }
 0x354   :  { %v2835_v36 = vshrl.u32 %v2707_v51, 8  ;;  %v1301_v23 = vxor.u32 %v1173_v24, %v1045_v28  ;;  %v6160_v49 = vsel %vm3365_vm2, %v6013_v13, 0.0  ;;  %v5429_v50 = vsel %vm5096_vm8, %v5134_v39, 0.0 }
 0x355   :  { %v2708_v40 = vxor.u32 %v2580_v42, %v2452_v59  ;;  %v1302_v54 = vxor.u32 %v1174_v44, %v1046_v10  ;;  %v6161_v41 = vadd.f32 %v6160_v49, %v6159_v12  ;;  %v277_v9 = vadd.s32 1008, %v6906_v1 }
 0x356   :  { %v2963_v33 = vcvt.s32.f32 %v2835_v36  ;;  %v1429_v56 = vmul.u32 2221713035, %v1301_v23  ;;  %v278_v27 = vadd.s32 1008, %v6913_v4  ;;  %v4620_v58 = vrot.slane %v7903_v48, 7  ;;  %v7990_v23 = vpop.f32.mrf.mxu0 }
 0x357   :  { %v2836_v53 = vshrl.u32 %v2708_v40, 8  ;;  %v1430_v35 = vmul.u32 2221713035, %v1302_v54  ;;  %v405_v55 = vmul.u32 16, %v277_v9  ;;  %v5133_v45 = vrot.slane %v7903_v48, 1 }
 0x358   :  { %v3091_v21 = vmul.f32 5.9604645e-08, %v2963_v33  ;;  %v1557_v0 = vshrl.u32 %v1429_v56, 16  ;;  %v406_v57 = vmul.u32 16, %v278_v27  ;;  %v4622_v60 = vsel %vm4583_vm10, %v4620_v58, %v4621_v19 }
 0x359   :  { %v2964_v32 = vcvt.s32.f32 %v2836_v53  ;;  %v1558_v1 = vshrl.u32 %v1430_v35, 16  ;;  %v533_v7 = vadd.s32 %v405_v55, %v6908_v2  ;;  %v4916_v4 = vsel %vm4583_vm10, 0.0, %v4620_v58  ;;  %v7997_v53 = vpop.f32.mrf.mxu0 }
 0x35a   :  { %vm3219_vm5 = vcmp.lt.f32.partialorder %v3091_v21, 0.006449987  ;;  %v1685_v46 = vxor.u32 %v1557_v0, %v1429_v56  ;;  %v534_v61 = vadd.s32 %v406_v57, %v6908_v2  ;;  %v4992_v5 = vmax.f32 %v7903_v48, %v4916_v4 }
 0x35b   :  { %v3347_v6 = vsel %vm3219_vm5, 1.0, %v6891_v8  ;;  %v3092_v20 = vmul.f32 5.9604645e-08, %v2964_v32  ;;  %v1686_v43 = vxor.u32 %v1558_v1, %v1430_v35  ;;  %v663_v19 = vxor.u32 %v6910_v3, %v533_v7 }
 0x35c   :  { %6850 = vmatprep.mubr.msk.f32.mxu1 %vm3365_vm2, %v3347_v6  ;;  %v1813_v26 = vshrl.u32 %v1685_v46, 16  ;;  %v664_v18 = vxor.u32 %v6910_v3, %v534_v61  ;;  %v4993_v63 = vmax.f32 %v7891_v47, %v4622_v60  ;;  %v5135_v28 = vsel %vm5096_vm8, %v5133_v45, %v5134_v39  ;;  %v8006_v6 = vpop.f32.mrf.mxu0 }
 0x35d   :  { %vm3220_vm6 = vcmp.lt.f32.partialorder %v3092_v20, 0.006449987  ;;  %v1814_v2 = vshrl.u32 %v1686_v43, 16  ;;  %v791_v48 = vshrl.u32 %v663_v19, 16  ;;  %v7972_v16 = vmax.f32 %v4992_v5, %v5135_v28 }
 0x35e   :  { %v3348_v59 = vsel %vm3220_vm6, 1.0, %v6891_v8  ;;  %v1941_v10 = vxor.u32 %v1813_v26, %v1685_v46  ;;  %v792_v12 = vshrl.u32 %v664_v18, 16  ;;  %v7975_v51 = vmax.f32 %v4993_v63, %v5429_v50 }
 0x35f   :  { %6851 = vmatmul.mubr.msk.f32.gmra.mxu1 %vm3365_vm2, %v3348_v59  ;;  %v1942_v3 = vxor.u32 %v1814_v2, %v1686_v43  ;;  %v919_v24 = vxor.u32 %v791_v48, %v663_v19  ;;  %v5633_v47 = vmax.f32 %v7972_v16, %v7926_v17  ;;  %v5759_v39 = vmax.f32 %v5631_v11, %v7972_v16 }
 0x360   :  { %v2069_v42 = vmul.u32 2146121005, %v1941_v10  ;;  %v920_v44 = vxor.u32 %v792_v12, %v664_v18  ;;  %v5634_v13 = vmax.f32 %v7975_v51, %v7928_v14  ;;  %v5760_v36 = vmax.f32 %v5632_v25, %v7975_v51 }
 0x361   :  { %v2070_v49 = vmul.u32 2146121005, %v1942_v3  ;;  %v1047_v50 = vmul.u32 2146121005, %v919_v24  ;;  %vm5887_vm7 = vcmp.gt.f32.partialorder %v5759_v39, 0.5  ;;  %v6162_v40 = vsel %vm3365_vm2, %v6014_v22, 0.0 }
 0x362   :  { %v2197_v54 = vshrl.u32 %v2069_v42, 15  ;;  %v1048_v15 = vmul.u32 2146121005, %v920_v44  ;;  %vm5888_vm9 = vcmp.gt.f32.partialorder %v5760_v36, 0.5  ;;  %v6015_v11 = vsel %vm5887_vm7, 0.0, %v6890_v38 }
 0x363   :  { %v2198_v9 = vshrl.u32 %v2070_v49, 15  ;;  %v1175_v33 = vshrl.u32 %v1047_v50, 15  ;;  %v6016_v56 = vsel %vm5888_vm9, 0.0, %v6890_v38  ;;  %v6163_v27 = vadd.f32 %v6162_v40, %v6161_v41 }
 0x364   :  { %v2325_v58 = vxor.u32 %v2197_v54, %v2069_v42  ;;  %v1176_v37 = vshrl.u32 %v1048_v15, 15  ;;  %v6164_v14 = vsel %vm3365_vm2, %v6015_v11, 0.0  ;;  %v4624_v25 = vrot.slane %v7911_v30, 7 }
 0x365   :  { %v2326_v35 = vxor.u32 %v2198_v9, %v2070_v49  ;;  %v1303_v22 = vxor.u32 %v1175_v33, %v1047_v50  ;;  %v6165_v55 = vadd.f32 %v6164_v14, %v6163_v27  ;;  %v5137_v45 = vrot.slane %v7911_v30, 1 }
 0x366   :  { %v2453_v21 = vmul.u32 2221713035, %v2325_v58  ;;  %v1304_v0 = vxor.u32 %v1176_v37, %v1048_v15  ;;  %v4623_v57 = vrot.slane %v7923_v34, 7  ;;  %v5136_v60 = vrot.slane %v7923_v34, 1 }
 0x367   :  { %v2454_v41 = vmul.u32 2221713035, %v2326_v35  ;;  %v1431_v32 = vmul.u32 2221713035, %v1303_v22  ;;  %v5430_v1 = vsel %vm5096_vm8, %v5137_v45, 0.0  ;;  %v6166_v7 = vsel %vm3365_vm2, %v6016_v56, 0.0 }
 0x368   :  { %v2581_v4 = vshrl.u32 %v2453_v21, 16  ;;  %v1432_v46 = vmul.u32 2221713035, %v1304_v0  ;;  %v4625_v61 = vsel %vm4583_vm10, %v4623_v57, %v4624_v25  ;;  %v4917_v5 = vsel %vm4583_vm10, 0.0, %v4623_v57 }
 0x369   :  { %v2582_v20 = vshrl.u32 %v2454_v41, 16  ;;  %v1559_v43 = vshrl.u32 %v1431_v32, 16  ;;  %v4994_v19 = vmax.f32 %v7923_v34, %v4917_v5  ;;  %v4995_v26 = vmax.f32 %v7911_v30, %v4625_v61  ;;  %v8017_v34 = vpop.f32.mrf.mxu0 }
 0x36a   :  { %v2709_v18 = vxor.u32 %v2581_v4, %v2453_v21  ;;  %v1560_v63 = vshrl.u32 %v1432_v46, 16  ;;  %v5138_v28 = vsel %vm5096_vm8, %v5136_v60, %v5137_v45  ;;  %v6167_v2 = vadd.f32 %v6166_v7, %v6165_v55 }
 0x36b   :  { %v2710_v48 = vxor.u32 %v2582_v20, %v2454_v41  ;;  %v1687_v59 = vxor.u32 %v1559_v43, %v1431_v32  ;;  %v8011_v10 = vmax.f32 %v4994_v19, %v5138_v28  ;;  %v8013_v12 = vmax.f32 %v4995_v26, %v5430_v1 }
 0x36c   :  { %v2837_v3 = vshrl.u32 %v2709_v18, 8  ;;  %v1688_v24 = vxor.u32 %v1560_v63, %v1432_v46  ;;  %v4627_v39 = vrot.slane %v7944_v31, 7  ;;  %v5140_v42 = vrot.slane %v7944_v31, 1 }
 0x36d   :  { %v2838_v30 = vshrl.u32 %v2710_v48, 8  ;;  %v1815_v44 = vshrl.u32 %v1687_v59, 16  ;;  %v5635_v36 = vmax.f32 %v8011_v10, %v7972_v16  ;;  %v5636_v49 = vmax.f32 %v8013_v12, %v7975_v51  ;;  %v8030_v51 = vpop.f32.mrf.mxu0 }
 0x36e   :  { %v2965_v50 = vcvt.s32.f32 %v2837_v3  ;;  %v1816_v40 = vshrl.u32 %v1688_v24, 16  ;;  %v5761_v54 = vmax.f32 %v5633_v47, %v8011_v10  ;;  %v5762_v15 = vmax.f32 %v5634_v13, %v8013_v12 }
 0x36f   :  { %v2966_v11 = vcvt.s32.f32 %v2838_v30  ;;  %v1943_v9 = vxor.u32 %v1815_v44, %v1687_v59  ;;  %v5431_v33 = vsel %vm5096_vm8, %v5140_v42, 0.0  ;;  %v4626_v56 = vrot.slane %v7951_v52, 7  ;;  %v8041_v60 = vpop.f32.mrf.mxu0 }
 0x370   :  { %v3093_v27 = vmul.f32 5.9604645e-08, %v2965_v50  ;;  %v1944_v58 = vxor.u32 %v1816_v40, %v1688_v24  ;;  %vm5889_vm11 = vcmp.gt.f32.partialorder %v5761_v54, 0.5  ;;  %vm5890_vm12 = vcmp.gt.f32.partialorder %v5762_v15, 0.5 }
 0x371   :  { %v3094_v37 = vmul.f32 5.9604645e-08, %v2966_v11  ;;  %v2071_v14 = vmul.u32 2146121005, %v1943_v9  ;;  %v6017_v25 = vsel %vm5889_vm11, 0.0, %v6890_v38  ;;  %v6018_v17 = vsel %vm5890_vm12, 0.0, %v6890_v38 }
 0x372   :  { %vm3221_vm13 = vcmp.lt.f32.partialorder %v3093_v27, 0.006449987  ;;  %v2072_v16 = vmul.u32 2146121005, %v1944_v58  ;;  %v6168_v47 = vsel %vm3365_vm2, %v6017_v25, 0.0  ;;  %v4628_v13 = vsel %vm4583_vm10, %v4626_v56, %v4627_v39 }
 0x373   :  { %v3349_v35 = vsel %vm3221_vm13, 1.0, %v6891_v8  ;;  %vm3222_vm14 = vcmp.lt.f32.partialorder %v3094_v37, 0.006449987  ;;  %v2199_v22 = vshrl.u32 %v2071_v14, 15  ;;  %v6169_v55 = vadd.f32 %v6168_v47, %v6167_v2 }
 0x374   :  { %6853 = vmatprep.mubr.msk.f32.mxu1 %vm3365_vm2, %v3349_v35  ;;  %v3350_v45 = vsel %vm3222_vm14, 1.0, %v6891_v8  ;;  %v2200_v21 = vshrl.u32 %v2072_v16, 15  ;;  %v4918_v0 = vsel %vm4583_vm10, 0.0, %v4626_v56  ;;  %v4997_v57 = vmax.f32 %v7944_v31, %v4628_v13 }
 0x375   :  { %6854 = vmatmul.mubr.msk.f32.gmra.mxu1 %vm3365_vm2, %v3350_v45  ;;  %v2327_v41 = vxor.u32 %v2199_v22, %v2071_v14  ;;  %v4996_v32 = vmax.f32 %v7951_v52, %v4918_v0  ;;  %v5139_v1 = vrot.slane %v7951_v52, 1  ;;  %v6170_v7 = vsel %vm3365_vm2, %v6018_v17, 0.0  ;;  %v8052_v52 = vpop.f32.mrf.mxu0 }
 0x376   :  { %v2328_v4 = vxor.u32 %v2200_v21, %v2072_v16  ;;  %v5510_v46 = vmax.f32 %v4997_v57, %v5431_v33  ;;  %v6171_v61 = vadd.f32 %v6170_v7, %v6169_v55  ;;  %v4630_v5 = vrot.slane %v7958_v62, 7 }
 0x377   :  { %v2455_v20 = vmul.u32 2221713035, %v2327_v41  ;;  %v5141_v43 = vsel %vm5096_vm8, %v5139_v1, %v5140_v42  ;;  %v5143_v31 = vrot.slane %v7958_v62, 1  ;;  %v4629_v19 = vrot.slane %v7970_v29, 7  ;;  %v8062_v9 = vpop.f32.mrf.mxu0 }
 0x378   :  { %v2456_v26 = vmul.u32 2221713035, %v2328_v4  ;;  %v5509_v18 = vmax.f32 %v4996_v32, %v5141_v43  ;;  %v5764_v63 = vmax.f32 %v5636_v49, %v5510_v46  ;;  %v5142_v28 = vrot.slane %v7970_v29, 1 }
 0x379   :  { %v2583_v2 = vshrl.u32 %v2455_v20, 16  ;;  %v5432_v48 = vsel %vm5096_vm8, %v5143_v31, 0.0  ;;  %v4631_v59 = vsel %vm4583_vm10, %v4629_v19, %v4630_v5  ;;  %v4919_v3 = vsel %vm4583_vm10, 0.0, %v4629_v19  ;;  %v8068_v13 = vpop.f32.mrf.mxu0 }
 0x37a   :  { %v2584_v24 = vshrl.u32 %v2456_v26, 16  ;;  %v5763_v39 = vmax.f32 %v5635_v36, %v5509_v18  ;;  %v4998_v42 = vmax.f32 %v7970_v29, %v4919_v3  ;;  %v4999_v30 = vmax.f32 %v7958_v62, %v4631_v59 }
 0x37b   :  { %v2711_v44 = vxor.u32 %v2583_v2, %v2455_v20  ;;  %v5144_v49 = vsel %vm5096_vm8, %v5142_v28, %v5143_v31  ;;  %v5637_v50 = vmax.f32 %v5509_v18, %v8011_v10  ;;  %v5638_v40 = vmax.f32 %v5510_v46, %v8013_v12  ;;  %v8077_v7 = vpop.f32.mrf.mxu0 }
 0x37c   :  { %v2712_v54 = vxor.u32 %v2584_v24, %v2456_v26  ;;  %vm5891_vm15 = vcmp.gt.f32.partialorder %v5763_v39, 0.5  ;;  %v5511_v15 = vmax.f32 %v4998_v42, %v5144_v49  ;;  %v5512_v11 = vmax.f32 %v4999_v30, %v5432_v48 }
 0x37d   :  { %v2839_v33 = vshrl.u32 %v2711_v44, 8  ;;  %v6019_v36 = vsel %vm5891_vm15, 0.0, %v6890_v38  ;;  %vm5892_vm0 = vcmp.gt.f32.partialorder %v5764_v63, 0.5  ;;  %v4633_v29 = vrot.slane %v7990_v23, 7  ;;  %v8095_v3 = vpop.f32.mrf.mxu0 }
 0x37e   :  { %v2840_v62 = vshrl.u32 %v2712_v54, 8  ;;  %v6172_v56 = vsel %vm3365_vm2, %v6019_v36, 0.0  ;;  %v5639_v27 = vmax.f32 %v5511_v15, %v5509_v18  ;;  %v5640_v58 = vmax.f32 %v5512_v11, %v5510_v46 }
 0x37f   :  { %v2967_v10 = vcvt.s32.f32 %v2839_v33  ;;  %v6173_v37 = vadd.f32 %v6172_v56, %v6171_v61  ;;  %v5765_v12 = vmax.f32 %v5637_v50, %v5511_v15  ;;  %v5766_v14 = vmax.f32 %v5638_v40, %v5512_v11 }
 0x380   :  { %v2968_v25 = vcvt.s32.f32 %v2840_v62  ;;  %v5767_v17 = vmax.f32 %v5639_v27, 0.0  ;;  %v5768_v16 = vmax.f32 %v5640_v58, 0.0  ;;  %v6020_v47 = vsel %vm5892_vm0, 0.0, %v6890_v38  ;;  %v8109_v62 = vpop.f32.mrf.mxu0 }
 0x381   :  { %v3095_v35 = vmul.f32 5.9604645e-08, %v2967_v10  ;;  %vm5893_vm1 = vcmp.gt.f32.partialorder %v5765_v12, 0.5  ;;  %vm5894_vm3 = vcmp.gt.f32.partialorder %v5766_v14, 0.5  ;;  %v6174_v22 = vsel %vm3365_vm2, %v6020_v47, 0.0 }
 0x382   :  { %v3096_v55 = vmul.f32 5.9604645e-08, %v2968_v25  ;;  %vm5895_vm4 = vcmp.gt.f32.partialorder %v5767_v17, 0.5  ;;  %vm5896_vm5 = vcmp.gt.f32.partialorder %v5768_v16, 0.5  ;;  %v6021_v45 = vsel %vm5893_vm1, 0.0, %v6890_v38 }
 0x383   :  { %vm3223_vm6 = vcmp.lt.f32.partialorder %v3095_v35, 0.006449987  ;;  %v6022_v21 = vsel %vm5894_vm3, 0.0, %v6890_v38  ;;  %v6023_v0 = vsel %vm5895_vm4, 0.0, %v6890_v38  ;;  %v6024_v57 = vsel %vm5896_vm5, 0.0, %v6890_v38 }
 0x384   :  { %v3351_v41 = vsel %vm3223_vm6, 1.0, %v6891_v8  ;;  %vm3224_vm7 = vcmp.lt.f32.partialorder %v3096_v55, 0.006449987  ;;  %v6175_v32 = vadd.f32 %v6174_v22, %v6173_v37  ;;  %v6176_v1 = vsel %vm3365_vm2, %v6021_v45, 0.0  ;;  %v8119_v45 = vpop.f32.mrf.mxu0 }
 0x385   :  { %6856 = vmatprep.mubr.msk.f32.mxu1 %vm3365_vm2, %v3351_v41  ;;  %v3352_v4 = vsel %vm3224_vm7, 1.0, %v6891_v8  ;;  %v6178_v46 = vsel %vm3365_vm2, %v6022_v21, 0.0  ;;  %v6180_v61 = vsel %vm3365_vm2, %v6023_v0, 0.0  ;;  %v6182_v5 = vsel %vm3365_vm2, %v6024_v57, 0.0 }
 0x386   :  { %6857 = vmatmul.mubr.msk.f32.gmra.mxu1 %vm3365_vm2, %v3352_v4  ;;  %v6177_v20 = vadd.f32 %v6176_v1, %v6175_v32  ;;  %v5146_v43 = vrot.slane %v7990_v23, 1  ;;  %v4632_v31 = vrot.slane %v7997_v53, 7  ;;  %v5145_v19 = vrot.slane %v7997_v53, 1 }
 0x387   :  { %v4636_v26 = vrot.slane %v8006_v6, 7  ;;  %v5149_v18 = vrot.slane %v8006_v6, 1  ;;  %v4635_v8 = vrot.slane %v8017_v34, 7  ;;  %v5148_v63 = vrot.slane %v8017_v34, 1 }
 0x388   :  { %v6179_v28 = vadd.f32 %v6178_v46, %v6177_v20  ;;  %v5433_v2 = vsel %vm5096_vm8, %v5146_v43, 0.0  ;;  %v4634_v48 = vsel %vm4583_vm10, %v4632_v31, %v4633_v29  ;;  %v4920_v59 = vsel %vm4583_vm10, 0.0, %v4632_v31  ;;  %v8136_v31 = vpop.f32.mrf.mxu0 }
 0x389   :  { %v5000_v24 = vmax.f32 %v7997_v53, %v4920_v59  ;;  %v5001_v39 = vmax.f32 %v7990_v23, %v4634_v48  ;;  %v5147_v42 = vsel %vm5096_vm8, %v5145_v19, %v5146_v43  ;;  %v5434_v30 = vsel %vm5096_vm8, %v5149_v18, 0.0 }
 0x38a   :  { %v6181_v44 = vadd.f32 %v6180_v61, %v6179_v28  ;;  %v4637_v49 = vsel %vm4583_vm10, %v4635_v8, %v4636_v26  ;;  %v4921_v50 = vsel %vm4583_vm10, 0.0, %v4635_v8  ;;  %v5150_v40 = vsel %vm5096_vm8, %v5148_v63, %v5149_v18 }
 0x38b   :  { %v5513_v54 = vmax.f32 %v5000_v24, %v5147_v42  ;;  %v5514_v15 = vmax.f32 %v5001_v39, %v5433_v2  ;;  %v5002_v11 = vmax.f32 %v8017_v34, %v4921_v50  ;;  %v5003_v33 = vmax.f32 %v8006_v6, %v4637_v49 }
 0x38c   :  { %v6183_v53 = vadd.f32 %v6182_v5, %v6181_v44  ;;  %v4639_v23 = vrot.slane %v8030_v51, 7  ;;  %v5152_v36 = vrot.slane %v8030_v51, 1  ;;  %v4638_v29 = vrot.slane %v8041_v60, 7  ;;  %v8153_v44 = vpop.f32.mrf.mxu0 }
 0x38d   :  { %v5641_v56 = vmax.f32 %v5513_v54, 0.0  ;;  %v5642_v27 = vmax.f32 %v5514_v15, 0.0  ;;  %v5515_v58 = vmax.f32 %v5002_v11, %v5150_v40  ;;  %v5516_v10 = vmax.f32 %v5003_v33, %v5434_v30 }
 0x38e   :  { %v5435_v37 = vsel %vm5096_vm8, %v5152_v36, 0.0  ;;  %v4640_v12 = vsel %vm4583_vm10, %v4638_v29, %v4639_v23  ;;  %v4922_v34 = vsel %vm4583_vm10, 0.0, %v4638_v29  ;;  %v5151_v6 = vrot.slane %v8041_v60, 1 }
 0x38f   :  { %v5643_v14 = vmax.f32 %v5515_v58, %v5513_v54  ;;  %v5644_v25 = vmax.f32 %v5516_v10, %v5514_v15  ;;  %v5769_v17 = vmax.f32 %v5641_v56, %v5515_v58  ;;  %v5770_v16 = vmax.f32 %v5642_v27, %v5516_v10  ;;  %v8159_v54 = vpop.f32.mrf.mxu1 }
 0x390   :  { %v5004_v47 = vmax.f32 %v8041_v60, %v4922_v34  ;;  %v5005_v35 = vmax.f32 %v8030_v51, %v4640_v12  ;;  %v5153_v22 = vsel %vm5096_vm8, %v5151_v6, %v5152_v36  ;;  %v4642_v55 = vrot.slane %v8052_v52, 7 }
 0x391   :  { %vm5897_vm9 = vcmp.gt.f32.partialorder %v5769_v17, 0.5  ;;  %vm5898_vm11 = vcmp.gt.f32.partialorder %v5770_v16, 0.5  ;;  %v5155_v21 = vrot.slane %v8052_v52, 1  ;;  %v4641_v0 = vrot.slane %v8062_v9, 7 }
 0x392   :  { %v6025_v57 = vsel %vm5897_vm9, 0.0, %v6890_v38  ;;  %v6026_v41 = vsel %vm5898_vm11, 0.0, %v6890_v38  ;;  %v8125_v32 = vmax.f32 %v5004_v47, %v5153_v22  ;;  %v8127_v60 = vmax.f32 %v5005_v35, %v5435_v37 }
 0x393   :  { %v6184_v51 = vsel %vm3365_vm2, %v6025_v57, 0.0  ;;  %v6186_v1 = vsel %vm3365_vm2, %v6026_v41, 0.0  ;;  %v5436_v4 = vsel %vm5096_vm8, %v5155_v21, 0.0  ;;  %v4643_v46 = vsel %vm4583_vm10, %v4641_v0, %v4642_v55 }
 0x394   :  { %v6185_v61 = vadd.f32 %v6184_v51, %v6183_v53  ;;  %v5645_v5 = vmax.f32 %v8125_v32, %v5515_v58  ;;  %v5646_v20 = vmax.f32 %v8127_v60, %v5516_v10  ;;  %v5771_v43 = vmax.f32 %v5643_v14, %v8125_v32  ;;  %v8171_v10 = vpop.f32.mrf.mxu0  ;;  %v8177_v14 = vpop.f32.mrf.mxu1 }
 0x395   :  { %v5772_v19 = vmax.f32 %v5644_v25, %v8127_v60  ;;  %v4923_v26 = vsel %vm4583_vm10, 0.0, %v4641_v0  ;;  %v5007_v18 = vmax.f32 %v8052_v52, %v4643_v46  ;;  %v5154_v8 = vrot.slane %v8062_v9, 1 }
 0x396   :  { %vm5899_vm12 = vcmp.gt.f32.partialorder %v5771_v43, 0.5  ;;  %v6187_v63 = vadd.f32 %v6186_v1, %v6185_v61  ;;  %v5006_v28 = vmax.f32 %v8062_v9, %v4923_v26  ;;  %v4645_v2 = vrot.slane %v8068_v13, 7  ;;  %v8188_v41 = vpop.f32.mrf.mxu0 }
 0x397   :  { %vm5900_vm13 = vcmp.gt.f32.partialorder %v5772_v19, 0.5  ;;  %v6027_v48 = vsel %vm5899_vm12, 0.0, %v6890_v38  ;;  %v5156_v59 = vsel %vm5096_vm8, %v5154_v8, %v5155_v21  ;;  %v8146_v24 = vmax.f32 %v5007_v18, %v5436_v4  ;;  %v8192_v4 = vpop.f32.mrf.mxu1 }
 0x398   :  { %v6028_v39 = vsel %vm5900_vm13, 0.0, %v6890_v38  ;;  %v6188_v42 = vsel %vm3365_vm2, %v6027_v48, 0.0  ;;  %v8150_v52 = vmax.f32 %v5006_v28, %v5156_v59  ;;  %v5158_v30 = vrot.slane %v8068_v13, 1  ;;  %v8205_v28 = vpop.f32.mrf.mxu0 }
 0x399   :  { %v6189_v9 = vadd.f32 %v6188_v42, %v6187_v63  ;;  %v5648_v49 = vmax.f32 %v8146_v24, %v8127_v60  ;;  %v5774_v50 = vmax.f32 %v5646_v20, %v8146_v24  ;;  %v6190_v40 = vsel %vm3365_vm2, %v6028_v39, 0.0  ;;  %v8211_v59 = vpop.f32.mrf.mxu1 }
 0x39a   :  { %v5647_v15 = vmax.f32 %v8150_v52, %v8125_v32  ;;  %v5773_v11 = vmax.f32 %v5645_v5, %v8150_v52  ;;  %v5437_v33 = vsel %vm5096_vm8, %v5158_v30, 0.0  ;;  %v4644_v53 = vrot.slane %v8077_v7, 7 }
 0x39b   :  { %vm5902_vm14 = vcmp.gt.f32.partialorder %v5774_v50, 0.5  ;;  %v6191_v23 = vadd.f32 %v6190_v40, %v6189_v9  ;;  %v5157_v36 = vrot.slane %v8077_v7, 1  ;;  %v4648_v29 = vrot.slane %v8095_v3, 7 }
 0x39c   :  { %vm5901_vm15 = vcmp.gt.f32.partialorder %v5773_v11, 0.5  ;;  %v6030_v56 = vsel %vm5902_vm14, 0.0, %v6890_v38  ;;  %v4646_v27 = vsel %vm4583_vm10, %v4644_v53, %v4645_v2  ;;  %v4924_v58 = vsel %vm4583_vm10, 0.0, %v4644_v53 }
 0x39d   :  { %v6029_v37 = vsel %vm5901_vm15, 0.0, %v6890_v38  ;;  %v5008_v12 = vmax.f32 %v8077_v7, %v4924_v58  ;;  %v5009_v34 = vmax.f32 %v8068_v13, %v4646_v27  ;;  %v5159_v6 = vsel %vm5096_vm8, %v5157_v36, %v5158_v30 }
 0x39e   :  { %v6192_v25 = vsel %vm3365_vm2, %v6029_v37, 0.0  ;;  %v6194_v17 = vsel %vm3365_vm2, %v6030_v56, 0.0  ;;  %v5161_v16 = vrot.slane %v8095_v3, 1  ;;  %v4647_v47 = vrot.slane %v8109_v62, 7 }
 0x39f   :  { %v6193_v35 = vadd.f32 %v6192_v25, %v6191_v23  ;;  %v5521_v22 = vmax.f32 %v5008_v12, %v5159_v6  ;;  %v5522_v55 = vmax.f32 %v5009_v34, %v5437_v33  ;;  %v5160_v21 = vrot.slane %v8109_v62, 1  ;;  %v8222_v33 = vpop.f32.mrf.mxu0 }
 0x3a0   :  { %v5438_v7 = vsel %vm5096_vm8, %v5161_v16, 0.0  ;;  %v4649_v13 = vsel %vm4583_vm10, %v4647_v47, %v4648_v29  ;;  %v4925_v0 = vsel %vm4583_vm10, 0.0, %v4647_v47  ;;  %v4651_v57 = vrot.slane %v8119_v45, 7  ;;  %v8226_v29 = vpop.f32.mrf.mxu1 }
 0x3a1   :  { %v5649_v32 = vmax.f32 %v5521_v22, %v8150_v52  ;;  %v5650_v60 = vmax.f32 %v5522_v55, %v8146_v24  ;;  %v5775_v51 = vmax.f32 %v5647_v15, %v5521_v22  ;;  %v5776_v1 = vmax.f32 %v5648_v49, %v5522_v55  ;;  %v8236_v47 = vpop.f32.mrf.mxu0 }
 0x3a2   :  { %v6195_v46 = vadd.f32 %v6194_v17, %v6193_v35  ;;  %v5010_v61 = vmax.f32 %v8109_v62, %v4925_v0  ;;  %v5011_v5 = vmax.f32 %v8095_v3, %v4649_v13  ;;  %v5162_v20 = vsel %vm5096_vm8, %v5160_v21, %v5161_v16 }
 0x3a3   :  { %vm5903_vm0 = vcmp.gt.f32.partialorder %v5775_v51, 0.5  ;;  %vm5904_vm1 = vcmp.gt.f32.partialorder %v5776_v1, 0.5  ;;  %v5164_v43 = vrot.slane %v8119_v45, 1  ;;  %v4650_v19 = vrot.slane %v8136_v31, 7 }
 0x3a4   :  { %v6031_v26 = vsel %vm5903_vm0, 0.0, %v6890_v38  ;;  %v6032_v18 = vsel %vm5904_vm1, 0.0, %v6890_v38  ;;  %v8201_v8 = vmax.f32 %v5010_v61, %v5162_v20  ;;  %v8203_v63 = vmax.f32 %v5011_v5, %v5438_v7  ;;  %v8241_v7 = vpop.f32.mrf.mxu1  ;;  %v8251_v20 = vpop.f32.mrf.mxu0 }
 0x3a5   :  { %v6196_v3 = vsel %vm3365_vm2, %v6031_v26, 0.0  ;;  %v6198_v62 = vsel %vm3365_vm2, %v6032_v18, 0.0  ;;  %v5439_v2 = vsel %vm5096_vm8, %v5164_v43, 0.0  ;;  %v4652_v48 = vsel %vm4583_vm10, %v4650_v19, %v4651_v57 }
 0x3a6   :  { %v6197_v24 = vadd.f32 %v6196_v3, %v6195_v46  ;;  %v5651_v39 = vmax.f32 %v8201_v8, %v5521_v22  ;;  %v5652_v42 = vmax.f32 %v8203_v63, %v5522_v55  ;;  %v5777_v52 = vmax.f32 %v5649_v32, %v8201_v8  ;;  %v8256_v26 = vpop.f32.mrf.mxu1 }
 0x3a7   :  { %v5778_v30 = vmax.f32 %v5650_v60, %v8203_v63  ;;  %v4926_v9 = vsel %vm4583_vm10, 0.0, %v4650_v19  ;;  %v5013_v49 = vmax.f32 %v8119_v45, %v4652_v48  ;;  %v5163_v50 = vrot.slane %v8136_v31, 1 }
 0x3a8   :  { %vm5905_vm3 = vcmp.gt.f32.partialorder %v5777_v52, 0.5  ;;  %v6199_v40 = vadd.f32 %v6198_v62, %v6197_v24  ;;  %v5012_v15 = vmax.f32 %v8136_v31, %v4926_v9  ;;  %v4654_v11 = vrot.slane %v8153_v44, 7  ;;  %v8261_v52 = vpop.f32.mrf.mxu0 }
 0x3a9   :  { %vm5906_vm4 = vcmp.gt.f32.partialorder %v5778_v30, 0.5  ;;  %v6033_v53 = vsel %vm5905_vm3, 0.0, %v6890_v38  ;;  %v5165_v23 = vsel %vm5096_vm8, %v5163_v50, %v5164_v43  ;;  %v5526_v36 = vmax.f32 %v5013_v49, %v5439_v2 }
 0x3aa   :  { %v6034_v45 = vsel %vm5906_vm4, 0.0, %v6890_v38  ;;  %v6200_v56 = vsel %vm3365_vm2, %v6033_v53, 0.0  ;;  %v5525_v27 = vmax.f32 %v5012_v15, %v5165_v23  ;;  %v5167_v58 = vrot.slane %v8153_v44, 1 }
 0x3ab   :  { %v6201_v31 = vadd.f32 %v6200_v56, %v6199_v40  ;;  %v5780_v37 = vmax.f32 %v5652_v42, %v5526_v36  ;;  %v6202_v12 = vsel %vm3365_vm2, %v6034_v45, 0.0  ;;  %v4653_v34 = vrot.slane %v8171_v10, 7  ;;  %v8267_v40 = vpop.f32.mrf.mxu1 }
 0x3ac   :  { %v5779_v6 = vmax.f32 %v5651_v39, %v5525_v27  ;;  %v5440_v25 = vsel %vm5096_vm8, %v5167_v58, 0.0  ;;  %v5166_v17 = vrot.slane %v8171_v10, 1  ;;  %v5653_v16 = vmax.f32 %v5525_v27, %v8201_v8 }
 0x3ad   :  { %v6203_v35 = vadd.f32 %v6202_v12, %v6201_v31  ;;  %v4655_v22 = vsel %vm4583_vm10, %v4653_v34, %v4654_v11  ;;  %v4927_v55 = vsel %vm4583_vm10, 0.0, %v4653_v34  ;;  %v5654_v21 = vmax.f32 %v5526_v36, %v8203_v63 }
 0x3ae   :  { %vm5907_vm5 = vcmp.gt.f32.partialorder %v5779_v6, 0.5  ;;  %v5014_v13 = vmax.f32 %v8171_v10, %v4927_v55  ;;  %v5015_v0 = vmax.f32 %v8153_v44, %v4655_v22  ;;  %v5168_v57 = vsel %vm5096_vm8, %v5166_v17, %v5167_v58  ;;  %v8276_v58 = vpop.f32.mrf.mxu0  ;;  %v8281_v6 = vpop.f32.mrf.mxu1 }
 0x3af   :  { %v6035_v32 = vsel %vm5907_vm5, 0.0, %v6890_v38  ;;  %vm5908_vm6 = vcmp.gt.f32.partialorder %v5780_v37, 0.5  ;;  %v4657_v60 = vrot.slane %v8188_v41, 7  ;;  %v5170_v51 = vrot.slane %v8188_v41, 1 }
 0x3b0   :  { %v6204_v1 = vsel %vm3365_vm2, %v6035_v32, 0.0  ;;  %v5527_v46 = vmax.f32 %v5014_v13, %v5168_v57  ;;  %v5528_v61 = vmax.f32 %v5015_v0, %v5440_v25  ;;  %v6036_v5 = vsel %vm5908_vm6, 0.0, %v6890_v38 }
 0x3b1   :  { %v6205_v10 = vadd.f32 %v6204_v1, %v6203_v35  ;;  %v6206_v44 = vsel %vm3365_vm2, %v6036_v5, 0.0  ;;  %v5441_v43 = vsel %vm5096_vm8, %v5170_v51, 0.0  ;;  %v4656_v19 = vrot.slane %v8205_v28, 7 }
 0x3b2   :  { %v5655_v18 = vmax.f32 %v5527_v46, %v5525_v27  ;;  %v5656_v8 = vmax.f32 %v5528_v61, %v5526_v36  ;;  %v5781_v63 = vmax.f32 %v5653_v16, %v5527_v46  ;;  %v5782_v3 = vmax.f32 %v5654_v21, %v5528_v61 }
 0x3b3   :  { %v6207_v62 = vadd.f32 %v6206_v44, %v6205_v10  ;;  %v4658_v2 = vsel %vm4583_vm10, %v4656_v19, %v4657_v60  ;;  %v4928_v48 = vsel %vm4583_vm10, 0.0, %v4656_v19  ;;  %v5169_v24 = vrot.slane %v8205_v28, 1  ;;  %v8295_v10 = vpop.f32.mrf.mxu1 }
 0x3b4   :  { %v5783_v39 = vmax.f32 %v5655_v18, 0.0  ;;  %v5784_v42 = vmax.f32 %v5656_v8, 0.0  ;;  %vm5909_vm7 = vcmp.gt.f32.partialorder %v5781_v63, 0.5  ;;  %vm5910_vm9 = vcmp.gt.f32.partialorder %v5782_v3, 0.5 }
 0x3b5   :  { %v6037_v30 = vsel %vm5909_vm7, 0.0, %v6890_v38  ;;  %v6038_v9 = vsel %vm5910_vm9, 0.0, %v6890_v38  ;;  %v5016_v49 = vmax.f32 %v8205_v28, %v4928_v48  ;;  %v5017_v50 = vmax.f32 %v8188_v41, %v4658_v2 }
 0x3b6   :  { %vm5911_vm11 = vcmp.gt.f32.partialorder %v5783_v39, 0.5  ;;  %vm5912_vm12 = vcmp.gt.f32.partialorder %v5784_v42, 0.5  ;;  %v6208_v15 = vsel %vm3365_vm2, %v6037_v30, 0.0  ;;  %v6210_v11 = vsel %vm3365_vm2, %v6038_v9, 0.0 }
 0x3b7   :  { %v6039_v53 = vsel %vm5911_vm11, 0.0, %v6890_v38  ;;  %v6040_v23 = vsel %vm5912_vm12, 0.0, %v6890_v38  ;;  %v6209_v36 = vadd.f32 %v6208_v15, %v6207_v62  ;;  %v5171_v45 = vsel %vm5096_vm8, %v5169_v24, %v5170_v51  ;;  %v4086_v51 = vpop.f32.mrf.mxu0 }
 0x3b8   :  { %v6212_v56 = vsel %vm3365_vm2, %v6039_v53, 0.0  ;;  %v6214_v28 = vsel %vm3365_vm2, %v6040_v23, 0.0  ;;  %v5529_v41 = vmax.f32 %v5016_v49, %v5171_v45  ;;  %v5530_v27 = vmax.f32 %v5017_v50, %v5441_v43  ;;  %v8308_v49 = vpop.f32.mrf.mxu1 }
 0x3b9   :  { %v6211_v31 = vadd.f32 %v6210_v11, %v6209_v36  ;;  %v4660_v37 = vrot.slane %v8222_v33, 7  ;;  %v5173_v12 = vrot.slane %v8222_v33, 1  ;;  %v4659_v34 = vrot.slane %v8236_v47, 7  ;;  %v8302_v24 = vpop.f32.mrf.mxu0 }
 0x3ba   :  { %v5657_v25 = vmax.f32 %v5529_v41, 0.0  ;;  %v5658_v17 = vmax.f32 %v5530_v27, 0.0  ;;  %v5172_v16 = vrot.slane %v8236_v47, 1  ;;  %v4663_v35 = vrot.slane %v8251_v20, 7 }
 0x3bb   :  { %v6213_v22 = vadd.f32 %v6212_v56, %v6211_v31  ;;  %v5442_v55 = vsel %vm5096_vm8, %v5173_v12, 0.0  ;;  %v4661_v21 = vsel %vm4583_vm10, %v4659_v34, %v4660_v37  ;;  %v4929_v13 = vsel %vm4583_vm10, 0.0, %v4659_v34  ;;  %v8323_v37 = vpop.f32.mrf.mxu1 }
 0x3bc   :  { %v5018_v0 = vmax.f32 %v8236_v47, %v4929_v13  ;;  %v5019_v57 = vmax.f32 %v8222_v33, %v4661_v21  ;;  %v5174_v32 = vsel %vm5096_vm8, %v5172_v16, %v5173_v12  ;;  %v5176_v60 = vrot.slane %v8251_v20, 1 }
 0x3bd   :  { %v6215_v1 = vadd.f32 %v6214_v28, %v6213_v22  ;;  %v4662_v46 = vrot.slane %v8261_v52, 7  ;;  %v5175_v61 = vrot.slane %v8261_v52, 1  ;;  %v4666_v5 = vrot.slane %v8276_v58, 7  ;;  %v4096_v28 = vpop.f32.mrf.mxu0 }
 0x3be   :  { %v5531_v44 = vmax.f32 %v5018_v0, %v5174_v32  ;;  %v5532_v43 = vmax.f32 %v5019_v57, %v5442_v55  ;;  %v5443_v47 = vsel %vm5096_vm8, %v5176_v60, 0.0  ;;  %v5179_v33 = vrot.slane %v8276_v58, 1 }
 0x3bf   :  { %v4664_v19 = vsel %vm4583_vm10, %v4662_v46, %v4663_v35  ;;  %v4930_v18 = vsel %vm4583_vm10, 0.0, %v4662_v46  ;;  %v5177_v8 = vsel %vm5096_vm8, %v5175_v61, %v5176_v60  ;;  %v4665_v63 = vrot.slane %v4086_v51, 7  ;;  %v6756_v0 = vpop.f32.mrf.mxu0 }
 0x3c0   :  { %v5659_v3 = vmax.f32 %v5531_v44, %v5529_v41  ;;  %v5660_v62 = vmax.f32 %v5532_v43, %v5530_v27  ;;  %v5785_v2 = vmax.f32 %v5657_v25, %v5531_v44  ;;  %v5786_v48 = vmax.f32 %v5658_v17, %v5532_v43 }
 0x3c1   :  { %v5020_v39 = vmax.f32 %v8261_v52, %v4930_v18  ;;  %v5021_v42 = vmax.f32 %v8251_v20, %v4664_v19  ;;  %v5444_v30 = vsel %vm5096_vm8, %v5179_v33, 0.0  ;;  %v4667_v9 = vsel %vm4583_vm10, %v4665_v63, %v4666_v5 }
 0x3c2   :  { %vm5913_vm13 = vcmp.gt.f32.partialorder %v5785_v2, 0.5  ;;  %vm5914_vm14 = vcmp.gt.f32.partialorder %v5786_v48, 0.5  ;;  %v4931_v50 = vsel %vm4583_vm10, 0.0, %v4665_v63  ;;  %v5023_v15 = vmax.f32 %v8276_v58, %v4667_v9  ;;  %v4106_v63 = vpop.f32.mrf.mxu0 }
 0x3c3   :  { %v6041_v11 = vsel %vm5913_vm13, 0.0, %v6890_v38  ;;  %v6042_v53 = vsel %vm5914_vm14, 0.0, %v6890_v38  ;;  %v8314_v23 = vmax.f32 %v5020_v39, %v5177_v8  ;;  %v8316_v52 = vmax.f32 %v5021_v42, %v5443_v47 }
 0x3c4   :  { %v6216_v20 = vsel %vm3365_vm2, %v6041_v11, 0.0  ;;  %v6218_v36 = vsel %vm3365_vm2, %v6042_v53, 0.0  ;;  %v5022_v45 = vmax.f32 %v4086_v51, %v4931_v50  ;;  %v5178_v56 = vrot.slane %v4086_v51, 1 }
 0x3c5   :  { %v6217_v41 = vadd.f32 %v6216_v20, %v6215_v1  ;;  %v5661_v27 = vmax.f32 %v8314_v23, %v5531_v44  ;;  %v5662_v58 = vmax.f32 %v8316_v52, %v5532_v43  ;;  %v5787_v31 = vmax.f32 %v5659_v3, %v8314_v23  ;;  %v8342_v1 = vpop.f32.mrf.mxu1 }
 0x3c6   :  { %v5788_v12 = vmax.f32 %v5660_v62, %v8316_v52  ;;  %v5180_v34 = vsel %vm5096_vm8, %v5178_v56, %v5179_v33  ;;  %v8327_v25 = vmax.f32 %v5023_v15, %v5444_v30  ;;  %v4669_v17 = vrot.slane %v8302_v24, 7 }
 0x3c7   :  { %vm5915_vm15 = vcmp.gt.f32.partialorder %v5787_v31, 0.5  ;;  %v6219_v16 = vadd.f32 %v6218_v36, %v6217_v41  ;;  %v8330_v35 = vmax.f32 %v5022_v45, %v5180_v34  ;;  %v5182_v22 = vrot.slane %v8302_v24, 1  ;;  %v8353_v39 = vpop.f32.mrf.mxu1 }
 0x3c8   :  { %vm5916_vm0 = vcmp.gt.f32.partialorder %v5788_v12, 0.5  ;;  %v6043_v55 = vsel %vm5915_vm15, 0.0, %v6890_v38  ;;  %v5664_v21 = vmax.f32 %v8327_v25, %v8316_v52  ;;  %v5790_v13 = vmax.f32 %v5662_v58, %v8327_v25 }
 0x3c9   :  { %v6044_v57 = vsel %vm5916_vm0, 0.0, %v6890_v38  ;;  %v6220_v32 = vsel %vm3365_vm2, %v6043_v55, 0.0  ;;  %v5663_v60 = vmax.f32 %v8330_v35, %v8314_v23  ;;  %v5789_v51 = vmax.f32 %v5661_v27, %v8330_v35  ;;  %v8367_v27 = vpop.f32.mrf.mxu0  ;;  %v8369_v58 = vpop.f32.mrf.mxu1 }
 0x3ca   :  { %v6221_v46 = vadd.f32 %v6220_v32, %v6219_v16  ;;  %vm5918_vm1 = vcmp.gt.f32.partialorder %v5790_v13, 0.5  ;;  %v6222_v61 = vsel %vm3365_vm2, %v6044_v57, 0.0  ;;  %v5445_v5 = vsel %vm5096_vm8, %v5182_v22, 0.0 }
 0x3cb   :  { %vm5917_vm3 = vcmp.gt.f32.partialorder %v5789_v51, 0.5  ;;  %v6046_v44 = vsel %vm5918_vm1, 0.0, %v6890_v38  ;;  %v4668_v43 = vrot.slane %v4096_v28, 7  ;;  %v5181_v47 = vrot.slane %v4096_v28, 1 }
 0x3cc   :  { %v6045_v33 = vsel %vm5917_vm3, 0.0, %v6890_v38  ;;  %v6223_v19 = vadd.f32 %v6222_v61, %v6221_v46  ;;  %v6226_v18 = vsel %vm3365_vm2, %v6046_v44, 0.0  ;;  %v4672_v8 = vrot.slane %v6756_v0, 7 }
 0x3cd   :  { %v6224_v3 = vsel %vm3365_vm2, %v6045_v33, 0.0  ;;  %v4670_v62 = vsel %vm4583_vm10, %v4668_v43, %v4669_v17  ;;  %v4932_v2 = vsel %vm4583_vm10, 0.0, %v4668_v43  ;;  %v5183_v48 = vsel %vm5096_vm8, %v5181_v47, %v5182_v22 }
 0x3ce   :  { %v6225_v42 = vadd.f32 %v6224_v3, %v6223_v19  ;;  %v5024_v30 = vmax.f32 %v4096_v28, %v4932_v2  ;;  %v5025_v9 = vmax.f32 %v8302_v24, %v4670_v62  ;;  %v5185_v50 = vrot.slane %v6756_v0, 1  ;;  %v4116_v19 = vpop.f32.mrf.mxu0 }
 0x3cf   :  { %v4681_v15 = vrot.slane %v8159_v54, 7  ;;  %v5194_v11 = vrot.slane %v8159_v54, 1  ;;  %v4671_v53 = vrot.slane %v4106_v63, 7  ;;  %v5184_v23 = vrot.slane %v4106_v63, 1 }
 0x3d0   :  { %v8358_v52 = vmax.f32 %v5024_v30, %v5183_v48  ;;  %v8360_v20 = vmax.f32 %v5025_v9, %v5445_v5  ;;  %v6227_v36 = vadd.f32 %v6226_v18, %v6225_v42  ;;  %v5446_v45 = vsel %vm5096_vm8, %v5185_v50, 0.0 }
 0x3d1   :  { %v5449_v56 = vsel %vm5096_vm8, %v5194_v11, 0.0  ;;  %v4673_v28 = vsel %vm4583_vm10, %v4671_v53, %v4672_v8  ;;  %v4933_v24 = vsel %vm4583_vm10, 0.0, %v4671_v53  ;;  %v5186_v41 = vsel %vm5096_vm8, %v5184_v23, %v5185_v50  ;;  %v6762_v53 = vpop.f32.mrf.mxu0 }
 0x3d2   :  { %v5665_v31 = vmax.f32 %v8358_v52, %v8330_v35  ;;  %v5666_v12 = vmax.f32 %v8360_v20, %v8327_v25  ;;  %v5791_v34 = vmax.f32 %v5663_v60, %v8358_v52  ;;  %v5792_v17 = vmax.f32 %v5664_v21, %v8360_v20  ;;  %v8387_v21 = vpop.f32.mrf.mxu1 }
 0x3d3   :  { %v5026_v16 = vmax.f32 %v4106_v63, %v4933_v24  ;;  %v5027_v22 = vmax.f32 %v6756_v0, %v4673_v28  ;;  %v4680_v55 = vrot.slane %v8177_v14, 7  ;;  %v5193_v13 = vrot.slane %v8177_v14, 1 }
 0x3d4   :  { %vm5919_vm4 = vcmp.gt.f32.partialorder %v5791_v34, 0.5  ;;  %vm5920_vm5 = vcmp.gt.f32.partialorder %v5792_v17, 0.5  ;;  %v4675_v57 = vrot.slane %v8367_v27, 7  ;;  %v5188_v32 = vrot.slane %v8367_v27, 1  ;;  %v8404_v42 = vpop.f32.mrf.mxu1 }
 0x3d5   :  { %v6047_v35 = vsel %vm5919_vm4, 0.0, %v6890_v38  ;;  %v6048_v25 = vsel %vm5920_vm5, 0.0, %v6890_v38  ;;  %v8383_v51 = vmax.f32 %v5026_v16, %v5186_v41  ;;  %v8385_v60 = vmax.f32 %v5027_v22, %v5446_v45 }
 0x3d6   :  { %v6228_v0 = vsel %vm3365_vm2, %v6047_v35, 0.0  ;;  %v6230_v46 = vsel %vm3365_vm2, %v6048_v25, 0.0  ;;  %v4682_v61 = vsel %vm4583_vm10, %v4680_v55, %v4681_v15  ;;  %v4936_v5 = vsel %vm4583_vm10, 0.0, %v4680_v55 }
 0x3d7   :  { %v6229_v44 = vadd.f32 %v6228_v0, %v6227_v36  ;;  %v5667_v43 = vmax.f32 %v8383_v51, %v8358_v52  ;;  %v5668_v47 = vmax.f32 %v8385_v60, %v8360_v20  ;;  %v5793_v33 = vmax.f32 %v5665_v31, %v8383_v51  ;;  %v8422_v31 = vpop.f32.mrf.mxu1 }
 0x3d8   :  { %v5794_v18 = vmax.f32 %v5666_v12, %v8385_v60  ;;  %v5032_v8 = vmax.f32 %v8177_v14, %v4936_v5  ;;  %v5033_v63 = vmax.f32 %v8159_v54, %v4682_v61  ;;  %v5195_v3 = vsel %vm5096_vm8, %v5193_v13, %v5194_v11 }
 0x3d9   :  { %vm5921_vm6 = vcmp.gt.f32.partialorder %v5793_v33, 0.5  ;;  %v6231_v62 = vadd.f32 %v6230_v46, %v6229_v44  ;;  %v5447_v2 = vsel %vm5096_vm8, %v5188_v32, 0.0  ;;  %v4684_v48 = vrot.slane %v8192_v4, 7  ;;  %v8435_v33 = vpop.f32.mrf.mxu1 }
 0x3da   :  { %vm5922_vm7 = vcmp.gt.f32.partialorder %v5794_v18, 0.5  ;;  %v6049_v30 = vsel %vm5921_vm6, 0.0, %v6890_v38  ;;  %v8407_v9 = vmax.f32 %v5032_v8, %v5195_v3  ;;  %v8409_v50 = vmax.f32 %v5033_v63, %v5449_v56 }
 0x3db   :  { %v6050_v14 = vsel %vm5922_vm7, 0.0, %v6890_v38  ;;  %v6232_v54 = vsel %vm3365_vm2, %v6049_v30, 0.0  ;;  %v5197_v15 = vrot.slane %v8192_v4, 1  ;;  %v4674_v11 = vrot.slane %v4116_v19, 7 }
 0x3dc   :  { %v8414_v23 = vadd.f32 %v6232_v54, %v6231_v62  ;;  %v5673_v52 = vmax.f32 %v8407_v9, 0.0  ;;  %v5674_v36 = vmax.f32 %v8409_v50, 0.0  ;;  %v5187_v45 = vrot.slane %v4116_v19, 1 }
 0x3dd   :  { %v5450_v28 = vsel %vm5096_vm8, %v5197_v15, 0.0  ;;  %v4676_v56 = vsel %vm4583_vm10, %v4674_v11, %v4675_v57  ;;  %v4934_v24 = vsel %vm4583_vm10, 0.0, %v4674_v11  ;;  %v4683_v41 = vrot.slane %v8211_v59, 7  ;;  %v4126_v57 = vpop.f32.mrf.mxu0 }
 0x3de   :  { %v5028_v12 = vmax.f32 %v4116_v19, %v4934_v24  ;;  %v5029_v34 = vmax.f32 %v8367_v27, %v4676_v56  ;;  %v5189_v17 = vsel %vm5096_vm8, %v5187_v45, %v5188_v32  ;;  %v5196_v16 = vrot.slane %v8211_v59, 1 }
 0x3df   :  { %v4685_v22 = vsel %vm4583_vm10, %v4683_v41, %v4684_v48  ;;  %v4937_v55 = vsel %vm4583_vm10, 0.0, %v4683_v41  ;;  %v4678_v13 = vrot.slane %v6762_v53, 7  ;;  %v5191_v35 = vrot.slane %v6762_v53, 1 }
 0x3e0   :  { %v5541_v25 = vmax.f32 %v5028_v12, %v5189_v17  ;;  %v5542_v0 = vmax.f32 %v5029_v34, %v5447_v2  ;;  %v5034_v46 = vmax.f32 %v8211_v59, %v4937_v55  ;;  %v5035_v61 = vmax.f32 %v8192_v4, %v4685_v22 }
 0x3e1   :  { %v5198_v5 = vsel %vm5096_vm8, %v5196_v16, %v5197_v15  ;;  %v5448_v27 = vsel %vm5096_vm8, %v5191_v35, 0.0  ;;  %v4687_v32 = vrot.slane %v8226_v29, 7  ;;  %v5200_v44 = vrot.slane %v8226_v29, 1 }
 0x3e2   :  { %v5795_v19 = vmax.f32 %v5667_v43, %v5541_v25  ;;  %v8437_v18 = vmax.f32 %v5034_v46, %v5198_v5  ;;  %v8439_v8 = vmax.f32 %v5035_v61, %v5450_v28  ;;  %v4677_v63 = vrot.slane %v4126_v57, 7 }
 0x3e3   :  { %v8444_v4 = vsel %vm5096_vm8, %v5200_v44, 0.0  ;;  %v5190_v59 = vrot.slane %v4126_v57, 1  ;;  %v5669_v3 = vmax.f32 %v5541_v25, %v8383_v51  ;;  %v5670_v62 = vmax.f32 %v5542_v0, %v8385_v60  ;;  %v8457_v51 = vpop.f32.mrf.mxu1 }
 0x3e4   :  { %vm5923_vm9 = vcmp.gt.f32.partialorder %v5795_v19, 0.5  ;;  %v5675_v2 = vmax.f32 %v8437_v18, %v8407_v9  ;;  %v5676_v43 = vmax.f32 %v8439_v8, %v8409_v50  ;;  %v5801_v48 = vmax.f32 %v5673_v52, %v8437_v18 }
 0x3e5   :  { %v6051_v30 = vsel %vm5923_vm9, 0.0, %v6890_v38  ;;  %v5802_v54 = vmax.f32 %v5674_v36, %v8439_v8  ;;  %v4679_v15 = vsel %vm4583_vm10, %v4677_v63, %v4678_v13  ;;  %v4935_v11 = vsel %vm4583_vm10, 0.0, %v4677_v63  ;;  %v8472_v55 = vpop.f32.mrf.mxu1 }
 0x3e6   :  { %v6236_v45 = vsel %vm3365_vm2, %v6051_v30, 0.0  ;;  %vm5929_vm11 = vcmp.gt.f32.partialorder %v5801_v48, 0.5  ;;  %v5030_v28 = vmax.f32 %v4126_v57, %v4935_v11  ;;  %v5031_v56 = vmax.f32 %v6762_v53, %v4679_v15 }
 0x3e7   :  { %vm5930_vm12 = vcmp.gt.f32.partialorder %v5802_v54, 0.5  ;;  %v6057_v24 = vsel %vm5929_vm11, 0.0, %v6890_v38  ;;  %v5192_v52 = vsel %vm5096_vm8, %v5190_v59, %v5191_v35  ;;  %v5796_v36 = vmax.f32 %v5668_v47, %v5542_v0  ;;  %v8481_v63 = vpop.f32.mrf.mxu1 }
 0x3e8   :  { %v6058_v41 = vsel %vm5930_vm12, 0.0, %v6890_v38  ;;  %v8467_v12 = vsel %vm3365_vm2, %v6057_v24, 0.0  ;;  %v5543_v34 = vmax.f32 %v5030_v28, %v5192_v52  ;;  %v5544_v17 = vmax.f32 %v5031_v56, %v5448_v27 }
 0x3e9   :  { %vm5924_vm13 = vcmp.gt.f32.partialorder %v5796_v36, 0.5  ;;  %v6234_v16 = vsel %vm3365_vm2, %v6050_v14, 0.0  ;;  %v4686_v53 = vrot.slane %v8241_v7, 7  ;;  %v5199_v22 = vrot.slane %v8241_v7, 1  ;;  %v8498_v52 = vpop.f32.mrf.mxu1 }
 0x3ea   :  { %v5671_v13 = vmax.f32 %v5543_v34, %v5541_v25  ;;  %v5672_v35 = vmax.f32 %v5544_v17, %v5542_v0  ;;  %v5797_v20 = vmax.f32 %v5669_v3, %v5543_v34  ;;  %v5798_v60 = vmax.f32 %v5670_v62, %v5544_v17 }
 0x3eb   :  { %v6052_v47 = vsel %vm5924_vm13, 0.0, %v6890_v38  ;;  %v6235_v57 = vadd.f32 %v6234_v16, %v8414_v23  ;;  %v4688_v46 = vsel %vm4583_vm10, %v4686_v53, %v4687_v32  ;;  %v4938_v61 = vsel %vm4583_vm10, 0.0, %v4686_v53  ;;  %v8519_v9 = vpop.f32.mrf.mxu1 }
 0x3ec   :  { %v5799_v5 = vmax.f32 %v5671_v13, 0.0  ;;  %v5800_v14 = vmax.f32 %v5672_v35, 0.0  ;;  %vm5925_vm14 = vcmp.gt.f32.partialorder %v5797_v20, 0.5  ;;  %vm5926_vm15 = vcmp.gt.f32.partialorder %v5798_v60, 0.5 }
 0x3ed   :  { %v6053_v27 = vsel %vm5925_vm14, 0.0, %v6890_v38  ;;  %v6054_v19 = vsel %vm5926_vm15, 0.0, %v6890_v38  ;;  %v6237_v25 = vadd.f32 %v6236_v45, %v6235_v57  ;;  %v6238_v0 = vsel %vm3365_vm2, %v6052_v47, 0.0 }
 0x3ee   :  { %vm5927_vm0 = vcmp.gt.f32.partialorder %v5799_v5, 0.5  ;;  %vm5928_vm1 = vcmp.gt.f32.partialorder %v5800_v14, 0.5  ;;  %v6240_v23 = vsel %vm3365_vm2, %v6053_v27, 0.0  ;;  %v6242_v32 = vsel %vm3365_vm2, %v6054_v19, 0.0 }
 0x3ef   :  { %v6055_v59 = vsel %vm5927_vm0, 0.0, %v6890_v38  ;;  %v6056_v3 = vsel %vm5928_vm1, 0.0, %v6890_v38  ;;  %v6239_v62 = vadd.f32 %v6238_v0, %v6237_v25  ;;  %v5036_v48 = vmax.f32 %v8241_v7, %v4938_v61  ;;  %v8537_v25 = vpop.f32.mrf.mxu1 }
 0x3f0   :  { %v6244_v30 = vsel %vm3365_vm2, %v6055_v59, 0.0  ;;  %v6246_v54 = vsel %vm3365_vm2, %v6056_v3, 0.0  ;;  %v5037_v15 = vmax.f32 %v8226_v29, %v4688_v46  ;;  %v5201_v11 = vsel %vm5096_vm8, %v5199_v22, %v5200_v44 }
 0x3f1   :  { %v6241_v45 = vadd.f32 %v6240_v23, %v6239_v62  ;;  %v8494_v28 = vmax.f32 %v5036_v48, %v5201_v11  ;;  %v6250_v56 = vsel %vm3365_vm2, %v6058_v41, 0.0  ;;  %v4690_v24 = vrot.slane %v8256_v26, 7 }
 0x3f2   :  { %v5550_v7 = vmax.f32 %v5037_v15, %v8444_v4  ;;  %v5203_v36 = vrot.slane %v8256_v26, 1  ;;  %v4689_v34 = vrot.slane %v8267_v40, 7  ;;  %v5202_v17 = vrot.slane %v8267_v40, 1 }
 0x3f3   :  { %v6243_v29 = vadd.f32 %v6242_v32, %v6241_v45  ;;  %v5677_v44 = vmax.f32 %v8494_v28, %v8437_v18  ;;  %v5803_v41 = vmax.f32 %v5675_v2, %v8494_v28  ;;  %v4693_v16 = vrot.slane %v8281_v6, 7 }
 0x3f4   :  { %v5678_v53 = vmax.f32 %v5550_v7, %v8439_v8  ;;  %v5804_v4 = vmax.f32 %v5676_v43, %v5550_v7  ;;  %v5452_v22 = vsel %vm5096_vm8, %v5203_v36, 0.0  ;;  %v4691_v13 = vsel %vm4583_vm10, %v4689_v34, %v4690_v24 }
 0x3f5   :  { %v6245_v35 = vadd.f32 %v6244_v30, %v6243_v29  ;;  %vm5931_vm3 = vcmp.gt.f32.partialorder %v5803_v41, 0.5  ;;  %v4939_v20 = vsel %vm4583_vm10, 0.0, %v4689_v34  ;;  %v5039_v60 = vmax.f32 %v8256_v26, %v4691_v13 }
 0x3f6   :  { %vm5932_vm4 = vcmp.gt.f32.partialorder %v5804_v4, 0.5  ;;  %v6059_v18 = vsel %vm5931_vm3, 0.0, %v6890_v38  ;;  %v5038_v2 = vmax.f32 %v8267_v40, %v4939_v20  ;;  %v5204_v50 = vsel %vm5096_vm8, %v5202_v17, %v5203_v36 }
 0x3f7   :  { %v6247_v8 = vadd.f32 %v6246_v54, %v6245_v35  ;;  %v6060_v43 = vsel %vm5932_vm4, 0.0, %v6890_v38  ;;  %v6252_v47 = vsel %vm3365_vm2, %v6059_v18, 0.0  ;;  %v8526_v57 = vmax.f32 %v5039_v60, %v5452_v22 }
 0x3f8   :  { %v8528_v46 = vmax.f32 %v5038_v2, %v5204_v50  ;;  %v6254_v26 = vsel %vm3365_vm2, %v6060_v43, 0.0  ;;  %v5206_v61 = vrot.slane %v8281_v6, 1  ;;  %v4692_v5 = vrot.slane %v8295_v10, 7 }
 0x3f9   :  { %v6249_v14 = vadd.f32 %v8467_v12, %v6247_v8  ;;  %v5680_v40 = vmax.f32 %v8526_v57, %v5550_v7  ;;  %v5806_v27 = vmax.f32 %v5678_v53, %v8526_v57  ;;  %v5205_v19 = vrot.slane %v8295_v10, 1 }
 0x3fa   :  { %v5679_v0 = vmax.f32 %v8528_v46, %v8494_v28  ;;  %v5805_v23 = vmax.f32 %v5677_v44, %v8528_v46  ;;  %v5453_v32 = vsel %vm5096_vm8, %v5206_v61, 0.0  ;;  %v4694_v59 = vsel %vm4583_vm10, %v4692_v5, %v4693_v16 }
 0x3fb   :  { %v6251_v3 = vadd.f32 %v6250_v56, %v6249_v14  ;;  %vm5934_vm5 = vcmp.gt.f32.partialorder %v5806_v27, 0.5  ;;  %v4940_v12 = vsel %vm4583_vm10, 0.0, %v4692_v5  ;;  %v5041_v62 = vmax.f32 %v8281_v6, %v4694_v59  ;;  %v8553_v56 = vpop.f32.mrf.mxu1 }
 0x3fc   :  { %vm5933_vm6 = vcmp.gt.f32.partialorder %v5805_v23, 0.5  ;;  %v6062_v48 = vsel %vm5934_vm5, 0.0, %v6890_v38  ;;  %v5040_v30 = vmax.f32 %v8295_v10, %v4940_v12  ;;  %v5207_v54 = vsel %vm5096_vm8, %v5205_v19, %v5206_v61 }
 0x3fd   :  { %v6253_v15 = vadd.f32 %v6252_v47, %v6251_v3  ;;  %v6061_v11 = vsel %vm5933_vm6, 0.0, %v6890_v38  ;;  %v8550_v45 = vmax.f32 %v5041_v62, %v5453_v32  ;;  %v6258_v28 = vsel %vm3365_vm2, %v6062_v48, 0.0  ;;  %v8567_v35 = vpop.f32.mrf.mxu1 }
 0x3fe   :  { %v6256_v24 = vsel %vm3365_vm2, %v6061_v11, 0.0  ;;  %v5553_v7 = vmax.f32 %v5040_v30, %v5207_v54  ;;  %v4696_v6 = vrot.slane %v8308_v49, 7  ;;  %v5209_v36 = vrot.slane %v8308_v49, 1 }
 0x3ff   :  { %v6255_v34 = vadd.f32 %v6254_v26, %v6253_v15  ;;  %v5682_v10 = vmax.f32 %v8550_v45, %v8526_v57  ;;  %v5808_v17 = vmax.f32 %v5680_v40, %v8550_v45  ;;  %v4695_v29 = vrot.slane %v8323_v37, 7  ;;  %v8580_v14 = vpop.f32.mrf.mxu1 }
 0x400   :  { %v5681_v44 = vmax.f32 %v5553_v7, %v8528_v46  ;;  %v5807_v41 = vmax.f32 %v5679_v0, %v5553_v7  ;;  %v5454_v16 = vsel %vm5096_vm8, %v5209_v36, 0.0  ;;  %v5208_v53 = vrot.slane %v8323_v37, 1 }
 0x401   :  { %v6257_v4 = vadd.f32 %v6256_v24, %v6255_v34  ;;  %vm5936_vm7 = vcmp.gt.f32.partialorder %v5808_v17, 0.5  ;;  %v4697_v22 = vsel %vm4583_vm10, %v4695_v29, %v4696_v6  ;;  %v4941_v13 = vsel %vm4583_vm10, 0.0, %v4695_v29  ;;  %v8592_v11 = vpop.f32.mrf.mxu1 }
 0x402   :  { %vm5935_vm9 = vcmp.gt.f32.partialorder %v5807_v41, 0.5  ;;  %v6064_v20 = vsel %vm5936_vm7, 0.0, %v6890_v38  ;;  %v5042_v60 = vmax.f32 %v8323_v37, %v4941_v13  ;;  %v5043_v18 = vmax.f32 %v8308_v49, %v4697_v22 }
 0x403   :  { %v6063_v2 = vsel %vm5935_vm9, 0.0, %v6890_v38  ;;  %v6259_v50 = vadd.f32 %v6258_v28, %v6257_v4  ;;  %v5210_v8 = vsel %vm5096_vm8, %v5208_v53, %v5209_v36  ;;  %v6262_v43 = vsel %vm3365_vm2, %v6064_v20, 0.0  ;;  %v8602_v4 = vpop.f32.mrf.mxu1 }
 0x404   :  { %v6260_v47 = vsel %vm3365_vm2, %v6063_v2, 0.0  ;;  %v5555_v57 = vmax.f32 %v5042_v60, %v5210_v8  ;;  %v5556_v46 = vmax.f32 %v5043_v18, %v5454_v16  ;;  %v4699_v26 = vrot.slane %v8342_v1, 7 }
 0x405   :  { %v6261_v61 = vadd.f32 %v6260_v47, %v6259_v50  ;;  %v5212_v5 = vrot.slane %v8342_v1, 1  ;;  %v4698_v37 = vrot.slane %v8353_v39, 7  ;;  %v5211_v49 = vrot.slane %v8353_v39, 1 }
 0x406   :  { %v5683_v40 = vmax.f32 %v5555_v57, %v5553_v7  ;;  %v5684_v27 = vmax.f32 %v5556_v46, %v8550_v45  ;;  %v5809_v19 = vmax.f32 %v5681_v44, %v5555_v57  ;;  %v5810_v0 = vmax.f32 %v5682_v10, %v5556_v46 }
 0x407   :  { %v6263_v23 = vadd.f32 %v6262_v43, %v6261_v61  ;;  %v5455_v32 = vsel %vm5096_vm8, %v5212_v5, 0.0  ;;  %v4700_v59 = vsel %vm4583_vm10, %v4698_v37, %v4699_v26  ;;  %v4942_v3 = vsel %vm4583_vm10, 0.0, %v4698_v37  ;;  %v8615_v26 = vpop.f32.mrf.mxu1 }
 0x408   :  { %vm5937_vm11 = vcmp.gt.f32.partialorder %v5809_v19, 0.5  ;;  %vm5938_vm12 = vcmp.gt.f32.partialorder %v5810_v0, 0.5  ;;  %v5044_v12 = vmax.f32 %v8353_v39, %v4942_v3  ;;  %v5045_v62 = vmax.f32 %v8342_v1, %v4700_v59 }
 0x409   :  { %v6065_v48 = vsel %vm5937_vm11, 0.0, %v6890_v38  ;;  %v6066_v30 = vsel %vm5938_vm12, 0.0, %v6890_v38  ;;  %v5213_v54 = vsel %vm5096_vm8, %v5211_v49, %v5212_v5  ;;  %v4702_v15 = vrot.slane %v8369_v58, 7 }
 0x40a   :  { %v6264_v45 = vsel %vm3365_vm2, %v6065_v48, 0.0  ;;  %v5557_v28 = vmax.f32 %v5044_v12, %v5213_v54  ;;  %v5558_v24 = vmax.f32 %v5045_v62, %v5455_v32  ;;  %v6266_v7 = vsel %vm3365_vm2, %v6066_v30, 0.0  ;;  %v8624_v48 = vpop.f32.mrf.mxu1 }
 0x40b   :  { %v6265_v6 = vadd.f32 %v6264_v45, %v6263_v23  ;;  %v5215_v39 = vrot.slane %v8369_v58, 1  ;;  %v4701_v1 = vrot.slane %v8387_v21, 7  ;;  %v5214_v36 = vrot.slane %v8387_v21, 1 }
 0x40c   :  { %v5811_v34 = vmax.f32 %v5683_v40, %v5557_v28  ;;  %v5812_v10 = vmax.f32 %v5684_v27, %v5558_v24  ;;  %v5685_v17 = vmax.f32 %v5557_v28, %v5555_v57  ;;  %v5686_v29 = vmax.f32 %v5558_v24, %v5556_v46 }
 0x40d   :  { %v6267_v44 = vadd.f32 %v6266_v7, %v6265_v6  ;;  %v5456_v41 = vsel %vm5096_vm8, %v5215_v39, 0.0  ;;  %v4703_v16 = vsel %vm4583_vm10, %v4701_v1, %v4702_v15  ;;  %v4943_v53 = vsel %vm4583_vm10, 0.0, %v4701_v1 }
 0x40e   :  { %vm5939_vm13 = vcmp.gt.f32.partialorder %v5811_v34, 0.5  ;;  %v5046_v22 = vmax.f32 %v8387_v21, %v4943_v53  ;;  %v5047_v13 = vmax.f32 %v8369_v58, %v4703_v16  ;;  %v5216_v20 = vsel %vm5096_vm8, %v5214_v36, %v5215_v39 }
 0x40f   :  { %v6067_v60 = vsel %vm5939_vm13, 0.0, %v6890_v38  ;;  %vm5940_vm14 = vcmp.gt.f32.partialorder %v5812_v10, 0.5  ;;  %v4705_v18 = vrot.slane %v8404_v42, 7  ;;  %v5218_v2 = vrot.slane %v8404_v42, 1  ;;  %v8636_v10 = vpop.f32.mrf.mxu1 }
 0x410   :  { %v6268_v50 = vsel %vm3365_vm2, %v6067_v60, 0.0  ;;  %v5559_v8 = vmax.f32 %v5046_v22, %v5216_v20  ;;  %v5560_v43 = vmax.f32 %v5047_v13, %v5456_v41  ;;  %v6068_v47 = vsel %vm5940_vm14, 0.0, %v6890_v38 }
 0x411   :  { %v6269_v57 = vadd.f32 %v6268_v50, %v6267_v44  ;;  %v6270_v21 = vsel %vm3365_vm2, %v6068_v47, 0.0  ;;  %v5457_v58 = vsel %vm5096_vm8, %v5218_v2, 0.0  ;;  %v4704_v46 = vrot.slane %v8422_v31, 7 }
 0x412   :  { %v5687_v61 = vmax.f32 %v5559_v8, %v5557_v28  ;;  %v5688_v5 = vmax.f32 %v5560_v43, %v5558_v24  ;;  %v5813_v37 = vmax.f32 %v5685_v17, %v5559_v8  ;;  %v5814_v49 = vmax.f32 %v5686_v29, %v5560_v43 }
 0x413   :  { %v6271_v40 = vadd.f32 %v6270_v21, %v6269_v57  ;;  %v4706_v27 = vsel %vm4583_vm10, %v4704_v46, %v4705_v18  ;;  %v4944_v19 = vsel %vm4583_vm10, 0.0, %v4704_v46  ;;  %v5217_v0 = vrot.slane %v8422_v31, 1  ;;  %v8650_v57 = vpop.f32.mrf.mxu1 }
 0x414   :  { %v5815_v23 = vmax.f32 %v5687_v61, 0.0  ;;  %v5816_v32 = vmax.f32 %v5688_v5, 0.0  ;;  %vm5941_vm15 = vcmp.gt.f32.partialorder %v5813_v37, 0.5  ;;  %vm5942_vm0 = vcmp.gt.f32.partialorder %v5814_v49, 0.5 }
 0x415   :  { %v6069_v59 = vsel %vm5941_vm15, 0.0, %v6890_v38  ;;  %v6070_v3 = vsel %vm5942_vm0, 0.0, %v6890_v38  ;;  %v5048_v12 = vmax.f32 %v8422_v31, %v4944_v19  ;;  %v5049_v62 = vmax.f32 %v8404_v42, %v4706_v27 }
 0x416   :  { %vm5943_vm1 = vcmp.gt.f32.partialorder %v5815_v23, 0.5  ;;  %vm5944_vm3 = vcmp.gt.f32.partialorder %v5816_v32, 0.5  ;;  %v6272_v30 = vsel %vm3365_vm2, %v6069_v59, 0.0  ;;  %v6274_v54 = vsel %vm3365_vm2, %v6070_v3, 0.0  ;;  %v8662_v3 = vpop.f32.mrf.mxu1 }
 0x417   :  { %v6071_v15 = vsel %vm5943_vm1, 0.0, %v6890_v38  ;;  %v6072_v45 = vsel %vm5944_vm3, 0.0, %v6890_v38  ;;  %v6273_v28 = vadd.f32 %v6272_v30, %v6271_v40  ;;  %v5219_v24 = vsel %vm5096_vm8, %v5217_v0, %v5218_v2 }
 0x418   :  { %v6276_v7 = vsel %vm3365_vm2, %v6071_v15, 0.0  ;;  %v6278_v31 = vsel %vm3365_vm2, %v6072_v45, 0.0  ;;  %v5561_v42 = vmax.f32 %v5048_v12, %v5219_v24  ;;  %v5562_v6 = vmax.f32 %v5049_v62, %v5457_v58 }
 0x419   :  { %v6275_v39 = vadd.f32 %v6274_v54, %v6273_v28  ;;  %v4708_v1 = vrot.slane %v8435_v33, 7  ;;  %v5221_v36 = vrot.slane %v8435_v33, 1  ;;  %v4707_v34 = vrot.slane %v8457_v51, 7 }
 0x41a   :  { %v5689_v17 = vmax.f32 %v5561_v42, 0.0  ;;  %v5690_v29 = vmax.f32 %v5562_v6, 0.0  ;;  %v5220_v44 = vrot.slane %v8457_v51, 1  ;;  %v4711_v41 = vrot.slane %v8472_v55, 7 }
 0x41b   :  { %v6277_v16 = vadd.f32 %v6276_v7, %v6275_v39  ;;  %v5458_v53 = vsel %vm5096_vm8, %v5221_v36, 0.0  ;;  %v4709_v22 = vsel %vm4583_vm10, %v4707_v34, %v4708_v1  ;;  %v4945_v13 = vsel %vm4583_vm10, 0.0, %v4707_v34 }
 0x41c   :  { %v5050_v20 = vmax.f32 %v8457_v51, %v4945_v13  ;;  %v5051_v60 = vmax.f32 %v8435_v33, %v4709_v22  ;;  %v5222_v18 = vsel %vm5096_vm8, %v5220_v44, %v5221_v36  ;;  %v5224_v2 = vrot.slane %v8472_v55, 1 }
 0x41d   :  { %v6279_v50 = vadd.f32 %v6278_v31, %v6277_v16  ;;  %v4710_v8 = vrot.slane %v8481_v63, 7  ;;  %v5223_v43 = vrot.slane %v8481_v63, 1  ;;  %v4714_v47 = vrot.slane %v8498_v52, 7 }
 0x41e   :  { %v5563_v21 = vmax.f32 %v5050_v20, %v5222_v18  ;;  %v5564_v58 = vmax.f32 %v5051_v60, %v5458_v53  ;;  %v5459_v46 = vsel %vm5096_vm8, %v5224_v2, 0.0  ;;  %v5227_v51 = vrot.slane %v8498_v52, 1 }
 0x41f   :  { %v4712_v33 = vsel %vm4583_vm10, %v4710_v8, %v4711_v41  ;;  %v4946_v61 = vsel %vm4583_vm10, 0.0, %v4710_v8  ;;  %v5225_v5 = vsel %vm5096_vm8, %v5223_v43, %v5224_v2  ;;  %v4713_v37 = vrot.slane %v8519_v9, 7 }
 0x420   :  { %v5691_v49 = vmax.f32 %v5563_v21, %v5561_v42  ;;  %v5692_v40 = vmax.f32 %v5564_v58, %v5562_v6  ;;  %v5817_v27 = vmax.f32 %v5689_v17, %v5563_v21  ;;  %v5818_v19 = vmax.f32 %v5690_v29, %v5564_v58  ;;  %v8679_v6 = vpop.f32.mrf.mxu1 }
 0x421   :  { %v5052_v0 = vmax.f32 %v8481_v63, %v4946_v61  ;;  %v5053_v23 = vmax.f32 %v8472_v55, %v4712_v33  ;;  %v5460_v32 = vsel %vm5096_vm8, %v5227_v51, 0.0  ;;  %v4715_v59 = vsel %vm4583_vm10, %v4713_v37, %v4714_v47 }
 0x422   :  { %vm5945_vm4 = vcmp.gt.f32.partialorder %v5817_v27, 0.5  ;;  %vm5946_vm5 = vcmp.gt.f32.partialorder %v5818_v19, 0.5  ;;  %v4947_v12 = vsel %vm4583_vm10, 0.0, %v4713_v37  ;;  %v5055_v62 = vmax.f32 %v8498_v52, %v4715_v59  ;;  %v8698_v60 = vpop.f32.mrf.mxu1 }
 0x423   :  { %v6073_v30 = vsel %vm5945_vm4, 0.0, %v6890_v38  ;;  %v6074_v54 = vsel %vm5946_vm5, 0.0, %v6890_v38  ;;  %v8668_v15 = vmax.f32 %v5052_v0, %v5225_v5  ;;  %v8670_v63 = vmax.f32 %v5053_v23, %v5459_v46 }
 0x424   :  { %v6280_v55 = vsel %vm3365_vm2, %v6073_v30, 0.0  ;;  %v6282_v45 = vsel %vm3365_vm2, %v6074_v54, 0.0  ;;  %v5054_v28 = vmax.f32 %v8519_v9, %v4947_v12  ;;  %v5226_v24 = vrot.slane %v8519_v9, 1 }
 0x425   :  { %v6281_v7 = vadd.f32 %v6280_v55, %v6279_v50  ;;  %v5693_v31 = vmax.f32 %v8668_v15, %v5563_v21  ;;  %v5694_v52 = vmax.f32 %v8670_v63, %v5564_v58  ;;  %v5819_v42 = vmax.f32 %v5691_v49, %v8668_v15  ;;  %v8712_v49 = vpop.f32.mrf.mxu1 }
 0x426   :  { %v5820_v39 = vmax.f32 %v5692_v40, %v8670_v63  ;;  %v5228_v1 = vsel %vm5096_vm8, %v5226_v24, %v5227_v51  ;;  %v8683_v36 = vmax.f32 %v5055_v62, %v5460_v32  ;;  %v4717_v34 = vrot.slane %v8537_v25, 7 }
 0x427   :  { %vm5947_vm6 = vcmp.gt.f32.partialorder %v5819_v42, 0.5  ;;  %v6283_v17 = vadd.f32 %v6282_v45, %v6281_v7  ;;  %v8686_v9 = vmax.f32 %v5054_v28, %v5228_v1  ;;  %v5230_v29 = vrot.slane %v8537_v25, 1  ;;  %v8726_v45 = vpop.f32.mrf.mxu1 }
 0x428   :  { %vm5948_vm7 = vcmp.gt.f32.partialorder %v5820_v39, 0.5  ;;  %v6075_v44 = vsel %vm5947_vm6, 0.0, %v6890_v38  ;;  %v5696_v41 = vmax.f32 %v8683_v36, %v8670_v63  ;;  %v5822_v16 = vmax.f32 %v5694_v52, %v8683_v36 }
 0x429   :  { %v6076_v53 = vsel %vm5948_vm7, 0.0, %v6890_v38  ;;  %v6284_v22 = vsel %vm3365_vm2, %v6075_v44, 0.0  ;;  %v5695_v13 = vmax.f32 %v8686_v9, %v8668_v15  ;;  %v5821_v20 = vmax.f32 %v5693_v31, %v8686_v9 }
 0x42a   :  { %v6285_v18 = vadd.f32 %v6284_v22, %v6283_v17  ;;  %vm5950_vm9 = vcmp.gt.f32.partialorder %v5822_v16, 0.5  ;;  %v6286_v2 = vsel %vm3365_vm2, %v6076_v53, 0.0  ;;  %v5461_v50 = vsel %vm5096_vm8, %v5230_v29, 0.0 }
 0x42b   :  { %vm5949_vm11 = vcmp.gt.f32.partialorder %v5821_v20, 0.5  ;;  %v6078_v8 = vsel %vm5950_vm9, 0.0, %v6890_v38  ;;  %v4716_v43 = vrot.slane %v8553_v56, 7  ;;  %v5229_v47 = vrot.slane %v8553_v56, 1 }
 0x42c   :  { %v6077_v21 = vsel %vm5949_vm11, 0.0, %v6890_v38  ;;  %v6287_v58 = vadd.f32 %v6286_v2, %v6285_v18  ;;  %v6290_v46 = vsel %vm3365_vm2, %v6078_v8, 0.0  ;;  %v4720_v51 = vrot.slane %v8567_v35, 7 }
 0x42d   :  { %v6288_v33 = vsel %vm3365_vm2, %v6077_v21, 0.0  ;;  %v4718_v61 = vsel %vm4583_vm10, %v4716_v43, %v4717_v34  ;;  %v4948_v5 = vsel %vm4583_vm10, 0.0, %v4716_v43  ;;  %v5231_v37 = vsel %vm5096_vm8, %v5229_v47, %v5230_v29 }
 0x42e   :  { %v6289_v40 = vadd.f32 %v6288_v33, %v6287_v58  ;;  %v5056_v27 = vmax.f32 %v8553_v56, %v4948_v5  ;;  %v5057_v19 = vmax.f32 %v8537_v25, %v4718_v61  ;;  %v5233_v0 = vrot.slane %v8567_v35, 1 }
 0x42f   :  { %v4719_v23 = vrot.slane %v8580_v14, 7  ;;  %v5232_v32 = vrot.slane %v8580_v14, 1  ;;  %v4723_v59 = vrot.slane %v8592_v11, 7  ;;  %v5236_v12 = vrot.slane %v8592_v11, 1 }
 0x430   :  { %v5569_v62 = vmax.f32 %v5056_v27, %v5231_v37  ;;  %v5570_v30 = vmax.f32 %v5057_v19, %v5461_v50  ;;  %v6291_v54 = vadd.f32 %v6290_v46, %v6289_v40  ;;  %v5462_v15 = vsel %vm5096_vm8, %v5233_v0, 0.0 }
 0x431   :  { %v4721_v63 = vsel %vm4583_vm10, %v4719_v23, %v4720_v51  ;;  %v4949_v56 = vsel %vm4583_vm10, 0.0, %v4719_v23  ;;  %v5234_v25 = vsel %vm5096_vm8, %v5232_v32, %v5233_v0  ;;  %v5463_v55 = vsel %vm5096_vm8, %v5236_v12, 0.0 }
 0x432   :  { %v5697_v28 = vmax.f32 %v5569_v62, %v8686_v9  ;;  %v5698_v24 = vmax.f32 %v5570_v30, %v8683_v36  ;;  %v5823_v7 = vmax.f32 %v5695_v13, %v5569_v62  ;;  %v5824_v31 = vmax.f32 %v5696_v41, %v5570_v30  ;;  %v8738_v41 = vpop.f32.mrf.mxu1 }
 0x433   :  { %v5058_v52 = vmax.f32 %v8580_v14, %v4949_v56  ;;  %v5059_v42 = vmax.f32 %v8567_v35, %v4721_v63  ;;  %v4722_v39 = vrot.slane %v8602_v4, 7  ;;  %v5235_v1 = vrot.slane %v8602_v4, 1 }
 0x434   :  { %vm5951_vm12 = vcmp.gt.f32.partialorder %v5823_v7, 0.5  ;;  %vm5952_vm13 = vcmp.gt.f32.partialorder %v5824_v31, 0.5  ;;  %v4726_v34 = vrot.slane %v8615_v26, 7  ;;  %v5239_v17 = vrot.slane %v8615_v26, 1  ;;  %v8749_v46 = vpop.f32.mrf.mxu1 }
 0x435   :  { %v6079_v9 = vsel %vm5951_vm12, 0.0, %v6890_v38  ;;  %v6080_v36 = vsel %vm5952_vm13, 0.0, %v6890_v38  ;;  %v5571_v29 = vmax.f32 %v5058_v52, %v5234_v25  ;;  %v5572_v44 = vmax.f32 %v5059_v42, %v5462_v15 }
 0x436   :  { %v6292_v35 = vsel %vm3365_vm2, %v6079_v9, 0.0  ;;  %v6294_v14 = vsel %vm3365_vm2, %v6080_v36, 0.0  ;;  %v4724_v16 = vsel %vm4583_vm10, %v4722_v39, %v4723_v59  ;;  %v4950_v53 = vsel %vm4583_vm10, 0.0, %v4722_v39 }
 0x437   :  { %v6293_v22 = vadd.f32 %v6292_v35, %v6291_v54  ;;  %v5699_v13 = vmax.f32 %v5571_v29, %v5569_v62  ;;  %v5700_v20 = vmax.f32 %v5572_v44, %v5570_v30  ;;  %v5825_v18 = vmax.f32 %v5697_v28, %v5571_v29  ;;  %v8760_v62 = vpop.f32.mrf.mxu1 }
 0x438   :  { %v5826_v2 = vmax.f32 %v5698_v24, %v5572_v44  ;;  %v5060_v50 = vmax.f32 %v8602_v4, %v4950_v53  ;;  %v5061_v8 = vmax.f32 %v8592_v11, %v4724_v16  ;;  %v5237_v43 = vsel %vm5096_vm8, %v5235_v1, %v5236_v12 }
 0x439   :  { %vm5953_vm14 = vcmp.gt.f32.partialorder %v5825_v18, 0.5  ;;  %v6295_v47 = vadd.f32 %v6294_v14, %v6293_v22  ;;  %v5464_v21 = vsel %vm5096_vm8, %v5239_v17, 0.0  ;;  %v4725_v58 = vrot.slane %v8624_v48, 7  ;;  %v8769_v42 = vpop.f32.mrf.mxu1 }
 0x43a   :  { %vm5954_vm15 = vcmp.gt.f32.partialorder %v5826_v2, 0.5  ;;  %v6081_v51 = vsel %vm5953_vm14, 0.0, %v6890_v38  ;;  %v5573_v33 = vmax.f32 %v5060_v50, %v5237_v43  ;;  %v5574_v61 = vmax.f32 %v5061_v8, %v5463_v55 }
 0x43b   :  { %v6082_v5 = vsel %vm5954_vm15, 0.0, %v6890_v38  ;;  %v6296_v4 = vsel %vm3365_vm2, %v6081_v51, 0.0  ;;  %v4727_v11 = vsel %vm4583_vm10, %v4725_v58, %v4726_v34  ;;  %v4951_v37 = vsel %vm4583_vm10, 0.0, %v4725_v58 }
 0x43c   :  { %v6297_v40 = vadd.f32 %v6296_v4, %v6295_v47  ;;  %v5827_v27 = vmax.f32 %v5699_v13, %v5573_v33  ;;  %v5828_v19 = vmax.f32 %v5700_v20, %v5574_v61  ;;  %v6298_v0 = vsel %vm3365_vm2, %v6082_v5, 0.0  ;;  %v8779_v13 = vpop.f32.mrf.mxu1 }
 0x43d   :  { %v5062_v23 = vmax.f32 %v8624_v48, %v4951_v37  ;;  %v5063_v32 = vmax.f32 %v8615_v26, %v4727_v11  ;;  %v5238_v59 = vrot.slane %v8624_v48, 1  ;;  %v5701_v12 = vmax.f32 %v5573_v33, %v5571_v29 }
 0x43e   :  { %vm5955_vm0 = vcmp.gt.f32.partialorder %v5827_v27, 0.5  ;;  %v6299_v30 = vadd.f32 %v6298_v0, %v6297_v40  ;;  %v5702_v54 = vmax.f32 %v5574_v61, %v5572_v44  ;;  %vm5956_vm1 = vcmp.gt.f32.partialorder %v5828_v19, 0.5  ;;  %v8792_v11 = vpop.f32.mrf.mxu1 }
 0x43f   :  { %v6083_v15 = vsel %vm5955_vm0, 0.0, %v6890_v38  ;;  %v5240_v63 = vsel %vm5096_vm8, %v5238_v59, %v5239_v17  ;;  %v5576_v56 = vmax.f32 %v5063_v32, %v5464_v21  ;;  %v6084_v25 = vsel %vm5956_vm1, 0.0, %v6890_v38 }
 0x440   :  { %v6300_v55 = vsel %vm3365_vm2, %v6083_v15, 0.0  ;;  %v5575_v28 = vmax.f32 %v5062_v23, %v5240_v63  ;;  %v6302_v26 = vsel %vm3365_vm2, %v6084_v25, 0.0  ;;  %v4729_v48 = vrot.slane %v8636_v10, 7 }
 0x441   :  { %v6301_v24 = vadd.f32 %v6300_v55, %v6299_v30  ;;  %v5704_v7 = vmax.f32 %v5576_v56, %v5574_v61  ;;  %v5830_v31 = vmax.f32 %v5702_v54, %v5576_v56  ;;  %v5242_v52 = vrot.slane %v8636_v10, 1  ;;  %v8806_v55 = vpop.f32.mrf.mxu1 }
 0x442   :  { %v5703_v39 = vmax.f32 %v5575_v28, %v5573_v33  ;;  %v5829_v1 = vmax.f32 %v5701_v12, %v5575_v28  ;;  %v4728_v34 = vrot.slane %v8650_v57, 7  ;;  %v5241_v17 = vrot.slane %v8650_v57, 1 }
 0x443   :  { %v5832_v9 = vmax.f32 %v5704_v7, 0.0  ;;  %vm5958_vm3 = vcmp.gt.f32.partialorder %v5830_v31, 0.5  ;;  %v6303_v36 = vadd.f32 %v6302_v26, %v6301_v24  ;;  %v5465_v29 = vsel %vm5096_vm8, %v5242_v52, 0.0 }
 0x444   :  { %v5831_v44 = vmax.f32 %v5703_v39, 0.0  ;;  %vm5957_vm4 = vcmp.gt.f32.partialorder %v5829_v1, 0.5  ;;  %v6086_v35 = vsel %vm5958_vm3, 0.0, %v6890_v38  ;;  %v4730_v14 = vsel %vm4583_vm10, %v4728_v34, %v4729_v48 }
 0x445   :  { %vm5960_vm5 = vcmp.gt.f32.partialorder %v5832_v9, 0.5  ;;  %v6085_v16 = vsel %vm5957_vm4, 0.0, %v6890_v38  ;;  %v6306_v53 = vsel %vm3365_vm2, %v6086_v35, 0.0  ;;  %v4952_v22 = vsel %vm4583_vm10, 0.0, %v4728_v34 }
 0x446   :  { %vm5959_vm6 = vcmp.gt.f32.partialorder %v5831_v44, 0.5  ;;  %v6088_v20 = vsel %vm5960_vm5, 0.0, %v6890_v38  ;;  %v6304_v18 = vsel %vm3365_vm2, %v6085_v16, 0.0  ;;  %v5064_v2 = vmax.f32 %v8650_v57, %v4952_v22  ;;  %v8818_v44 = vpop.f32.mrf.mxu1 }
 0x447   :  { %v6087_v50 = vsel %vm5959_vm6, 0.0, %v6890_v38  ;;  %v6305_v8 = vadd.f32 %v6304_v18, %v6303_v36  ;;  %v6310_v43 = vsel %vm3365_vm2, %v6088_v20, 0.0  ;;  %v5065_v47 = vmax.f32 %v8636_v10, %v4730_v14 }
 0x448   :  { %v6308_v21 = vsel %vm3365_vm2, %v6087_v50, 0.0  ;;  %v5243_v58 = vsel %vm5096_vm8, %v5241_v17, %v5242_v52  ;;  %v4732_v51 = vrot.slane %v8662_v3, 7  ;;  %v5245_v33 = vrot.slane %v8662_v3, 1 }
 0x449   :  { %v6307_v61 = vadd.f32 %v6306_v53, %v6305_v8  ;;  %v5577_v5 = vmax.f32 %v5064_v2, %v5243_v58  ;;  %v5578_v4 = vmax.f32 %v5065_v47, %v5465_v29  ;;  %v4731_v57 = vrot.slane %v8679_v6, 7 }
 0x44a   :  { %v5466_v37 = vsel %vm5096_vm8, %v5245_v33, 0.0  ;;  %v5244_v40 = vrot.slane %v8679_v6, 1  ;;  %v4735_v10 = vrot.slane %v8698_v60, 7  ;;  %v5248_v27 = vrot.slane %v8698_v60, 1 }
 0x44b   :  { %v6309_v19 = vadd.f32 %v6308_v21, %v6307_v61  ;;  %v5705_v0 = vmax.f32 %v5577_v5, 0.0  ;;  %v5706_v23 = vmax.f32 %v5578_v4, 0.0  ;;  %v4733_v32 = vsel %vm4583_vm10, %v4731_v57, %v4732_v51  ;;  %v8836_v21 = vpop.f32.mrf.mxu1 }
 0x44c   :  { %v4953_v59 = vsel %vm4583_vm10, 0.0, %v4731_v57  ;;  %v5067_v12 = vmax.f32 %v8662_v3, %v4733_v32  ;;  %v5246_v30 = vsel %vm5096_vm8, %v5244_v40, %v5245_v33  ;;  %v5467_v54 = vsel %vm5096_vm8, %v5248_v27, 0.0 }
 0x44d   :  { %v6311_v15 = vadd.f32 %v6310_v43, %v6309_v19  ;;  %v5066_v63 = vmax.f32 %v8679_v6, %v4953_v59  ;;  %v4734_v56 = vrot.slane %v8712_v49, 7  ;;  %v5247_v25 = vrot.slane %v8712_v49, 1 }
 0x44e   :  { %v5580_v28 = vmax.f32 %v5067_v12, %v5466_v37  ;;  %v4738_v26 = vrot.slane %v8726_v45, 7  ;;  %v5251_v48 = vrot.slane %v8726_v45, 1  ;;  %v4737_v3 = vrot.slane %v8738_v41, 7 }
 0x44f   :  { %v5579_v24 = vmax.f32 %v5066_v63, %v5246_v30  ;;  %v4736_v7 = vsel %vm4583_vm10, %v4734_v56, %v4735_v10  ;;  %v4954_v31 = vsel %vm4583_vm10, 0.0, %v4734_v56  ;;  %v5249_v6 = vsel %vm5096_vm8, %v5247_v25, %v5248_v27 }
 0x450   :  { %v5708_v52 = vmax.f32 %v5580_v28, %v5578_v4  ;;  %v5834_v39 = vmax.f32 %v5706_v23, %v5580_v28  ;;  %v5068_v1 = vmax.f32 %v8712_v49, %v4954_v31  ;;  %v5069_v34 = vmax.f32 %v8698_v60, %v4736_v7 }
 0x451   :  { %v5707_v17 = vmax.f32 %v5579_v24, %v5577_v5  ;;  %v5833_v9 = vmax.f32 %v5705_v0, %v5579_v24  ;;  %v5468_v36 = vsel %vm5096_vm8, %v5251_v48, 0.0  ;;  %v4739_v29 = vsel %vm4583_vm10, %v4737_v3, %v4738_v26  ;;  %v8853_v0 = vpop.f32.mrf.mxu1 }
 0x452   :  { %vm5962_vm7 = vcmp.gt.f32.partialorder %v5834_v39, 0.5  ;;  %v8820_v35 = vmax.f32 %v5068_v1, %v5249_v6  ;;  %v8822_v14 = vmax.f32 %v5069_v34, %v5467_v54  ;;  %v4955_v16 = vsel %vm4583_vm10, 0.0, %v4737_v3 }
 0x453   :  { %vm5961_vm9 = vcmp.gt.f32.partialorder %v5833_v9, 0.5  ;;  %v6090_v49 = vsel %vm5962_vm7, 0.0, %v6890_v38  ;;  %v5070_v60 = vmax.f32 %v8738_v41, %v4955_v16  ;;  %v5071_v53 = vmax.f32 %v8726_v45, %v4739_v29 }
 0x454   :  { %v6089_v22 = vsel %vm5961_vm9, 0.0, %v6890_v38  ;;  %v5709_v20 = vmax.f32 %v8820_v35, %v5579_v24  ;;  %v5710_v18 = vmax.f32 %v8822_v14, %v5580_v28  ;;  %v5835_v2 = vmax.f32 %v5707_v17, %v8820_v35  ;;  %v8868_v24 = vpop.f32.mrf.mxu1 }
 0x455   :  { %v6312_v50 = vsel %vm3365_vm2, %v6089_v22, 0.0  ;;  %v5836_v8 = vmax.f32 %v5708_v52, %v8822_v14  ;;  %v6314_v43 = vsel %vm3365_vm2, %v6090_v49, 0.0  ;;  %v5250_v47 = vrot.slane %v8738_v41, 1 }
 0x456   :  { %v6313_v58 = vadd.f32 %v6312_v50, %v6311_v15  ;;  %vm5963_vm11 = vcmp.gt.f32.partialorder %v5835_v2, 0.5  ;;  %v8838_v45 = vmax.f32 %v5071_v53, %v5468_v36  ;;  %v4741_v51 = vrot.slane %v8749_v46, 7  ;;  %v8881_v49 = vpop.f32.mrf.mxu1 }
 0x457   :  { %vm5964_vm12 = vcmp.gt.f32.partialorder %v5836_v8, 0.5  ;;  %v6091_v33 = vsel %vm5963_vm11, 0.0, %v6890_v38  ;;  %v5252_v61 = vsel %vm5096_vm8, %v5250_v47, %v5251_v48  ;;  %v5254_v5 = vrot.slane %v8749_v46, 1 }
 0x458   :  { %v6092_v4 = vsel %vm5964_vm12, 0.0, %v6890_v38  ;;  %v6315_v57 = vadd.f32 %v6314_v43, %v6313_v58  ;;  %v6316_v41 = vsel %vm3365_vm2, %v6091_v33, 0.0  ;;  %v8846_v37 = vmax.f32 %v5070_v60, %v5252_v61  ;;  %v8896_v33 = vpop.f32.mrf.mxu1 }
 0x459   :  { %v5712_v40 = vmax.f32 %v8838_v45, %v8822_v14  ;;  %v5838_v10 = vmax.f32 %v5710_v18, %v8838_v45  ;;  %v6318_v27 = vsel %vm3365_vm2, %v6092_v4, 0.0  ;;  %v5469_v19 = vsel %vm5096_vm8, %v5254_v5, 0.0 }
 0x45a   :  { %v6317_v23 = vadd.f32 %v6316_v41, %v6315_v57  ;;  %v5711_v32 = vmax.f32 %v8846_v37, %v8820_v35  ;;  %v5837_v59 = vmax.f32 %v5709_v20, %v8846_v37  ;;  %v4740_v12 = vrot.slane %v8760_v62, 7 }
 0x45b   :  { %vm5966_vm13 = vcmp.gt.f32.partialorder %v5838_v10, 0.5  ;;  %v5253_v30 = vrot.slane %v8760_v62, 1  ;;  %v4744_v54 = vrot.slane %v8769_v42, 7  ;;  %v5257_v15 = vrot.slane %v8769_v42, 1 }
 0x45c   :  { %vm5965_vm14 = vcmp.gt.f32.partialorder %v5837_v59, 0.5  ;;  %v6094_v63 = vsel %vm5966_vm13, 0.0, %v6890_v38  ;;  %v6319_v56 = vadd.f32 %v6318_v27, %v6317_v23  ;;  %v4742_v25 = vsel %vm4583_vm10, %v4740_v12, %v4741_v51 }
 0x45d   :  { %v6093_v28 = vsel %vm5965_vm14, 0.0, %v6890_v38  ;;  %v4956_v26 = vsel %vm4583_vm10, 0.0, %v4740_v12  ;;  %v5073_v48 = vmax.f32 %v8749_v46, %v4742_v25  ;;  %v5255_v3 = vsel %vm5096_vm8, %v5253_v30, %v5254_v5  ;;  %v8907_v12 = vpop.f32.mrf.mxu1 }
 0x45e   :  { %v6320_v7 = vsel %vm3365_vm2, %v6093_v28, 0.0  ;;  %v5072_v31 = vmax.f32 %v8760_v62, %v4956_v26  ;;  %v6322_v6 = vsel %vm3365_vm2, %v6094_v63, 0.0  ;;  %v5470_v52 = vsel %vm5096_vm8, %v5257_v15, 0.0 }
 0x45f   :  { %v6321_v39 = vadd.f32 %v6320_v7, %v6319_v56  ;;  %v5586_v1 = vmax.f32 %v5073_v48, %v5469_v19  ;;  %v4743_v34 = vrot.slane %v8779_v13, 7  ;;  %v5256_v17 = vrot.slane %v8779_v13, 1 }
 0x460   :  { %v5585_v9 = vmax.f32 %v5072_v31, %v5255_v3  ;;  %v4747_v46 = vrot.slane %v8792_v11, 7  ;;  %v5260_v36 = vrot.slane %v8792_v11, 1  ;;  %v4746_v29 = vrot.slane %v8806_v55, 7 }
 0x461   :  { %v5714_v35 = vmax.f32 %v5586_v1, %v8838_v45  ;;  %v5840_v62 = vmax.f32 %v5712_v40, %v5586_v1  ;;  %v6323_v14 = vadd.f32 %v6322_v6, %v6321_v39  ;;  %v4745_v16 = vsel %vm4583_vm10, %v4743_v34, %v4744_v54  ;;  %v8920_v39 = vpop.f32.mrf.mxu1 }
 0x462   :  { %v5713_v60 = vmax.f32 %v5585_v9, %v8846_v37  ;;  %v5839_v53 = vmax.f32 %v5711_v32, %v5585_v9  ;;  %v4957_v22 = vsel %vm4583_vm10, 0.0, %v4743_v34  ;;  %v5075_v20 = vmax.f32 %v8769_v42, %v4745_v16 }
 0x463   :  { %vm5968_vm15 = vcmp.gt.f32.partialorder %v5840_v62, 0.5  ;;  %v5074_v18 = vmax.f32 %v8779_v13, %v4957_v22  ;;  %v5258_v2 = vsel %vm5096_vm8, %v5256_v17, %v5257_v15  ;;  %v5471_v50 = vsel %vm5096_vm8, %v5260_v36, 0.0 }
 0x464   :  { %vm5967_vm0 = vcmp.gt.f32.partialorder %v5839_v53, 0.5  ;;  %v6096_v8 = vsel %vm5968_vm15, 0.0, %v6890_v38  ;;  %v8890_v43 = vmax.f32 %v5075_v20, %v5470_v52  ;;  %v4748_v47 = vsel %vm4583_vm10, %v4746_v29, %v4747_v46  ;;  %v8933_v53 = vpop.f32.mrf.mxu1 }
 0x465   :  { %v6095_v58 = vsel %vm5967_vm0, 0.0, %v6890_v38  ;;  %v5587_v45 = vmax.f32 %v5074_v18, %v5258_v2  ;;  %v6326_v51 = vsel %vm3365_vm2, %v6096_v8, 0.0  ;;  %v4958_v42 = vsel %vm4583_vm10, 0.0, %v4746_v29 }
 0x466   :  { %v6324_v13 = vsel %vm3365_vm2, %v6095_v58, 0.0  ;;  %v5716_v61 = vmax.f32 %v8890_v43, %v5586_v1  ;;  %v5842_v5 = vmax.f32 %v5714_v35, %v8890_v43  ;;  %v5076_v4 = vmax.f32 %v8806_v55, %v4958_v42 }
 0x467   :  { %v6325_v57 = vadd.f32 %v6324_v13, %v6323_v14  ;;  %v5715_v41 = vmax.f32 %v5587_v45, %v5585_v9  ;;  %v5841_v37 = vmax.f32 %v5713_v60, %v5587_v45  ;;  %v5077_v40 = vmax.f32 %v8792_v11, %v4748_v47 }
 0x468   :  { %vm5970_vm1 = vcmp.gt.f32.partialorder %v5842_v5, 0.5  ;;  %v5259_v10 = vrot.slane %v8806_v55, 1  ;;  %v4750_v27 = vrot.slane %v8818_v44, 7  ;;  %v5263_v19 = vrot.slane %v8818_v44, 1  ;;  %v8941_v5 = vpop.f32.mrf.mxu1 }
 0x469   :  { %vm5969_vm3 = vcmp.gt.f32.partialorder %v5841_v37, 0.5  ;;  %v6098_v23 = vsel %vm5970_vm1, 0.0, %v6890_v38  ;;  %v6327_v32 = vadd.f32 %v6326_v51, %v6325_v57  ;;  %v5590_v59 = vmax.f32 %v5077_v40, %v5471_v50 }
 0x46a   :  { %v6097_v30 = vsel %vm5969_vm3, 0.0, %v6890_v38  ;;  %v5261_v54 = vsel %vm5096_vm8, %v5259_v10, %v5260_v36  ;;  %v6330_v11 = vsel %vm3365_vm2, %v6098_v23, 0.0  ;;  %v5472_v15 = vsel %vm5096_vm8, %v5263_v19, 0.0 }
 0x46b   :  { %v6328_v55 = vsel %vm3365_vm2, %v6097_v30, 0.0  ;;  %v5589_v63 = vmax.f32 %v5076_v4, %v5261_v54  ;;  %v5844_v56 = vmax.f32 %v5716_v61, %v5590_v59  ;;  %v4749_v25 = vrot.slane %v8836_v21, 7  ;;  %v8953_v54 = vpop.f32.mrf.mxu1 }
 0x46c   :  { %v6329_v28 = vadd.f32 %v6328_v55, %v6327_v32  ;;  %v5262_v26 = vrot.slane %v8836_v21, 1  ;;  %v5718_v48 = vmax.f32 %v5590_v59, %v8890_v43  ;;  %v4753_v3 = vrot.slane %v8853_v0, 7 }
 0x46d   :  { %v5843_v7 = vmax.f32 %v5715_v41, %v5589_v63  ;;  %v4751_v31 = vsel %vm4583_vm10, %v4749_v25, %v4750_v27  ;;  %v4959_v6 = vsel %vm4583_vm10, 0.0, %v4749_v25  ;;  %v5717_v52 = vmax.f32 %v5589_v63, %v5587_v45 }
 0x46e   :  { %v6331_v1 = vadd.f32 %v6330_v11, %v6329_v28  ;;  %v5078_v34 = vmax.f32 %v8836_v21, %v4959_v6  ;;  %v5079_v17 = vmax.f32 %v8818_v44, %v4751_v31  ;;  %v5264_v9 = vsel %vm5096_vm8, %v5262_v26, %v5263_v19 }
 0x46f   :  { %vm5971_vm4 = vcmp.gt.f32.partialorder %v5843_v7, 0.5  ;;  %vm5972_vm5 = vcmp.gt.f32.partialorder %v5844_v56, 0.5  ;;  %v5266_v46 = vrot.slane %v8853_v0, 1  ;;  %v4752_v36 = vrot.slane %v8868_v24, 7 }
 0x470   :  { %v6099_v29 = vsel %vm5971_vm4, 0.0, %v6890_v38  ;;  %v5591_v35 = vmax.f32 %v5078_v34, %v5264_v9  ;;  %v5592_v62 = vmax.f32 %v5079_v17, %v5472_v15  ;;  %v6100_v14 = vsel %vm5972_vm5, 0.0, %v6890_v38  ;;  %v8967_v17 = vpop.f32.mrf.mxu1 }
 0x471   :  { %v6332_v16 = vsel %vm3365_vm2, %v6099_v29, 0.0  ;;  %v6334_v21 = vsel %vm3365_vm2, %v6100_v14, 0.0  ;;  %v5473_v44 = vsel %vm5096_vm8, %v5266_v46, 0.0  ;;  %v4754_v60 = vsel %vm4583_vm10, %v4752_v36, %v4753_v3 }
 0x472   :  { %v6333_v22 = vadd.f32 %v6332_v16, %v6331_v1  ;;  %v5719_v20 = vmax.f32 %v5591_v35, %v5589_v63  ;;  %v5720_v18 = vmax.f32 %v5592_v62, %v5590_v59  ;;  %v5845_v2 = vmax.f32 %v5717_v52, %v5591_v35 }
 0x473   :  { %v5846_v50 = vmax.f32 %v5718_v48, %v5592_v62  ;;  %v4960_v8 = vsel %vm4583_vm10, 0.0, %v4752_v36  ;;  %v5081_v43 = vmax.f32 %v8853_v0, %v4754_v60  ;;  %v5265_v47 = vrot.slane %v8868_v24, 1 }
 0x474   :  { %v5847_v58 = vmax.f32 %v5719_v20, 0.0  ;;  %v5848_v45 = vmax.f32 %v5720_v18, 0.0  ;;  %vm5973_vm6 = vcmp.gt.f32.partialorder %v5845_v2, 0.5  ;;  %v6335_v51 = vadd.f32 %v6334_v21, %v6333_v22  ;;  %v8979_v2 = vpop.f32.mrf.mxu1 }
 0x475   :  { %vm5974_vm7 = vcmp.gt.f32.partialorder %v5846_v50, 0.5  ;;  %v6101_v42 = vsel %vm5973_vm6, 0.0, %v6890_v38  ;;  %v5080_v13 = vmax.f32 %v8868_v24, %v4960_v8  ;;  %v5267_v61 = vsel %vm5096_vm8, %v5265_v47, %v5266_v46 }
 0x476   :  { %vm5975_vm9 = vcmp.gt.f32.partialorder %v5847_v58, 0.5  ;;  %vm5976_vm11 = vcmp.gt.f32.partialorder %v5848_v45, 0.5  ;;  %v6102_v4 = vsel %vm5974_vm7, 0.0, %v6890_v38  ;;  %v6336_v0 = vsel %vm3365_vm2, %v6101_v42, 0.0 }
 0x477   :  { %v6103_v57 = vsel %vm5975_vm9, 0.0, %v6890_v38  ;;  %v6104_v41 = vsel %vm5976_vm11, 0.0, %v6890_v38  ;;  %v6337_v37 = vadd.f32 %v6336_v0, %v6335_v51  ;;  %v6338_v40 = vsel %vm3365_vm2, %v6102_v4, 0.0  ;;  %v8988_v0 = vpop.f32.mrf.mxu1 }
 0x478   :  { %v6340_v10 = vsel %vm3365_vm2, %v6103_v57, 0.0  ;;  %v6342_v24 = vsel %vm3365_vm2, %v6104_v41, 0.0  ;;  %v5593_v27 = vmax.f32 %v5080_v13, %v5267_v61  ;;  %v5594_v19 = vmax.f32 %v5081_v43, %v5473_v44 }
 0x479   :  { %v6339_v23 = vadd.f32 %v6338_v40, %v6337_v37  ;;  %v4756_v32 = vrot.slane %v8881_v49, 7  ;;  %v5269_v59 = vrot.slane %v8881_v49, 1  ;;  %v4755_v30 = vrot.slane %v8896_v33, 7 }
 0x47a   :  { %v5721_v11 = vmax.f32 %v5593_v27, 0.0  ;;  %v5722_v15 = vmax.f32 %v5594_v19, 0.0  ;;  %v5268_v55 = vrot.slane %v8896_v33, 1  ;;  %v4759_v63 = vrot.slane %v8907_v12, 7 }
 0x47b   :  { %v6341_v56 = vadd.f32 %v6340_v10, %v6339_v23  ;;  %v5474_v25 = vsel %vm5096_vm8, %v5269_v59, 0.0  ;;  %v4757_v28 = vsel %vm4583_vm10, %v4755_v30, %v4756_v32  ;;  %v4961_v26 = vsel %vm4583_vm10, 0.0, %v4755_v30 }
 0x47c   :  { %v5082_v48 = vmax.f32 %v8896_v33, %v4961_v26  ;;  %v5083_v3 = vmax.f32 %v8881_v49, %v4757_v28  ;;  %v5270_v7 = vsel %vm5096_vm8, %v5268_v55, %v5269_v59  ;;  %v5272_v31 = vrot.slane %v8907_v12, 1 }
 0x47d   :  { %v6343_v6 = vadd.f32 %v6342_v24, %v6341_v56  ;;  %v4758_v52 = vrot.slane %v8920_v39, 7  ;;  %v5271_v1 = vrot.slane %v8920_v39, 1  ;;  %v4762_v34 = vrot.slane %v8933_v53, 7 }
 0x47e   :  { %v5595_v9 = vmax.f32 %v5082_v48, %v5270_v7  ;;  %v5596_v46 = vmax.f32 %v5083_v3, %v5474_v25  ;;  %v5475_v36 = vsel %vm5096_vm8, %v5272_v31, 0.0  ;;  %v5275_v33 = vrot.slane %v8933_v53, 1 }
 0x47f   :  { %v4760_v49 = vsel %vm4583_vm10, %v4758_v52, %v4759_v63  ;;  %v4962_v29 = vsel %vm4583_vm10, 0.0, %v4758_v52  ;;  %v5273_v35 = vsel %vm5096_vm8, %v5271_v1, %v5272_v31  ;;  %v4761_v62 = vrot.slane %v8941_v5, 7 }
 0x480   :  { %v5723_v14 = vmax.f32 %v5595_v9, %v5593_v27  ;;  %v5724_v16 = vmax.f32 %v5596_v46, %v5594_v19  ;;  %v5849_v21 = vmax.f32 %v5721_v11, %v5595_v9  ;;  %v5850_v44 = vmax.f32 %v5722_v15, %v5596_v46  ;;  %v9004_v11 = vpop.f32.mrf.mxu1 }
 0x481   :  { %v5084_v60 = vmax.f32 %v8920_v39, %v4962_v29  ;;  %v5085_v22 = vmax.f32 %v8907_v12, %v4760_v49  ;;  %v5476_v20 = vsel %vm5096_vm8, %v5275_v33, 0.0  ;;  %v4763_v18 = vsel %vm4583_vm10, %v4761_v62, %v4762_v34 }
 0x482   :  { %vm5977_vm12 = vcmp.gt.f32.partialorder %v5849_v21, 0.5  ;;  %vm5978_vm13 = vcmp.gt.f32.partialorder %v5850_v44, 0.5  ;;  %v4963_v50 = vsel %vm4583_vm10, 0.0, %v4761_v62  ;;  %v5087_v8 = vmax.f32 %v8933_v53, %v4763_v18  ;;  %v4436_v34 = vpop.f32.mrf.mxu1 }
 0x483   :  { %v6105_v43 = vsel %vm5977_vm12, 0.0, %v6890_v38  ;;  %v6106_v47 = vsel %vm5978_vm13, 0.0, %v6890_v38  ;;  %v5597_v58 = vmax.f32 %v5084_v60, %v5273_v35  ;;  %v5598_v39 = vmax.f32 %v5085_v22, %v5475_v36 }
 0x484   :  { %v6344_v12 = vsel %vm3365_vm2, %v6105_v43, 0.0  ;;  %v5086_v45 = vmax.f32 %v8941_v5, %v4963_v50  ;;  %v5274_v51 = vrot.slane %v8941_v5, 1  ;;  %v6346_v53 = vsel %vm3365_vm2, %v6106_v47, 0.0  ;;  %v6858_v22 = vpop.f32.mrf.mxu1 }
 0x485   :  { %v6345_v42 = vadd.f32 %v6344_v12, %v6343_v6  ;;  %v5725_v13 = vmax.f32 %v5597_v58, %v5595_v9  ;;  %v5726_v61 = vmax.f32 %v5598_v39, %v5596_v46  ;;  %v5851_v4 = vmax.f32 %v5723_v14, %v5597_v58 }
 0x486   :  { %v5852_v57 = vmax.f32 %v5724_v16, %v5598_v39  ;;  %v5276_v41 = vsel %vm5096_vm8, %v5274_v51, %v5275_v33  ;;  %v8992_v37 = vmax.f32 %v5087_v8, %v5476_v20  ;;  %v5278_v24 = vrot.slane %v8953_v54, 1 }
 0x487   :  { %vm5979_vm14 = vcmp.gt.f32.partialorder %v5851_v4, 0.5  ;;  %v6347_v40 = vadd.f32 %v6346_v53, %v6345_v42  ;;  %v8994_v10 = vmax.f32 %v5086_v45, %v5276_v41  ;;  %v4765_v19 = vrot.slane %v8953_v54, 7  ;;  %v4446_v4 = vpop.f32.mrf.mxu1 }
 0x488   :  { %vm5980_vm15 = vcmp.gt.f32.partialorder %v5852_v57, 0.5  ;;  %v6107_v5 = vsel %vm5979_vm14, 0.0, %v6890_v38  ;;  %v5854_v27 = vmax.f32 %v5726_v61, %v8992_v37  ;;  %v5728_v59 = vmax.f32 %v8992_v37, %v5598_v39 }
 0x489   :  { %v6108_v23 = vsel %vm5980_vm15, 0.0, %v6890_v38  ;;  %v6348_v32 = vsel %vm3365_vm2, %v6107_v5, 0.0  ;;  %v5853_v30 = vmax.f32 %v5725_v13, %v8994_v10  ;;  %v5727_v55 = vmax.f32 %v8994_v10, %v5597_v58 }
 0x48a   :  { %v6349_v15 = vadd.f32 %v6348_v32, %v6347_v40  ;;  %vm5982_vm0 = vcmp.gt.f32.partialorder %v5854_v27, 0.5  ;;  %v6350_v63 = vsel %vm3365_vm2, %v6108_v23, 0.0  ;;  %v5477_v56 = vsel %vm5096_vm8, %v5278_v24, 0.0 }
 0x48b   :  { %vm5981_vm1 = vcmp.gt.f32.partialorder %v5853_v30, 0.5  ;;  %v4764_v25 = vrot.slane %v8967_v17, 7  ;;  %v5277_v28 = vrot.slane %v8967_v17, 1  ;;  %v6110_v48 = vsel %vm5982_vm0, 0.0, %v6890_v38 }
 0x48c   :  { %v6109_v26 = vsel %vm5981_vm1, 0.0, %v6890_v38  ;;  %v6351_v3 = vadd.f32 %v6350_v63, %v6349_v15  ;;  %v4768_v7 = vrot.slane %v8979_v2, 7  ;;  %v5281_v33 = vrot.slane %v8979_v2, 1 }
 0x48d   :  { %v6352_v31 = vsel %vm3365_vm2, %v6109_v26, 0.0  ;;  %v4766_v6 = vsel %vm4583_vm10, %v4764_v25, %v4765_v19  ;;  %v4964_v52 = vsel %vm4583_vm10, 0.0, %v4764_v25  ;;  %v5279_v1 = vsel %vm5096_vm8, %v5277_v28, %v5278_v24 }
 0x48e   :  { %v6353_v9 = vadd.f32 %v6352_v31, %v6351_v3  ;;  %v5088_v46 = vmax.f32 %v8967_v17, %v4964_v52  ;;  %v5089_v36 = vmax.f32 %v8953_v54, %v4766_v6  ;;  %v4767_v49 = vrot.slane %v8988_v0, 7 }
 0x48f   :  { %v5280_v29 = vrot.slane %v8988_v0, 1  ;;  %v5284_v35 = vrot.slane %v9004_v11, 1  ;;  %v6354_v16 = vsel %vm3365_vm2, %v6110_v48, 0.0  ;;  %v4771_v21 = vrot.slane %v9004_v11, 7 }
 0x490   :  { %v5601_v62 = vmax.f32 %v5088_v46, %v5279_v1  ;;  %v5602_v14 = vmax.f32 %v5089_v36, %v5477_v56  ;;  %v6355_v44 = vadd.f32 %v6354_v16, %v6353_v9  ;;  %v5478_v60 = vsel %vm5096_vm8, %v5281_v33, 0.0 }
 0x491   :  { %v4769_v17 = vsel %vm4583_vm10, %v4767_v49, %v4768_v7  ;;  %v4965_v54 = vsel %vm4583_vm10, 0.0, %v4767_v49  ;;  %v5282_v50 = vsel %vm5096_vm8, %v5280_v29, %v5281_v33  ;;  %v5479_v8 = vsel %vm5096_vm8, %v5284_v35, 0.0 }
 0x492   :  { %v5855_v20 = vmax.f32 %v5727_v55, %v5601_v62  ;;  %v5856_v18 = vmax.f32 %v5728_v59, %v5602_v14  ;;  %v5729_v43 = vmax.f32 %v5601_v62, %v8994_v10  ;;  %v5730_v47 = vmax.f32 %v5602_v14, %v8992_v37 }
 0x493   :  { %v5090_v58 = vmax.f32 %v8988_v0, %v4965_v54  ;;  %v4770_v39 = vrot.slane %v4436_v34, 7  ;;  %v5091_v12 = vmax.f32 %v8979_v2, %v4769_v17  ;;  %v5283_v45 = vrot.slane %v4436_v34, 1 }
 0x494   :  { %vm5983_vm3 = vcmp.gt.f32.partialorder %v5855_v20, 0.5  ;;  %vm5984_vm4 = vcmp.gt.f32.partialorder %v5856_v18, 0.5  ;;  %v4774_v13 = vrot.slane %v6858_v22, 7  ;;  %v5287_v61 = vrot.slane %v6858_v22, 1 }
 0x495   :  { %v6111_v51 = vsel %vm5983_vm3, 0.0, %v6890_v38  ;;  %v5603_v42 = vmax.f32 %v5090_v58, %v5282_v50  ;;  %v6112_v57 = vsel %vm5984_vm4, 0.0, %v6890_v38  ;;  %v4772_v41 = vsel %vm4583_vm10, %v4770_v39, %v4771_v21 }
 0x496   :  { %v6356_v53 = vsel %vm3365_vm2, %v6111_v51, 0.0  ;;  %v4966_v0 = vsel %vm4583_vm10, 0.0, %v4770_v39  ;;  %v5604_v2 = vmax.f32 %v5091_v12, %v5478_v60  ;;  %v5093_v5 = vmax.f32 %v9004_v11, %v4772_v41 }
 0x497   :  { %v6357_v37 = vadd.f32 %v6356_v53, %v6355_v44  ;;  %v5731_v40 = vmax.f32 %v5603_v42, %v5601_v62  ;;  %v5857_v10 = vmax.f32 %v5729_v43, %v5603_v42  ;;  %v5092_v24 = vmax.f32 %v4436_v34, %v4966_v0 }
 0x498   :  { %v5285_v27 = vsel %vm5096_vm8, %v5283_v45, %v5284_v35  ;;  %v4773_v19 = vrot.slane %v4446_v4, 7  ;;  %v6358_v23 = vsel %vm3365_vm2, %v6112_v57, 0.0  ;;  %v5286_v59 = vrot.slane %v4446_v4, 1 }
 0x499   :  { %vm5985_vm5 = vcmp.gt.f32.partialorder %v5857_v10, 0.5  ;;  %v5605_v32 = vmax.f32 %v5092_v24, %v5285_v27  ;;  %v5480_v30 = vsel %vm5096_vm8, %v5287_v61, 0.0  ;;  %v5606_v63 = vmax.f32 %v5093_v5, %v5479_v8 }
 0x49a   :  { %v4775_v15 = vsel %vm4583_vm10, %v4773_v19, %v4774_v13  ;;  %v4967_v55 = vsel %vm4583_vm10, 0.0, %v4773_v19  ;;  %v6359_v56 = vadd.f32 %v6358_v23, %v6357_v37  ;;  %v6113_v11 = vsel %vm5985_vm5, 0.0, %v6890_v38 }
 0x49b   :  { %v5859_v25 = vmax.f32 %v5731_v40, %v5605_v32  ;;  %v5094_v28 = vmax.f32 %v4446_v4, %v4967_v55  ;;  %v5095_v26 = vmax.f32 %v6858_v22, %v4775_v15  ;;  %v5288_v48 = vsel %vm5096_vm8, %v5286_v59, %v5287_v61 }
 0x49c   :  { %v5733_v3 = vmax.f32 %v5605_v32, %v5603_v42  ;;  %v5732_v7 = vmax.f32 %v5604_v2, %v5602_v14  ;;  %v5734_v52 = vmax.f32 %v5606_v63, %v5604_v2  ;;  %v5858_v1 = vmax.f32 %v5730_v47, %v5604_v2 }
 0x49d   :  { %v5607_v31 = vmax.f32 %v5094_v28, %v5288_v48  ;;  %v5608_v6 = vmax.f32 %v5095_v26, %v5480_v30  ;;  %v6360_v9 = vsel %vm3365_vm2, %v6113_v11, 0.0  ;;  %vm5987_vm6 = vcmp.gt.f32.partialorder %v5859_v25, 0.5 }
 0x49e   :  { %v5860_v34 = vmax.f32 %v5732_v7, %v5606_v63  ;;  %v6361_v33 = vadd.f32 %v6360_v9, %v6359_v56  ;;  %vm5986_vm10 = vcmp.gt.f32.partialorder %v5858_v1, 0.5  ;;  %v6115_v35 = vsel %vm5987_vm6, 0.0, %v6890_v38 }
 0x49f   :  { %v5735_v46 = vmax.f32 %v5607_v31, %v5605_v32  ;;  %v5861_v36 = vmax.f32 %v5733_v3, %v5607_v31  ;;  %v5736_v49 = vmax.f32 %v5608_v6, %v5606_v63  ;;  %v5862_v29 = vmax.f32 %v5734_v52, %v5608_v6 }
 0x4a0   :  { %vm5988_vm7 = vcmp.gt.f32.partialorder %v5860_v34, 0.5  ;;  %v6114_v62 = vsel %vm5986_vm10, 0.0, %v6890_v38  ;;  %v6364_v17 = vsel %vm3365_vm2, %v6115_v35, 0.0 }
 0x4a1   :  { %vm5989_vm8 = vcmp.gt.f32.partialorder %v5861_v36, 0.5  ;;  %v5863_v14 = vmax.f32 %v5735_v46, 0.0  ;;  %v6362_v16 = vsel %vm3365_vm2, %v6114_v62, 0.0  ;;  %v6116_v21 = vsel %vm5988_vm7, 0.0, %v6890_v38 }
 0x4a2   :  { %v6363_v44 = vadd.f32 %v6362_v16, %v6361_v33  ;;  %v5864_v60 = vmax.f32 %v5736_v49, 0.0  ;;  %vm5990_vm9 = vcmp.gt.f32.partialorder %v5862_v29, 0.5  ;;  %v6117_v54 = vsel %vm5989_vm8, 0.0, %v6890_v38 }
 0x4a3   :  { %vm5991_vm11 = vcmp.gt.f32.partialorder %v5863_v14, 0.5  ;;  %v6366_v20 = vsel %vm3365_vm2, %v6116_v21, 0.0  ;;  %v6118_v18 = vsel %vm5990_vm9, 0.0, %v6890_v38  ;;  %v6368_v8 = vsel %vm3365_vm2, %v6117_v54, 0.0 }
 0x4a4   :  { %v6365_v22 = vadd.f32 %v6364_v17, %v6363_v44  ;;  %vm5992_vm12 = vcmp.gt.f32.partialorder %v5864_v60, 0.5  ;;  %v6119_v43 = vsel %vm5991_vm11, 0.0, %v6890_v38  ;;  %v6370_v58 = vsel %vm3365_vm2, %v6118_v18, 0.0 }
 0x4a5   :  { %v6120_v39 = vsel %vm5992_vm12, 0.0, %v6890_v38  ;;  %v6372_v45 = vsel %vm3365_vm2, %v6119_v43, 0.0 }
 0x4a6   :  { %v6367_v50 = vadd.f32 %v6366_v20, %v6365_v22  ;;  %v6374_v42 = vsel %vm3365_vm2, %v6120_v39, 0.0 }
 0x4a8   :  { %v6369_v47 = vadd.f32 %v6368_v8, %v6367_v50 }
 0x4aa   :  { %v6371_v12 = vadd.f32 %v6370_v58, %v6369_v47 }
 0x4ac   :  { %v6373_v51 = vadd.f32 %v6372_v45, %v6371_v12 }
 0x4ae   :  { %v6375_v13 = vadd.f32 %v6374_v42, %v6373_v51 }
 0x4b0   :  { %6376 = vadd.xlane.f32.xlu0 %v6375_v13 }
 0x539   :  { %v6377_v61 = vpop.xlane.xlu0 %6376 }
 0x53a   :  { %v6378_v4 = vrot.slane %v6377_v61, 4 }
 0x53c   :  { %v6379_v57 = vadd.f32 %v6378_v4, %v6377_v61 }
 0x53e   :  { %v6380_v53 = vrot.slane %v6379_v57, 2 }
 0x540   :  { %v6381_v41 = vadd.f32 %v6380_v53, %v6379_v57 }
 0x542   :  { %v6382_v0 = vrot.slane %v6381_v41, 1 }
 0x544   :  { %v6383_v37 = vadd.f32 %v6382_v0, %v6381_v41 }
 0x546   :  { %6863 = vpush %v6383_v37 }
 0x577   :  { %s6864_s10 = spop %6863 }
 0x578   :  { %v6385_v38 = vstv %s6864_s10 }
 0x579   :  { %6386 = vst [vmem:[#allocation4] sm:$0x1] %v6385_v38 }
 0x57a   :  { %6879 = shalt.err (!%p6876_p4)
}
 0x57b   :  { %6396 = dma.vmem_to_hbm [thread:$0]  %s6394_s9, 16, %s9067_s1, [#allocation5]  }
 0x57c   :  { %6888 = dma.done.wait [#allocation5], 16  }
 0x57d   :  { %6889 = vsyncadd [#allocation5], 4294967280 }
 0x57e   :  { %6400 = vsyncpa [#allocation5], 1 }

</bundles_post_ra>
